<compile_context>
chip_gen: v6e
topology: v6e:2x2x1
jax: 0.10.0
libtpu: 0.0.40
codegen_flags: <defaults>
</compile_context>

<pallas_src>
import math
from functools import partial

import jax
import jax.numpy as jnp
from jax.experimental import pallas as pl
from jax.experimental.pallas import tpu as pltpu


# ----------------------------------------------------------------------------
# helpers
# ----------------------------------------------------------------------------
def _erf_approx(x):
    # Abramowitz & Stegun 7.1.26 polynomial erf, |abs err| < 1.5e-7 (VPU-only ops).
    p = 0.3275911
    a1, a2, a3, a4, a5 = (0.254829592, -0.284496736, 1.421413741,
                          -1.453152027, 1.061405429)
    ax = jnp.abs(x)
    t = 1.0 / (1.0 + p * ax)
    poly = ((((a5 * t + a4) * t + a3) * t + a2) * t + a1) * t
    y = 1.0 - poly * jnp.exp(-ax * ax)
    return jnp.sign(x) * y


def _gelu_exact(x):
    # torch.nn.functional.gelu default (erf based), as used by diffusers GEGLU.
    return 0.5 * x * (1.0 + _erf_approx(x * (1.0 / math.sqrt(2.0))))


def make_positional_encoding(d_model, max_len=24):
    position = jnp.arange(max_len, dtype=jnp.float32)[:, None]
    div_term = jnp.exp(jnp.arange(0, d_model, 2, dtype=jnp.float32)
                       * (-math.log(10000.0) / d_model))
    pe = jnp.zeros((max_len, d_model), dtype=jnp.float32)
    pe = pe.at[:, 0::2].set(jnp.sin(position * div_term))
    pe = pe.at[:, 1::2].set(jnp.cos(position * div_term))
    return pe


def _largest_divisor_leq(n, cap, prefer_multiple_of=1):
    """Largest divisor of n that is <= cap (preferring multiples of
    `prefer_multiple_of`). Returns n itself if n <= cap."""
    if n <= cap:
        return n
    fallback = 1
    for t in range(cap, 0, -1):
        if n % t == 0:
            if t % prefer_multiple_of == 0:
                return t
            if fallback == 1:
                fallback = t
    return fallback


# ----------------------------------------------------------------------------
# fused attention kernel: LN + PE + attention + out-proj + residual
# ----------------------------------------------------------------------------
def _fused_attn_kernel(x_ref, pe_ref, g_ref, b_ref, wq_ref, wk_ref, wv_ref,
                       wo_ref, bo_ref, o_ref, acc_ref, *, heads, head_dim):
    f32 = jnp.float32
    bf16 = jnp.bfloat16
    x = x_ref[...].astype(f32)                          # (S, F, C) residual input
    S, F, C = x.shape
    scale = 1.0 / math.sqrt(head_dim)

    # LayerNorm over channels (float32 statistics).
    mean = jnp.mean(x, axis=-1, keepdims=True)
    xc = x - mean
    var = jnp.mean(xc * xc, axis=-1, keepdims=True)
    xn = xc * jax.lax.rsqrt(var + 1e-5) * g_ref[...] + b_ref[...]

    # Temporal sinusoidal positional encoding, broadcast over the sequence batch.
    xn = xn + pe_ref[...][None, :, :]

    # QKV projections: one (S*F, C) x (C, C) bf16 MXU matmul each, f32 accumulation.
    xf = xn.reshape(S * F, C).astype(bf16)
    q = jnp.dot(xf, wq_ref[...], preferred_element_type=f32).reshape(S, F, C)
    k = jnp.dot(xf, wk_ref[...], preferred_element_type=f32).reshape(S, F, C)
    v = jnp.dot(xf, wv_ref[...], preferred_element_type=f32).reshape(S, F, C)

    # Per-head attention, batched over all S sequences of the block.
    # Head outputs land directly in the f32 VMEM scratch (no concatenate).
    for h in range(heads):                              # static loop over heads
        sl = slice(h * head_dim, (h + 1) * head_dim)
        qh, kh, vh = q[:, :, sl], k[:, :, sl], v[:, :, sl]
        s = jnp.einsum("sfe,sge->sfg", qh, kh,
                       preferred_element_type=f32) * scale
        s = s - jnp.max(s, axis=-1, keepdims=True)
        p = jnp.exp(s)                                   # f32 softmax numerics
        p = p * pl.reciprocal(jnp.sum(p, axis=-1, keepdims=True), approx=True)
        oh = jnp.einsum("sfg,sge->sfe", p, vh, preferred_element_type=f32)
        acc_ref[:, :, sl] = oh

    # Output projection + bias + residual add, stored in one shot.
    of = acc_ref[...].reshape(S * F, C).astype(bf16)
    out = jnp.dot(of, wo_ref[...], preferred_element_type=f32) + bo_ref[...]
    o_ref[...] = (out.reshape(S, F, C) + x).astype(o_ref.dtype)


def fused_temporal_attention(x, pe, ln_g, ln_b, wq, wk, wv, wo, bo,
                             heads, head_dim, seq_tile_cap=64):
    """x: (S, F, C) in "(b d) f c" layout. Returns x + Attn(LayerNorm(x) + PE)."""
    S, F, C = x.shape
    s_tile = _largest_divisor_leq(S, seq_tile_cap)
    grid = (S // s_tile,)
    bf16 = jnp.bfloat16
    kernel = partial(_fused_attn_kernel, heads=heads, head_dim=head_dim)
    return pl.pallas_call(
        kernel,
        out_shape=jax.ShapeDtypeStruct((S, F, C), x.dtype),
        grid=grid,
        in_specs=[
            pl.BlockSpec((s_tile, F, C), lambda i: (i, 0, 0)),   # x (residual in)
            pl.BlockSpec((F, C), lambda i: (0, 0)),              # positional enc
            pl.BlockSpec((1, C), lambda i: (0, 0)),              # ln gamma
            pl.BlockSpec((1, C), lambda i: (0, 0)),              # ln beta
            pl.BlockSpec((C, C), lambda i: (0, 0)),              # wq (bf16)
            pl.BlockSpec((C, C), lambda i: (0, 0)),              # wk (bf16)
            pl.BlockSpec((C, C), lambda i: (0, 0)),              # wv (bf16)
            pl.BlockSpec((C, C), lambda i: (0, 0)),              # wo (bf16)
            pl.BlockSpec((1, C), lambda i: (0, 0)),              # bo
        ],
        out_specs=pl.BlockSpec((s_tile, F, C), lambda i: (i, 0, 0)),
        scratch_shapes=[pltpu.VMEM((s_tile, F, C), jnp.float32)],
        compiler_params=pltpu.CompilerParams(
            dimension_semantics=("parallel",)),
    )(x, pe, ln_g, ln_b,
      wq.astype(bf16), wk.astype(bf16), wv.astype(bf16), wo.astype(bf16), bo)


# ----------------------------------------------------------------------------
# fused feed-forward kernel: LN + GEGLU FF + residual
# ----------------------------------------------------------------------------
def _fused_ff_kernel(x_ref, g_ref, b_ref, w1_ref, b1_ref, w2_ref, b2_ref,
                     o_ref, *, inner):
    f32 = jnp.float32
    bf16 = jnp.bfloat16
    x = x_ref[...].astype(f32)                          # (R, C) residual input
    mean = jnp.mean(x, axis=-1, keepdims=True)
    xc = x - mean
    var = jnp.mean(xc * xc, axis=-1, keepdims=True)
    xn = xc * jax.lax.rsqrt(var + 1e-5) * g_ref[...] + b_ref[...]
    h = jnp.dot(xn.astype(bf16), w1_ref[...],
                preferred_element_type=f32) + b1_ref[...]
    hid = h[:, :inner]
    gate = h[:, inner:]
    act = (hid * _gelu_exact(gate)).astype(bf16)
    out = jnp.dot(act, w2_ref[...], preferred_element_type=f32) + b2_ref[...]
    o_ref[...] = (out + x).astype(o_ref.dtype)


def fused_geglu_ff(x, ln_g, ln_b, w1, b1, w2, b2, row_tile_cap=1024):
    """x: (N, C). Returns x + FF_geglu(LayerNorm(x)), row-tiled & pipelined."""
    N, C = x.shape
    inner = w2.shape[0]
    r_tile = _largest_divisor_leq(N, row_tile_cap, prefer_multiple_of=8)
    grid = (N // r_tile,)
    bf16 = jnp.bfloat16
    kernel = partial(_fused_ff_kernel, inner=inner)
    return pl.pallas_call(
        kernel,
        out_shape=jax.ShapeDtypeStruct((N, C), x.dtype),
        grid=grid,
        in_specs=[
            pl.BlockSpec((r_tile, C), lambda i: (i, 0)),         # x (residual in)
            pl.BlockSpec((1, C), lambda i: (0, 0)),              # ln gamma
            pl.BlockSpec((1, C), lambda i: (0, 0)),              # ln beta
            pl.BlockSpec(w1.shape, lambda i: (0, 0)),            # w1 (bf16)
            pl.BlockSpec(b1.shape, lambda i: (0, 0)),            # b1
            pl.BlockSpec(w2.shape, lambda i: (0, 0)),            # w2 (bf16)
            pl.BlockSpec(b2.shape, lambda i: (0, 0)),            # b2
        ],
        out_specs=pl.BlockSpec((r_tile, C), lambda i: (i, 0)),
        compiler_params=pltpu.CompilerParams(
            dimension_semantics=("parallel",)),
    )(x, ln_g, ln_b, w1.astype(bf16), b1, w2.astype(bf16), b2)


# ----------------------------------------------------------------------------
# TemporalTransformerBlock forward (Pallas-backed)
# ----------------------------------------------------------------------------
def temporal_transformer_block(x, params, video_length, heads, head_dim):
    bf_, d, c = x.shape
    f = video_length
    b = bf_ // f
    pe = params["pe"][:f]                                # (f, c)

    # Single layout change: "(b f) d c -> (b d) f c".  LayerNorm / FF / residual
    # adds are per-row over c, so they commute with this rearrange.
    xs = x.reshape(b, f, d, c).transpose(0, 2, 1, 3).reshape(b * d, f, c)

    for p in params["attn"]:
        xs = fused_temporal_attention(xs, pe, p["ln_g"], p["ln_b"],
                                      p["wq"], p["wk"], p["wv"],
                                      p["wo"], p["bo"], heads, head_dim)

    xs = fused_geglu_ff(xs.reshape(b * d * f, c),
                        params["ff_ln_g"], params["ff_ln_b"],
                        params["w1"], params["b1"],
                        params["w2"], params["b2"]).reshape(b * d, f, c)

    # "(b d) f c -> (b f) d c" back.
    return xs.reshape(b, d, f, c).transpose(0, 2, 1, 3).reshape(bf_, d, c)


# ----------------------------------------------------------------------------
# pure-JAX float32 reference (for correctness check only)
# ----------------------------------------------------------------------------
def reference_forward(x, params, video_length, heads, head_dim):
    bf_, d, c = x.shape
    f = video_length
    b = bf_ // f
    pe = params["pe"][:f]

    def ln(y, g, bt):
        mu = jnp.mean(y, -1, keepdims=True)
        var = jnp.mean((y - mu) ** 2, -1, keepdims=True)
        return (y - mu) / jnp.sqrt(var + 1e-5) * g + bt

    for p in params["attn"]:
        xn = ln(x, p["ln_g"], p["ln_b"])
        xr = xn.reshape(b, f, d, c).transpose(0, 2, 1, 3).reshape(b * d, f, c)
        xr = xr + pe
        q = xr @ p["wq"]
        k = xr @ p["wk"]
        v = xr @ p["wv"]

        def split(t):
            return t.reshape(b * d, f, heads, head_dim).transpose(0, 2, 1, 3)

        qh, kh, vh = split(q), split(k), split(v)
        s = jnp.einsum("bhqd,bhkd->bhqk", qh, kh) / math.sqrt(head_dim)
        pr = jax.nn.softmax(s, axis=-1)
        oh = jnp.einsum("bhqk,bhkd->bhqd", pr, vh)
        o = oh.transpose(0, 2, 1, 3).reshape(b * d, f, c)
        o = o @ p["wo"] + p["bo"]
        o = o.reshape(b, d, f, c).transpose(0, 2, 1, 3).reshape(bf_, d, c)
        x = o + x

    xn = ln(x, params["ff_ln_g"], params["ff_ln_b"])
    h = xn @ params["w1"] + params["b1"]
    inner = params["w2"].shape[0]
    hid, gate = h[..., :inner], h[..., inner:]
    g = 0.5 * gate * (1.0 + jax.lax.erf(gate / math.sqrt(2.0)))
    ff = (hid * g) @ params["w2"] + params["b2"]
    return ff + x


# ----------------------------------------------------------------------------
# deterministic parameter init (synthetic; no checkpoint)
# ----------------------------------------------------------------------------
def init_params(key, dim, max_len=24):
    keys = jax.random.split(key, 20)
    it = iter(keys)

    def nrm(shape, scale):
        return scale * jax.random.normal(next(it), shape, dtype=jnp.float32)

    params = {"attn": [], "pe": make_positional_encoding(dim, max_len)}
    for _ in range(2):  # attention_block_types = ('Temporal_Self', 'Temporal_Self')
        params["attn"].append({
            "ln_g": 1.0 + 0.1 * nrm((1, dim), 1.0),
            "ln_b": nrm((1, dim), 0.1),
            "wq": nrm((dim, dim), 1.0 / math.sqrt(dim)),   # attention_bias=False
            "wk": nrm((dim, dim), 1.0 / math.sqrt(dim)),
            "wv": nrm((dim, dim), 1.0 / math.sqrt(dim)),
            "wo": nrm((dim, dim), 1.0 / math.sqrt(dim)),   # to_out[0] has bias
            "bo": nrm((1, dim), 0.02),
        })
    inner = 4 * dim  # FeedForward mult=4, geglu -> proj to 2*inner
    params.update({
        "ff_ln_g": 1.0 + 0.1 * nrm((1, dim), 1.0),
        "ff_ln_b": nrm((1, dim), 0.1),
        "w1": nrm((dim, 2 * inner), 1.0 / math.sqrt(dim)),
        "b1": nrm((1, 2 * inner), 0.02),
        "w2": nrm((inner, dim), 1.0 / math.sqrt(inner)),
        "b2": nrm((1, dim), 0.02),
    })
    return params


# ----------------------------------------------------------------------------
if __name__ == "__main__":
    # dim=32, heads=4, head_dim=8, frames=8, spatial tokens=16, batch=2
    # temporal_position_encoding=True (as used by the hallo motion module).
    B, F, D, C = 2, 8, 16, 32
    HEADS, HEAD_DIM = 4, 8

    key = jax.random.PRNGKey(0)
    kx, kp = jax.random.split(key)
    hidden_states = jax.random.normal(kx, (B * F, D, C), dtype=jnp.float32)
    params = init_params(kp, C, max_len=24)

    out = temporal_transformer_block(hidden_states, params,
                                     video_length=F, heads=HEADS, head_dim=HEAD_DIM)
    out = jax.block_until_ready(out)

    ref = reference_forward(hidden_states, params, F, HEADS, HEAD_DIM)
    assert out.shape == (B * F, D, C)
    assert bool(jnp.all(jnp.isfinite(out)))
    max_err = float(jnp.max(jnp.abs(out - ref)))
    # bf16 MXU matmuls with f32 accumulation: allow a slightly wider tolerance
    # than the pure-f32 version.
    assert max_err < 5e-2, f"mismatch vs reference: {max_err}"
    print("KERNEL_OK")
</pallas_src>

<mosaic_0001>
module attributes {stable_mosaic.version = 11 : i64} {
  func.func @_fused_attn_kernel(%arg0: i32, %arg1: memref<32x8x32xf32, #tpu.memory_space<vmem>>, %arg2: memref<8x32xf32, #tpu.memory_space<vmem>>, %arg3: memref<1x32xf32, #tpu.memory_space<vmem>>, %arg4: memref<1x32xf32, #tpu.memory_space<vmem>>, %arg5: memref<32x32xbf16, #tpu.memory_space<vmem>>, %arg6: memref<32x32xbf16, #tpu.memory_space<vmem>>, %arg7: memref<32x32xbf16, #tpu.memory_space<vmem>>, %arg8: memref<32x32xbf16, #tpu.memory_space<vmem>>, %arg9: memref<1x32xf32, #tpu.memory_space<vmem>>, %arg10: memref<32x8x32xf32, #tpu.memory_space<vmem>>, %arg11: memref<32x8x32xf32, #tpu.memory_space<vmem>>) attributes {dimension_semantics = [#tpu.dimension_semantics<parallel>], iteration_bounds = array<i64: 1>, scalar_prefetch = 0 : i64, scratch_operands = 1 : i64, tpu.core_type = #tpu.core_type<tc>, window_params = [{transform_indices = @transform_0, window_bounds = array<i64: 32, 8, 32>}, {pipeline_mode = #tpu.pipeline_mode<synchronous>, transform_indices = @transform_1, window_bounds = array<i64: 8, 32>}, {pipeline_mode = #tpu.pipeline_mode<synchronous>, transform_indices = @transform_2, window_bounds = array<i64: 1, 32>}, {pipeline_mode = #tpu.pipeline_mode<synchronous>, transform_indices = @transform_3, window_bounds = array<i64: 1, 32>}, {pipeline_mode = #tpu.pipeline_mode<synchronous>, transform_indices = @transform_4, window_bounds = array<i64: 32, 32>}, {pipeline_mode = #tpu.pipeline_mode<synchronous>, transform_indices = @transform_5, window_bounds = array<i64: 32, 32>}, {pipeline_mode = #tpu.pipeline_mode<synchronous>, transform_indices = @transform_6, window_bounds = array<i64: 32, 32>}, {pipeline_mode = #tpu.pipeline_mode<synchronous>, transform_indices = @transform_7, window_bounds = array<i64: 32, 32>}, {pipeline_mode = #tpu.pipeline_mode<synchronous>, transform_indices = @transform_8, window_bounds = array<i64: 1, 32>}, {transform_indices = @transform_9, window_bounds = array<i64: 32, 8, 32>}]} {
    %c0 = arith.constant 0 : index
    %c0_0 = arith.constant 0 : index
    %c0_1 = arith.constant 0 : index
    %0 = vector.load %arg1[%c0, %c0_0, %c0_1] : memref<32x8x32xf32, #tpu.memory_space<vmem>>, vector<32x8x32xf32>
    %cst = arith.constant dense<0.000000e+00> : vector<32x8xf32>
    %1 = vector.multi_reduction <add>, %0, %cst [2] : vector<32x8x32xf32> to vector<32x8xf32>
    %2 = vector.shape_cast %1 : vector<32x8xf32> to vector<32x8x1xf32>
    %cst_2 = arith.constant 3.200000e+01 : f32
    %3 = vector.broadcast %cst_2 : f32 to vector<32x8x1xf32>
    %4 = arith.divf %2, %3 : vector<32x8x1xf32>
    %5 = vector.broadcast %4 : vector<32x8x1xf32> to vector<32x8x32xf32>
    %6 = arith.subf %0, %5 : vector<32x8x32xf32>
    %7 = arith.mulf %6, %6 : vector<32x8x32xf32>
    %cst_3 = arith.constant dense<0.000000e+00> : vector<32x8xf32>
    %8 = vector.multi_reduction <add>, %7, %cst_3 [2] : vector<32x8x32xf32> to vector<32x8xf32>
    %9 = vector.shape_cast %8 : vector<32x8xf32> to vector<32x8x1xf32>
    %cst_4 = arith.constant 3.200000e+01 : f32
    %10 = vector.broadcast %cst_4 : f32 to vector<32x8x1xf32>
    %11 = arith.divf %9, %10 : vector<32x8x1xf32>
    %cst_5 = arith.constant 9.99999974E-6 : f32
    %12 = vector.broadcast %cst_5 : f32 to vector<32x8x1xf32>
    %13 = arith.addf %11, %12 : vector<32x8x1xf32>
    %14 = math.rsqrt %13 : vector<32x8x1xf32>
    %15 = vector.broadcast %14 : vector<32x8x1xf32> to vector<32x8x32xf32>
    %16 = arith.mulf %6, %15 : vector<32x8x32xf32>
    %c0_6 = arith.constant 0 : index
    %c0_7 = arith.constant 0 : index
    %17 = vector.load %arg3[%c0_6, %c0_7] : memref<1x32xf32, #tpu.memory_space<vmem>>, vector<1x32xf32>
    %18 = vector.shape_cast %17 : vector<1x32xf32> to vector<1x1x32xf32>
    %19 = vector.broadcast %18 : vector<1x1x32xf32> to vector<32x8x32xf32>
    %20 = arith.mulf %16, %19 : vector<32x8x32xf32>
    %c0_8 = arith.constant 0 : index
    %c0_9 = arith.constant 0 : index
    %21 = vector.load %arg4[%c0_8, %c0_9] : memref<1x32xf32, #tpu.memory_space<vmem>>, vector<1x32xf32>
    %22 = vector.shape_cast %21 : vector<1x32xf32> to vector<1x1x32xf32>
    %23 = vector.broadcast %22 : vector<1x1x32xf32> to vector<32x8x32xf32>
    %24 = arith.addf %20, %23 : vector<32x8x32xf32>
    %c0_10 = arith.constant 0 : index
    %c0_11 = arith.constant 0 : index
    %25 = vector.load %arg2[%c0_10, %c0_11] : memref<8x32xf32, #tpu.memory_space<vmem>>, vector<8x32xf32>
    %26 = vector.shape_cast %25 : vector<8x32xf32> to vector<1x8x32xf32>
    %27 = vector.broadcast %26 : vector<1x8x32xf32> to vector<32x8x32xf32>
    %28 = arith.addf %24, %27 : vector<32x8x32xf32>
    %29 = vector.shape_cast %28 : vector<32x8x32xf32> to vector<256x32xf32>
    %30 = arith.truncf %29 : vector<256x32xf32> to vector<256x32xbf16>
    %c0_12 = arith.constant 0 : index
    %c0_13 = arith.constant 0 : index
    %31 = vector.load %arg5[%c0_12, %c0_13] : memref<32x32xbf16, #tpu.memory_space<vmem>>, vector<32x32xbf16>
    %cst_14 = arith.constant dense<0.000000e+00> : vector<256x32xf32>
    %32 = tpu.matmul %30, %31, %cst_14 {dimension_numbers = #tpu.dot_dimension_numbers<[1], [0], [0], [1], [0, 0, 1, 1], [], []>} : vector<256x32xbf16>, vector<32x32xbf16>, vector<256x32xf32> -> vector<256x32xf32>
    %33 = vector.shape_cast %32 : vector<256x32xf32> to vector<32x8x32xf32>
    %c0_15 = arith.constant 0 : index
    %c0_16 = arith.constant 0 : index
    %34 = vector.load %arg6[%c0_15, %c0_16] : memref<32x32xbf16, #tpu.memory_space<vmem>>, vector<32x32xbf16>
    %cst_17 = arith.constant dense<0.000000e+00> : vector<256x32xf32>
    %35 = tpu.matmul %30, %34, %cst_17 {dimension_numbers = #tpu.dot_dimension_numbers<[1], [0], [0], [1], [0, 0, 1, 1], [], []>} : vector<256x32xbf16>, vector<32x32xbf16>, vector<256x32xf32> -> vector<256x32xf32>
    %36 = vector.shape_cast %35 : vector<256x32xf32> to vector<32x8x32xf32>
    %c0_18 = arith.constant 0 : index
    %c0_19 = arith.constant 0 : index
    %37 = vector.load %arg7[%c0_18, %c0_19] : memref<32x32xbf16, #tpu.memory_space<vmem>>, vector<32x32xbf16>
    %cst_20 = arith.constant dense<0.000000e+00> : vector<256x32xf32>
    %38 = tpu.matmul %30, %37, %cst_20 {dimension_numbers = #tpu.dot_dimension_numbers<[1], [0], [0], [1], [0, 0, 1, 1], [], []>} : vector<256x32xbf16>, vector<32x32xbf16>, vector<256x32xf32> -> vector<256x32xf32>
    %39 = vector.shape_cast %38 : vector<256x32xf32> to vector<32x8x32xf32>
    %40 = vector.extract_strided_slice %33 {offsets = [0, 0, 0], sizes = [32, 8, 8], strides = [1, 1, 1]} : vector<32x8x32xf32> to vector<32x8x8xf32>
    %41 = vector.extract_strided_slice %36 {offsets = [0, 0, 0], sizes = [32, 8, 8], strides = [1, 1, 1]} : vector<32x8x32xf32> to vector<32x8x8xf32>
    %42 = vector.extract_strided_slice %39 {offsets = [0, 0, 0], sizes = [32, 8, 8], strides = [1, 1, 1]} : vector<32x8x32xf32> to vector<32x8x8xf32>
    "tpu.trace_start"() <{level = 10 : i32, message = "sfe,sge->sfg"}> : () -> ()
    %cst_21 = arith.constant dense<0.000000e+00> : vector<32x8x8xf32>
    %43 = tpu.matmul %40, %41, %cst_21 {dimension_numbers = #tpu.dot_dimension_numbers<[2], [2], [1], [1], [0, 0, 0, 1, 1, 1], [0], [0]>} : vector<32x8x8xf32>, vector<32x8x8xf32>, vector<32x8x8xf32> -> vector<32x8x8xf32>
    "tpu.trace_stop"() : () -> ()
    %cst_22 = arith.constant 0.353553385 : f32
    %44 = vector.broadcast %cst_22 : f32 to vector<32x8x8xf32>
    %45 = arith.mulf %43, %44 : vector<32x8x8xf32>
    %cst_23 = arith.constant dense<0xFF800000> : vector<32x8xf32>
    %46 = vector.multi_reduction <maximumf>, %45, %cst_23 [2] : vector<32x8x8xf32> to vector<32x8xf32>
    %47 = vector.shape_cast %46 : vector<32x8xf32> to vector<32x8x1xf32>
    %48 = vector.broadcast %47 : vector<32x8x1xf32> to vector<32x8x8xf32>
    %49 = arith.subf %45, %48 : vector<32x8x8xf32>
    %50 = math.exp %49 : vector<32x8x8xf32>
    %cst_24 = arith.constant dense<0.000000e+00> : vector<32x8xf32>
    %51 = vector.multi_reduction <add>, %50, %cst_24 [2] : vector<32x8x8xf32> to vector<32x8xf32>
    %52 = vector.shape_cast %51 : vector<32x8xf32> to vector<32x8x1xf32>
    %53 = tpu.reciprocal %52 {approx = true} : vector<32x8x1xf32> -> vector<32x8x1xf32>
    %54 = vector.broadcast %53 : vector<32x8x1xf32> to vector<32x8x8xf32>
    %55 = arith.mulf %50, %54 : vector<32x8x8xf32>
    "tpu.trace_start"() <{level = 10 : i32, message = "sfg,sge->sfe"}> : () -> ()
    %cst_25 = arith.constant dense<0.000000e+00> : vector<32x8x8xf32>
    %56 = tpu.matmul %55, %42, %cst_25 {dimension_numbers = #tpu.dot_dimension_numbers<[2], [1], [1], [2], [0, 0, 0, 1, 1, 2], [0], [0]>} : vector<32x8x8xf32>, vector<32x8x8xf32>, vector<32x8x8xf32> -> vector<32x8x8xf32>
    "tpu.trace_stop"() : () -> ()
    %c0_26 = arith.constant 0 : index
    %c0_27 = arith.constant 0 : index
    %c0_28 = arith.constant 0 : index
    %57 = vector.load %arg11[%c0_26, %c0_27, %c0_28] : memref<32x8x32xf32, #tpu.memory_space<vmem>>, vector<32x8x8xf32>
    tpu.vector_store %arg11[%c0_26, %c0_27, %c0_28], %56 {strides = array<i32>} : memref<32x8x32xf32, #tpu.memory_space<vmem>>, vector<32x8x8xf32>,
    %58 = vector.extract_strided_slice %33 {offsets = [0, 0, 8], sizes = [32, 8, 8], strides = [1, 1, 1]} : vector<32x8x32xf32> to vector<32x8x8xf32>
    %59 = vector.extract_strided_slice %36 {offsets = [0, 0, 8], sizes = [32, 8, 8], strides = [1, 1, 1]} : vector<32x8x32xf32> to vector<32x8x8xf32>
    %60 = vector.extract_strided_slice %39 {offsets = [0, 0, 8], sizes = [32, 8, 8], strides = [1, 1, 1]} : vector<32x8x32xf32> to vector<32x8x8xf32>
    "tpu.trace_start"() <{level = 10 : i32, message = "sfe,sge->sfg"}> : () -> ()
    %cst_29 = arith.constant dense<0.000000e+00> : vector<32x8x8xf32>
    %61 = tpu.matmul %58, %59, %cst_29 {dimension_numbers = #tpu.dot_dimension_numbers<[2], [2], [1], [1], [0, 0, 0, 1, 1, 1], [0], [0]>} : vector<32x8x8xf32>, vector<32x8x8xf32>, vector<32x8x8xf32> -> vector<32x8x8xf32>
    "tpu.trace_stop"() : () -> ()
    %cst_30 = arith.constant 0.353553385 : f32
    %62 = vector.broadcast %cst_30 : f32 to vector<32x8x8xf32>
    %63 = arith.mulf %61, %62 : vector<32x8x8xf32>
    %cst_31 = arith.constant dense<0xFF800000> : vector<32x8xf32>
    %64 = vector.multi_reduction <maximumf>, %63, %cst_31 [2] : vector<32x8x8xf32> to vector<32x8xf32>
    %65 = vector.shape_cast %64 : vector<32x8xf32> to vector<32x8x1xf32>
    %66 = vector.broadcast %65 : vector<32x8x1xf32> to vector<32x8x8xf32>
    %67 = arith.subf %63, %66 : vector<32x8x8xf32>
    %68 = math.exp %67 : vector<32x8x8xf32>
    %cst_32 = arith.constant dense<0.000000e+00> : vector<32x8xf32>
    %69 = vector.multi_reduction <add>, %68, %cst_32 [2] : vector<32x8x8xf32> to vector<32x8xf32>
    %70 = vector.shape_cast %69 : vector<32x8xf32> to vector<32x8x1xf32>
    %71 = tpu.reciprocal %70 {approx = true} : vector<32x8x1xf32> -> vector<32x8x1xf32>
    %72 = vector.broadcast %71 : vector<32x8x1xf32> to vector<32x8x8xf32>
    %73 = arith.mulf %68, %72 : vector<32x8x8xf32>
    "tpu.trace_start"() <{level = 10 : i32, message = "sfg,sge->sfe"}> : () -> ()
    %cst_33 = arith.constant dense<0.000000e+00> : vector<32x8x8xf32>
    %74 = tpu.matmul %73, %60, %cst_33 {dimension_numbers = #tpu.dot_dimension_numbers<[2], [1], [1], [2], [0, 0, 0, 1, 1, 2], [0], [0]>} : vector<32x8x8xf32>, vector<32x8x8xf32>, vector<32x8x8xf32> -> vector<32x8x8xf32>
    "tpu.trace_stop"() : () -> ()
    %c0_34 = arith.constant 0 : index
    %c0_35 = arith.constant 0 : index
    %c8 = arith.constant 8 : index
    %75 = vector.load %arg11[%c0_34, %c0_35, %c8] : memref<32x8x32xf32, #tpu.memory_space<vmem>>, vector<32x8x8xf32>
    tpu.vector_store %arg11[%c0_34, %c0_35, %c8], %74 {strides = array<i32>} : memref<32x8x32xf32, #tpu.memory_space<vmem>>, vector<32x8x8xf32>,
    %76 = vector.extract_strided_slice %33 {offsets = [0, 0, 16], sizes = [32, 8, 8], strides = [1, 1, 1]} : vector<32x8x32xf32> to vector<32x8x8xf32>
    %77 = vector.extract_strided_slice %36 {offsets = [0, 0, 16], sizes = [32, 8, 8], strides = [1, 1, 1]} : vector<32x8x32xf32> to vector<32x8x8xf32>
    %78 = vector.extract_strided_slice %39 {offsets = [0, 0, 16], sizes = [32, 8, 8], strides = [1, 1, 1]} : vector<32x8x32xf32> to vector<32x8x8xf32>
    "tpu.trace_start"() <{level = 10 : i32, message = "sfe,sge->sfg"}> : () -> ()
    %cst_36 = arith.constant dense<0.000000e+00> : vector<32x8x8xf32>
    %79 = tpu.matmul %76, %77, %cst_36 {dimension_numbers = #tpu.dot_dimension_numbers<[2], [2], [1], [1], [0, 0, 0, 1, 1, 1], [0], [0]>} : vector<32x8x8xf32>, vector<32x8x8xf32>, vector<32x8x8xf32> -> vector<32x8x8xf32>
    "tpu.trace_stop"() : () -> ()
    %cst_37 = arith.constant 0.353553385 : f32
    %80 = vector.broadcast %cst_37 : f32 to vector<32x8x8xf32>
    %81 = arith.mulf %79, %80 : vector<32x8x8xf32>
    %cst_38 = arith.constant dense<0xFF800000> : vector<32x8xf32>
    %82 = vector.multi_reduction <maximumf>, %81, %cst_38 [2] : vector<32x8x8xf32> to vector<32x8xf32>
    %83 = vector.shape_cast %82 : vector<32x8xf32> to vector<32x8x1xf32>
    %84 = vector.broadcast %83 : vector<32x8x1xf32> to vector<32x8x8xf32>
    %85 = arith.subf %81, %84 : vector<32x8x8xf32>
    %86 = math.exp %85 : vector<32x8x8xf32>
    %cst_39 = arith.constant dense<0.000000e+00> : vector<32x8xf32>
    %87 = vector.multi_reduction <add>, %86, %cst_39 [2] : vector<32x8x8xf32> to vector<32x8xf32>
    %88 = vector.shape_cast %87 : vector<32x8xf32> to vector<32x8x1xf32>
    %89 = tpu.reciprocal %88 {approx = true} : vector<32x8x1xf32> -> vector<32x8x1xf32>
    %90 = vector.broadcast %89 : vector<32x8x1xf32> to vector<32x8x8xf32>
    %91 = arith.mulf %86, %90 : vector<32x8x8xf32>
    "tpu.trace_start"() <{level = 10 : i32, message = "sfg,sge->sfe"}> : () -> ()
    %cst_40 = arith.constant dense<0.000000e+00> : vector<32x8x8xf32>
    %92 = tpu.matmul %91, %78, %cst_40 {dimension_numbers = #tpu.dot_dimension_numbers<[2], [1], [1], [2], [0, 0, 0, 1, 1, 2], [0], [0]>} : vector<32x8x8xf32>, vector<32x8x8xf32>, vector<32x8x8xf32> -> vector<32x8x8xf32>
    "tpu.trace_stop"() : () -> ()
    %c0_41 = arith.constant 0 : index
    %c0_42 = arith.constant 0 : index
    %c16 = arith.constant 16 : index
    %93 = vector.load %arg11[%c0_41, %c0_42, %c16] : memref<32x8x32xf32, #tpu.memory_space<vmem>>, vector<32x8x8xf32>
    tpu.vector_store %arg11[%c0_41, %c0_42, %c16], %92 {strides = array<i32>} : memref<32x8x32xf32, #tpu.memory_space<vmem>>, vector<32x8x8xf32>,
    %94 = vector.extract_strided_slice %33 {offsets = [0, 0, 24], sizes = [32, 8, 8], strides = [1, 1, 1]} : vector<32x8x32xf32> to vector<32x8x8xf32>
    %95 = vector.extract_strided_slice %36 {offsets = [0, 0, 24], sizes = [32, 8, 8], strides = [1, 1, 1]} : vector<32x8x32xf32> to vector<32x8x8xf32>
    %96 = vector.extract_strided_slice %39 {offsets = [0, 0, 24], sizes = [32, 8, 8], strides = [1, 1, 1]} : vector<32x8x32xf32> to vector<32x8x8xf32>
    "tpu.trace_start"() <{level = 10 : i32, message = "sfe,sge->sfg"}> : () -> ()
    %cst_43 = arith.constant dense<0.000000e+00> : vector<32x8x8xf32>
    %97 = tpu.matmul %94, %95, %cst_43 {dimension_numbers = #tpu.dot_dimension_numbers<[2], [2], [1], [1], [0, 0, 0, 1, 1, 1], [0], [0]>} : vector<32x8x8xf32>, vector<32x8x8xf32>, vector<32x8x8xf32> -> vector<32x8x8xf32>
    "tpu.trace_stop"() : () -> ()
    %cst_44 = arith.constant 0.353553385 : f32
    %98 = vector.broadcast %cst_44 : f32 to vector<32x8x8xf32>
    %99 = arith.mulf %97, %98 : vector<32x8x8xf32>
    %cst_45 = arith.constant dense<0xFF800000> : vector<32x8xf32>
    %100 = vector.multi_reduction <maximumf>, %99, %cst_45 [2] : vector<32x8x8xf32> to vector<32x8xf32>
    %101 = vector.shape_cast %100 : vector<32x8xf32> to vector<32x8x1xf32>
    %102 = vector.broadcast %101 : vector<32x8x1xf32> to vector<32x8x8xf32>
    %103 = arith.subf %99, %102 : vector<32x8x8xf32>
    %104 = math.exp %103 : vector<32x8x8xf32>
    %cst_46 = arith.constant dense<0.000000e+00> : vector<32x8xf32>
    %105 = vector.multi_reduction <add>, %104, %cst_46 [2] : vector<32x8x8xf32> to vector<32x8xf32>
    %106 = vector.shape_cast %105 : vector<32x8xf32> to vector<32x8x1xf32>
    %107 = tpu.reciprocal %106 {approx = true} : vector<32x8x1xf32> -> vector<32x8x1xf32>
    %108 = vector.broadcast %107 : vector<32x8x1xf32> to vector<32x8x8xf32>
    %109 = arith.mulf %104, %108 : vector<32x8x8xf32>
    "tpu.trace_start"() <{level = 10 : i32, message = "sfg,sge->sfe"}> : () -> ()
    %cst_47 = arith.constant dense<0.000000e+00> : vector<32x8x8xf32>
    %110 = tpu.matmul %109, %96, %cst_47 {dimension_numbers = #tpu.dot_dimension_numbers<[2], [1], [1], [2], [0, 0, 0, 1, 1, 2], [0], [0]>} : vector<32x8x8xf32>, vector<32x8x8xf32>, vector<32x8x8xf32> -> vector<32x8x8xf32>
    "tpu.trace_stop"() : () -> ()
    %c0_48 = arith.constant 0 : index
    %c0_49 = arith.constant 0 : index
    %c24 = arith.constant 24 : index
    %111 = vector.load %arg11[%c0_48, %c0_49, %c24] : memref<32x8x32xf32, #tpu.memory_space<vmem>>, vector<32x8x8xf32>
    tpu.vector_store %arg11[%c0_48, %c0_49, %c24], %110 {strides = array<i32>} : memref<32x8x32xf32, #tpu.memory_space<vmem>>, vector<32x8x8xf32>,
    %c0_50 = arith.constant 0 : index
    %c0_51 = arith.constant 0 : index
    %c0_52 = arith.constant 0 : index
    %112 = vector.load %arg11[%c0_50, %c0_51, %c0_52] : memref<32x8x32xf32, #tpu.memory_space<vmem>>, vector<32x8x32xf32>
    %113 = vector.shape_cast %112 : vector<32x8x32xf32> to vector<256x32xf32>
    %114 = arith.truncf %113 : vector<256x32xf32> to vector<256x32xbf16>
    %c0_53 = arith.constant 0 : index
    %c0_54 = arith.constant 0 : index
    %115 = vector.load %arg8[%c0_53, %c0_54] : memref<32x32xbf16, #tpu.memory_space<vmem>>, vector<32x32xbf16>
    %cst_55 = arith.constant dense<0.000000e+00> : vector<256x32xf32>
    %116 = tpu.matmul %114, %115, %cst_55 {dimension_numbers = #tpu.dot_dimension_numbers<[1], [0], [0], [1], [0, 0, 1, 1], [], []>} : vector<256x32xbf16>, vector<32x32xbf16>, vector<256x32xf32> -> vector<256x32xf32>
    %c0_56 = arith.constant 0 : index
    %c0_57 = arith.constant 0 : index
    %117 = vector.load %arg9[%c0_56, %c0_57] : memref<1x32xf32, #tpu.memory_space<vmem>>, vector<1x32xf32>
    %118 = vector.broadcast %117 : vector<1x32xf32> to vector<256x32xf32>
    %119 = arith.addf %116, %118 : vector<256x32xf32>
    %120 = vector.shape_cast %119 : vector<256x32xf32> to vector<32x8x32xf32>
    %121 = arith.addf %120, %0 : vector<32x8x32xf32>
    %c0_58 = arith.constant 0 : index
    %c0_59 = arith.constant 0 : index
    %c0_60 = arith.constant 0 : index
    %122 = vector.load %arg10[%c0_58, %c0_59, %c0_60] : memref<32x8x32xf32, #tpu.memory_space<vmem>>, vector<32x8x32xf32>
    tpu.vector_store %arg10[%c0_58, %c0_59, %c0_60], %121 {strides = array<i32>} : memref<32x8x32xf32, #tpu.memory_space<vmem>>, vector<32x8x32xf32>,
    return
  }
  func.func @transform_0(%arg0: i32) -> (i32, i32, i32) {
    %c0_i32 = arith.constant 0 : i32
    %c0_i32_0 = arith.constant 0 : i32
    %c0_i32_1 = arith.constant 0 : i32
    return %arg0, %c0_i32, %c0_i32_0 : i32, i32, i32
  }
  func.func @transform_1(%arg0: i32) -> (i32, i32) {
    %c0_i32 = arith.constant 0 : i32
    %c0_i32_0 = arith.constant 0 : i32
    %c0_i32_1 = arith.constant 0 : i32
    return %c0_i32, %c0_i32_0 : i32, i32
  }
  func.func @transform_2(%arg0: i32) -> (i32, i32) {
    %c0_i32 = arith.constant 0 : i32
    %c0_i32_0 = arith.constant 0 : i32
    %c0_i32_1 = arith.constant 0 : i32
    return %c0_i32, %c0_i32_0 : i32, i32
  }
  func.func @transform_3(%arg0: i32) -> (i32, i32) {
    %c0_i32 = arith.constant 0 : i32
    %c0_i32_0 = arith.constant 0 : i32
    %c0_i32_1 = arith.constant 0 : i32
    return %c0_i32, %c0_i32_0 : i32, i32
  }
  func.func @transform_4(%arg0: i32) -> (i32, i32) {
    %c0_i32 = arith.constant 0 : i32
    %c0_i32_0 = arith.constant 0 : i32
    %c0_i32_1 = arith.constant 0 : i32
    return %c0_i32, %c0_i32_0 : i32, i32
  }
  func.func @transform_5(%arg0: i32) -> (i32, i32) {
    %c0_i32 = arith.constant 0 : i32
    %c0_i32_0 = arith.constant 0 : i32
    %c0_i32_1 = arith.constant 0 : i32
    return %c0_i32, %c0_i32_0 : i32, i32
  }
  func.func @transform_6(%arg0: i32) -> (i32, i32) {
    %c0_i32 = arith.constant 0 : i32
    %c0_i32_0 = arith.constant 0 : i32
    %c0_i32_1 = arith.constant 0 : i32
    return %c0_i32, %c0_i32_0 : i32, i32
  }
  func.func @transform_7(%arg0: i32) -> (i32, i32) {
    %c0_i32 = arith.constant 0 : i32
    %c0_i32_0 = arith.constant 0 : i32
    %c0_i32_1 = arith.constant 0 : i32
    return %c0_i32, %c0_i32_0 : i32, i32
  }
  func.func @transform_8(%arg0: i32) -> (i32, i32) {
    %c0_i32 = arith.constant 0 : i32
    %c0_i32_0 = arith.constant 0 : i32
    %c0_i32_1 = arith.constant 0 : i32
    return %c0_i32, %c0_i32_0 : i32, i32
  }
  func.func @transform_9(%arg0: i32) -> (i32, i32, i32) {
    %c0_i32 = arith.constant 0 : i32
    %c0_i32_0 = arith.constant 0 : i32
    %c0_i32_1 = arith.constant 0 : i32
    return %arg0, %c0_i32, %c0_i32_0 : i32, i32, i32
  }
}

</mosaic_0001>

<bundles_post_ra>
// kernel: tpu_custom_call.1
= control target key start
LH: loop header
LB: loop body
LE: loop exit
PB: predicated region body
PF: predicated region fallthrough
CT: control target
= control target key end

     0   :  { %14 = vsyncpa [#allocation4], 0  ;;  %s31798_s0 = inlined_call_operand.hbm [shape: f32[32,8,32], index: 0, kind: input, shape index: {}]   ;;  %s31799_s1 = inlined_call_operand.hbm [shape: f32[8,32], index: 1, kind: input, shape index: {}]   ;;  %s31800_s2 = inlined_call_operand.vmem [shape: f32[1,32], index: 2, kind: input, shape index: {}]   ;;  %s31801_s3 = inlined_call_operand.vmem [shape: f32[1,32], index: 3, kind: input, shape index: {}]   ;;  %s31802_s4 = inlined_call_operand.hbm [shape: bf16[32,32], index: 4, kind: input, shape index: {}]   ;;  %s31803_s5 = inlined_call_operand.hbm [shape: bf16[32,32], index: 5, kind: input, shape index: {}]   ;;  %s31804_s6 = inlined_call_operand.hbm [shape: bf16[32,32], index: 6, kind: input, shape index: {}]   ;;  %s31805_s7 = inlined_call_operand.hbm [shape: bf16[32,32], index: 7, kind: input, shape index: {}]   ;;  %s31806_s8 = inlined_call_operand.vmem [shape: f32[1,32], index: 8, kind: input, shape index: {}]   ;;  %s31807_s9 = inlined_call_operand.hbm [shape: f32[32,8,32], index: 9, kind: output, shape index: {}]  }
   0x1   :  { %15 = vsyncpa [#allocation7], 0 }
   0x2   :  { %16 = vsyncpa [#allocation10], 0 }
   0x3   :  { %17 = vsyncpa [#allocation13], 0 }
   0x4   :  { %18 = vsyncpa [#allocation5], 0  ;;  %s26525_s30 = smov [#allocation6]  }
   0x5   :  { %s37_s10 = sshll.u32 %s26525_s30, 4  ;;  %s38_s10 = int_to_ptr.vmem [resolvable:$true] %s37_s10 }
   0x6   :  { %s26383_s11 = scalar_lea.vmem %s38_s10, 128  ;;  %p26388_p1 = scmp.lt.s32.totalorder %s38_s10, %s38_s10 }
   0x7   :  { %p26384_p0 = scmp.ne.s32.totalorder %s38_s10, %s26383_s11  ;;  %p26389_p2 = scmp.lt.s32.totalorder %s26383_s11, %s26383_s11 }
   0x9   :  { %p26390_p3 = por %p26389_p2, %p26388_p1 }
   0xb   :  { %p26391_p4 = pnand %p26390_p3, %p26384_p0 }
   0xd   :  { %26394 = shalt.err (!%p26391_p4)
}
   0xe   :  { %40 = dma.hbm_to_vmem [thread:$0]  %s31799_s1, 128, %s38_s10, [#allocation7]  }
   0xf   :  { %s26526_s14 = smov [#allocation9]   ;;  %s26527_s16 = smov [#allocation3]  }
  0x10   :  { %s62_s15 = sshll.u32 %s26526_s14, 4  ;;  %s24_s17 = sshll.u32 %s26527_s16, 4  ;;  %s63_s15 = int_to_ptr.vmem [resolvable:$true] %s62_s15  ;;  %s25_s17 = int_to_ptr.vmem [resolvable:$true] %s24_s17 }
  0x11   :  { %s26403_s18 = scalar_lea.vmem %s63_s15, 256  ;;  %p26408_p6 = scmp.lt.s32.totalorder %s63_s15, %s63_s15 }
  0x12   :  { %p26404_p5 = scmp.ne.s32.totalorder %s63_s15, %s26403_s18  ;;  %p26409_p7 = scmp.lt.s32.totalorder %s26403_s18, %s26403_s18 }
  0x14   :  { %p26410_p8 = por %p26409_p7, %p26408_p6 }
  0x16   :  { %p26411_p9 = pnand %p26410_p8, %p26404_p5 }
  0x18   :  { %26414 = shalt.err (!%p26411_p9)
}
  0x19   :  { %s26528_s19 = smov 64   ;;  %s26529_s20 = smov 4  }
  0x1a   :  { %68 = dma.hbm_to_vmem [thread:$0]  %s31803_s5, 256, %s63_s15, [#allocation10], %s26528_s19, %s26528_s19, %s26529_s20  }
  0x1b   :  { %s26423_s1 = scalar_lea.vmem %s25_s17, 4096  ;;  %p26428_p11 = scmp.lt.s32.totalorder %s25_s17, %s25_s17 }
  0x1c   :  { %p26424_p10 = scmp.ne.s32.totalorder %s25_s17, %s26423_s1  ;;  %p26429_p12 = scmp.lt.s32.totalorder %s26423_s1, %s26423_s1 }
  0x1e   :  { %p26430_p13 = por %p26429_p12, %p26428_p11 }
  0x20   :  { %p26431_p0 = pnand %p26430_p13, %p26424_p10 }
  0x22   :  { %26434 = shalt.err (!%p26431_p0)
}
  0x23   :  { %s26530_s23 = smov 128   ;;  %s26531_s24 = smov 8  }
  0x24   :  { %30 = dma.hbm_to_vmem [thread:$0]  %s31798_s0, 4096, %s25_s17, [#allocation4], %s26530_s23, %s26530_s23, %s26531_s24  }
  0x25   :  { %s26532_s27 = smov [#allocation8]   ;;  %s26533_s5 = smov [#allocation11]  }
  0x26   :  { %s50_s28 = sshll.u32 %s26532_s27, 4  ;;  %s74_s29 = sshll.u32 %s26533_s5, 4  ;;  %s51_s28 = int_to_ptr.vmem [resolvable:$true] %s50_s28  ;;  %s75_s29 = int_to_ptr.vmem [resolvable:$true] %s74_s29 }
  0x27   :  { %s26443_s30 = scalar_lea.vmem %s51_s28, 256  ;;  %p26448_p2 = scmp.lt.s32.totalorder %s51_s28, %s51_s28 }
  0x28   :  { %p26444_p1 = scmp.ne.s32.totalorder %s51_s28, %s26443_s30  ;;  %p26449_p3 = scmp.lt.s32.totalorder %s26443_s30, %s26443_s30 }
  0x2a   :  { %p26450_p4 = por %p26449_p3, %p26448_p2 }
  0x2c   :  { %p26451_p5 = pnand %p26450_p4, %p26444_p1 }
  0x2e   :  { %26454 = shalt.err (!%p26451_p5)
}
  0x2f   :  { %56 = dma.hbm_to_vmem [thread:$0]  %s31802_s4, 256, %s51_s28, [#allocation7], %s26528_s19, %s26528_s19, %s26529_s20  }
  0x30   :  { %s26463_s0 = scalar_lea.vmem %s75_s29, 256  ;;  %p26468_p7 = scmp.lt.s32.totalorder %s75_s29, %s75_s29 }
  0x31   :  { %p26464_p6 = scmp.ne.s32.totalorder %s75_s29, %s26463_s0  ;;  %p26469_p8 = scmp.lt.s32.totalorder %s26463_s0, %s26463_s0 }
  0x33   :  { %p26470_p9 = por %p26469_p8, %p26468_p7 }
  0x35   :  { %p26471_p10 = pnand %p26470_p9, %p26464_p6 }
  0x37   :  { %26474 = shalt.err (!%p26471_p10)
}
  0x38   :  { %80 = dma.hbm_to_vmem [thread:$0]  %s31804_s6, 256, %s75_s29, [#allocation10], %s26528_s19, %s26528_s19, %s26529_s20  }
  0x39   :  { %s26534_s14 = smov [#allocation12]  }
  0x3a   :  { %s86_s15 = sshll.u32 %s26534_s14, 4  ;;  %s87_s15 = int_to_ptr.vmem [resolvable:$true] %s86_s15 }
  0x3b   :  { %s26483_s16 = scalar_lea.vmem %s87_s15, 256  ;;  %p26488_p12 = scmp.lt.s32.totalorder %s87_s15, %s87_s15 }
  0x3c   :  { %p26484_p11 = scmp.ne.s32.totalorder %s87_s15, %s26483_s16  ;;  %p26489_p13 = scmp.lt.s32.totalorder %s26483_s16, %s26483_s16 }
  0x3e   :  { %p26490_p0 = por %p26489_p13, %p26488_p12 }
  0x40   :  { %p26491_p1 = pnand %p26490_p0, %p26484_p11 }
  0x42   :  { %26494 = shalt.err (!%p26491_p1)
}
  0x43   :  { %92 = dma.hbm_to_vmem [thread:$0]  %s31805_s7, 256, %s87_s15, [#allocation13], %s26528_s19, %s26528_s19, %s26529_s20  }
  0x44   :  { %26515 = dma.done.wait [#allocation4], 4096  }
  0x45   :  { %26516 = vsyncadd [#allocation4], 4294963200 }
  0x46   :  { %26517 = dma.done.wait [#allocation7], 384  }
  0x47   :  { %26518 = vsyncadd [#allocation7], 4294966912 }
  0x48   :  { %26519 = dma.done.wait [#allocation10], 512  }
  0x49   :  { %26520 = vsyncadd [#allocation10], 4294966784 }
  0x4a   :  { %26521 = dma.done.wait [#allocation13], 256  }
  0x4b   :  { %26522 = vsyncadd [#allocation13], 4294967040  ;;  %vm146_vm0 = vcmask 261120   ;;  %v26626_v0 = vld [vmem:[#allocation3 + $0x80] sm:$0xff]  ;;  %v26628_v1 = vld [vmem:[#allocation3 + $0x90] sm:$0xff]  ;;  %vm26536_vm1 = vmmov 0  }
  0x4c   :  { %v26630_v2 = vld [vmem:[#allocation3 + $0x88] sm:$0xff]  ;;  %v195_v3 = vsel %vm146_vm0, %v26626_v0, 0.0  ;;  %v201_v4 = vsel %vm146_vm0, %v26628_v1, 0.0  ;;  %v26636_v5 = vld [vmem:[#allocation3 + $0x98] sm:$0xff]  ;;  %v26642_v8 = vld [vmem:[#allocation3 + $0xa0] sm:$0xff]  ;;  %vm1270_vm2 = vcmask 64512  }
  0x4d   :  { %196 = vadd.xlane.f32.xlu0 %v195_v3  ;;  %202 = vadd.xlane.f32.xlu1 %v201_v4  ;;  %v198_v6 = vsel %vm146_vm0, %v26630_v2, 0.0  ;;  %v204_v7 = vsel %vm146_vm0, %v26636_v5, 0.0  ;;  %v26644_v9 = vld [vmem:[#allocation3 + $0xa8] sm:$0xff]  ;;  %v207_v10 = vsel %vm146_vm0, %v26642_v8, 0.0  ;;  %v26650_v12 = vld [vmem:[#allocation3 + $0xb0] sm:$0xff]  ;;  %v26652_v13 = vld [vmem:[#allocation3 + $0xb8] sm:$0xff] }
  0x4e   :  { %v210_v11 = vsel %vm146_vm0, %v26644_v9, 0.0  ;;  %v26654_v14 = vld [vmem:[#allocation3 + $0xc0] sm:$0xff]  ;;  %v26656_v15 = vld [vmem:[#allocation3 + $0xc8] sm:$0xff]  ;;  %v213_v16 = vsel %vm146_vm0, %v26650_v12, 0.0  ;;  %v216_v17 = vsel %vm146_vm0, %v26652_v13, 0.0  ;;  %v26666_v20 = vld [vmem:[#allocation3 + $0xd0] sm:$0xff] }
  0x4f   :  { %v219_v18 = vsel %vm146_vm0, %v26654_v14, 0.0  ;;  %v222_v19 = vsel %vm146_vm0, %v26656_v15, 0.0  ;;  %v26668_v21 = vld [vmem:[#allocation3 + $0xd8] sm:$0xff]  ;;  %v225_v22 = vsel %vm146_vm0, %v26666_v20, 0.0  ;;  %v26674_v24 = vld [vmem:[#allocation3 + $0xe0] sm:$0xff]  ;;  %v26676_v25 = vld [vmem:[#allocation3 + $0xe8] sm:$0xff] }
  0x50   :  { %v228_v23 = vsel %vm146_vm0, %v26668_v21, 0.0  ;;  %v231_v26 = vsel %vm146_vm0, %v26674_v24, 0.0  ;;  %v234_v27 = vsel %vm146_vm0, %v26676_v25, 0.0  ;;  %v26682_v28 = vld [vmem:[#allocation3 + $0xf0] sm:$0xff]  ;;  %v26684_v29 = vld [vmem:[#allocation3 + $0xf8] sm:$0xff]  ;;  %v26690_v32 = vld [vmem:[#allocation3] sm:$0xff] }
  0x51   :  { %199 = vadd.xlane.f32.xlu0 %v198_v6  ;;  %205 = vadd.xlane.f32.xlu1 %v204_v7  ;;  %v237_v30 = vsel %vm146_vm0, %v26682_v28, 0.0  ;;  %v240_v31 = vsel %vm146_vm0, %v26684_v29, 0.0  ;;  %v26692_v33 = vld [vmem:[#allocation3 + $0x8] sm:$0xff]  ;;  %v147_v34 = vsel %vm146_vm0, %v26690_v32, 0.0  ;;  %v26698_v36 = vld [vmem:[#allocation3 + $0x10] sm:$0xff]  ;;  %v26700_v37 = vld [vmem:[#allocation3 + $0x18] sm:$0xff] }
  0x52   :  { %v150_v35 = vsel %vm146_vm0, %v26692_v33, 0.0  ;;  %v153_v38 = vsel %vm146_vm0, %v26698_v36, 0.0  ;;  %v156_v39 = vsel %vm146_vm0, %v26700_v37, 0.0  ;;  %v26706_v40 = vld [vmem:[#allocation3 + $0x20] sm:$0xff]  ;;  %v26708_v41 = vld [vmem:[#allocation3 + $0x28] sm:$0xff]  ;;  %v26714_v44 = vld [vmem:[#allocation3 + $0x30] sm:$0xff] }
  0x53   :  { %v159_v42 = vsel %vm146_vm0, %v26706_v40, 0.0  ;;  %v162_v43 = vsel %vm146_vm0, %v26708_v41, 0.0  ;;  %v26716_v45 = vld [vmem:[#allocation3 + $0x38] sm:$0xff]  ;;  %v165_v46 = vsel %vm146_vm0, %v26714_v44, 0.0  ;;  %v26722_v48 = vld [vmem:[#allocation3 + $0x40] sm:$0xff]  ;;  %v26724_v49 = vld [vmem:[#allocation3 + $0x48] sm:$0xff] }
  0x54   :  { %v168_v47 = vsel %vm146_vm0, %v26716_v45, 0.0  ;;  %v171_v50 = vsel %vm146_vm0, %v26722_v48, 0.0  ;;  %v174_v51 = vsel %vm146_vm0, %v26724_v49, 0.0  ;;  %v26730_v52 = vld [vmem:[#allocation3 + $0x50] sm:$0xff]  ;;  %v26732_v53 = vld [vmem:[#allocation3 + $0x58] sm:$0xff]  ;;  %v26738_v56 = vld [vmem:[#allocation3 + $0x60] sm:$0xff] }
  0x55   :  { %208 = vadd.xlane.f32.xlu0 %v207_v10  ;;  %211 = vadd.xlane.f32.xlu1 %v210_v11  ;;  %v177_v54 = vsel %vm146_vm0, %v26730_v52, 0.0  ;;  %v180_v55 = vsel %vm146_vm0, %v26732_v53, 0.0  ;;  %v26740_v57 = vld [vmem:[#allocation3 + $0x68] sm:$0xff]  ;;  %v183_v58 = vsel %vm146_vm0, %v26738_v56, 0.0  ;;  %v26746_v60 = vld [vmem:[#allocation3 + $0x70] sm:$0xff]  ;;  %v26748_v61 = vld [vmem:[#allocation3 + $0x78] sm:$0xff] }
  0x56   :  { %v186_v59 = vsel %vm146_vm0, %v26740_v57, 0.0  ;;  %v189_v62 = vsel %vm146_vm0, %v26746_v60, 0.0  ;;  %v192_v63 = vsel %vm146_vm0, %v26748_v61, 0.0  ;;  %s26539_s20 = smov 104   ;;  %s26540_s21 = smov 16   ;;  %vm11927_vm3 = vcmask 130112  }
  0x57   :  { %vm17400_vm4 = vcmask 195712   ;;  %s26541_s22 = smov 24   ;;  %vm22873_vm5 = vcmask 261312  }
  0x59   :  { %214 = vadd.xlane.f32.xlu0 %v213_v16  ;;  %217 = vadd.xlane.f32.xlu1 %v216_v17 }
  0x5d   :  { %220 = vadd.xlane.f32.xlu0 %v219_v18  ;;  %223 = vadd.xlane.f32.xlu1 %v222_v19 }
  0x61   :  { %226 = vadd.xlane.f32.xlu0 %v225_v22  ;;  %229 = vadd.xlane.f32.xlu1 %v228_v23 }
  0x65   :  { %232 = vadd.xlane.f32.xlu0 %v231_v26  ;;  %235 = vadd.xlane.f32.xlu1 %v234_v27 }
  0x69   :  { %238 = vadd.xlane.f32.xlu0 %v237_v30  ;;  %241 = vadd.xlane.f32.xlu1 %v240_v31 }
  0x6d   :  { %148 = vadd.xlane.f32.xlu0 %v147_v34  ;;  %151 = vadd.xlane.f32.xlu1 %v150_v35 }
  0x71   :  { %154 = vadd.xlane.f32.xlu0 %v153_v38  ;;  %157 = vadd.xlane.f32.xlu1 %v156_v39 }
  0x75   :  { %160 = vadd.xlane.f32.xlu0 %v159_v42  ;;  %163 = vadd.xlane.f32.xlu1 %v162_v43 }
  0x79   :  { %166 = vadd.xlane.f32.xlu0 %v165_v46  ;;  %169 = vadd.xlane.f32.xlu1 %v168_v47 }
  0x7d   :  { %172 = vadd.xlane.f32.xlu0 %v171_v50  ;;  %175 = vadd.xlane.f32.xlu1 %v174_v51 }
  0x81   :  { %178 = vadd.xlane.f32.xlu0 %v177_v54  ;;  %181 = vadd.xlane.f32.xlu1 %v180_v55 }
  0x85   :  { %184 = vadd.xlane.f32.xlu0 %v183_v58  ;;  %187 = vadd.xlane.f32.xlu1 %v186_v59 }
  0x89   :  { %190 = vadd.xlane.f32.xlu0 %v189_v62  ;;  %193 = vadd.xlane.f32.xlu1 %v192_v63 }
  0xd6   :  { %v197_v3 = vpop.xlane.xlu0 %196  ;;  %v203_v4 = vpop.xlane.xlu1 %202 }
  0xd7   :  { %v260_v6 = vmul.f32 0.03125, %v197_v3  ;;  %v262_v7 = vmul.f32 0.03125, %v203_v4 }
  0xd9   :  { %v26755_v10 = vsub.f32 %v26626_v0, %v260_v6  ;;  %v26758_v11 = vsub.f32 %v26628_v1, %v262_v7 }
  0xda   :  { %v200_v16 = vpop.xlane.xlu0 %199  ;;  %v206_v17 = vpop.xlane.xlu1 %205 }
  0xdb   :  { %v261_v18 = vmul.f32 0.03125, %v200_v16  ;;  %v263_v19 = vmul.f32 0.03125, %v206_v17  ;;  %v324_v22 = vmul.f32 %v26755_v10, %v26755_v10  ;;  %v326_v23 = vmul.f32 %v26758_v11, %v26758_v11 }
  0xdd   :  { %v26765_v26 = vsub.f32 %v26630_v2, %v261_v18  ;;  %v26768_v27 = vsub.f32 %v26636_v5, %v263_v19  ;;  %v388_v0 = vsel %vm146_vm0, %v324_v22, 0.0  ;;  %v394_v31 = vsel %vm146_vm0, %v326_v23, 0.0 }
  0xde   :  { %v209_v1 = vpop.xlane.xlu0 %208  ;;  %389 = vadd.xlane.f32.xlu0 %v388_v0  ;;  %v212_v30 = vpop.xlane.xlu1 %211 }
  0xdf   :  { %v264_v34 = vmul.f32 0.03125, %v209_v1  ;;  %v265_v35 = vmul.f32 0.03125, %v212_v30  ;;  %v325_v38 = vmul.f32 %v26765_v26, %v26765_v26  ;;  %v327_v39 = vmul.f32 %v26768_v27, %v26768_v27 }
  0xe1   :  { %v26777_v2 = vsub.f32 %v26642_v8, %v264_v34  ;;  %v26780_v5 = vsub.f32 %v26644_v9, %v265_v35  ;;  %v391_v42 = vsel %vm146_vm0, %v325_v38, 0.0  ;;  %v397_v47 = vsel %vm146_vm0, %v327_v39, 0.0 }
  0xe2   :  { %v215_v43 = vpop.xlane.xlu0 %214  ;;  %392 = vadd.xlane.f32.xlu1 %v391_v42  ;;  %395 = vadd.xlane.f32.xlu0 %v394_v31  ;;  %v218_v46 = vpop.xlane.xlu1 %217 }
  0xe3   :  { %v266_v50 = vmul.f32 0.03125, %v215_v43  ;;  %v267_v51 = vmul.f32 0.03125, %v218_v46  ;;  %v328_v54 = vmul.f32 %v26777_v2, %v26777_v2  ;;  %v329_v8 = vmul.f32 %v26780_v5, %v26780_v5 }
  0xe5   :  { %v26789_v55 = vsub.f32 %v26650_v12, %v266_v50  ;;  %v26792_v9 = vsub.f32 %v26652_v13, %v267_v51  ;;  %v400_v58 = vsel %vm146_vm0, %v328_v54, 0.0  ;;  %v403_v63 = vsel %vm146_vm0, %v329_v8, 0.0 }
  0xe6   :  { %v221_v59 = vpop.xlane.xlu0 %220  ;;  %398 = vadd.xlane.f32.xlu1 %v397_v47  ;;  %401 = vadd.xlane.f32.xlu0 %v400_v58  ;;  %v224_v62 = vpop.xlane.xlu1 %223 }
  0xe7   :  { %v268_v3 = vmul.f32 0.03125, %v221_v59  ;;  %v269_v4 = vmul.f32 0.03125, %v224_v62  ;;  %v330_v6 = vmul.f32 %v26789_v55, %v26789_v55  ;;  %v331_v12 = vmul.f32 %v26792_v9, %v26792_v9 }
  0xe9   :  { %v26801_v7 = vsub.f32 %v26654_v14, %v268_v3  ;;  %v26804_v13 = vsub.f32 %v26656_v15, %v269_v4  ;;  %v406_v16 = vsel %vm146_vm0, %v330_v6, 0.0  ;;  %v409_v19 = vsel %vm146_vm0, %v331_v12, 0.0 }
  0xea   :  { %v227_v17 = vpop.xlane.xlu0 %226  ;;  %404 = vadd.xlane.f32.xlu1 %v403_v63  ;;  %407 = vadd.xlane.f32.xlu0 %v406_v16  ;;  %v230_v18 = vpop.xlane.xlu1 %229 }
  0xeb   :  { %v270_v22 = vmul.f32 0.03125, %v227_v17  ;;  %v271_v23 = vmul.f32 0.03125, %v230_v18  ;;  %v332_v0 = vmul.f32 %v26801_v7, %v26801_v7  ;;  %v333_v14 = vmul.f32 %v26804_v13, %v26804_v13 }
  0xed   :  { %v26813_v1 = vsub.f32 %v26666_v20, %v270_v22  ;;  %v26816_v15 = vsub.f32 %v26668_v21, %v271_v23  ;;  %v412_v30 = vsel %vm146_vm0, %v332_v0, 0.0  ;;  %v415_v35 = vsel %vm146_vm0, %v333_v14, 0.0 }
  0xee   :  { %v233_v31 = vpop.xlane.xlu0 %232  ;;  %410 = vadd.xlane.f32.xlu1 %v409_v19  ;;  %413 = vadd.xlane.f32.xlu0 %v412_v30  ;;  %v236_v34 = vpop.xlane.xlu1 %235 }
  0xef   :  { %v272_v38 = vmul.f32 0.03125, %v233_v31  ;;  %v273_v39 = vmul.f32 0.03125, %v236_v34  ;;  %v334_v42 = vmul.f32 %v26813_v1, %v26813_v1  ;;  %v335_v20 = vmul.f32 %v26816_v15, %v26816_v15 }
  0xf1   :  { %v26825_v43 = vsub.f32 %v26674_v24, %v272_v38  ;;  %v26828_v21 = vsub.f32 %v26676_v25, %v273_v39  ;;  %v418_v46 = vsel %vm146_vm0, %v334_v42, 0.0  ;;  %v421_v51 = vsel %vm146_vm0, %v335_v20, 0.0 }
  0xf2   :  { %v239_v47 = vpop.xlane.xlu0 %238  ;;  %416 = vadd.xlane.f32.xlu1 %v415_v35  ;;  %419 = vadd.xlane.f32.xlu0 %v418_v46  ;;  %v242_v50 = vpop.xlane.xlu1 %241 }
  0xf3   :  { %v274_v54 = vmul.f32 0.03125, %v239_v47  ;;  %v275_v8 = vmul.f32 0.03125, %v242_v50  ;;  %v336_v58 = vmul.f32 %v26825_v43, %v26825_v43  ;;  %v337_v24 = vmul.f32 %v26828_v21, %v26828_v21 }
  0xf5   :  { %v26837_v59 = vsub.f32 %v26682_v28, %v274_v54  ;;  %v26840_v25 = vsub.f32 %v26684_v29, %v275_v8  ;;  %v424_v62 = vsel %vm146_vm0, %v336_v58, 0.0  ;;  %v427_v3 = vsel %vm146_vm0, %v337_v24, 0.0 }
  0xf6   :  { %422 = vadd.xlane.f32.xlu1 %v421_v51  ;;  %425 = vadd.xlane.f32.xlu0 %v424_v62  ;;  %v149_v63 = vpop.xlane.xlu0 %148  ;;  %v152_v4 = vpop.xlane.xlu1 %151 }
  0xf7   :  { %v244_v6 = vmul.f32 0.03125, %v149_v63  ;;  %v245_v12 = vmul.f32 0.03125, %v152_v4  ;;  %v338_v16 = vmul.f32 %v26837_v59, %v26837_v59  ;;  %v339_v28 = vmul.f32 %v26840_v25, %v26840_v25  ;;  %v25759_v63 = vld [vmem:[#allocation8 + $0x8] sm:$0xff]  }
  0xf8   :  { %25737 = vmatprep.subr.bf16.mxu1 %v25759_v63  ;;  %24313 = vmatprep.subr.bf16.mxu0 %v25759_v63 }
  0xf9   :  { %v26849_v17 = vsub.f32 %v26690_v32, %v244_v6  ;;  %v26852_v29 = vsub.f32 %v26692_v33, %v245_v12  ;;  %v430_v18 = vsel %vm146_vm0, %v338_v16, 0.0  ;;  %v433_v22 = vsel %vm146_vm0, %v339_v28, 0.0  ;;  %25739 = vmatpush3.bf16.msra.mxu1 %v25759_v63  ;;  %24314 = vmatpush3.bf16.msra.mxu0 %v25759_v63 }
  0xfa   :  { %428 = vadd.xlane.f32.xlu1 %v427_v3  ;;  %431 = vadd.xlane.f32.xlu0 %v430_v18  ;;  %v155_v19 = vpop.xlane.xlu0 %154  ;;  %v158_v23 = vpop.xlane.xlu1 %157 }
  0xfb   :  { %v246_v0 = vmul.f32 0.03125, %v155_v19  ;;  %v247_v14 = vmul.f32 0.03125, %v158_v23  ;;  %v308_v30 = vmul.f32 %v26849_v17, %v26849_v17  ;;  %v309_v32 = vmul.f32 %v26852_v29, %v26852_v29 }
  0xfd   :  { %v26861_v31 = vsub.f32 %v26698_v36, %v246_v0  ;;  %v26864_v33 = vsub.f32 %v26700_v37, %v247_v14  ;;  %v340_v34 = vsel %vm146_vm0, %v308_v30, 0.0  ;;  %v343_v38 = vsel %vm146_vm0, %v309_v32, 0.0 }
  0xfe   :  { %434 = vadd.xlane.f32.xlu1 %v433_v22  ;;  %341 = vadd.xlane.f32.xlu0 %v340_v34  ;;  %v161_v35 = vpop.xlane.xlu0 %160  ;;  %v164_v39 = vpop.xlane.xlu1 %163 }
  0xff   :  { %v248_v42 = vmul.f32 0.03125, %v161_v35  ;;  %v249_v20 = vmul.f32 0.03125, %v164_v39  ;;  %v310_v46 = vmul.f32 %v26861_v31, %v26861_v31  ;;  %v311_v36 = vmul.f32 %v26864_v33, %v26864_v33 }
 0x101   :  { %v26873_v47 = vsub.f32 %v26706_v40, %v248_v42  ;;  %v26876_v37 = vsub.f32 %v26708_v41, %v249_v20  ;;  %v346_v50 = vsel %vm146_vm0, %v310_v46, 0.0  ;;  %v349_v54 = vsel %vm146_vm0, %v311_v36, 0.0 }
 0x102   :  { %344 = vadd.xlane.f32.xlu1 %v343_v38  ;;  %347 = vadd.xlane.f32.xlu0 %v346_v50  ;;  %v167_v51 = vpop.xlane.xlu0 %166  ;;  %v170_v8 = vpop.xlane.xlu1 %169 }
 0x103   :  { %v250_v58 = vmul.f32 0.03125, %v167_v51  ;;  %v251_v24 = vmul.f32 0.03125, %v170_v8  ;;  %v312_v62 = vmul.f32 %v26873_v47, %v26873_v47  ;;  %v313_v40 = vmul.f32 %v26876_v37, %v26876_v37 }
 0x105   :  { %v26885_v41 = vsub.f32 %v26714_v44, %v250_v58  ;;  %v26888_v3 = vsub.f32 %v26716_v45, %v251_v24  ;;  %v352_v4 = vsel %vm146_vm0, %v312_v62, 0.0  ;;  %v355_v12 = vsel %vm146_vm0, %v313_v40, 0.0  ;;  %v25760_v45 = vld [vmem:[#allocation8] sm:$0xff]  }
 0x106   :  { %350 = vadd.xlane.f32.xlu1 %v349_v54  ;;  %353 = vadd.xlane.f32.xlu0 %v352_v4  ;;  %v173_v6 = vpop.xlane.xlu0 %172  ;;  %v176_v16 = vpop.xlane.xlu1 %175 }
 0x107   :  { %v252_v28 = vmul.f32 0.03125, %v173_v6  ;;  %v253_v18 = vmul.f32 0.03125, %v176_v16  ;;  %v314_v19 = vmul.f32 %v26885_v41, %v26885_v41  ;;  %v315_v44 = vmul.f32 %v26888_v3, %v26888_v3  ;;  %25738 = vmatprep.subr.bf16.mxu1 %v25760_v45  ;;  %24315 = vmatprep.subr.bf16.mxu0 %v25760_v45 }
 0x108   :  { %25740 = vmatpush3.bf16.msra.mxu1 %v25760_v45  ;;  %24316 = vmatpush3.bf16.msra.mxu0 %v25760_v45  ;;  %v26949_v45 = vld [vmem:[#allocation11 + $0x8] sm:$0xff]  }
 0x109   :  { %v26897_v22 = vsub.f32 %v26722_v48, %v252_v28  ;;  %v26900_v23 = vsub.f32 %v26724_v49, %v253_v18  ;;  %v358_v0 = vsel %vm146_vm0, %v314_v19, 0.0  ;;  %v361_v30 = vsel %vm146_vm0, %v315_v44, 0.0  ;;  %24385 = vmatprep.subr.bf16.mxu0 %v26949_v45 }
 0x10a   :  { %356 = vadd.xlane.f32.xlu1 %v355_v12  ;;  %359 = vadd.xlane.f32.xlu0 %v358_v0  ;;  %v179_v14 = vpop.xlane.xlu0 %178  ;;  %v182_v32 = vpop.xlane.xlu1 %181 }
 0x10b   :  { %v254_v34 = vmul.f32 0.03125, %v179_v14  ;;  %v255_v35 = vmul.f32 0.03125, %v182_v32  ;;  %v316_v38 = vmul.f32 %v26897_v22, %v26897_v22  ;;  %v317_v48 = vmul.f32 %v26900_v23, %v26900_v23 }
 0x10d   :  { %v26909_v49 = vsub.f32 %v26730_v52, %v254_v34  ;;  %v26912_v39 = vsub.f32 %v26732_v53, %v255_v35  ;;  %v364_v42 = vsel %vm146_vm0, %v316_v38, 0.0  ;;  %v367_v46 = vsel %vm146_vm0, %v317_v48, 0.0 }
 0x10e   :  { %362 = vadd.xlane.f32.xlu1 %v361_v30  ;;  %365 = vadd.xlane.f32.xlu0 %v364_v42  ;;  %v185_v20 = vpop.xlane.xlu0 %184  ;;  %v188_v36 = vpop.xlane.xlu1 %187 }
 0x10f   :  { %v256_v50 = vmul.f32 0.03125, %v185_v20  ;;  %v257_v51 = vmul.f32 0.03125, %v188_v36  ;;  %v318_v54 = vmul.f32 %v26909_v49, %v26909_v49  ;;  %v319_v52 = vmul.f32 %v26912_v39, %v26912_v39 }
 0x111   :  { %v26921_v8 = vsub.f32 %v26738_v56, %v256_v50  ;;  %v26924_v53 = vsub.f32 %v26740_v57, %v257_v51  ;;  %v370_v58 = vsel %vm146_vm0, %v318_v54, 0.0  ;;  %v373_v62 = vsel %vm146_vm0, %v319_v52, 0.0 }
 0x112   :  { %368 = vadd.xlane.f32.xlu1 %v367_v46  ;;  %371 = vadd.xlane.f32.xlu0 %v370_v58  ;;  %v191_v24 = vpop.xlane.xlu0 %190  ;;  %v194_v40 = vpop.xlane.xlu1 %193 }
 0x113   :  { %v258_v63 = vmul.f32 0.03125, %v191_v24  ;;  %v259_v4 = vmul.f32 0.03125, %v194_v40  ;;  %v320_v6 = vmul.f32 %v26921_v8, %v26921_v8  ;;  %v321_v56 = vmul.f32 %v26924_v53, %v26924_v53 }
 0x115   :  { %v26933_v12 = vsub.f32 %v26746_v60, %v258_v63  ;;  %v26936_v57 = vsub.f32 %v26748_v61, %v259_v4  ;;  %v376_v16 = vsel %vm146_vm0, %v320_v6, 0.0  ;;  %v379_v28 = vsel %vm146_vm0, %v321_v56, 0.0  ;;  %v26946_v61 = vld [vmem:[#allocation9 + $0x8] sm:$0xff]  }
 0x116   :  { %374 = vadd.xlane.f32.xlu1 %v373_v62  ;;  %377 = vadd.xlane.f32.xlu0 %v376_v16 }
 0x117   :  { %v322_v18 = vmul.f32 %v26933_v12, %v26933_v12  ;;  %v323_v19 = vmul.f32 %v26936_v57, %v26936_v57  ;;  %24349 = vmatprep.subr.bf16.mxu1 %v26946_v61 }
 0x119   :  { %v382_v44 = vsel %vm146_vm0, %v322_v18, 0.0  ;;  %v385_v60 = vsel %vm146_vm0, %v323_v19, 0.0  ;;  %v26955_v18 = vld [vmem:[%s31800_s2] ss:$0 sm:$0xff]  ;;  %s26537_s2 = smov 120  }
 0x11a   :  { %380 = vadd.xlane.f32.xlu1 %v379_v28  ;;  %383 = vadd.xlane.f32.xlu0 %v382_v44 }
 0x11e   :  { %386 = vadd.xlane.f32.xlu1 %v385_v60 }
 0x167   :  { %v390_v0 = vpop.xlane.xlu0 %389 }
 0x168   :  { %v452_v14 = vmul.f32 0.03125, %v390_v0 }
 0x16a   :  { %v484_v30 = vadd.f32 1e-05, %v452_v14 }
 0x16b   :  { %v393_v32 = vpop.xlane.xlu1 %392  ;;  %v396_v34 = vpop.xlane.xlu0 %395 }
 0x16c   :  { %25767 = vrsqrt.f32 %v484_v30  ;;  %v453_v35 = vmul.f32 0.03125, %v393_v32  ;;  %v454_v38 = vmul.f32 0.03125, %v396_v34 }
 0x16e   :  { %v485_v48 = vadd.f32 1e-05, %v453_v35  ;;  %v486_v42 = vadd.f32 1e-05, %v454_v38  ;;  %v26962_v35 = vld [vmem:[%s31801_s3] ss:$0 sm:$0xff] }
 0x16f   :  { %v399_v20 = vpop.xlane.xlu1 %398  ;;  %v402_v46 = vpop.xlane.xlu0 %401  ;;  %s26538_s3 = smov 112  }
 0x170   :  { %25769 = vrsqrt.f32 %v485_v48  ;;  %v455_v36 = vmul.f32 0.03125, %v399_v20  ;;  %v456_v50 = vmul.f32 0.03125, %v402_v46 }
 0x171   :  { %25771 = vrsqrt.f32 %v486_v42 }
 0x172   :  { %v487_v51 = vadd.f32 1e-05, %v455_v36  ;;  %v488_v54 = vadd.f32 1e-05, %v456_v50 }
 0x173   :  { %v405_v52 = vpop.xlane.xlu1 %404  ;;  %v408_v58 = vpop.xlane.xlu0 %407 }
 0x174   :  { %25773 = vrsqrt.f32 %v487_v51  ;;  %v457_v24 = vmul.f32 0.03125, %v405_v52  ;;  %v458_v62 = vmul.f32 0.03125, %v408_v58 }
 0x175   :  { %25775 = vrsqrt.f32 %v488_v54 }
 0x176   :  { %v489_v40 = vadd.f32 1e-05, %v457_v24  ;;  %v490_v63 = vadd.f32 1e-05, %v458_v62  ;;  %v26968_v24 = vld [vmem:[#allocation6] sm:$0xff] }
 0x177   :  { %v411_v4 = vpop.xlane.xlu1 %410  ;;  %v414_v6 = vpop.xlane.xlu0 %413 }
 0x178   :  { %25777 = vrsqrt.f32 %v489_v40  ;;  %v459_v56 = vmul.f32 0.03125, %v411_v4  ;;  %v460_v16 = vmul.f32 0.03125, %v414_v6 }
 0x179   :  { %v25768_v28 = vpop.eup %25767  ;;  %25779 = vrsqrt.f32 %v490_v63 }
 0x17a   :  { %v491_v19 = vadd.f32 1e-05, %v459_v56  ;;  %v492_v44 = vadd.f32 1e-05, %v460_v16  ;;  %v548_v60 = vmul.f32 %v25768_v28, %v26755_v10 }
 0x17b   :  { %v417_v0 = vpop.xlane.xlu1 %416  ;;  %v420_v14 = vpop.xlane.xlu0 %419 }
 0x17c   :  { %25781 = vrsqrt.f32 %v491_v19  ;;  %v461_v30 = vmul.f32 0.03125, %v417_v0  ;;  %v462_v32 = vmul.f32 0.03125, %v420_v14  ;;  %v587_v34 = vmul.f32 %v26955_v18, %v548_v60 }
 0x17d   :  { %v25770_v38 = vpop.eup %25769  ;;  %25783 = vrsqrt.f32 %v492_v44 }
 0x17e   :  { %v25772_v48 = vpop.eup %25771  ;;  %v493_v42 = vadd.f32 1e-05, %v461_v30  ;;  %v494_v20 = vadd.f32 1e-05, %v462_v32  ;;  %v549_v46 = vmul.f32 %v25770_v38, %v26765_v26  ;;  %v626_v50 = vadd.f32 %v26962_v35, %v587_v34 }
 0x17f   :  { %v423_v10 = vpop.xlane.xlu1 %422  ;;  %v426_v36 = vpop.xlane.xlu0 %425  ;;  %v550_v51 = vmul.f32 %v25772_v48, %v26758_v11 }
 0x180   :  { %25785 = vrsqrt.f32 %v493_v42  ;;  %v463_v54 = vmul.f32 0.03125, %v423_v10  ;;  %v464_v52 = vmul.f32 0.03125, %v426_v36  ;;  %v588_v58 = vmul.f32 %v26955_v18, %v549_v46 }
 0x181   :  { %v25774_v62 = vpop.eup %25773  ;;  %25787 = vrsqrt.f32 %v494_v20  ;;  %v589_v40 = vmul.f32 %v26955_v18, %v550_v51  ;;  %v659_v28 = vadd.f32 %v26968_v24, %v626_v50 }
 0x182   :  { %v25776_v63 = vpop.eup %25775  ;;  %v495_v4 = vadd.f32 1e-05, %v463_v54  ;;  %v496_v26 = vadd.f32 1e-05, %v464_v52  ;;  %v627_v6 = vadd.f32 %v26962_v35, %v588_v58  ;;  %v551_v56 = vmul.f32 %v25774_v62, %v26768_v27 }
 0x183   :  { %v429_v16 = vpop.xlane.xlu1 %428  ;;  %v432_v11 = vpop.xlane.xlu0 %431  ;;  %v552_v19 = vmul.f32 %v25776_v63, %v26777_v2  ;;  %v628_v32 = vadd.f32 %v26962_v35, %v589_v40 }
 0x184   :  { %25789 = vrsqrt.f32 %v495_v4  ;;  %v465_v44 = vmul.f32 0.03125, %v429_v16  ;;  %v466_v60 = vmul.f32 0.03125, %v432_v11  ;;  %v660_v0 = vadd.f32 %v26968_v24, %v627_v6 }
 0x185   :  { %v25778_v14 = vpop.eup %25777  ;;  %25791 = vrsqrt.f32 %v496_v26  ;;  %v590_v30 = vmul.f32 %v26955_v18, %v551_v56  ;;  %v591_v34 = vmul.f32 %v26955_v18, %v552_v19 }
 0x186   :  { %v25780_v27 = vpop.eup %25779  ;;  %v497_v38 = vadd.f32 1e-05, %v465_v44  ;;  %v498_v48 = vadd.f32 1e-05, %v466_v60  ;;  %v26979_v42 = vpack.c.bf16 %v660_v0, %v659_v28  ;;  %v553_v2 = vmul.f32 %v25778_v14, %v26780_v5  ;;  %v25762_v44 = vld [vmem:[#allocation9] sm:$0xff]  }
 0x187   :  { %v435_v20 = vpop.xlane.xlu1 %434  ;;  %v342_v46 = vpop.xlane.xlu0 %341  ;;  %v629_v10 = vadd.f32 %v26962_v35, %v590_v30  ;;  %v630_v36 = vadd.f32 %v26962_v35, %v591_v34  ;;  %v554_v50 = vmul.f32 %v25780_v27, %v26789_v55  ;;  %v661_v5 = vadd.f32 %v26968_v24, %v628_v32 }
 0x188   :  { %25793 = vrsqrt.f32 %v497_v38  ;;  %v467_v51 = vmul.f32 0.03125, %v435_v20  ;;  %v436_v54 = vmul.f32 0.03125, %v342_v46  ;;  %24333 = vmatprep.mubr.msk.bf16.mxu1 %vm146_vm0, %v26979_v42  ;;  %v592_v52 = vmul.f32 %v26955_v18, %v553_v2 }
 0x189   :  { %v25782_v58 = vpop.eup %25781  ;;  %25795 = vrsqrt.f32 %v498_v48  ;;  %v662_v62 = vadd.f32 %v26968_v24, %v629_v10  ;;  %v593_v40 = vmul.f32 %v26955_v18, %v554_v50  ;;  %v663_v28 = vadd.f32 %v26968_v24, %v630_v36 }
 0x18a   :  { %v25784_v63 = vpop.eup %25783  ;;  %v499_v4 = vadd.f32 1e-05, %v467_v51  ;;  %v468_v26 = vadd.f32 1e-05, %v436_v54  ;;  %v631_v55 = vadd.f32 %v26962_v35, %v592_v52  ;;  %v555_v6 = vmul.f32 %v25782_v58, %v26792_v9 }
 0x18b   :  { %v345_v56 = vpop.xlane.xlu1 %344  ;;  %v348_v16 = vpop.xlane.xlu0 %347  ;;  %v26993_v11 = vpack.c.bf16 %v662_v62, %v661_v5  ;;  %v556_v19 = vmul.f32 %v25784_v63, %v26801_v7  ;;  %v632_v32 = vadd.f32 %v26962_v35, %v593_v40 }
 0x18c   :  { %25797 = vrsqrt.f32 %v499_v4  ;;  %v437_v60 = vmul.f32 0.03125, %v345_v56  ;;  %v438_v0 = vmul.f32 0.03125, %v348_v16  ;;  %v664_v14 = vadd.f32 %v26968_v24, %v631_v55 }
 0x18d   :  { %v25786_v30 = vpop.eup %25785  ;;  %25799 = vrsqrt.f32 %v468_v26  ;;  %24334 = vmatmul.mubr.msk.bf16.vlgmr.msra.gmra.mxu1 %vm146_vm0, %v26993_v11  ;;  %v594_v9 = vmul.f32 %v26955_v18, %v555_v6  ;;  %v595_v34 = vmul.f32 %v26955_v18, %v556_v19 }
 0x18e   :  { %v25788_v27 = vpop.eup %25787  ;;  %v469_v38 = vadd.f32 1e-05, %v437_v60  ;;  %v470_v7 = vadd.f32 1e-05, %v438_v0  ;;  %v27003_v48 = vpack.c.bf16 %v664_v14, %v663_v28  ;;  %v557_v2 = vmul.f32 %v25786_v30, %v26804_v13  ;;  %24350 = vmatpush3.bf16.msra.mxu1 %v26946_v61 }
 0x18f   :  { %v351_v20 = vpop.xlane.xlu1 %350  ;;  %v354_v46 = vpop.xlane.xlu0 %353  ;;  %v633_v10 = vadd.f32 %v26962_v35, %v594_v9  ;;  %v634_v36 = vadd.f32 %v26962_v35, %v595_v34  ;;  %v558_v50 = vmul.f32 %v25788_v27, %v26813_v1  ;;  %24351 = vmatprep.subr.bf16.mxu1 %v25762_v44  ;;  %v665_v61 = vadd.f32 %v26968_v24, %v632_v32 }
 0x190   :  { %25801 = vrsqrt.f32 %v469_v38  ;;  %v439_v51 = vmul.f32 0.03125, %v351_v20  ;;  %v440_v54 = vmul.f32 0.03125, %v354_v46  ;;  %24337 = vmatprep.mubr.msk.bf16.mxu1 %vm146_vm0, %v27003_v48  ;;  %v596_v52 = vmul.f32 %v26955_v18, %v557_v2 }
 0x191   :  { %v25790_v13 = vpop.eup %25789  ;;  %25803 = vrsqrt.f32 %v470_v7  ;;  %v666_v58 = vadd.f32 %v26968_v24, %v633_v10  ;;  %v597_v5 = vmul.f32 %v26955_v18, %v558_v50  ;;  %v667_v56 = vadd.f32 %v26968_v24, %v634_v36 }
 0x192   :  { %v25792_v62 = vpop.eup %25791  ;;  %v471_v40 = vadd.f32 1e-05, %v439_v51  ;;  %v472_v1 = vadd.f32 1e-05, %v440_v54  ;;  %v635_v63 = vadd.f32 %v26962_v35, %v596_v52  ;;  %v559_v4 = vmul.f32 %v25790_v13, %v26816_v15  ;;  %24352 = vmatpush3.bf16.msra.mxu1 %v25762_v44 }
 0x193   :  { %v357_v26 = vpop.xlane.xlu1 %356  ;;  %v360_v55 = vpop.xlane.xlu0 %359  ;;  %v27018_v6 = vpack.c.bf16 %v666_v58, %v665_v61  ;;  %v560_v16 = vmul.f32 %v25792_v62, %v26825_v43  ;;  %v636_v44 = vadd.f32 %v26962_v35, %v597_v5 }
 0x194   :  { %25805 = vrsqrt.f32 %v471_v40  ;;  %v441_v28 = vmul.f32 0.03125, %v357_v26  ;;  %v442_v19 = vmul.f32 0.03125, %v360_v55  ;;  %v668_v60 = vadd.f32 %v26968_v24, %v635_v63 }
 0x195   :  { %v25794_v0 = vpop.eup %25793  ;;  %25807 = vrsqrt.f32 %v472_v1  ;;  %24338 = vmatmul.mubr.msk.bf16.gmra.mxu1 %vm146_vm0, %v27018_v6  ;;  %v598_v15 = vmul.f32 %v26955_v18, %v559_v4  ;;  %v599_v14 = vmul.f32 %v26955_v18, %v560_v16 }
 0x196   :  { %v25796_v30 = vpop.eup %25795  ;;  %v473_v9 = vadd.f32 1e-05, %v441_v28  ;;  %v474_v32 = vadd.f32 1e-05, %v442_v19  ;;  %v27028_v43 = vpack.c.bf16 %v668_v60, %v667_v56  ;;  %v561_v34 = vmul.f32 %v25794_v0, %v26828_v21 }
 0x197   :  { %v363_v27 = vpop.xlane.xlu1 %362  ;;  %v366_v38 = vpop.xlane.xlu0 %365  ;;  %v637_v7 = vadd.f32 %v26962_v35, %v598_v15  ;;  %v638_v2 = vadd.f32 %v26962_v35, %v599_v14  ;;  %v562_v20 = vmul.f32 %v25796_v30, %v26837_v59  ;;  %v669_v21 = vadd.f32 %v26968_v24, %v636_v44 }
 0x198   :  { %25809 = vrsqrt.f32 %v473_v9  ;;  %v443_v46 = vmul.f32 0.03125, %v363_v27  ;;  %v444_v10 = vmul.f32 0.03125, %v366_v38  ;;  %24341 = vmatprep.mubr.msk.bf16.mxu1 %vm146_vm0, %v27028_v43  ;;  %v600_v36 = vmul.f32 %v26955_v18, %v561_v34 }
 0x199   :  { %v25798_v50 = vpop.eup %25797  ;;  %25811 = vrsqrt.f32 %v474_v32  ;;  %v670_v51 = vadd.f32 %v26968_v24, %v637_v7  ;;  %v601_v54 = vmul.f32 %v26955_v18, %v562_v20  ;;  %v671_v1 = vadd.f32 %v26968_v24, %v638_v2 }
 0x19a   :  { %v25800_v52 = vpop.eup %25799  ;;  %v475_v13 = vadd.f32 1e-05, %v443_v46  ;;  %v476_v61 = vadd.f32 1e-05, %v444_v10  ;;  %v639_v59 = vadd.f32 %v26962_v35, %v600_v36  ;;  %v563_v58 = vmul.f32 %v25798_v50, %v26840_v25 }
 0x19b   :  { %v369_v5 = vpop.xlane.xlu1 %368  ;;  %v372_v62 = vpop.xlane.xlu0 %371  ;;  %v27042_v40 = vpack.c.bf16 %v670_v51, %v669_v21  ;;  %v532_v63 = vmul.f32 %v25800_v52, %v26849_v17  ;;  %v640_v16 = vadd.f32 %v26962_v35, %v601_v54 }
 0x19c   :  { %25813 = vrsqrt.f32 %v475_v13  ;;  %v445_v4 = vmul.f32 0.03125, %v369_v5  ;;  %v446_v26 = vmul.f32 0.03125, %v372_v62  ;;  %v672_v55 = vadd.f32 %v26968_v24, %v639_v59 }
 0x19d   :  { %v25802_v56 = vpop.eup %25801  ;;  %25815 = vrsqrt.f32 %v476_v61  ;;  %24342 = vmatmul.mubr.msk.bf16.gmra.mxu1 %vm146_vm0, %v27042_v40  ;;  %v602_v25 = vmul.f32 %v26955_v18, %v563_v58  ;;  %v571_v28 = vmul.f32 %v26955_v18, %v532_v63 }
 0x19e   :  { %v25804_v19 = vpop.eup %25803  ;;  %v477_v60 = vadd.f32 1e-05, %v445_v4  ;;  %v478_v0 = vadd.f32 1e-05, %v446_v26  ;;  %v27052_v17 = vpack.c.bf16 %v672_v55, %v671_v1  ;;  %v533_v15 = vmul.f32 %v25802_v56, %v26852_v29 }
 0x19f   :  { %v375_v44 = vpop.xlane.xlu1 %374  ;;  %v378_v14 = vpop.xlane.xlu0 %377  ;;  %v641_v30 = vadd.f32 %v26962_v35, %v602_v25  ;;  %v610_v9 = vadd.f32 %v26962_v35, %v571_v28  ;;  %v534_v32 = vmul.f32 %v25804_v19, %v26861_v31  ;;  %v673_v29 = vadd.f32 %v26968_v24, %v640_v16 }
 0x1a0   :  { %25817 = vrsqrt.f32 %v477_v60  ;;  %v447_v34 = vmul.f32 0.03125, %v375_v44  ;;  %v448_v27 = vmul.f32 0.03125, %v378_v14  ;;  %24345 = vmatprep.mubr.msk.bf16.mxu1 %vm146_vm0, %v27052_v17  ;;  %v572_v38 = vmul.f32 %v26955_v18, %v533_v15 }
 0x1a1   :  { %v25806_v7 = vpop.eup %25805  ;;  %25819 = vrsqrt.f32 %v478_v0  ;;  %v674_v2 = vadd.f32 %v26968_v24, %v641_v30  ;;  %v573_v20 = vmul.f32 %v26955_v18, %v534_v32  ;;  %v643_v52 = vadd.f32 %v26968_v24, %v610_v9 }
 0x1a2   :  { %v25808_v46 = vpop.eup %25807  ;;  %v479_v10 = vadd.f32 1e-05, %v447_v34  ;;  %v480_v36 = vadd.f32 1e-05, %v448_v27  ;;  %v611_v31 = vadd.f32 %v26962_v35, %v572_v38  ;;  %v535_v50 = vmul.f32 %v25806_v7, %v26864_v33  ;;  %v25764_v38 = vld [vmem:[#allocation11] sm:$0xff]  }
 0x1a3   :  { %v381_v21 = vpop.xlane.xlu1 %380  ;;  %v384_v51 = vpop.xlane.xlu0 %383  ;;  %v27066_v54 = vpack.c.bf16 %v674_v2, %v673_v29  ;;  %v536_v13 = vmul.f32 %v25808_v46, %v26873_v47  ;;  %v612_v62 = vadd.f32 %v26962_v35, %v573_v20 }
 0x1a4   :  { %25821 = vrsqrt.f32 %v479_v10  ;;  %v449_v61 = vmul.f32 0.03125, %v381_v21  ;;  %v450_v59 = vmul.f32 0.03125, %v384_v51  ;;  %v644_v58 = vadd.f32 %v26968_v24, %v611_v31 }
 0x1a5   :  { %v25810_v5 = vpop.eup %25809  ;;  %25823 = vrsqrt.f32 %v480_v36  ;;  %24346 = vmatmul.mubr.msk.bf16.gmra.mxu1 %vm146_vm0, %v27066_v54  ;;  %v574_v33 = vmul.f32 %v26955_v18, %v535_v50  ;;  %v575_v1 = vmul.f32 %v26955_v18, %v536_v13 }
 0x1a6   :  { %v25812_v63 = vpop.eup %25811  ;;  %v481_v4 = vadd.f32 1e-05, %v449_v61  ;;  %v482_v26 = vadd.f32 1e-05, %v450_v59  ;;  %v27076_v47 = vpack.c.bf16 %v644_v58, %v643_v52  ;;  %v537_v55 = vmul.f32 %v25810_v5, %v26876_v37 }
 0x1a7   :  { %v387_v56 = vpop.xlane.xlu1 %386  ;;  %v613_v25 = vadd.f32 %v26962_v35, %v574_v33  ;;  %v538_v16 = vmul.f32 %v25812_v63, %v26885_v41  ;;  %v614_v60 = vadd.f32 %v26962_v35, %v575_v1  ;;  %v645_v37 = vadd.f32 %v26968_v24, %v612_v62 }
 0x1a8   :  { %25825 = vrsqrt.f32 %v481_v4  ;;  %v451_v28 = vmul.f32 0.03125, %v387_v56  ;;  %24317 = vmatprep.mubr.msk.bf16.mxu0 %vm146_vm0, %v27076_v47  ;;  %24353 = vmatprep.mubr.msk.bf16.mxu1 %vm146_vm0, %v27076_v47  ;;  %v576_v19 = vmul.f32 %v26955_v18, %v537_v55 }
 0x1a9   :  { %v25814_v0 = vpop.eup %25813  ;;  %25827 = vrsqrt.f32 %v482_v26  ;;  %v646_v15 = vadd.f32 %v26968_v24, %v613_v25  ;;  %v577_v41 = vmul.f32 %v26955_v18, %v538_v16  ;;  %v647_v7 = vadd.f32 %v26968_v24, %v614_v60 }
 0x1aa   :  { %v25816_v44 = vpop.eup %25815  ;;  %v483_v14 = vadd.f32 1e-05, %v451_v28  ;;  %v615_v30 = vadd.f32 %v26962_v35, %v576_v19  ;;  %v539_v9 = vmul.f32 %v25814_v0, %v26888_v3 }
 0x1ab   :  { %v27092_v32 = vpack.c.bf16 %v646_v15, %v645_v37  ;;  %v616_v34 = vadd.f32 %v26962_v35, %v577_v41  ;;  %v540_v27 = vmul.f32 %v25816_v44, %v26897_v22 }
 0x1ac   :  { %25829 = vrsqrt.f32 %v483_v14  ;;  %v648_v29 = vadd.f32 %v26968_v24, %v615_v30  ;;  %v578_v2 = vmul.f32 %v26955_v18, %v539_v9 }
 0x1ad   :  { %v25818_v20 = vpop.eup %25817  ;;  %24318 = vmatmul.mubr.msk.bf16.vlgmr.msra.gmra.mxu0 %vm146_vm0, %v27092_v32  ;;  %24354 = vmatmul.mubr.msk.bf16.vlgmr.msra.gmra.mxu1 %vm146_vm0, %v27092_v32  ;;  %v579_v3 = vmul.f32 %v26955_v18, %v540_v27  ;;  %v649_v31 = vadd.f32 %v26968_v24, %v616_v34 }
 0x1ae   :  { %v25820_v46 = vpop.eup %25819  ;;  %v27104_v10 = vpack.c.bf16 %v648_v29, %v647_v7  ;;  %v617_v22 = vadd.f32 %v26962_v35, %v578_v2  ;;  %v541_v36 = vmul.f32 %v25818_v20, %v26900_v23  ;;  %24386 = vmatpush3.bf16.msra.mxu0 %v26949_v45 }
 0x1af   :  { %v542_v50 = vmul.f32 %v25820_v46, %v26909_v49  ;;  %24387 = vmatprep.subr.bf16.mxu0 %v25764_v38  ;;  %v618_v52 = vadd.f32 %v26962_v35, %v579_v3 }
 0x1b0   :  { %24321 = vmatprep.mubr.msk.bf16.mxu0 %vm146_vm0, %v27104_v10  ;;  %24357 = vmatprep.mubr.msk.bf16.mxu1 %vm146_vm0, %v27104_v10  ;;  %v650_v21 = vadd.f32 %v26968_v24, %v617_v22  ;;  %v580_v51 = vmul.f32 %v26955_v18, %v541_v36 }
 0x1b1   :  { %v25822_v23 = vpop.eup %25821  ;;  %v581_v45 = vmul.f32 %v26955_v18, %v542_v50  ;;  %v651_v33 = vadd.f32 %v26968_v24, %v618_v52 }
 0x1b2   :  { %v25824_v13 = vpop.eup %25823  ;;  %v678_v61 = vpack.c.bf16 %v650_v21, %v649_v31  ;;  %v619_v49 = vadd.f32 %v26962_v35, %v580_v51  ;;  %v543_v59 = vmul.f32 %v25822_v23, %v26912_v39  ;;  %24388 = vmatpush3.bf16.msra.mxu0 %v25764_v38 }
 0x1b3   :  { %v620_v58 = vadd.f32 %v26962_v35, %v581_v45  ;;  %v544_v5 = vmul.f32 %v25824_v13, %v26921_v8 }
 0x1b4   :  { %v652_v62 = vadd.f32 %v26968_v24, %v619_v49  ;;  %v582_v1 = vmul.f32 %v26955_v18, %v543_v59 }
 0x1b5   :  { %v25826_v63 = vpop.eup %25825  ;;  %24322 = vmatmul.mubr.msk.bf16.gmra.mxu0 %vm146_vm0, %v678_v61  ;;  %24358 = vmatmul.mubr.msk.bf16.gmra.mxu1 %vm146_vm0, %v678_v61  ;;  %v583_v4 = vmul.f32 %v26955_v18, %v544_v5  ;;  %v653_v8 = vadd.f32 %v26968_v24, %v620_v58 }
 0x1b6   :  { %v25828_v26 = vpop.eup %25827  ;;  %v679_v39 = vpack.c.bf16 %v652_v62, %v651_v33  ;;  %v621_v55 = vadd.f32 %v26962_v35, %v582_v1  ;;  %v545_v56 = vmul.f32 %v25826_v63, %v26924_v53 }
 0x1b7   :  { %v546_v25 = vmul.f32 %v25828_v26, %v26933_v12  ;;  %v622_v19 = vadd.f32 %v26962_v35, %v583_v4 }
 0x1b8   :  { %24325 = vmatprep.mubr.msk.bf16.mxu0 %vm146_vm0, %v679_v39  ;;  %24361 = vmatprep.mubr.msk.bf16.mxu1 %vm146_vm0, %v679_v39  ;;  %v654_v16 = vadd.f32 %v26968_v24, %v621_v55  ;;  %v584_v28 = vmul.f32 %v26955_v18, %v545_v56 }
 0x1b9   :  { %v25830_v60 = vpop.eup %25829  ;;  %v585_v0 = vmul.f32 %v26955_v18, %v546_v25  ;;  %v655_v12 = vadd.f32 %v26968_v24, %v622_v19 }
 0x1ba   :  { %v680_v37 = vpack.c.bf16 %v654_v16, %v653_v8  ;;  %v623_v53 = vadd.f32 %v26962_v35, %v584_v28  ;;  %v547_v15 = vmul.f32 %v25830_v60, %v26936_v57 }
 0x1bb   :  { %v624_v14 = vadd.f32 %v26962_v35, %v585_v0 }
 0x1bc   :  { %v656_v41 = vadd.f32 %v26968_v24, %v623_v53  ;;  %v586_v44 = vmul.f32 %v26955_v18, %v547_v15  ;;  %v31838_v18 = vmov 0.0  }
 0x1bd   :  { %24326 = vmatmul.mubr.msk.bf16.gmra.mxu0 %vm146_vm0, %v680_v37  ;;  %24362 = vmatmul.mubr.msk.bf16.gmra.mxu1 %vm146_vm0, %v680_v37  ;;  %v657_v57 = vadd.f32 %v26968_v24, %v624_v14 }
 0x1be   :  { %v681_v30 = vpack.c.bf16 %v656_v41, %v655_v12  ;;  %v625_v9 = vadd.f32 %v26962_v35, %v586_v44  ;;  %24421 = vmatprep.subr.mxu1 %v31838_v18  ;;  %24501 = vmatprep.subr.mxu0 %v31838_v18 }
 0x1c0   :  { %24329 = vmatprep.mubr.msk.bf16.mxu0 %vm146_vm0, %v681_v30  ;;  %24365 = vmatprep.mubr.msk.bf16.mxu1 %vm146_vm0, %v681_v30  ;;  %v658_v34 = vadd.f32 %v26968_v24, %v625_v9 }
 0x1c2   :  { %v682_v27 = vpack.c.bf16 %v658_v34, %v657_v57 }
 0x1c5   :  { %24330 = vmatmul.mubr.msk.bf16.gmra.mxu0 %vm146_vm0, %v682_v27  ;;  %24366 = vmatmul.mubr.msk.bf16.gmra.mxu1 %vm146_vm0, %v682_v27 }
 0x1c6   :  { %24369 = vmatprep.mubr.msk.bf16.mxu1 %vm146_vm0, %v26979_v42  ;;  %24389 = vmatprep.mubr.msk.bf16.mxu0 %vm146_vm0, %v27076_v47 }
 0x1cd   :  { %24370 = vmatmul.mubr.msk.bf16.gmra.mxu1 %vm146_vm0, %v26993_v11  ;;  %24390 = vmatmul.mubr.msk.bf16.vlgmr.msra.gmra.mxu0 %vm146_vm0, %v27092_v32 }
 0x1ce   :  { %24373 = vmatprep.mubr.msk.bf16.mxu1 %vm146_vm0, %v27003_v48  ;;  %24393 = vmatprep.mubr.msk.bf16.mxu0 %vm146_vm0, %v27104_v10 }
 0x1d5   :  { %24374 = vmatmul.mubr.msk.bf16.gmra.mxu1 %vm146_vm0, %v27018_v6  ;;  %24394 = vmatmul.mubr.msk.bf16.gmra.mxu0 %vm146_vm0, %v678_v61 }
 0x1d6   :  { %24377 = vmatprep.mubr.msk.bf16.mxu1 %vm146_vm0, %v27028_v43  ;;  %24397 = vmatprep.mubr.msk.bf16.mxu0 %vm146_vm0, %v679_v39 }
 0x1dd   :  { %24378 = vmatmul.mubr.msk.bf16.gmra.mxu1 %vm146_vm0, %v27042_v40  ;;  %24398 = vmatmul.mubr.msk.bf16.gmra.mxu0 %vm146_vm0, %v680_v37 }
 0x1de   :  { %24381 = vmatprep.mubr.msk.bf16.mxu1 %vm146_vm0, %v27052_v17  ;;  %24401 = vmatprep.mubr.msk.bf16.mxu0 %vm146_vm0, %v681_v30 }
 0x1e5   :  { %24382 = vmatmul.mubr.msk.bf16.gmra.mxu1 %vm146_vm0, %v27066_v54  ;;  %24402 = vmatmul.mubr.msk.bf16.gmra.mxu0 %vm146_vm0, %v682_v27 }
 0x1e6   :  { %24405 = vmatprep.mubr.msk.bf16.mxu0 %vm146_vm0, %v26979_v42  ;;  %24423 = vmatprep.mubr.msk.f32.mxu1 %vm26536_vm1, %v31838_v18 }
 0x1ed   :  { %24406 = vmatmul.mubr.msk.bf16.gmra.mxu0 %vm146_vm0, %v26993_v11 }
 0x1ee   :  { %24409 = vmatprep.mubr.msk.bf16.mxu0 %vm146_vm0, %v27003_v48 }
 0x1f5   :  { %24410 = vmatmul.mubr.msk.bf16.gmra.mxu0 %vm146_vm0, %v27018_v6 }
 0x1f6   :  { %24413 = vmatprep.mubr.msk.bf16.mxu0 %vm146_vm0, %v27028_v43 }
 0x1fd   :  { %24414 = vmatmul.mubr.msk.bf16.gmra.mxu0 %vm146_vm0, %v27042_v40 }
 0x1fe   :  { %24417 = vmatprep.mubr.msk.bf16.mxu0 %vm146_vm0, %v27052_v17 }
 0x205   :  { %24418 = vmatmul.mubr.msk.bf16.gmra.mxu0 %vm146_vm0, %v27066_v54 }
 0x206   :  { %24503 = vmatprep.mubr.msk.f32.mxu0 %vm26536_vm1, %v31838_v18 }
 0x24d   :  { %v27203_v35 = vpop.f32.mrf.mxu1 }
 0x24f   :  { %v27205_v24 = vpop.f32.mrf.mxu1 }
 0x251   :  { %v27207_v42 = vpop.f32.mrf.mxu1 }
 0x252   :  { %31990 = vst [vmem:[#allocation20_spill] sm:$0xff] %v27207_v42 }
 0x253   :  { %v27209_v11 = vpop.f32.mrf.mxu1 }
 0x254   :  { %31991 = vst [vmem:[#allocation21_spill] sm:$0xff] %v27209_v11 }
 0x255   :  { %v27211_v48 = vpop.f32.mrf.mxu1 }
 0x256   :  { %31992 = vst [vmem:[#allocation22_spill] sm:$0xff] %v27211_v48 }
 0x257   :  { %v27213_v6 = vpop.f32.mrf.mxu1 }
 0x259   :  { %v27215_v43 = vpop.f32.mrf.mxu1 }
 0x25a   :  { %31993 = vst [vmem:[#allocation23_spill] sm:$0xff] %v27215_v43 }
 0x25b   :  { %v27217_v40 = vpop.f32.mrf.mxu1 }
 0x25c   :  { %31994 = vst [vmem:[#allocation24_spill] sm:$0xff] %v27217_v40 }
 0x25d   :  { %v27219_v17 = vpop.f32.mrf.mxu1 }
 0x25e   :  { %31995 = vst [vmem:[#allocation25_spill] sm:$0xff] %v27219_v17 }
 0x25f   :  { %v27221_v54 = vpop.f32.mrf.mxu1 }
 0x260   :  { %31996 = vst [vmem:[#allocation26_spill] sm:$0xff] %v27221_v54 }
 0x261   :  { %v27223_v47 = vpop.f32.mrf.mxu1 }
 0x262   :  { %31997 = vst [vmem:[#allocation27_spill] sm:$0xff] %v27223_v47 }
 0x263   :  { %v27225_v32 = vpop.f32.mrf.mxu1 }
 0x264   :  { %31998 = vst [vmem:[#allocation28_spill] sm:$0xff] %v27225_v32 }
 0x265   :  { %v27227_v38 = vpop.f32.mrf.mxu1 }
 0x266   :  { %31999 = vst [vmem:[#allocation29_spill] sm:$0xff] %v27227_v38 }
 0x267   :  { %v27229_v7 = vpop.f32.mrf.mxu1 }
 0x268   :  { %32000 = vst [vmem:[#allocation30_spill] sm:$0xff] %v27229_v7 }
 0x269   :  { %v27231_v29 = vpop.f32.mrf.mxu1 }
 0x26a   :  { %32001 = vst [vmem:[#allocation31_spill] sm:$0xff] %v27231_v29 }
 0x26b   :  { %v27233_v2 = vpop.f32.mrf.mxu1 }
 0x26c   :  { %32002 = vst [vmem:[#allocation32_spill] sm:$0xff] %v27233_v2 }
 0x26d   :  { %v27235_v20 = vpop.f32.mrf.mxu0  ;;  %v27237_v3 = vpop.f32.mrf.mxu1 }
 0x26e   :  { %32003 = vst [vmem:[#allocation33_spill] sm:$0xff] %v27235_v20  ;;  %32004 = vst [vmem:[#allocation34_spill] sm:$0xff] %v27237_v3  ;;  %6611 = vrot.lane.b32.xlu0 %v27235_v20, %s26537_s2 }
 0x26f   :  { %v27241_v46 = vpop.f32.mrf.mxu0  ;;  %v27243_v10 = vpop.f32.mrf.mxu1 }
 0x270   :  { %32005 = vst [vmem:[#allocation35_spill] sm:$0xff] %v27241_v46  ;;  %32006 = vst [vmem:[#allocation36_spill] sm:$0xff] %v27243_v10  ;;  %24422 = vmatpush3.xpose.msk.msra.mxu1 %vm1270_vm2, %v27243_v10  ;;  %6455 = vrot.lane.b32.xlu1 %v27241_v46, %s26537_s2 }
 0x271   :  { %v27249_v22 = vpop.f32.mrf.mxu0  ;;  %v27251_v36 = vpop.f32.mrf.mxu1  ;;  %24426 = vmatprep.subr.mxu1 %v31838_v18 }
 0x272   :  { %32007 = vst [vmem:[#allocation37_spill] sm:$0xff] %v27249_v22  ;;  %32008 = vst [vmem:[#allocation38_spill] sm:$0xff] %v27251_v36 }
 0x273   :  { %v27254_v31 = vpop.f32.mrf.mxu0  ;;  %v27256_v50 = vpop.f32.mrf.mxu1  ;;  %24424 = vmatmul.mubr.msk.f32.vlgmr.msra.gmra.mxu1 %vm1270_vm2, %v27241_v46 }
 0x274   :  { %32009 = vst [vmem:[#allocation39_spill] sm:$0xff] %v27254_v31  ;;  %32010 = vst [vmem:[#allocation40_spill] sm:$0xff] %v27256_v50  ;;  %6689 = vrot.lane.b32.xlu1 %v27249_v22, %s26537_s2  ;;  %24427 = vmatpush3.xpose.msk.msra.mxu1 %vm1270_vm2, %v27256_v50 }
 0x275   :  { %v27264_v21 = vpop.f32.mrf.mxu0  ;;  %v27266_v51 = vpop.f32.mrf.mxu1  ;;  %24428 = vmatprep.mubr.msk.f32.mxu1 %vm26536_vm1, %v31838_v18  ;;  %24431 = vmatprep.subr.mxu1 %v31838_v18 }
 0x276   :  { %32011 = vst [vmem:[#allocation41_spill] sm:$0xff] %v27264_v21  ;;  %32012 = vst [vmem:[#allocation42_spill] sm:$0xff] %v27266_v51  ;;  %6923 = vrot.lane.b32.xlu0 %v27264_v21, %s26537_s2 }
 0x277   :  { %v27273_v52 = vpop.f32.mrf.mxu0  ;;  %v27275_v23 = vpop.f32.mrf.mxu1  ;;  %24429 = vmatmul.mubr.msk.f32.vlgmr.msra.gmra.mxu1 %vm1270_vm2, %v27254_v31 }
 0x278   :  { %32013 = vst [vmem:[#allocation43_spill] sm:$0xff] %v27273_v52  ;;  %32014 = vst [vmem:[#allocation44_spill] sm:$0xff] %v27275_v23  ;;  %6533 = vrot.lane.b32.xlu1 %v27254_v31, %s26537_s2  ;;  %24432 = vmatpush3.xpose.msk.msra.mxu1 %vm1270_vm2, %v27237_v3 }
 0x279   :  { %v27283_v45 = vpop.f32.mrf.mxu0  ;;  %v27285_v13 = vpop.f32.mrf.mxu1  ;;  %24433 = vmatprep.mubr.msk.f32.mxu1 %vm26536_vm1, %v31838_v18  ;;  %24436 = vmatprep.subr.mxu1 %v31838_v18 }
 0x27a   :  { %32015 = vst [vmem:[#allocation45_spill] sm:$0xff] %v27283_v45  ;;  %32016 = vst [vmem:[#allocation46_spill] sm:$0xff] %v27285_v13  ;;  %6767 = vrot.lane.b32.xlu0 %v27273_v52, %s26537_s2 }
 0x27b   :  { %v27292_v61 = vpop.f32.mrf.mxu0  ;;  %v27294_v49 = vpop.f32.mrf.mxu1  ;;  %24434 = vmatmul.mubr.msk.f32.vlgmr.msra.gmra.mxu1 %vm1270_vm2, %v27235_v20 }
 0x27c   :  { %32017 = vst [vmem:[#allocation47_spill] sm:$0xff] %v27292_v61  ;;  %32018 = vst [vmem:[#allocation48_spill] sm:$0xff] %v27294_v49  ;;  %7001 = vrot.lane.b32.xlu1 %v27283_v45, %s26537_s2  ;;  %24437 = vmatpush3.xpose.msk.msra.mxu1 %vm1270_vm2, %v27251_v36 }
 0x27d   :  { %v27302_v59 = vpop.f32.mrf.mxu0  ;;  %v27304_v58 = vpop.f32.mrf.mxu1  ;;  %24438 = vmatprep.mubr.msk.f32.mxu1 %vm26536_vm1, %v31838_v18  ;;  %24441 = vmatprep.subr.mxu1 %v31838_v18 }
 0x27e   :  { %32019 = vst [vmem:[#allocation49_spill] sm:$0xff] %v27302_v59  ;;  %32020 = vst [vmem:[#allocation50_spill] sm:$0xff] %v27304_v58  ;;  %7235 = vrot.lane.b32.xlu0 %v27302_v59, %s26537_s2 }
 0x27f   :  { %v27311_v5 = vpop.f32.mrf.mxu0  ;;  %v27313_v33 = vpop.f32.mrf.mxu1  ;;  %24439 = vmatmul.mubr.msk.f32.vlgmr.msra.gmra.mxu1 %vm1270_vm2, %v27249_v22 }
 0x280   :  { %32021 = vst [vmem:[#allocation51_spill] sm:$0xff] %v27311_v5  ;;  %32022 = vst [vmem:[#allocation52_spill] sm:$0xff] %v27313_v33  ;;  %6845 = vrot.lane.b32.xlu1 %v27292_v61, %s26537_s2  ;;  %24442 = vmatpush3.xpose.msk.msra.mxu1 %vm1270_vm2, %v27275_v23 }
 0x281   :  { %v27321_v62 = vpop.f32.mrf.mxu0  ;;  %v27323_v1 = vpop.f32.mrf.mxu1  ;;  %24443 = vmatprep.mubr.msk.f32.mxu1 %vm26536_vm1, %v31838_v18  ;;  %24446 = vmatprep.subr.mxu1 %v31838_v18 }
 0x282   :  { %32023 = vst [vmem:[#allocation53_spill] sm:$0xff] %v27321_v62  ;;  %32024 = vst [vmem:[#allocation54_spill] sm:$0xff] %v27323_v1  ;;  %7079 = vrot.lane.b32.xlu0 %v27311_v5, %s26537_s2 }
 0x283   :  { %v27330_v63 = vpop.f32.mrf.mxu0  ;;  %v27332_v4 = vpop.f32.mrf.mxu1  ;;  %24444 = vmatmul.mubr.msk.f32.vlgmr.msra.gmra.mxu1 %vm1270_vm2, %v27273_v52 }
 0x284   :  { %32025 = vst [vmem:[#allocation55_spill] sm:$0xff] %v27330_v63  ;;  %32026 = vst [vmem:[#allocation56_spill] sm:$0xff] %v27332_v4  ;;  %7313 = vrot.lane.b32.xlu1 %v27321_v62, %s26537_s2  ;;  %24447 = vmatpush3.xpose.msk.msra.mxu1 %vm1270_vm2, %v27294_v49 }
 0x285   :  { %v27340_v26 = vpop.f32.mrf.mxu0  ;;  %v27342_v39 = vpop.f32.mrf.mxu1  ;;  %24448 = vmatprep.mubr.msk.f32.mxu1 %vm26536_vm1, %v31838_v18  ;;  %24451 = vmatprep.subr.mxu1 %v31838_v18 }
 0x286   :  { %32027 = vst [vmem:[#allocation57_spill] sm:$0xff] %v27342_v39 }
 0x287   :  { %v27347_v55 = vpop.f32.mrf.mxu0  ;;  %v27349_v56 = vpop.f32.mrf.mxu1  ;;  %24449 = vmatmul.mubr.msk.f32.vlgmr.msra.gmra.mxu1 %vm1270_vm2, %v27292_v61 }
 0x288   :  { %32028 = vst [vmem:[#allocation58_spill] sm:$0xff] %v27347_v55  ;;  %32029 = vst [vmem:[#allocation59_spill] sm:$0xff] %v27349_v56  ;;  %7157 = vrot.lane.b32.xlu1 %v27330_v63, %s26537_s2  ;;  %24452 = vmatpush3.xpose.msk.msra.mxu1 %vm1270_vm2, %v27266_v51 }
 0x289   :  { %7391 = vrot.lane.b32.xlu0 %v27347_v55, %s26537_s2  ;;  %v27359_v8 = vpop.f32.mrf.mxu0  ;;  %v27361_v25 = vpop.f32.mrf.mxu1  ;;  %24453 = vmatprep.mubr.msk.f32.mxu1 %vm26536_vm1, %v31838_v18 }
 0x28a   :  { %32030 = vst [vmem:[#allocation60_spill] sm:$0xff] %v27359_v8  ;;  %32031 = vst [vmem:[#allocation61_spill] sm:$0xff] %v27361_v25  ;;  %24456 = vmatprep.subr.mxu1 %v31838_v18 }
 0x28b   :  { %v27366_v16 = vpop.f32.mrf.mxu0  ;;  %v27368_v28 = vpop.f32.mrf.mxu1  ;;  %24454 = vmatmul.mubr.msk.f32.vlgmr.msra.gmra.mxu1 %vm1270_vm2, %v27264_v21 }
 0x28c   :  { %32032 = vst [vmem:[#allocation62_spill] sm:$0xff] %v27366_v16  ;;  %32033 = vst [vmem:[#allocation63_spill] sm:$0xff] %v27368_v28  ;;  %24457 = vmatpush3.xpose.msk.msra.mxu1 %vm1270_vm2, %v27285_v13  ;;  %7469 = vrot.lane.b32.xlu1 %v27366_v16, %s26537_s2 }
 0x28d   :  { %6613 = vrot.lane.b32.xlu0 %v27237_v3, %s26537_s2  ;;  %v27378_v19 = vpop.f32.mrf.mxu1  ;;  %24458 = vmatprep.mubr.msk.f32.mxu1 %vm26536_vm1, %v31838_v18  ;;  %v27530_v27 = vpop.f32.mrf.mxu0 }
 0x28e   :  { %24461 = vmatprep.subr.mxu1 %v31838_v18  ;;  %32044 = vst [vmem:[#allocation74_spill] sm:$0xff] %v27530_v27 }
 0x28f   :  { %v27383_v60 = vpop.f32.mrf.mxu1  ;;  %24459 = vmatmul.mubr.msk.f32.vlgmr.msra.gmra.mxu1 %vm1270_vm2, %v27283_v45 }
 0x290   :  { %24462 = vmatpush3.xpose.msk.msra.mxu1 %vm1270_vm2, %v27313_v33  ;;  %24502 = vmatpush3.xpose.msk.msra.mxu0 %vm1270_vm2, %v27383_v60 }
 0x291   :  { %6457 = vrot.lane.b32.xlu0 %v27243_v10, %s26537_s2  ;;  %6691 = vrot.lane.b32.xlu1 %v27251_v36, %s26537_s2  ;;  %v27395_v0 = vpop.f32.mrf.mxu1 }
 0x292   :  { %32034 = vst [vmem:[#allocation64_spill] sm:$0xff] %v27395_v0  ;;  %24463 = vmatprep.mubr.msk.f32.mxu1 %vm26536_vm1, %v31838_v18  ;;  %24466 = vmatprep.subr.mxu1 %v31838_v18 }
 0x293   :  { %v27400_v37 = vpop.f32.mrf.mxu1  ;;  %24464 = vmatmul.mubr.msk.f32.vlgmr.msra.gmra.mxu1 %vm1270_vm2, %v27311_v5  ;;  %24504 = vmatmul.mubr.msk.f32.vlgmr.msra.gmra.mxu0 %vm1270_vm2, %v27205_v24 }
 0x294   :  { %32035 = vst [vmem:[#allocation65_spill] sm:$0xff] %v27400_v37  ;;  %24511 = vmatprep.subr.mxu0 %v31838_v18  ;;  %24467 = vmatpush3.xpose.msk.msra.mxu1 %vm1270_vm2, %v27332_v4 }
 0x295   :  { %24512 = vmatpush3.xpose.msk.msra.mxu0 %vm1270_vm2, %v27378_v19  ;;  %6925 = vrot.lane.b32.xlu0 %v27266_v51, %s26537_s2  ;;  %v27413_v53 = vpop.f32.mrf.mxu1 }
 0x296   :  { %6535 = vrot.lane.b32.xlu1 %v27256_v50, %s26537_s2  ;;  %24468 = vmatprep.mubr.msk.f32.mxu1 %vm26536_vm1, %v31838_v18 }
 0x297   :  { %24513 = vmatprep.mubr.msk.f32.mxu0 %vm26536_vm1, %v31838_v18  ;;  %v27421_v15 = vpop.f32.mrf.mxu1  ;;  %24469 = vmatmul.mubr.msk.f32.vlgmr.msra.gmra.mxu1 %vm1270_vm2, %v27330_v63 }
 0x298   :  { %24471 = vmatprep.subr.mxu1 %v31838_v18  ;;  %24514 = vmatmul.mubr.msk.f32.vlgmr.msra.gmra.mxu0 %vm1270_vm2, %v27203_v35 }
 0x299   :  { %24521 = vmatprep.subr.mxu0 %v31838_v18  ;;  %24472 = vmatpush3.xpose.msk.msra.mxu1 %vm1270_vm2, %v27304_v58  ;;  %v27431_v12 = vpop.f32.mrf.mxu1 }
 0x29a   :  { %32036 = vst [vmem:[#allocation66_spill] sm:$0xff] %v27431_v12  ;;  %24522 = vmatpush3.xpose.msk.msra.mxu0 %vm1270_vm2, %v27421_v15  ;;  %6769 = vrot.lane.b32.xlu0 %v27275_v23, %s26537_s2 }
 0x29b   :  { %7003 = vrot.lane.b32.xlu1 %v27285_v13, %s26537_s2  ;;  %24473 = vmatprep.mubr.msk.f32.mxu1 %vm26536_vm1, %v31838_v18  ;;  %v27441_v41 = vpop.f32.mrf.mxu1 }
 0x29c   :  { %32037 = vst [vmem:[#allocation67_spill] sm:$0xff] %v27441_v41  ;;  %24523 = vmatprep.mubr.msk.f32.mxu0 %vm26536_vm1, %v31838_v18  ;;  %24474 = vmatmul.mubr.msk.f32.vlgmr.msra.gmra.mxu1 %vm1270_vm2, %v27302_v59 }
 0x29d   :  { %24476 = vmatprep.subr.mxu1 %v31838_v18  ;;  %24524 = vmatmul.mubr.msk.f32.vlgmr.msra.gmra.mxu0 %vm1270_vm2, %v27213_v6  ;;  %v27450_v44 = vpop.f32.mrf.mxu1 }
 0x29e   :  { %32038 = vst [vmem:[#allocation68_spill] sm:$0xff] %v27450_v44  ;;  %24531 = vmatprep.subr.mxu0 %v31838_v18  ;;  %24477 = vmatpush3.xpose.msk.msra.mxu1 %vm1270_vm2, %v27323_v1 }
 0x29f   :  { %24532 = vmatpush3.xpose.msk.msra.mxu0 %vm1270_vm2, %v27413_v53  ;;  %7237 = vrot.lane.b32.xlu0 %v27304_v58, %s26537_s2  ;;  %v27459_v14 = vpop.f32.mrf.mxu1 }
 0x2a0   :  { %32039 = vst [vmem:[#allocation69_spill] sm:$0xff] %v27459_v14  ;;  %6847 = vrot.lane.b32.xlu1 %v27294_v49, %s26537_s2  ;;  %24478 = vmatprep.mubr.msk.f32.mxu1 %vm26536_vm1, %v31838_v18 }
 0x2a1   :  { %24533 = vmatprep.mubr.msk.f32.mxu0 %vm26536_vm1, %v31838_v18  ;;  %24479 = vmatmul.mubr.msk.f32.vlgmr.msra.gmra.mxu1 %vm1270_vm2, %v27321_v62  ;;  %v27469_v30 = vpop.f32.mrf.mxu1 }
 0x2a2   :  { %32040 = vst [vmem:[#allocation70_spill] sm:$0xff] %v27469_v30  ;;  %24481 = vmatprep.subr.mxu1 %v31838_v18  ;;  %24534 = vmatmul.mubr.msk.f32.vlgmr.msra.gmra.mxu0 %vm1270_vm2, %v27211_v48 }
 0x2a3   :  { %24541 = vmatprep.subr.mxu0 %v31838_v18  ;;  %24482 = vmatpush3.xpose.msk.msra.mxu1 %vm1270_vm2, %v27349_v56  ;;  %v27477_v9 = vpop.f32.mrf.mxu1 }
 0x2a4   :  { %32041 = vst [vmem:[#allocation71_spill] sm:$0xff] %v27477_v9  ;;  %24542 = vmatpush3.xpose.msk.msra.mxu0 %vm1270_vm2, %v27459_v14  ;;  %7081 = vrot.lane.b32.xlu0 %v27313_v33, %s26537_s2 }
 0x2a5   :  { %7315 = vrot.lane.b32.xlu1 %v27323_v1, %s26537_s2  ;;  %24483 = vmatprep.mubr.msk.f32.mxu1 %vm26536_vm1, %v31838_v18  ;;  %v27494_v57 = vpop.f32.mrf.mxu1 }
 0x2a6   :  { %24543 = vmatprep.mubr.msk.f32.mxu0 %vm26536_vm1, %v31838_v18  ;;  %24484 = vmatmul.mubr.msk.f32.vlgmr.msra.gmra.mxu1 %vm1270_vm2, %v27347_v55  ;;  %32042 = vst [vmem:[#allocation72_spill] sm:$0xff] %v27494_v57 }
 0x2a7   :  { %24486 = vmatprep.subr.mxu1 %v31838_v18  ;;  %24544 = vmatmul.mubr.msk.f32.vlgmr.msra.gmra.mxu0 %vm1270_vm2, %v27221_v54  ;;  %v27509_v34 = vpop.f32.mrf.mxu1 }
 0x2a8   :  { %24551 = vmatprep.subr.mxu0 %v31838_v18  ;;  %7393 = vrot.lane.b32.xlu0 %v27349_v56, %s26537_s2  ;;  %32043 = vst [vmem:[#allocation73_spill] sm:$0xff] %v27509_v34 }
 0x2a9   :  { %24552 = vmatpush3.xpose.msk.msra.mxu0 %vm1270_vm2, %v27450_v44  ;;  %24487 = vmatpush3.xpose.msk.msra.mxu1 %vm1270_vm2, %v27368_v28 }
 0x2aa   :  { %7159 = vrot.lane.b32.xlu1 %v27332_v4, %s26537_s2  ;;  %24488 = vmatprep.mubr.msk.f32.mxu1 %vm26536_vm1, %v31838_v18 }
 0x2ab   :  { %24553 = vmatprep.mubr.msk.f32.mxu0 %vm26536_vm1, %v31838_v18  ;;  %24491 = vmatprep.subr.mxu1 %v31838_v18 }
 0x2ac   :  { %24489 = vmatmul.mubr.msk.f32.vlgmr.msra.gmra.mxu1 %vm1270_vm2, %v27366_v16  ;;  %24554 = vmatmul.mubr.msk.f32.vlgmr.msra.gmra.mxu0 %vm1270_vm2, %v27219_v17  ;;  %v27545_v16 = vpop.f32.mrf.mxu0 }
 0x2ad   :  { %24561 = vmatprep.subr.mxu0 %v31838_v18  ;;  %24492 = vmatpush3.xpose.msk.msra.mxu1 %vm1270_vm2, %v27342_v39  ;;  %32045 = vst [vmem:[#allocation75_spill] sm:$0xff] %v27545_v16 }
 0x2ae   :  { %24562 = vmatpush3.xpose.msk.msra.mxu0 %vm1270_vm2, %v27509_v34  ;;  %7471 = vrot.lane.b32.xlu1 %v27368_v28, %s26537_s2  ;;  %v27588_v28 = vpop.f32.mrf.mxu1  ;;  %v27606_v1 = vpop.f32.mrf.mxu0 }
 0x2af   :  { %24493 = vmatprep.mubr.msk.f32.mxu1 %vm26536_vm1, %v31838_v18  ;;  %24563 = vmatprep.mubr.msk.f32.mxu0 %vm26536_vm1, %v31838_v18  ;;  %32046 = vst [vmem:[#allocation76_spill] sm:$0xff] %v27588_v28  ;;  %32048 = vst [vmem:[#allocation78_spill] sm:$0xff] %v27606_v1 }
 0x2b0   :  { %24494 = vmatmul.mubr.msk.f32.vlgmr.msra.gmra.mxu1 %vm1270_vm2, %v27340_v26  ;;  %24496 = vmatprep.subr.mxu1 %v31838_v18  ;;  %v27597_v62 = vpop.f32.mrf.mxu1  ;;  %v27615_v63 = vpop.f32.mrf.mxu0 }
 0x2b1   :  { %24564 = vmatmul.mubr.msk.f32.vlgmr.msra.gmra.mxu0 %vm1270_vm2, %v27229_v7  ;;  %24571 = vmatprep.subr.mxu0 %v31838_v18  ;;  %32047 = vst [vmem:[#allocation77_spill] sm:$0xff] %v27597_v62  ;;  %32049 = vst [vmem:[#allocation79_spill] sm:$0xff] %v27615_v63 }
 0x2b2   :  { %24497 = vmatpush3.xpose.msk.msra.mxu1 %vm1270_vm2, %v27361_v25  ;;  %24572 = vmatpush3.xpose.msk.msra.mxu0 %vm1270_vm2, %v27494_v57  ;;  %v27623_v4 = vpop.f32.mrf.mxu0 }
 0x2b3   :  { %24498 = vmatprep.mubr.msk.f32.mxu1 %vm26536_vm1, %v31838_v18  ;;  %24573 = vmatprep.mubr.msk.f32.mxu0 %vm26536_vm1, %v31838_v18  ;;  %32050 = vst [vmem:[#allocation80_spill] sm:$0xff] %v27623_v4 }
 0x2b4   :  { %24506 = vmatprep.subr.mxu1 %v31838_v18  ;;  %24581 = vmatprep.subr.mxu0 %v31838_v18  ;;  %v27625_v45 = vpop.f32.mrf.mxu0 }
 0x2b5   :  { %24499 = vmatmul.mubr.msk.f32.vlgmr.msra.gmra.mxu1 %vm1270_vm2, %v27359_v8  ;;  %24574 = vmatmul.mubr.msk.f32.vlgmr.msra.gmra.mxu0 %vm1270_vm2, %v27227_v38  ;;  %32051 = vst [vmem:[#allocation81_spill] sm:$0xff] %v27625_v45 }
 0x2b6   :  { %24507 = vmatpush3.xpose.msk.msra.mxu1 %vm1270_vm2, %v27400_v37  ;;  %24582 = vmatpush3.msra.mxu0 %v27545_v16  ;;  %v27627_v13 = vpop.f32.mrf.mxu0 }
 0x2b7   :  { %24508 = vmatprep.mubr.msk.f32.mxu1 %vm26536_vm1, %v31838_v18  ;;  %24516 = vmatprep.subr.mxu1 %v31838_v18  ;;  %32052 = vst [vmem:[#allocation82_spill] sm:$0xff] %v27627_v13 }
 0x2b8   :  { %24583 = vmatprep.mubr.msk.f32.mxu0 %vm26536_vm1, %v31838_v18  ;;  %24591 = vmatprep.subr.mxu0 %v31838_v18  ;;  %v27629_v61 = vpop.f32.mrf.mxu0 }
 0x2b9   :  { %24509 = vmatmul.mubr.msk.f32.vlgmr.msra.gmra.mxu1 %vm1270_vm2, %v27209_v11  ;;  %32053 = vst [vmem:[#allocation83_spill] sm:$0xff] %v27629_v61 }
 0x2ba   :  { %24517 = vmatpush3.xpose.msk.msra.mxu1 %vm1270_vm2, %v27395_v0  ;;  %24518 = vmatprep.mubr.msk.f32.mxu1 %vm26536_vm1, %v31838_v18  ;;  %v27631_v49 = vpop.f32.mrf.mxu0 }
 0x2bb   :  { %24526 = vmatprep.subr.mxu1 %v31838_v18  ;;  %32054 = vst [vmem:[#allocation84_spill] sm:$0xff] %v27631_v49 }
 0x2bc   :  { %v27633_v22 = vpop.f32.mrf.mxu0 }
 0x2bd   :  { %24519 = vmatmul.mubr.msk.f32.vlgmr.msra.gmra.mxu1 %vm1270_vm2, %v27207_v42  ;;  %32055 = vst [vmem:[#allocation85_spill] sm:$0xff] %v27633_v22 }
 0x2be   :  { %24527 = vmatpush3.xpose.msk.msra.mxu1 %vm1270_vm2, %v27441_v41  ;;  %24528 = vmatprep.mubr.msk.f32.mxu1 %vm26536_vm1, %v31838_v18  ;;  %v27635_v36 = vpop.f32.mrf.mxu0 }
 0x2bf   :  { %24536 = vmatprep.subr.mxu1 %v31838_v18  ;;  %32056 = vst [vmem:[#allocation86_spill] sm:$0xff] %v27635_v36 }
 0x2c0   :  { %v27637_v31 = vpop.f32.mrf.mxu0 }
 0x2c1   :  { %24529 = vmatmul.mubr.msk.f32.vlgmr.msra.gmra.mxu1 %vm1270_vm2, %v27217_v40  ;;  %32057 = vst [vmem:[#allocation87_spill] sm:$0xff] %v27637_v31 }
 0x2c2   :  { %24537 = vmatpush3.xpose.msk.msra.mxu1 %vm1270_vm2, %v27431_v12  ;;  %24538 = vmatprep.mubr.msk.f32.mxu1 %vm26536_vm1, %v31838_v18  ;;  %v27639_v50 = vpop.f32.mrf.mxu0 }
 0x2c3   :  { %24546 = vmatprep.subr.mxu1 %v31838_v18  ;;  %32058 = vst [vmem:[#allocation88_spill] sm:$0xff] %v27639_v50 }
 0x2c4   :  { %v27641_v55 = vpop.f32.mrf.mxu0 }
 0x2c5   :  { %24539 = vmatmul.mubr.msk.f32.vlgmr.msra.gmra.mxu1 %vm1270_vm2, %v27215_v43  ;;  %32059 = vst [vmem:[#allocation89_spill] sm:$0xff] %v27641_v55 }
 0x2c6   :  { %24547 = vmatpush3.xpose.msk.msra.mxu1 %vm1270_vm2, %v27477_v9  ;;  %24548 = vmatprep.mubr.msk.f32.mxu1 %vm26536_vm1, %v31838_v18 }
 0x2c7   :  { %24556 = vmatprep.subr.mxu1 %v31838_v18 }
 0x2c9   :  { %24549 = vmatmul.mubr.msk.f32.vlgmr.msra.gmra.mxu1 %vm1270_vm2, %v27225_v32 }
 0x2ca   :  { %24557 = vmatpush3.xpose.msk.msra.mxu1 %vm1270_vm2, %v27469_v30  ;;  %24558 = vmatprep.mubr.msk.f32.mxu1 %vm26536_vm1, %v31838_v18 }
 0x2cb   :  { %24566 = vmatprep.subr.mxu1 %v31838_v18 }
 0x2cd   :  { %24559 = vmatmul.mubr.msk.f32.vlgmr.msra.gmra.mxu1 %vm1270_vm2, %v27223_v47 }
 0x2ce   :  { %24567 = vmatpush3.xpose.msk.msra.mxu1 %vm1270_vm2, %v27597_v62  ;;  %24568 = vmatprep.mubr.msk.f32.mxu1 %vm26536_vm1, %v31838_v18 }
 0x2cf   :  { %24576 = vmatprep.subr.mxu1 %v31838_v18 }
 0x2d1   :  { %24569 = vmatmul.mubr.msk.f32.vlgmr.msra.gmra.mxu1 %vm1270_vm2, %v27233_v2 }
 0x2d2   :  { %24577 = vmatpush3.xpose.msk.msra.mxu1 %vm1270_vm2, %v27588_v28  ;;  %24578 = vmatprep.mubr.msk.f32.mxu1 %vm26536_vm1, %v31838_v18 }
 0x2d3   :  { %24586 = vmatprep.subr.mxu1 %v31838_v18 }
 0x2d5   :  { %24579 = vmatmul.mubr.msk.f32.vlgmr.msra.gmra.mxu1 %vm1270_vm2, %v27231_v29 }
 0x2d6   :  { %24587 = vmatpush3.msra.mxu1 %v27615_v63  ;;  %24588 = vmatprep.mubr.msk.f32.mxu1 %vm26536_vm1, %v31838_v18 }
 0x2d7   :  { %24596 = vmatprep.subr.mxu1 %v31838_v18  ;;  %v27643_v18 = vpop.f32.mrf.mxu0 }
 0x2d8   :  { %32060 = vst [vmem:[#allocation90_spill] sm:$0xff] %v27643_v18 }
 0x2d9   :  { %v27645_v56 = vpop.f32.mrf.mxu0 }
 0x2da   :  { %32061 = vst [vmem:[#allocation91_spill] sm:$0xff] %v27645_v56 }
 0x2db   :  { %v27647_v59 = vpop.f32.mrf.mxu0 }
 0x2dc   :  { %32062 = vst [vmem:[#allocation92_spill] sm:$0xff] %v27647_v59 }
 0x2dd   :  { %v27649_v58 = vpop.f32.mrf.mxu0 }
 0x2de   :  { %32063 = vst [vmem:[#allocation93_spill] sm:$0xff] %v27649_v58 }
 0x2df   :  { %v27651_v5 = vpop.f32.mrf.mxu0 }
 0x2e0   :  { %32064 = vst [vmem:[#allocation94_spill] sm:$0xff] %v27651_v5 }
 0x2e1   :  { %v27653_v33 = vpop.f32.mrf.mxu0 }
 0x2e2   :  { %32065 = vst [vmem:[#allocation95_spill] sm:$0xff] %v27653_v33 }
 0x2e3   :  { %v27655_v21 = vpop.f32.mrf.mxu0 }
 0x2e4   :  { %32066 = vst [vmem:[#allocation96_spill] sm:$0xff] %v27655_v21 }
 0x2e5   :  { %v27657_v51 = vpop.f32.mrf.mxu0 }
 0x2e6   :  { %32067 = vst [vmem:[#allocation97_spill] sm:$0xff] %v27657_v51 }
 0x2e7   :  { %v27659_v52 = vpop.f32.mrf.mxu0 }
 0x2e8   :  { %32068 = vst [vmem:[#allocation98_spill] sm:$0xff] %v27659_v52 }
 0x2e9   :  { %v27661_v23 = vpop.f32.mrf.mxu0 }
 0x2ea   :  { %32069 = vst [vmem:[#allocation99_spill] sm:$0xff] %v27661_v23 }
 0x2eb   :  { %v27665_v46 = vpop.f32.mrf.mxu0 }
 0x2ec   :  { %32070 = vst [vmem:[#allocation100_spill] sm:$0xff] %v27665_v46 }
 0x2ed   :  { %v27671_v33 = vpop.f32.mrf.mxu0 }
 0x2ee   :  { %32071 = vst [vmem:[#allocation101_spill] sm:$0xff] %v27671_v33 }
 0x2ef   :  { %v27677_v2 = vpop.f32.mrf.mxu0 }
 0x2f0   :  { %32072 = vst [vmem:[#allocation102_spill] sm:$0xff] %v27677_v2 }
 0x333   :  { %v1343_v20 = vpop.f32.mrf.mxu1 }
 0x334   :  { %v27663_v3 = vmul.f32 0.35355338, %v1343_v20 }
 0x335   :  { %v24425_v10 = vpop.f32.mrf.mxu1 }
 0x336   :  { %v3735_v63 = vsel %vm1270_vm2, %v27663_v3, -inf }
 0x337   :  { %v1419_v5 = vpop.f32.mrf.mxu1  ;;  %3736 = vmax.xlane.f32.xlu0 %v3735_v63  ;;  %v27683_v63 = vpop.f32.mrf.mxu0 }
 0x338   :  { %v27669_v29 = vmul.f32 0.35355338, %v1419_v5  ;;  %32073 = vst [vmem:[#allocation103_spill] sm:$0xff] %v27683_v63 }
 0x339   :  { %v24430_v28 = vpop.f32.mrf.mxu1 }
 0x33a   :  { %v3738_v52 = vsel %vm1270_vm2, %v27669_v29, -inf }
 0x33b   :  { %v1495_v23 = vpop.f32.mrf.mxu1  ;;  %3739 = vmax.xlane.f32.xlu1 %v3738_v52 }
 0x33c   :  { %v27675_v20 = vmul.f32 0.35355338, %v1495_v23  ;;  %v27689_v23 = vpop.f32.mrf.mxu0 }
 0x33d   :  { %v24435_v10 = vpop.f32.mrf.mxu1  ;;  %32074 = vst [vmem:[#allocation104_spill] sm:$0xff] %v27689_v23 }
 0x33e   :  { %v3741_v62 = vsel %vm1270_vm2, %v27675_v20, -inf }
 0x33f   :  { %v1571_v47 = vpop.f32.mrf.mxu1  ;;  %3742 = vmax.xlane.f32.xlu0 %v3741_v62  ;;  %v27695_v62 = vpop.f32.mrf.mxu0 }
 0x340   :  { %v27681_v5 = vmul.f32 0.35355338, %v1571_v47  ;;  %32075 = vst [vmem:[#allocation105_spill] sm:$0xff] %v27695_v62 }
 0x341   :  { %v24440_v28 = vpop.f32.mrf.mxu1 }
 0x342   :  { %v3744_v30 = vsel %vm1270_vm2, %v27681_v5, -inf }
 0x343   :  { %v1647_v46 = vpop.f32.mrf.mxu1  ;;  %3745 = vmax.xlane.f32.xlu1 %v3744_v30  ;;  %v27701_v30 = vpop.f32.mrf.mxu0 }
 0x344   :  { %v27687_v52 = vmul.f32 0.35355338, %v1647_v46  ;;  %32076 = vst [vmem:[#allocation106_spill] sm:$0xff] %v27701_v30 }
 0x345   :  { %v24445_v10 = vpop.f32.mrf.mxu1 }
 0x346   :  { %v3747_v2 = vsel %vm1270_vm2, %v27687_v52, -inf }
 0x347   :  { %v1723_v32 = vpop.f32.mrf.mxu1  ;;  %3748 = vmax.xlane.f32.xlu0 %v3747_v2  ;;  %v27707_v2 = vpop.f32.mrf.mxu0 }
 0x348   :  { %v27693_v47 = vmul.f32 0.35355338, %v1723_v32  ;;  %32077 = vst [vmem:[#allocation107_spill] sm:$0xff] %v27707_v2 }
 0x349   :  { %v24450_v28 = vpop.f32.mrf.mxu1 }
 0x34a   :  { %v3750_v63 = vsel %vm1270_vm2, %v27693_v47, -inf }
 0x34b   :  { %v1799_v33 = vpop.f32.mrf.mxu1  ;;  %3751 = vmax.xlane.f32.xlu1 %v3750_v63 }
 0x34c   :  { %v27699_v46 = vmul.f32 0.35355338, %v1799_v33 }
 0x34d   :  { %v24455_v10 = vpop.f32.mrf.mxu1 }
 0x34e   :  { %v3753_v23 = vsel %vm1270_vm2, %v27699_v46, -inf }
 0x34f   :  { %v1875_v9 = vpop.f32.mrf.mxu1  ;;  %3754 = vmax.xlane.f32.xlu0 %v3753_v23 }
 0x350   :  { %v27705_v32 = vmul.f32 0.35355338, %v1875_v9 }
 0x351   :  { %v24460_v28 = vpop.f32.mrf.mxu1 }
 0x352   :  { %v3756_v62 = vsel %vm1270_vm2, %v27705_v32, -inf }
 0x353   :  { %v1951_v21 = vpop.f32.mrf.mxu1  ;;  %3757 = vmax.xlane.f32.xlu1 %v3756_v62  ;;  %v2559_v33 = vpop.f32.mrf.mxu0 }
 0x354   :  { %v27711_v63 = vmul.f32 0.35355338, %v1951_v21  ;;  %v27713_v43 = vmul.f32 0.35355338, %v2559_v33 }
 0x355   :  { %v24465_v30 = vpop.f32.mrf.mxu1  ;;  %v24505_v10 = vpop.f32.mrf.mxu0 }
 0x356   :  { %v3759_v23 = vsel %vm1270_vm2, %v27711_v63, -inf  ;;  %v3783_v62 = vsel %vm1270_vm2, %v27713_v43, -inf }
 0x357   :  { %v2027_v9 = vpop.f32.mrf.mxu1  ;;  %3760 = vmax.xlane.f32.xlu0 %v3759_v23 }
 0x358   :  { %v27717_v51 = vmul.f32 0.35355338, %v2027_v9  ;;  %v2711_v28 = vpop.f32.mrf.mxu0 }
 0x359   :  { %v24470_v2 = vpop.f32.mrf.mxu1  ;;  %v27719_v12 = vmul.f32 0.35355338, %v2711_v28 }
 0x35a   :  { %v24515_v59 = vpop.f32.mrf.mxu0  ;;  %v3762_v21 = vsel %vm1270_vm2, %v27717_v51, -inf }
 0x35b   :  { %3763 = vmax.xlane.f32.xlu1 %v3762_v21  ;;  %3784 = vmax.xlane.f32.xlu0 %v3783_v62  ;;  %v3789_v9 = vsel %vm1270_vm2, %v27719_v12, -inf }
 0x35c   :  { %v2103_v30 = vpop.f32.mrf.mxu1 }
 0x35d   :  { %v2863_v33 = vpop.f32.mrf.mxu0  ;;  %v27725_v10 = vmul.f32 0.35355338, %v2103_v30 }
 0x35e   :  { %v24475_v23 = vpop.f32.mrf.mxu1  ;;  %v27729_v59 = vmul.f32 0.35355338, %v2863_v33 }
 0x35f   :  { %v24525_v2 = vpop.f32.mrf.mxu0  ;;  %3790 = vmax.xlane.f32.xlu0 %v3789_v9  ;;  %v3765_v21 = vsel %vm1270_vm2, %v27725_v10, -inf }
 0x360   :  { %v3795_v33 = vsel %vm1270_vm2, %v27729_v59, -inf }
 0x361   :  { %v2179_v28 = vpop.f32.mrf.mxu1 }
 0x362   :  { %v27731_v40 = vmul.f32 0.35355338, %v2179_v28  ;;  %v3015_v58 = vpop.f32.mrf.mxu0 }
 0x363   :  { %v24480_v62 = vpop.f32.mrf.mxu1  ;;  %3766 = vmax.xlane.f32.xlu0 %v3765_v21  ;;  %v27737_v23 = vmul.f32 0.35355338, %v3015_v58 }
 0x364   :  { %v24535_v41 = vpop.f32.mrf.mxu0  ;;  %v3768_v30 = vsel %vm1270_vm2, %v27731_v40, -inf }
 0x365   :  { %3769 = vmax.xlane.f32.xlu1 %v3768_v30  ;;  %v3801_v21 = vsel %vm1270_vm2, %v27737_v23, -inf  ;;  %v27745_v41 = vpop.permute.xlu1 %6455 }
 0x366   :  { %v2255_v2 = vpop.f32.mrf.mxu1  ;;  %32078 = vst [vmem:[#allocation108_spill] sm:$0xff] %v27745_v41 }
 0x367   :  { %v3167_v9 = vpop.f32.mrf.mxu0  ;;  %3796 = vmax.xlane.f32.xlu0 %v3795_v33  ;;  %v27741_v16 = vmul.f32 0.35355338, %v2255_v2 }
 0x368   :  { %v24485_v28 = vpop.f32.mrf.mxu1  ;;  %v27749_v0 = vmul.f32 0.35355338, %v3167_v9 }
 0x369   :  { %v24545_v42 = vpop.f32.mrf.mxu0  ;;  %v3771_v33 = vsel %vm1270_vm2, %v27741_v16, -inf  ;;  %v27755_v41 = vpop.permute.xlu1 %6689 }
 0x36a   :  { %32079 = vst [vmem:[#allocation109_spill] sm:$0xff] %v27755_v41  ;;  %v3807_v9 = vsel %vm1270_vm2, %v27749_v0, -inf }
 0x36b   :  { %3802 = vmax.xlane.f32.xlu0 %v3801_v21 }
 0x36c   :  { %v2331_v62 = vpop.f32.mrf.mxu1  ;;  %v3319_v30 = vpop.f32.mrf.mxu0 }
 0x36d   :  { %v27747_v58 = vmul.f32 0.35355338, %v2331_v62  ;;  %v27757_v21 = vmul.f32 0.35355338, %v3319_v30  ;;  %v27767_v30 = vpop.permute.xlu0 %6611 }
 0x36e   :  { %v24490_v50 = vpop.f32.mrf.mxu1  ;;  %v24555_v38 = vpop.f32.mrf.mxu0  ;;  %32080 = vst [vmem:[#allocation110_spill] sm:$0xff] %v27767_v30 }
 0x36f   :  { %v3774_v42 = vsel %vm1270_vm2, %v27747_v58, -inf  ;;  %3772 = vmax.xlane.f32.xlu0 %v3771_v33  ;;  %v3813_v33 = vsel %vm1270_vm2, %v27757_v21, -inf }
 0x370   :  { %3775 = vmax.xlane.f32.xlu1 %v3774_v42  ;;  %v2407_v2 = vpop.f32.mrf.mxu1 }
 0x371   :  { %v3471_v28 = vpop.f32.mrf.mxu0  ;;  %v27761_v18 = vmul.f32 0.35355338, %v2407_v2 }
 0x372   :  { %v24495_v62 = vpop.f32.mrf.mxu1  ;;  %v27773_v41 = vmul.f32 0.35355338, %v3471_v28 }
 0x373   :  { %v24565_v50 = vpop.f32.mrf.mxu0  ;;  %3808 = vmax.xlane.f32.xlu0 %v3807_v9  ;;  %v27769_v62 = vpop.permute.xlu1 %6533 }
 0x374   :  { %32081 = vst [vmem:[#allocation111_spill] sm:$0xff] %v27769_v62 }
 0x375   :  { %v2483_v38 = vpop.f32.mrf.mxu1  ;;  %v3623_v11 = vpop.f32.mrf.mxu0 }
 0x376   :  { %v27763_v57 = vmul.f32 0.35355338, %v2483_v38  ;;  %v3777_v38 = vsel %vm1270_vm2, %v27761_v18, -inf }
 0x377   :  { %v24500_v42 = vpop.f32.mrf.mxu1  ;;  %v24575_v7 = vpop.f32.mrf.mxu0  ;;  %3814 = vmax.xlane.f32.xlu0 %v3813_v33 }
 0x378   :  { %v3780_v50 = vsel %vm1270_vm2, %v27763_v57, -inf  ;;  %v27779_v7 = vpop.permute.xlu0 %6923  ;;  %v27783_v62 = vpop.permute.xlu1 %7001 }
 0x379   :  { %3781 = vmax.xlane.f32.xlu1 %v3780_v50  ;;  %v2635_v9 = vpop.f32.mrf.mxu1  ;;  %32082 = vst [vmem:[#allocation112_spill] sm:$0xff] %v27779_v7  ;;  %32083 = vst [vmem:[#allocation113_spill] sm:$0xff] %v27783_v62  ;;  %v27785_v50 = vmul.f32 0.35355338, %v3623_v11 }
 0x37a   :  { %v27775_v2 = vmul.f32 0.35355338, %v2635_v9  ;;  %v3819_v9 = vsel %vm1270_vm2, %v27773_v41, -inf }
 0x37b   :  { %v24510_v34 = vpop.f32.mrf.mxu1  ;;  %3778 = vmax.xlane.f32.xlu0 %v3777_v38  ;;  %v3825_v11 = vsel %vm1270_vm2, %v27785_v50, -inf }
 0x37c   :  { %v3786_v33 = vsel %vm1270_vm2, %v27775_v2, -inf  ;;  %v27793_v7 = vpop.permute.xlu0 %6767 }
 0x37d   :  { %3787 = vmax.xlane.f32.xlu1 %v3786_v33  ;;  %v2787_v42 = vpop.f32.mrf.mxu1  ;;  %32084 = vst [vmem:[#allocation114_spill] sm:$0xff] %v27793_v7 }
 0x37e   :  { %v27787_v28 = vmul.f32 0.35355338, %v2787_v42  ;;  %v27799_v42 = vpop.permute.xlu1 %6845 }
 0x37f   :  { %v24520_v30 = vpop.f32.mrf.mxu1  ;;  %3820 = vmax.xlane.f32.xlu0 %v3819_v9  ;;  %32085 = vst [vmem:[#allocation115_spill] sm:$0xff] %v27799_v42 }
 0x380   :  { %v3792_v34 = vsel %vm1270_vm2, %v27787_v28, -inf  ;;  %v27805_v55 = vpop.permute.xlu0 %7235 }
 0x381   :  { %3793 = vmax.xlane.f32.xlu1 %v3792_v34  ;;  %v2939_v38 = vpop.f32.mrf.mxu1  ;;  %32086 = vst [vmem:[#allocation116_spill] sm:$0xff] %v27805_v55 }
 0x382   :  { %v27795_v33 = vmul.f32 0.35355338, %v2939_v38  ;;  %v27809_v17 = vpop.permute.xlu1 %7313 }
 0x383   :  { %v24530_v62 = vpop.f32.mrf.mxu1  ;;  %3826 = vmax.xlane.f32.xlu0 %v3825_v11  ;;  %32087 = vst [vmem:[#allocation117_spill] sm:$0xff] %v27809_v17 }
 0x384   :  { %v3798_v30 = vsel %vm1270_vm2, %v27795_v33, -inf }
 0x385   :  { %3799 = vmax.xlane.f32.xlu1 %v3798_v30  ;;  %v3091_v9 = vpop.f32.mrf.mxu1 }
 0x386   :  { %v27803_v56 = vmul.f32 0.35355338, %v3091_v9  ;;  %v27815_v9 = vpop.permute.xlu0 %7079  ;;  %v27819_v44 = vpop.permute.xlu1 %7157 }
 0x387   :  { %v24540_v34 = vpop.f32.mrf.mxu1  ;;  %32088 = vst [vmem:[#allocation118_spill] sm:$0xff] %v27815_v9  ;;  %32089 = vst [vmem:[#allocation119_spill] sm:$0xff] %v27819_v44 }
 0x388   :  { %v3804_v38 = vsel %vm1270_vm2, %v27803_v56, -inf }
 0x389   :  { %3805 = vmax.xlane.f32.xlu1 %v3804_v38  ;;  %v3243_v7 = vpop.f32.mrf.mxu1 }
 0x38a   :  { %v27811_v62 = vmul.f32 0.35355338, %v3243_v7  ;;  %v27823_v7 = vpop.permute.xlu0 %7391 }
 0x38b   :  { %v24550_v11 = vpop.f32.mrf.mxu1  ;;  %32090 = vst [vmem:[#allocation120_spill] sm:$0xff] %v27823_v7 }
 0x38c   :  { %v3810_v42 = vsel %vm1270_vm2, %v27811_v62, -inf }
 0x38d   :  { %3811 = vmax.xlane.f32.xlu1 %v3810_v42  ;;  %v3395_v30 = vpop.f32.mrf.mxu1 }
 0x38e   :  { %v27817_v34 = vmul.f32 0.35355338, %v3395_v30  ;;  %v27829_v30 = vpop.permute.xlu1 %7469  ;;  %v27833_v54 = vpop.permute.xlu0 %6613 }
 0x38f   :  { %v24560_v55 = vpop.f32.mrf.mxu1  ;;  %32091 = vst [vmem:[#allocation121_spill] sm:$0xff] %v27829_v30  ;;  %32092 = vst [vmem:[#allocation122_spill] sm:$0xff] %v27833_v54 }
 0x390   :  { %v3816_v38 = vsel %vm1270_vm2, %v27817_v34, -inf }
 0x391   :  { %3817 = vmax.xlane.f32.xlu1 %v3816_v38  ;;  %v3547_v17 = vpop.f32.mrf.mxu1 }
 0x392   :  { %v27825_v11 = vmul.f32 0.35355338, %v3547_v17  ;;  %v27837_v7 = vpop.permute.xlu1 %6691  ;;  %v27839_v17 = vpop.permute.xlu0 %6457 }
 0x393   :  { %v24570_v36 = vpop.f32.mrf.mxu1  ;;  %32093 = vst [vmem:[#allocation123_spill] sm:$0xff] %v27837_v7  ;;  %32094 = vst [vmem:[#allocation124_spill] sm:$0xff] %v27839_v17 }
 0x394   :  { %v3822_v42 = vsel %vm1270_vm2, %v27825_v11, -inf }
 0x395   :  { %3823 = vmax.xlane.f32.xlu1 %v3822_v42  ;;  %v3699_v9 = vpop.f32.mrf.mxu1 }
 0x396   :  { %v27831_v55 = vmul.f32 0.35355338, %v3699_v9  ;;  %v27841_v36 = vpop.permute.xlu1 %6535  ;;  %v27843_v49 = vpop.permute.xlu0 %6925 }
 0x397   :  { %v24580_v44 = vpop.f32.mrf.mxu1  ;;  %32095 = vst [vmem:[#allocation125_spill] sm:$0xff] %v27841_v36  ;;  %32096 = vst [vmem:[#allocation126_spill] sm:$0xff] %v27843_v49 }
 0x398   :  { %v3828_v38 = vsel %vm1270_vm2, %v27831_v55, -inf }
 0x399   :  { %3829 = vmax.xlane.f32.xlu1 %v3828_v38 }
 0x39a   :  { %v27845_v42 = vpop.permute.xlu1 %7003  ;;  %v27847_v30 = vpop.permute.xlu0 %6769 }
 0x39b   :  { %32097 = vst [vmem:[#allocation127_spill] sm:$0xff] %v27845_v42  ;;  %32098 = vst [vmem:[#allocation128_spill] sm:$0xff] %v27847_v30 }
 0x39e   :  { %v27849_v9 = vpop.permute.xlu1 %6847  ;;  %v27851_v44 = vpop.permute.xlu0 %7237 }
 0x39f   :  { %32099 = vst [vmem:[#allocation129_spill] sm:$0xff] %v27849_v9  ;;  %32100 = vst [vmem:[#allocation130_spill] sm:$0xff] %v27851_v44 }
 0x3a2   :  { %v27853_v54 = vpop.permute.xlu1 %7315  ;;  %v27855_v14 = vpop.permute.xlu0 %7081 }
 0x3a3   :  { %32101 = vst [vmem:[#allocation131_spill] sm:$0xff] %v27853_v54  ;;  %32102 = vst [vmem:[#allocation132_spill] sm:$0xff] %v27855_v14 }
 0x3a6   :  { %v27857_v38 = vpop.permute.xlu1 %7159  ;;  %v27859_v7 = vpop.permute.xlu0 %7393 }
 0x3a7   :  { %32103 = vst [vmem:[#allocation133_spill] sm:$0xff] %v27857_v38  ;;  %32104 = vst [vmem:[#allocation134_spill] sm:$0xff] %v27859_v7 }
 0x3aa   :  { %v27861_v17 = vpop.permute.xlu1 %7471 }
 0x3ab   :  { %32105 = vst [vmem:[#allocation135_spill] sm:$0xff] %v27861_v17 }
 0x3c0   :  { %v3737_v36 = vpop.xlane.xlu0 %3736 }
 0x3c1   :  { %v3831_v49 = vsub.f32 %v27663_v3, %v3737_v36 }
 0x3c3   :  { %v3863_v42 = vmul.f32 1.442695, %v3831_v49 }
 0x3c4   :  { %v3740_v31 = vpop.xlane.xlu1 %3739 }
 0x3c5   :  { %25831 = vpow2.f32 %v3863_v42  ;;  %v3832_v9 = vsub.f32 %v27669_v29, %v3740_v31 }
 0x3c7   :  { %v3865_v30 = vmul.f32 1.442695, %v3832_v9 }
 0x3c8   :  { %v3743_v44 = vpop.xlane.xlu0 %3742 }
 0x3c9   :  { %25833 = vpow2.f32 %v3865_v30  ;;  %v3833_v54 = vsub.f32 %v27675_v20, %v3743_v44 }
 0x3cb   :  { %v3867_v14 = vmul.f32 1.442695, %v3833_v54 }
 0x3cc   :  { %v3746_v48 = vpop.xlane.xlu1 %3745 }
 0x3cd   :  { %25835 = vpow2.f32 %v3867_v14  ;;  %v3834_v38 = vsub.f32 %v27681_v5, %v3746_v48 }
 0x3cf   :  { %v3869_v7 = vmul.f32 1.442695, %v3834_v38 }
 0x3d0   :  { %v3749_v17 = vpop.xlane.xlu0 %3748 }
 0x3d1   :  { %25837 = vpow2.f32 %v3869_v7  ;;  %v3835_v3 = vsub.f32 %v27687_v52, %v3749_v17 }
 0x3d2   :  { %v27868_v49 = vpop.eup %25831 }
 0x3d3   :  { %v3871_v36 = vmul.f32 1.442695, %v3835_v3  ;;  %v3927_v29 = vsel %vm1270_vm2, %v27868_v49, 0.0 }
 0x3d4   :  { %v3752_v31 = vpop.xlane.xlu1 %3751  ;;  %3928 = vadd.xlane.f32.xlu0 %v3927_v29 }
 0x3d5   :  { %25839 = vpow2.f32 %v3871_v36  ;;  %v3836_v54 = vsub.f32 %v27693_v47, %v3752_v31 }
 0x3d6   :  { %v27873_v20 = vpop.eup %25833 }
 0x3d7   :  { %v3873_v14 = vmul.f32 1.442695, %v3836_v54  ;;  %v3930_v48 = vsel %vm1270_vm2, %v27873_v20, 0.0 }
 0x3d8   :  { %3931 = vadd.xlane.f32.xlu1 %v3930_v48  ;;  %v3755_v5 = vpop.xlane.xlu0 %3754 }
 0x3d9   :  { %25841 = vpow2.f32 %v3873_v14  ;;  %v3837_v52 = vsub.f32 %v27699_v46, %v3755_v5 }
 0x3da   :  { %v27878_v7 = vpop.eup %25835 }
 0x3db   :  { %v3875_v30 = vmul.f32 1.442695, %v3837_v52  ;;  %v3933_v17 = vsel %vm1270_vm2, %v27878_v7, 0.0 }
 0x3dc   :  { %v3758_v42 = vpop.xlane.xlu1 %3757  ;;  %3934 = vadd.xlane.f32.xlu0 %v3933_v17 }
 0x3dd   :  { %25843 = vpow2.f32 %v3875_v30  ;;  %v3838_v47 = vsub.f32 %v27705_v32, %v3758_v42 }
 0x3de   :  { %v27883_v9 = vpop.eup %25837 }
 0x3df   :  { %v3877_v44 = vmul.f32 1.442695, %v3838_v47  ;;  %v3936_v38 = vsel %vm1270_vm2, %v27883_v9, 0.0 }
 0x3e0   :  { %3937 = vadd.xlane.f32.xlu1 %v3936_v38  ;;  %v3761_v3 = vpop.xlane.xlu0 %3760 }
 0x3e1   :  { %25845 = vpow2.f32 %v3877_v44  ;;  %v3839_v46 = vsub.f32 %v27711_v63, %v3761_v3 }
 0x3e2   :  { %v27888_v36 = vpop.eup %25839 }
 0x3e3   :  { %v3879_v29 = vmul.f32 1.442695, %v3839_v46  ;;  %v3939_v31 = vsel %vm1270_vm2, %v27888_v36, 0.0 }
 0x3e4   :  { %v3764_v54 = vpop.xlane.xlu1 %3763  ;;  %3940 = vadd.xlane.f32.xlu0 %v3939_v31  ;;  %v3785_v32 = vpop.xlane.xlu0 %3784 }
 0x3e5   :  { %25847 = vpow2.f32 %v3879_v29  ;;  %v3840_v14 = vsub.f32 %v27717_v51, %v3764_v54  ;;  %v3847_v48 = vsub.f32 %v27713_v43, %v3785_v32 }
 0x3e6   :  { %v27894_v5 = vpop.eup %25841 }
 0x3e7   :  { %v3881_v52 = vmul.f32 1.442695, %v3840_v14  ;;  %v3895_v30 = vmul.f32 1.442695, %v3847_v48  ;;  %v3942_v63 = vsel %vm1270_vm2, %v27894_v5, 0.0 }
 0x3e8   :  { %3943 = vadd.xlane.f32.xlu1 %v3942_v63  ;;  %v3791_v17 = vpop.xlane.xlu0 %3790 }
 0x3e9   :  { %25849 = vpow2.f32 %v3881_v52  ;;  %v3849_v42 = vsub.f32 %v27719_v12, %v3791_v17 }
 0x3ea   :  { %v27899_v47 = vpop.eup %25843  ;;  %25851 = vpow2.f32 %v3895_v30 }
 0x3eb   :  { %v3899_v44 = vmul.f32 1.442695, %v3849_v42  ;;  %v3945_v51 = vsel %vm1270_vm2, %v27899_v47, 0.0 }
 0x3ec   :  { %3946 = vadd.xlane.f32.xlu0 %v3945_v51  ;;  %v3767_v43 = vpop.xlane.xlu0 %3766 }
 0x3ed   :  { %25853 = vpow2.f32 %v3899_v44  ;;  %v3841_v38 = vsub.f32 %v27725_v10, %v3767_v43 }
 0x3ee   :  { %v27904_v3 = vpop.eup %25845  ;;  %v3770_v46 = vpop.xlane.xlu1 %3769 }
 0x3ef   :  { %v3842_v29 = vsub.f32 %v27731_v40, %v3770_v46  ;;  %v3883_v31 = vmul.f32 1.442695, %v3841_v38  ;;  %v3948_v12 = vsel %vm1270_vm2, %v27904_v3, 0.0 }
 0x3f0   :  { %3949 = vadd.xlane.f32.xlu1 %v3948_v12  ;;  %v3797_v54 = vpop.xlane.xlu0 %3796 }
 0x3f1   :  { %v3885_v32 = vmul.f32 1.442695, %v3842_v29  ;;  %25855 = vpow2.f32 %v3883_v31  ;;  %v3851_v14 = vsub.f32 %v27729_v59, %v3797_v54 }
 0x3f2   :  { %v27910_v48 = vpop.eup %25847 }
 0x3f3   :  { %25857 = vpow2.f32 %v3885_v32  ;;  %v3903_v52 = vmul.f32 1.442695, %v3851_v14  ;;  %v3951_v10 = vsel %vm1270_vm2, %v27910_v48, 0.0 }
 0x3f4   :  { %3952 = vadd.xlane.f32.xlu0 %v3951_v10  ;;  %v3803_v30 = vpop.xlane.xlu0 %3802 }
 0x3f5   :  { %25859 = vpow2.f32 %v3903_v52  ;;  %v3853_v40 = vsub.f32 %v27737_v23, %v3803_v30 }
 0x3f6   :  { %v27915_v63 = vpop.eup %25849 }
 0x3f7   :  { %v27917_v17 = vpop.eup %25851  ;;  %v3907_v42 = vmul.f32 1.442695, %v3853_v40  ;;  %v3954_v59 = vsel %vm1270_vm2, %v27915_v63, 0.0 }
 0x3f8   :  { %3955 = vadd.xlane.f32.xlu1 %v3954_v59  ;;  %v3975_v44 = vsel %vm1270_vm2, %v27917_v17, 0.0  ;;  %v3773_v51 = vpop.xlane.xlu0 %3772 }
 0x3f9   :  { %v3776_v43 = vpop.xlane.xlu1 %3775  ;;  %25861 = vpow2.f32 %v3907_v42  ;;  %3976 = vadd.xlane.f32.xlu0 %v3975_v44  ;;  %v3843_v38 = vsub.f32 %v27741_v16, %v3773_v51 }
 0x3fa   :  { %v27924_v46 = vpop.eup %25853  ;;  %v3844_v23 = vsub.f32 %v27747_v58, %v3776_v43 }
 0x3fb   :  { %v3887_v29 = vmul.f32 1.442695, %v3843_v38  ;;  %v3981_v31 = vsel %vm1270_vm2, %v27924_v46, 0.0 }
 0x3fc   :  { %v3889_v12 = vmul.f32 1.442695, %v3844_v23  ;;  %v3809_v54 = vpop.xlane.xlu0 %3808 }
 0x3fd   :  { %25863 = vpow2.f32 %v3887_v29  ;;  %3982 = vadd.xlane.f32.xlu0 %v3981_v31  ;;  %v3855_v32 = vsub.f32 %v27749_v0, %v3809_v54 }
 0x3fe   :  { %v27930_v14 = vpop.eup %25855  ;;  %25865 = vpow2.f32 %v3889_v12 }
 0x3ff   :  { %v3911_v52 = vmul.f32 1.442695, %v3855_v32  ;;  %v3957_v16 = vsel %vm1270_vm2, %v27930_v14, 0.0 }
 0x400   :  { %v27934_v10 = vpop.eup %25857  ;;  %v3815_v58 = vpop.xlane.xlu0 %3814 }
 0x401   :  { %25867 = vpow2.f32 %v3911_v52  ;;  %v3960_v30 = vsel %vm1270_vm2, %v27934_v10, 0.0  ;;  %3958 = vadd.xlane.f32.xlu0 %v3957_v16  ;;  %v3857_v40 = vsub.f32 %v27757_v21, %v3815_v58 }
 0x402   :  { %v27939_v42 = vpop.eup %25859  ;;  %3961 = vadd.xlane.f32.xlu1 %v3960_v30  ;;  %v3782_v30 = vpop.xlane.xlu1 %3781 }
 0x403   :  { %v3915_v0 = vmul.f32 1.442695, %v3857_v40  ;;  %v3987_v59 = vsel %vm1270_vm2, %v27939_v42, 0.0  ;;  %v3846_v40 = vsub.f32 %v27763_v57, %v3782_v30 }
 0x404   :  { %v3779_v44 = vpop.xlane.xlu0 %3778 }
 0x405   :  { %25869 = vpow2.f32 %v3915_v0  ;;  %3988 = vadd.xlane.f32.xlu0 %v3987_v59  ;;  %v3845_v51 = vsub.f32 %v27761_v18, %v3779_v44  ;;  %v3893_v0 = vmul.f32 1.442695, %v3846_v40 }
 0x406   :  { %v27944_v43 = vpop.eup %25861  ;;  %v3788_v44 = vpop.xlane.xlu1 %3787 }
 0x407   :  { %v3891_v38 = vmul.f32 1.442695, %v3845_v51  ;;  %v3993_v23 = vsel %vm1270_vm2, %v27944_v43, 0.0 }
 0x408   :  { %v3821_v59 = vpop.xlane.xlu0 %3820 }
 0x409   :  { %25871 = vpow2.f32 %v3891_v38  ;;  %3994 = vadd.xlane.f32.xlu0 %v3993_v23  ;;  %v3859_v51 = vsub.f32 %v27773_v41, %v3821_v59 }
 0x40a   :  { %v27948_v21 = vpop.eup %25863  ;;  %25873 = vpow2.f32 %v3893_v0  ;;  %v3794_v23 = vpop.xlane.xlu1 %3793 }
 0x40b   :  { %v27950_v29 = vpop.eup %25865  ;;  %v3963_v31 = vsel %vm1270_vm2, %v27948_v21, 0.0 }
 0x40c   :  { %v3966_v12 = vsel %vm1270_vm2, %v27950_v29, 0.0  ;;  %v3827_v38 = vpop.xlane.xlu0 %3826 }
 0x40d   :  { %3967 = vadd.xlane.f32.xlu1 %v3966_v12  ;;  %3964 = vadd.xlane.f32.xlu0 %v3963_v31  ;;  %v3919_v31 = vmul.f32 1.442695, %v3859_v51  ;;  %v3861_v12 = vsub.f32 %v27785_v50, %v3827_v38 }
 0x40e   :  { %v27956_v18 = vpop.eup %25867 }
 0x40f   :  { %v3999_v54 = vsel %vm1270_vm2, %v27956_v18, 0.0  ;;  %25875 = vpow2.f32 %v3919_v31 }
 0x411   :  { %4000 = vadd.xlane.f32.xlu0 %v3999_v54  ;;  %v3923_v54 = vmul.f32 1.442695, %v3861_v12 }
 0x412   :  { %v27960_v32 = vpop.eup %25869 }
 0x413   :  { %v4005_v52 = vsel %vm1270_vm2, %v27960_v32, 0.0  ;;  %25877 = vpow2.f32 %v3923_v54  ;;  %v3848_v54 = vsub.f32 %v27775_v2, %v3788_v44 }
 0x415   :  { %4006 = vadd.xlane.f32.xlu0 %v4005_v52 }
 0x416   :  { %v27964_v16 = vpop.eup %25871 }
 0x417   :  { %v3969_v58 = vsel %vm1270_vm2, %v27964_v16, 0.0  ;;  %v27975_v52 = vpop.eup %25873 }
 0x418   :  { %v3972_v57 = vsel %vm1270_vm2, %v27975_v52, 0.0 }
 0x419   :  { %3970 = vadd.xlane.f32.xlu0 %v3969_v58  ;;  %v3800_v58 = vpop.xlane.xlu1 %3799 }
 0x41c   :  { %v27979_v40 = vpop.eup %25875 }
 0x41d   :  { %v3806_v30 = vpop.xlane.xlu1 %3805  ;;  %v4011_v41 = vsel %vm1270_vm2, %v27979_v40, 0.0 }
 0x41e   :  { %7627 = vrot.lane.b32.xlu1 %v27361_v25, %s26537_s2 }
 0x420   :  { %v27983_v59 = vpop.eup %25877 }
 0x421   :  { %v3812_v0 = vpop.xlane.xlu1 %3811  ;;  %32106 = vst [vmem:[#allocation136_spill] sm:$0xff] %v27983_v59  ;;  %v4017_v51 = vsel %vm1270_vm2, %v27983_v59, 0.0 }
 0x425   :  { %v27985_v50 = vpop.xlane.xlu1 %3817 }
 0x429   :  { %v27991_v38 = vpop.xlane.xlu1 %3823 }
 0x42d   :  { %v27995_v31 = vpop.xlane.xlu1 %3829 }
 0x42f   :  { %7549 = vrot.lane.b32.xlu0 %v27342_v39, %s26537_s2  ;;  %v3850_v39 = vsub.f32 %v27787_v28, %v3794_v23  ;;  %v3854_v28 = vsub.f32 %v27803_v56, %v3806_v30  ;;  %v3856_v56 = vsub.f32 %v27811_v62, %v3812_v0  ;;  %v3858_v62 = vsub.f32 %v27817_v34, %v27985_v50 }
 0x431   :  { %v3917_v34 = vmul.f32 1.442695, %v3858_v62 }
 0x442   :  { %3973 = vadd.xlane.f32.xlu1 %v3972_v57 }
 0x44e   :  { %4012 = vadd.xlane.f32.xlu0 %v4011_v41  ;;  %v3897_v41 = vmul.f32 1.442695, %v3848_v54 }
 0x452   :  { %4018 = vadd.xlane.f32.xlu0 %v4017_v51 }
 0x453   :  { %7625 = vrot.lane.b32.xlu1 %v27359_v8, %s26537_s2  ;;  %v3901_v8 = vmul.f32 1.442695, %v3850_v39  ;;  %v32107_v39 = vmov 0.0  }
 0x457   :  { %7783 = vrot.lane.b32.xlu1 %v27400_v37, %s26537_s2  ;;  %v3852_v37 = vsub.f32 %v27795_v33, %v3800_v58 }
 0x459   :  { %v3905_v44 = vmul.f32 1.442695, %v3852_v37 }
 0x45d   :  { %v3929_v12 = vpop.xlane.xlu0 %3928 }
 0x45e   :  { %25879 = vrcp.f32 %v3929_v12 }
 0x461   :  { %v3932_v57 = vpop.xlane.xlu1 %3931 }
 0x462   :  { %25881 = vrcp.f32 %v3932_v57 }
 0x465   :  { %v3935_v51 = vpop.xlane.xlu0 %3934 }
 0x466   :  { %25883 = vrcp.f32 %v3935_v51 }
 0x467   :  { %25885 = vpow2.f32 %v3897_v41 }
 0x468   :  { %7547 = vrot.lane.b32.xlu0 %v27340_v26, %s26537_s2 }
 0x469   :  { %v3938_v25 = vpop.xlane.xlu1 %3937 }
 0x46a   :  { %25887 = vrcp.f32 %v3938_v25 }
 0x46b   :  { %v25880_v59 = vpop.eup %25879  ;;  %25889 = vpow2.f32 %v3901_v8  ;;  %v3909_v8 = vmul.f32 1.442695, %v3854_v28 }
 0x46c   :  { %7705 = vrot.lane.b32.xlu0 %v27383_v60, %s26537_s2  ;;  %v4055_v2 = vmul.f32 %v25880_v59, %v27868_v49  ;;  %v3860_v59 = vsub.f32 %v27825_v11, %v27991_v38 }
 0x46d   :  { %v3941_v23 = vpop.xlane.xlu0 %3940 }
 0x46e   :  { %25891 = vrcp.f32 %v3941_v23  ;;  %24584 = vmatmul.mubr.msk.f32.vlgmr.msra.gmra.mxu0 %vm1270_vm2, %v4055_v2  ;;  %v3921_v11 = vmul.f32 1.442695, %v3860_v59  ;;  %v3862_v2 = vsub.f32 %v27831_v55, %v27995_v31  ;;  %v32109_v59 = vld [vmem:[#allocation87_spill] sm:$0xff] }
 0x46f   :  { %v25882_v12 = vpop.eup %25881  ;;  %24592 = vmatpush3.msra.mxu0 %v27530_v27  ;;  %24593 = vmatprep.mubr.msk.f32.mxu0 %vm26536_vm1, %v32107_v39  ;;  %25893 = vpow2.f32 %v3905_v44 }
 0x470   :  { %7703 = vrot.lane.b32.xlu0 %v27205_v24, %s26537_s2  ;;  %v4056_v25 = vmul.f32 %v25882_v12, %v27873_v20  ;;  %24601 = vmatprep.subr.mxu0 %v32107_v39  ;;  %v3913_v20 = vmul.f32 1.442695, %v3856_v56  ;;  %v3925_v23 = vmul.f32 1.442695, %v3862_v2  ;;  %v32112_v2 = vld [vmem:[#allocation26_spill] sm:$0xff] }
 0x471   :  { %v3944_v37 = vpop.xlane.xlu1 %3943 }
 0x472   :  { %25895 = vrcp.f32 %v3944_v37  ;;  %24589 = vmatmul.mubr.msk.f32.vlgmr.msra.gmra.mxu1 %vm1270_vm2, %v4056_v25 }
 0x473   :  { %v25884_v33 = vpop.eup %25883  ;;  %24597 = vmatpush3.msra.mxu1 %v27606_v1  ;;  %24598 = vmatprep.mubr.msk.f32.mxu1 %vm26536_vm1, %v32107_v39  ;;  %25897 = vpow2.f32 %v3909_v8 }
 0x474   :  { %7861 = vrot.lane.b32.xlu0 %v27378_v19, %s26537_s2  ;;  %v4057_v49 = vmul.f32 %v25884_v33, %v27878_v7  ;;  %24606 = vmatprep.subr.mxu1 %v32107_v39  ;;  %v28025_v30 = vpop.eup %25885 }
 0x475   :  { %v3947_v58 = vpop.xlane.xlu0 %3946  ;;  %v3978_v57 = vsel %vm1270_vm2, %v28025_v30, 0.0 }
 0x476   :  { %25899 = vrcp.f32 %v3947_v58  ;;  %24594 = vmatmul.mubr.msk.f32.vlgmr.msra.gmra.mxu0 %vm1270_vm2, %v4057_v49 }
 0x477   :  { %v25888_v0 = vpop.eup %25887  ;;  %24602 = vmatpush3.msra.mxu0 %v27625_v45  ;;  %24603 = vmatprep.mubr.msk.f32.mxu0 %vm26536_vm1, %v32107_v39  ;;  %25901 = vpow2.f32 %v3913_v20 }
 0x478   :  { %7859 = vrot.lane.b32.xlu0 %v27203_v35, %s26537_s2  ;;  %v4058_v7 = vmul.f32 %v25888_v0, %v27883_v9  ;;  %24611 = vmatprep.subr.mxu0 %v32107_v39  ;;  %v28037_v54 = vpop.eup %25889 }
 0x479   :  { %v3950_v50 = vpop.xlane.xlu1 %3949  ;;  %v3984_v44 = vsel %vm1270_vm2, %v28037_v54, 0.0 }
 0x47a   :  { %25903 = vrcp.f32 %v3950_v50  ;;  %24599 = vmatmul.mubr.msk.f32.vlgmr.msra.gmra.mxu1 %vm1270_vm2, %v4058_v7 }
 0x47b   :  { %v25892_v41 = vpop.eup %25891  ;;  %3979 = vadd.xlane.f32.xlu1 %v3978_v57  ;;  %24607 = vmatpush3.msra.mxu1 %v27629_v61  ;;  %25905 = vpow2.f32 %v3917_v34 }
 0x47c   :  { %8017 = vrot.lane.b32.xlu0 %v27421_v15, %s26537_s2  ;;  %v4059_v9 = vmul.f32 %v25892_v41, %v27888_v36  ;;  %24608 = vmatprep.mubr.msk.f32.mxu1 %vm26536_vm1, %v32107_v39  ;;  %v28049_v51 = vpop.eup %25893 }
 0x47d   :  { %v3953_v38 = vpop.xlane.xlu0 %3952  ;;  %24616 = vmatprep.subr.mxu1 %v32107_v39  ;;  %v3990_v12 = vsel %vm1270_vm2, %v28049_v51, 0.0 }
 0x47e   :  { %25907 = vrcp.f32 %v3953_v38  ;;  %24604 = vmatmul.mubr.msk.f32.vlgmr.msra.gmra.mxu0 %vm1270_vm2, %v4059_v9  ;;  %v32111_v38 = vld [vmem:[#allocation84_spill] sm:$0xff] }
 0x47f   :  { %v25896_v36 = vpop.eup %25895  ;;  %3985 = vadd.xlane.f32.xlu1 %v3984_v44  ;;  %24612 = vmatpush3.msra.mxu0 %v27623_v4  ;;  %25909 = vpow2.f32 %v3921_v11 }
 0x480   :  { %8015 = vrot.lane.b32.xlu0 %v27213_v6, %s26537_s2  ;;  %v4060_v28 = vmul.f32 %v25896_v36, %v27894_v5  ;;  %24613 = vmatprep.mubr.msk.f32.mxu0 %vm26536_vm1, %v32107_v39  ;;  %v28063_v31 = vpop.eup %25897 }
 0x481   :  { %v3956_v55 = vpop.xlane.xlu1 %3955  ;;  %24621 = vmatprep.subr.mxu0 %v32107_v39  ;;  %v3996_v37 = vsel %vm1270_vm2, %v28063_v31, 0.0 }
 0x482   :  { %25911 = vrcp.f32 %v3956_v55  ;;  %v28067_v25 = vpop.xlane.xlu0 %3976  ;;  %24609 = vmatmul.mubr.msk.f32.vlgmr.msra.gmra.mxu1 %vm1270_vm2, %v4060_v28  ;;  %v32113_v55 = vld [vmem:[#allocation86_spill] sm:$0xff] }
 0x483   :  { %v25900_v8 = vpop.eup %25899  ;;  %3991 = vadd.xlane.f32.xlu1 %v3990_v12  ;;  %24617 = vmatpush3.msra.mxu1 %v27627_v13  ;;  %25913 = vpow2.f32 %v3925_v23  ;;  %v32114_v23 = vld [vmem:[#allocation68_spill] sm:$0xff] }
 0x484   :  { %8173 = vrot.lane.b32.xlu0 %v27413_v53, %s26537_s2  ;;  %v4061_v5 = vmul.f32 %v25900_v8, %v27899_v47  ;;  %24618 = vmatprep.mubr.msk.f32.mxu1 %vm26536_vm1, %v32107_v39  ;;  %v28077_v56 = vpop.eup %25901  ;;  %v32108_v47 = vld [vmem:[#allocation22_spill] sm:$0xff] }
 0x485   :  { %24626 = vmatprep.subr.mxu1 %v32107_v39  ;;  %v4002_v58 = vsel %vm1270_vm2, %v28077_v56, 0.0 }
 0x486   :  { %v28081_v33 = vpop.xlane.xlu0 %3982  ;;  %24614 = vmatmul.mubr.msk.f32.vlgmr.msra.gmra.mxu0 %vm1270_vm2, %v4061_v5 }
 0x487   :  { %v25904_v49 = vpop.eup %25903  ;;  %3997 = vadd.xlane.f32.xlu1 %v3996_v37  ;;  %24622 = vmatpush3.msra.mxu0 %v27633_v22  ;;  %v32115_v37 = vld [vmem:[#allocation25_spill] sm:$0xff] }
 0x488   :  { %8171 = vrot.lane.b32.xlu0 %v32108_v47, %s26537_s2  ;;  %v4062_v20 = vmul.f32 %v25904_v49, %v27904_v3  ;;  %24623 = vmatprep.mubr.msk.f32.mxu0 %vm26536_vm1, %v32107_v39  ;;  %v28091_v62 = vpop.eup %25905  ;;  %v32110_v3 = vld [vmem:[#allocation69_spill] sm:$0xff] }
 0x489   :  { %24631 = vmatprep.subr.mxu0 %v32107_v39  ;;  %v4008_v41 = vsel %vm1270_vm2, %v28091_v62, 0.0 }
 0x48a   :  { %v3959_v0 = vpop.xlane.xlu0 %3958  ;;  %24619 = vmatmul.mubr.msk.f32.vlgmr.msra.gmra.mxu1 %vm1270_vm2, %v4062_v20 }
 0x48b   :  { %v25908_v7 = vpop.eup %25907  ;;  %4003 = vadd.xlane.f32.xlu1 %v4002_v58  ;;  %v3962_v34 = vpop.xlane.xlu1 %3961  ;;  %25915 = vrcp.f32 %v3959_v0  ;;  %24627 = vmatpush3.msra.mxu1 %v32109_v59 }
 0x48c   :  { %25917 = vrcp.f32 %v3962_v34  ;;  %8329 = vrot.lane.b32.xlu0 %v32110_v3, %s26537_s2  ;;  %v4063_v50 = vmul.f32 %v25908_v7, %v27910_v48  ;;  %24628 = vmatprep.mubr.msk.f32.mxu1 %vm26536_vm1, %v32107_v39  ;;  %v28103_v57 = vpop.eup %25909  ;;  %v32116_v7 = vld [vmem:[#allocation89_spill] sm:$0xff]  ;;  %v32117_v34 = vld [vmem:[#allocation91_spill] sm:$0xff] }
 0x48d   :  { %24636 = vmatprep.subr.mxu1 %v32107_v39  ;;  %v4014_v44 = vsel %vm1270_vm2, %v28103_v57, 0.0 }
 0x48e   :  { %v3989_v9 = vpop.xlane.xlu0 %3988  ;;  %24624 = vmatmul.mubr.msk.f32.vlgmr.msra.gmra.mxu0 %vm1270_vm2, %v4063_v50  ;;  %v32118_v50 = vld [vmem:[#allocation73_spill] sm:$0xff] }
 0x48f   :  { %v25912_v11 = vpop.eup %25911  ;;  %4009 = vadd.xlane.f32.xlu1 %v4008_v41  ;;  %24632 = vmatpush3.msra.mxu0 %v32111_v38 }
 0x490   :  { %8327 = vrot.lane.b32.xlu0 %v32112_v2, %s26537_s2  ;;  %v4064_v48 = vmul.f32 %v25912_v11, %v27915_v63  ;;  %24633 = vmatprep.mubr.msk.f32.mxu0 %vm26536_vm1, %v32107_v39  ;;  %v28118_v28 = vpop.eup %25913 }
 0x491   :  { %24641 = vmatprep.subr.mxu0 %v32107_v39  ;;  %v4020_v12 = vsel %vm1270_vm2, %v28118_v28, 0.0 }
 0x492   :  { %v3995_v36 = vpop.xlane.xlu0 %3994  ;;  %24629 = vmatmul.mubr.msk.f32.vlgmr.msra.gmra.mxu1 %vm1270_vm2, %v4064_v48 }
 0x493   :  { %4015 = vadd.xlane.f32.xlu1 %v4014_v44  ;;  %24637 = vmatpush3.msra.mxu1 %v32113_v55 }
 0x494   :  { %8485 = vrot.lane.b32.xlu0 %v32114_v23, %s26537_s2  ;;  %24638 = vmatprep.mubr.msk.f32.mxu1 %vm26536_vm1, %v32107_v39 }
 0x495   :  { %24646 = vmatprep.subr.mxu1 %v32107_v39 }
 0x496   :  { %v3968_v63 = vpop.xlane.xlu1 %3967  ;;  %v3965_v8 = vpop.xlane.xlu0 %3964 }
 0x497   :  { %25919 = vrcp.f32 %v3968_v63  ;;  %4021 = vadd.xlane.f32.xlu1 %v4020_v12  ;;  %v32120_v63 = vld [vmem:[#allocation72_spill] sm:$0xff] }
 0x498   :  { %v25916_v5 = vpop.eup %25915  ;;  %25921 = vrcp.f32 %v3965_v8  ;;  %8483 = vrot.lane.b32.xlu0 %v32115_v37, %s26537_s2  ;;  %v32121_v8 = vld [vmem:[#allocation90_spill] sm:$0xff] }
 0x499   :  { %v25918_v49 = vpop.eup %25917  ;;  %v4065_v20 = vmul.f32 %v25916_v5, %v27930_v14  ;;  %v32119_v14 = vld [vmem:[#allocation30_spill] sm:$0xff]  ;;  %v32122_v5 = vld [vmem:[#allocation21_spill] sm:$0xff] }
 0x49a   :  { %v4001_v58 = vpop.xlane.xlu0 %4000  ;;  %v4066_v0 = vmul.f32 %v25918_v49, %v27934_v10 }
 0x49b   :  { %24634 = vmatmul.mubr.msk.f32.vlgmr.msra.gmra.mxu0 %vm1270_vm2, %v4065_v20  ;;  %v32127_v20 = vld [vmem:[#allocation20_spill] sm:$0xff] }
 0x49c   :  { %24639 = vmatmul.mubr.msk.f32.vlgmr.msra.gmra.mxu1 %vm1270_vm2, %v4066_v0  ;;  %24642 = vmatpush3.msra.mxu0 %v32116_v7 }
 0x49d   :  { %24647 = vmatpush3.msra.mxu1 %v32117_v34  ;;  %8641 = vrot.lane.b32.xlu0 %v32118_v50, %s26537_s2 }
 0x49e   :  { %v4007_v41 = vpop.xlane.xlu0 %4006  ;;  %24648 = vmatprep.mubr.msk.f32.mxu1 %vm26536_vm1, %v32107_v39  ;;  %24656 = vmatprep.subr.mxu1 %v32107_v39 }
 0x49f   :  { %24643 = vmatprep.mubr.msk.f32.mxu0 %vm26536_vm1, %v32107_v39  ;;  %24651 = vmatprep.subr.mxu0 %v32107_v39 }
 0x4a1   :  { %8639 = vrot.lane.b32.xlu0 %v32119_v14, %s26537_s2 }
 0x4a2   :  { %v3971_v10 = vpop.xlane.xlu0 %3970 }
 0x4a3   :  { %25923 = vrcp.f32 %v3971_v10 }
 0x4a4   :  { %v25920_v11 = vpop.eup %25919  ;;  %25925 = vrcp.f32 %v28067_v25  ;;  %v32123_v25 = vld [vmem:[#allocation29_spill] sm:$0xff] }
 0x4a5   :  { %v25922_v48 = vpop.eup %25921  ;;  %v4068_v44 = vmul.f32 %v25920_v11, %v27950_v29  ;;  %8797 = vrot.lane.b32.xlu0 %v32120_v63, %s26537_s2  ;;  %25927 = vrcp.f32 %v28081_v33  ;;  %v32124_v29 = vld [vmem:[#allocation88_spill] sm:$0xff]  ;;  %v32126_v33 = vld [vmem:[#allocation75_spill] sm:$0xff] }
 0x4a6   :  { %v4067_v12 = vmul.f32 %v25922_v48, %v27948_v21  ;;  %v32125_v21 = vld [vmem:[#allocation64_spill] sm:$0xff]  ;;  %25929 = vrcp.f32 %v3989_v9  ;;  %v32128_v11 = vld [vmem:[#allocation67_spill] sm:$0xff]  ;;  %v32129_v9 = vld [vmem:[#allocation93_spill] sm:$0xff] }
 0x4a7   :  { %24649 = vmatmul.mubr.msk.f32.vlgmr.msra.gmra.mxu1 %vm1270_vm2, %v4068_v44  ;;  %25931 = vrcp.f32 %v3995_v36  ;;  %v32131_v44 = vld [vmem:[#allocation92_spill] sm:$0xff] }
 0x4a8   :  { %24657 = vmatpush3.msra.mxu1 %v32121_v8  ;;  %7781 = vrot.lane.b32.xlu1 %v32122_v5, %s26537_s2  ;;  %25933 = vrcp.f32 %v4001_v58 }
 0x4a9   :  { %24644 = vmatmul.mubr.msk.f32.vlgmr.msra.gmra.mxu0 %vm1270_vm2, %v4067_v12  ;;  %8795 = vrot.lane.b32.xlu0 %v32123_v25, %s26537_s2  ;;  %25935 = vrcp.f32 %v4007_v41  ;;  %v32132_v12 = vld [vmem:[#allocation66_spill] sm:$0xff] }
 0x4aa   :  { %24652 = vmatpush3.msra.mxu0 %v32124_v29  ;;  %24653 = vmatprep.mubr.msk.f32.mxu0 %vm26536_vm1, %v32107_v39 }
 0x4ab   :  { %24661 = vmatprep.subr.mxu0 %v32107_v39  ;;  %24658 = vmatprep.mubr.msk.f32.mxu1 %vm26536_vm1, %v32107_v39 }
 0x4ac   :  { %7939 = vrot.lane.b32.xlu1 %v32125_v21, %s26537_s2  ;;  %24666 = vmatprep.subr.mxu1 %v32107_v39 }
 0x4ad   :  { %9336 = vrot.lane.b32.xlu0 %v32126_v33, %s26537_s2 }
 0x4b0   :  { %v25924_v49 = vpop.eup %25923  ;;  %7937 = vrot.lane.b32.xlu1 %v32127_v20, %s26537_s2 }
 0x4b1   :  { %9490 = vrot.lane.b32.xlu0 %v27530_v27, %s26537_s2  ;;  %v4069_v0 = vmul.f32 %v25924_v49, %v27964_v16  ;;  %v25926_v10 = vpop.eup %25925  ;;  %v32130_v16 = vld [vmem:[#allocation24_spill] sm:$0xff]  ;;  %v32133_v49 = vld [vmem:[#allocation97_spill] sm:$0xff] }
 0x4b2   :  { %v4071_v36 = vmul.f32 %v25926_v10, %v27917_v17  ;;  %v25928_v48 = vpop.eup %25927  ;;  %v32135_v10 = vld [vmem:[#allocation96_spill] sm:$0xff] }
 0x4b3   :  { %24654 = vmatmul.mubr.msk.f32.vlgmr.msra.gmra.mxu0 %vm1270_vm2, %v4069_v0  ;;  %v4073_v58 = vmul.f32 %v25928_v48, %v27924_v46  ;;  %v25930_v17 = vpop.eup %25929  ;;  %v32134_v46 = vld [vmem:[#allocation23_spill] sm:$0xff] }
 0x4b4   :  { %8095 = vrot.lane.b32.xlu1 %v32128_v11, %s26537_s2  ;;  %24662 = vmatpush3.msra.mxu0 %v32129_v9  ;;  %v4075_v41 = vmul.f32 %v25930_v17, %v27939_v42  ;;  %v25932_v0 = vpop.eup %25931  ;;  %v32136_v42 = vld [vmem:[#allocation71_spill] sm:$0xff] }
 0x4b5   :  { %9644 = vrot.lane.b32.xlu0 %v27625_v45, %s26537_s2  ;;  %24663 = vmatprep.mubr.msk.f32.mxu0 %vm26536_vm1, %v32107_v39  ;;  %v25934_v48 = vpop.eup %25933 }
 0x4b6   :  { %24671 = vmatprep.subr.mxu0 %v32107_v39  ;;  %v4079_v17 = vmul.f32 %v25934_v48, %v27956_v18 }
 0x4b7   :  { %24664 = vmatmul.mubr.msk.f32.vlgmr.msra.gmra.mxu0 %vm1270_vm2, %v4071_v36  ;;  %v4077_v36 = vmul.f32 %v25932_v0, %v27944_v43  ;;  %v28225_v43 = vpop.permute.xlu1 %7627  ;;  %v32138_v0 = vld [vmem:[#allocation28_spill] sm:$0xff] }
 0x4b8   :  { %8093 = vrot.lane.b32.xlu1 %v32130_v16, %s26537_s2  ;;  %24672 = vmatpush3.msra.mxu0 %v32131_v44 }
 0x4b9   :  { %9798 = vrot.lane.b32.xlu0 %v27623_v4, %s26537_s2  ;;  %24673 = vmatprep.mubr.msk.f32.mxu0 %vm26536_vm1, %v32107_v39  ;;  %v32146_v4 = vld [vmem:[#allocation95_spill] sm:$0xff] }
 0x4ba   :  { %24681 = vmatprep.subr.mxu0 %v32107_v39 }
 0x4bb   :  { %24674 = vmatmul.mubr.msk.f32.vlgmr.msra.gmra.mxu0 %vm1270_vm2, %v4073_v58  ;;  %v32137_v58 = vld [vmem:[#allocation101_spill] sm:$0xff] }
 0x4bc   :  { %8251 = vrot.lane.b32.xlu1 %v32132_v12, %s26537_s2  ;;  %24682 = vmatpush3.msra.mxu0 %v32133_v49 }
 0x4bd   :  { %9952 = vrot.lane.b32.xlu0 %v27633_v22, %s26537_s2  ;;  %24683 = vmatprep.mubr.msk.f32.mxu0 %vm26536_vm1, %v32107_v39  ;;  %v32145_v22 = vld [vmem:[#allocation76_spill] sm:$0xff] }
 0x4be   :  { %24691 = vmatprep.subr.mxu0 %v32107_v39 }
 0x4bf   :  { %24684 = vmatmul.mubr.msk.f32.vlgmr.msra.gmra.mxu0 %vm1270_vm2, %v4075_v41  ;;  %v25936_v41 = vpop.eup %25935 }
 0x4c0   :  { %8249 = vrot.lane.b32.xlu1 %v32134_v46, %s26537_s2  ;;  %24692 = vmatpush3.msra.mxu0 %v32135_v10  ;;  %v4081_v18 = vmul.f32 %v25936_v41, %v27960_v32  ;;  %v32142_v32 = vld [vmem:[#allocation27_spill] sm:$0xff]  ;;  %v28250_v41 = vpop.permute.xlu0 %7549 }
 0x4c1   :  { %10106 = vrot.lane.b32.xlu0 %v32111_v38, %s26537_s2  ;;  %24693 = vmatprep.mubr.msk.f32.mxu0 %vm26536_vm1, %v32107_v39 }
 0x4c2   :  { %24701 = vmatprep.subr.mxu0 %v32107_v39 }
 0x4c3   :  { %24694 = vmatmul.mubr.msk.f32.vlgmr.msra.gmra.mxu0 %vm1270_vm2, %v4077_v36  ;;  %v32139_v36 = vld [vmem:[#allocation100_spill] sm:$0xff] }
 0x4c4   :  { %8407 = vrot.lane.b32.xlu1 %v32136_v42, %s26537_s2  ;;  %24702 = vmatpush3.msra.mxu0 %v32137_v58 }
 0x4c5   :  { %10260 = vrot.lane.b32.xlu0 %v32116_v7, %s26537_s2  ;;  %24703 = vmatprep.mubr.msk.f32.mxu0 %vm26536_vm1, %v32107_v39  ;;  %v32141_v7 = vld [vmem:[#allocation105_spill] sm:$0xff] }
 0x4c6   :  { %24711 = vmatprep.subr.mxu0 %v32107_v39 }
 0x4c7   :  { %24704 = vmatmul.mubr.msk.f32.vlgmr.msra.gmra.mxu0 %vm1270_vm2, %v4079_v17  ;;  %v32140_v17 = vld [vmem:[#allocation70_spill] sm:$0xff] }
 0x4c8   :  { %8405 = vrot.lane.b32.xlu1 %v32138_v0, %s26537_s2  ;;  %24712 = vmatpush3.msra.mxu0 %v32139_v36 }
 0x4c9   :  { %10414 = vrot.lane.b32.xlu0 %v32124_v29, %s26537_s2  ;;  %24713 = vmatprep.mubr.msk.f32.mxu0 %vm26536_vm1, %v32107_v39 }
 0x4ca   :  { %24721 = vmatprep.subr.mxu0 %v32107_v39 }
 0x4cb   :  { %v3974_v48 = vpop.xlane.xlu1 %3973  ;;  %24714 = vmatmul.mubr.msk.f32.vlgmr.msra.gmra.mxu0 %vm1270_vm2, %v4081_v18  ;;  %v32143_v18 = vld [vmem:[#allocation77_spill] sm:$0xff] }
 0x4cc   :  { %25937 = vrcp.f32 %v3974_v48  ;;  %8563 = vrot.lane.b32.xlu1 %v32140_v17, %s26537_s2  ;;  %24722 = vmatpush3.msra.mxu0 %v32141_v7 }
 0x4cd   :  { %10568 = vrot.lane.b32.xlu0 %v32129_v9, %s26537_s2  ;;  %24723 = vmatprep.mubr.msk.f32.mxu0 %vm26536_vm1, %v32107_v39  ;;  %v32144_v9 = vld [vmem:[#allocation32_spill] sm:$0xff] }
 0x4ce   :  { %24731 = vmatprep.subr.mxu0 %v32107_v39 }
 0x4d0   :  { %8561 = vrot.lane.b32.xlu1 %v32142_v32, %s26537_s2 }
 0x4d1   :  { %10722 = vrot.lane.b32.xlu0 %v32131_v44, %s26537_s2 }
 0x4d4   :  { %8719 = vrot.lane.b32.xlu1 %v32143_v18, %s26537_s2 }
 0x4d5   :  { %11030 = vrot.lane.b32.xlu0 %v32135_v10, %s26537_s2 }
 0x4d7   :  { %v4013_v48 = vpop.xlane.xlu0 %4012 }
 0x4d8   :  { %8717 = vrot.lane.b32.xlu1 %v32144_v9, %s26537_s2  ;;  %25939 = vrcp.f32 %v4013_v48 }
 0x4d9   :  { %v25938_v29 = vpop.eup %25937  ;;  %11184 = vrot.lane.b32.xlu0 %v32137_v58, %s26537_s2 }
 0x4da   :  { %v4070_v38 = vmul.f32 %v25938_v29, %v27975_v52  ;;  %v32147_v52 = vld [vmem:[#allocation31_spill] sm:$0xff] }
 0x4db   :  { %v4019_v44 = vpop.xlane.xlu0 %4018  ;;  %v32148_v29 = vld [vmem:[#allocation79_spill] sm:$0xff] }
 0x4dc   :  { %8875 = vrot.lane.b32.xlu1 %v32145_v22, %s26537_s2  ;;  %24659 = vmatmul.mubr.msk.f32.vlgmr.msra.gmra.mxu1 %vm1270_vm2, %v4070_v38  ;;  %25941 = vrcp.f32 %v4019_v44 }
 0x4dd   :  { %24667 = vmatpush3.msra.mxu1 %v32146_v4  ;;  %11338 = vrot.lane.b32.xlu0 %v32139_v36, %s26537_s2  ;;  %v32149_v36 = vld [vmem:[#allocation104_spill] sm:$0xff] }
 0x4de   :  { %24668 = vmatprep.mubr.msk.f32.mxu1 %vm26536_vm1, %v32107_v39  ;;  %24676 = vmatprep.subr.mxu1 %v32107_v39 }
 0x4df   :  { %v28270_v48 = vpop.permute.xlu0 %7547 }
 0x4e0   :  { %8873 = vrot.lane.b32.xlu1 %v32147_v52, %s26537_s2 }
 0x4e1   :  { %11492 = vrot.lane.b32.xlu0 %v32141_v7, %s26537_s2  ;;  %v32150_v7 = vld [vmem:[#allocation36_spill] sm:$0xff] }
 0x4e3   :  { %v28276_v38 = vpop.permute.xlu0 %7705 }
 0x4e4   :  { %9413 = vrot.lane.b32.xlu1 %v32148_v29, %s26537_s2 }
 0x4e5   :  { %v25940_v44 = vpop.eup %25939  ;;  %11646 = vrot.lane.b32.xlu0 %v32149_v36, %s26537_s2 }
 0x4e6   :  { %v4083_v58 = vmul.f32 %v25940_v44, %v27979_v40  ;;  %v32151_v40 = vld [vmem:[#allocation136_spill] sm:$0xff] }
 0x4e7   :  { %v28283_v10 = vpop.permute.xlu0 %7703 }
 0x4e8   :  { %9567 = vrot.lane.b32.xlu1 %v27606_v1, %s26537_s2  ;;  %24724 = vmatmul.mubr.msk.f32.vlgmr.msra.gmra.mxu0 %vm1270_vm2, %v4083_v58  ;;  %v32152_v58 = vld [vmem:[#allocation35_spill] sm:$0xff]  ;;  %v32172_v1 = vld [vmem:[#allocation94_spill] sm:$0xff] }
 0x4e9   :  { %v25942_v45 = vpop.eup %25941  ;;  %11962 = vrot.lane.b32.xlu0 %v32150_v7, %s26538_s3  ;;  %24732 = vmatpush3.msra.mxu0 %v32149_v36  ;;  %v32153_v7 = vld [vmem:[#allocation124_spill] sm:$0xff] }
 0x4ea   :  { %24733 = vmatprep.mubr.msk.f32.mxu0 %vm26536_vm1, %v32107_v39  ;;  %24741 = vmatprep.subr.mxu0 %v32107_v39  ;;  %v4085_v44 = vmul.f32 %v25942_v45, %v32151_v40  ;;  %v32154_v45 = vld [vmem:[#allocation108_spill] sm:$0xff]  ;;  %v32155_v40 = vld [vmem:[#allocation34_spill] sm:$0xff] }
 0x4eb   :  { %v28295_v27 = vpop.permute.xlu0 %7861 }
 0x4ec   :  { %9721 = vrot.lane.b32.xlu1 %v27629_v61, %s26537_s2  ;;  %24734 = vmatmul.mubr.msk.f32.vlgmr.msra.gmra.mxu0 %vm1270_vm2, %v4085_v44  ;;  %v32156_v44 = vld [vmem:[#allocation122_spill] sm:$0xff] }
 0x4ed   :  { %11960 = vrot.lane.b32.xlu0 %v32152_v58, %s26538_s3  ;;  %24742 = vmatpush3.xpose.msk.msra.mxu0 %vm1270_vm2, %v32153_v7  ;;  %v32157_v58 = vld [vmem:[#allocation110_spill] sm:$0xff] }
 0x4ee   :  { %24743 = vmatprep.mubr.msk.f32.mxu0 %vm26536_vm1, %v32107_v39  ;;  %24751 = vmatprep.subr.mxu0 %v32107_v39 }
 0x4ef   :  { %v28307_v36 = vpop.permute.xlu0 %7859 }
 0x4f0   :  { %9875 = vrot.lane.b32.xlu1 %v27627_v13, %s26537_s2  ;;  %24744 = vmatmul.mubr.msk.f32.vlgmr.msra.gmra.mxu0 %vm1270_vm2, %v32154_v45  ;;  %v32158_v45 = vld [vmem:[#allocation33_spill] sm:$0xff] }
 0x4f1   :  { %12118 = vrot.lane.b32.xlu0 %v32155_v40, %s26538_s3  ;;  %24752 = vmatpush3.xpose.msk.msra.mxu0 %vm1270_vm2, %v32156_v44  ;;  %v32159_v40 = vld [vmem:[#allocation128_spill] sm:$0xff] }
 0x4f2   :  { %24753 = vmatprep.mubr.msk.f32.mxu0 %vm26536_vm1, %v32107_v39  ;;  %24761 = vmatprep.subr.mxu0 %v32107_v39 }
 0x4f3   :  { %v28320_v7 = vpop.permute.xlu0 %8017 }
 0x4f4   :  { %10029 = vrot.lane.b32.xlu1 %v32109_v59, %s26537_s2  ;;  %24754 = vmatmul.mubr.msk.f32.vlgmr.msra.gmra.mxu0 %vm1270_vm2, %v32157_v58  ;;  %v32160_v59 = vld [vmem:[#allocation114_spill] sm:$0xff]  ;;  %v32161_v58 = vld [vmem:[#allocation44_spill] sm:$0xff] }
 0x4f5   :  { %12116 = vrot.lane.b32.xlu0 %v32158_v45, %s26538_s3  ;;  %24762 = vmatpush3.xpose.msk.msra.mxu0 %vm1270_vm2, %v32159_v40  ;;  %v32162_v45 = vld [vmem:[#allocation126_spill] sm:$0xff]  ;;  %v28343_v40 = vpop.permute.xlu1 %7625 }
 0x4f6   :  { %24763 = vmatprep.mubr.msk.f32.mxu0 %vm26536_vm1, %v32107_v39  ;;  %24771 = vmatprep.subr.mxu0 %v32107_v39 }
 0x4f7   :  { %v28333_v44 = vpop.permute.xlu0 %8015 }
 0x4f8   :  { %10183 = vrot.lane.b32.xlu1 %v32113_v55, %s26537_s2  ;;  %24764 = vmatmul.mubr.msk.f32.vlgmr.msra.gmra.mxu0 %vm1270_vm2, %v32160_v59  ;;  %v32163_v55 = vld [vmem:[#allocation112_spill] sm:$0xff]  ;;  %v32164_v59 = vld [vmem:[#allocation43_spill] sm:$0xff] }
 0x4f9   :  { %12274 = vrot.lane.b32.xlu0 %v32161_v58, %s26538_s3  ;;  %24772 = vmatpush3.xpose.msk.msra.mxu0 %vm1270_vm2, %v32162_v45  ;;  %v32165_v58 = vld [vmem:[#allocation132_spill] sm:$0xff]  ;;  %v28363_v61 = vpop.permute.xlu1 %7783 }
 0x4fa   :  { %24773 = vmatprep.mubr.msk.f32.mxu0 %vm26536_vm1, %v32107_v39  ;;  %24781 = vmatprep.subr.mxu0 %v32107_v39 }
 0x4fb   :  { %v28348_v13 = vpop.permute.xlu0 %8173 }
 0x4fc   :  { %10337 = vrot.lane.b32.xlu1 %v32117_v34, %s26537_s2  ;;  %24774 = vmatmul.mubr.msk.f32.vlgmr.msra.gmra.mxu0 %vm1270_vm2, %v32163_v55  ;;  %v32166_v34 = vld [vmem:[#allocation118_spill] sm:$0xff] }
 0x4fd   :  { %12272 = vrot.lane.b32.xlu0 %v32164_v59, %s26538_s3  ;;  %24782 = vmatpush3.xpose.msk.msra.mxu0 %vm1270_vm2, %v32165_v58  ;;  %v32167_v55 = vld [vmem:[#allocation42_spill] sm:$0xff] }
 0x4fe   :  { %24783 = vmatprep.mubr.msk.f32.mxu0 %vm26536_vm1, %v32107_v39  ;;  %24791 = vmatprep.subr.mxu0 %v32107_v39  ;;  %v32168_v59 = vld [vmem:[#allocation130_spill] sm:$0xff] }
 0x4ff   :  { %v28361_v45 = vpop.permute.xlu0 %8171 }
 0x500   :  { %10491 = vrot.lane.b32.xlu1 %v32121_v8, %s26537_s2  ;;  %24784 = vmatmul.mubr.msk.f32.vlgmr.msra.gmra.mxu0 %vm1270_vm2, %v32166_v34  ;;  %v32169_v8 = vld [vmem:[#allocation116_spill] sm:$0xff]  ;;  %v32170_v34 = vld [vmem:[#allocation41_spill] sm:$0xff] }
 0x501   :  { %12430 = vrot.lane.b32.xlu0 %v32167_v55, %s26538_s3  ;;  %24792 = vmatpush3.xpose.msk.msra.mxu0 %vm1270_vm2, %v32168_v59  ;;  %v32171_v55 = vld [vmem:[#allocation134_spill] sm:$0xff] }
 0x502   :  { %24793 = vmatprep.mubr.msk.f32.mxu0 %vm26536_vm1, %v32107_v39  ;;  %24801 = vmatprep.subr.mxu0 %v32107_v39 }
 0x503   :  { %v28376_v58 = vpop.permute.xlu0 %8329 }
 0x504   :  { %v3980_v33 = vpop.xlane.xlu1 %3979  ;;  %10645 = vrot.lane.b32.xlu1 %v32146_v4, %s26537_s2  ;;  %24794 = vmatmul.mubr.msk.f32.vlgmr.msra.gmra.mxu0 %vm1270_vm2, %v32169_v8  ;;  %v32173_v4 = vld [vmem:[#allocation120_spill] sm:$0xff] }
 0x505   :  { %25943 = vrcp.f32 %v3980_v33  ;;  %12428 = vrot.lane.b32.xlu0 %v32170_v34, %s26538_s3  ;;  %24802 = vmatpush3.xpose.msk.msra.mxu0 %vm1270_vm2, %v32171_v55  ;;  %v32174_v33 = vld [vmem:[#allocation52_spill] sm:$0xff]  ;;  %v32178_v34 = vld [vmem:[#allocation98_spill] sm:$0xff] }
 0x506   :  { %24803 = vmatprep.mubr.msk.f32.mxu0 %vm26536_vm1, %v32107_v39  ;;  %24811 = vmatprep.subr.mxu0 %v32107_v39 }
 0x507   :  { %v28393_v8 = vpop.permute.xlu0 %8327 }
 0x508   :  { %v3986_v59 = vpop.xlane.xlu1 %3985  ;;  %10799 = vrot.lane.b32.xlu1 %v32172_v1, %s26537_s2  ;;  %24804 = vmatmul.mubr.msk.f32.vlgmr.msra.gmra.mxu0 %vm1270_vm2, %v32173_v4  ;;  %v32175_v4 = vld [vmem:[#allocation51_spill] sm:$0xff] }
 0x509   :  { %25945 = vrcp.f32 %v3986_v59  ;;  %12586 = vrot.lane.b32.xlu0 %v32174_v33, %s26538_s3  ;;  %24812 = vmatpush3.xpose.msk.msra.mxu0 %vm1270_vm2, %v28250_v41  ;;  %v32176_v33 = vld [vmem:[#allocation99_spill] sm:$0xff] }
 0x50a   :  { %24813 = vmatprep.mubr.msk.f32.mxu0 %vm26536_vm1, %v32107_v39  ;;  %24821 = vmatprep.subr.mxu0 %v32107_v39 }
 0x50b   :  { %v28413_v41 = vpop.permute.xlu0 %8485 }
 0x50c   :  { %v3992_v55 = vpop.xlane.xlu1 %3991  ;;  %10876 = vrot.lane.b32.xlu1 %v32133_v49, %s26537_s2  ;;  %24814 = vmatmul.mubr.msk.f32.vlgmr.msra.gmra.mxu0 %vm1270_vm2, %v28270_v48  ;;  %v32177_v48 = vld [vmem:[#allocation50_spill] sm:$0xff] }
 0x50d   :  { %25947 = vrcp.f32 %v3992_v55  ;;  %12584 = vrot.lane.b32.xlu0 %v32175_v4, %s26538_s3  ;;  %24822 = vmatpush3.xpose.msk.msra.mxu0 %vm1270_vm2, %v28276_v38 }
 0x50e   :  { %24823 = vmatprep.mubr.msk.f32.mxu0 %vm26536_vm1, %v32107_v39  ;;  %24831 = vmatprep.subr.mxu0 %v32107_v39 }
 0x510   :  { %v3998_v59 = vpop.xlane.xlu1 %3997  ;;  %10953 = vrot.lane.b32.xlu1 %v32176_v33, %s26537_s2  ;;  %24824 = vmatmul.mubr.msk.f32.vlgmr.msra.gmra.mxu0 %vm1270_vm2, %v28283_v10  ;;  %v28431_v10 = vpop.permute.xlu0 %8483 }
 0x511   :  { %25949 = vrcp.f32 %v3998_v59  ;;  %12742 = vrot.lane.b32.xlu0 %v32177_v48, %s26538_s3  ;;  %24832 = vmatpush3.xpose.msk.msra.mxu0 %vm1270_vm2, %v28295_v27  ;;  %v32179_v27 = vld [vmem:[#allocation49_spill] sm:$0xff] }
 0x512   :  { %v25944_v38 = vpop.eup %25943  ;;  %24833 = vmatprep.mubr.msk.f32.mxu0 %vm26536_vm1, %v32107_v39  ;;  %24841 = vmatprep.subr.mxu0 %v32107_v39 }
 0x513   :  { %v4072_v55 = vmul.f32 %v25944_v38, %v28025_v30 }
 0x514   :  { %v4004_v4 = vpop.xlane.xlu1 %4003  ;;  %11107 = vrot.lane.b32.xlu1 %v32178_v34, %s26537_s2  ;;  %24834 = vmatmul.mubr.msk.f32.vlgmr.msra.gmra.mxu0 %vm1270_vm2, %v28307_v36 }
 0x515   :  { %25951 = vrcp.f32 %v4004_v4  ;;  %24669 = vmatmul.mubr.msk.f32.vlgmr.msra.gmra.mxu1 %vm1270_vm2, %v4072_v55  ;;  %12740 = vrot.lane.b32.xlu0 %v32179_v27, %s26538_s3  ;;  %v32180_v4 = vld [vmem:[#allocation103_spill] sm:$0xff] }
 0x516   :  { %v25946_v59 = vpop.eup %25945  ;;  %24677 = vmatpush3.msra.mxu1 %v32172_v1  ;;  %24678 = vmatprep.mubr.msk.f32.mxu1 %vm26536_vm1, %v32107_v39  ;;  %v32181_v55 = vld [vmem:[#allocation59_spill] sm:$0xff] }
 0x517   :  { %v4074_v30 = vmul.f32 %v25946_v59, %v28037_v54  ;;  %24686 = vmatprep.subr.mxu1 %v32107_v39  ;;  %24842 = vmatpush3.xpose.msk.msra.mxu0 %vm1270_vm2, %v28320_v7  ;;  %v8642_v7 = vpop.permute.xlu0 %8641 }
 0x518   :  { %v4010_v36 = vpop.xlane.xlu1 %4009  ;;  %11261 = vrot.lane.b32.xlu1 %v32180_v4, %s26537_s2  ;;  %24843 = vmatprep.mubr.msk.f32.mxu0 %vm26536_vm1, %v32107_v39 }
 0x519   :  { %25953 = vrcp.f32 %v4010_v36  ;;  %24679 = vmatmul.mubr.msk.f32.vlgmr.msra.gmra.mxu1 %vm1270_vm2, %v4074_v30  ;;  %24851 = vmatprep.subr.mxu0 %v32107_v39  ;;  %v32182_v36 = vld [vmem:[#allocation102_spill] sm:$0xff] }
 0x51a   :  { %v25948_v38 = vpop.eup %25947  ;;  %24687 = vmatpush3.msra.mxu1 %v32176_v33  ;;  %24688 = vmatprep.mubr.msk.f32.mxu1 %vm26536_vm1, %v32107_v39 }
 0x51b   :  { %v4076_v54 = vmul.f32 %v25948_v38, %v28049_v51  ;;  %24696 = vmatprep.subr.mxu1 %v32107_v39  ;;  %12898 = vrot.lane.b32.xlu0 %v32181_v55, %s26538_s3  ;;  %v8640_v38 = vpop.permute.xlu0 %8639  ;;  %v32195_v55 = vld [vmem:[#allocation129_spill] sm:$0xff] }
 0x51c   :  { %v4016_v59 = vpop.xlane.xlu1 %4015  ;;  %11415 = vrot.lane.b32.xlu1 %v32182_v36, %s26537_s2  ;;  %24844 = vmatmul.mubr.msk.f32.vlgmr.msra.gmra.mxu0 %vm1270_vm2, %v28333_v44 }
 0x51d   :  { %25955 = vrcp.f32 %v4016_v59  ;;  %24852 = vmatpush3.xpose.msk.msra.mxu0 %vm1270_vm2, %v28348_v13  ;;  %24689 = vmatmul.mubr.msk.f32.vlgmr.msra.gmra.mxu1 %vm1270_vm2, %v4076_v54  ;;  %v32183_v13 = vld [vmem:[#allocation107_spill] sm:$0xff]  ;;  %v32184_v54 = vld [vmem:[#allocation58_spill] sm:$0xff] }
 0x51e   :  { %v25950_v51 = vpop.eup %25949  ;;  %24697 = vmatpush3.msra.mxu1 %v32178_v34  ;;  %24853 = vmatprep.mubr.msk.f32.mxu0 %vm26536_vm1, %v32107_v39 }
 0x51f   :  { %v4078_v30 = vmul.f32 %v25950_v51, %v28063_v31  ;;  %24861 = vmatprep.subr.mxu0 %v32107_v39  ;;  %24698 = vmatprep.mubr.msk.f32.mxu1 %vm26536_vm1, %v32107_v39 }
 0x520   :  { %v4022_v44 = vpop.xlane.xlu1 %4021  ;;  %24706 = vmatprep.subr.mxu1 %v32107_v39  ;;  %11569 = vrot.lane.b32.xlu1 %v32183_v13, %s26537_s2 }
 0x521   :  { %25957 = vrcp.f32 %v4022_v44  ;;  %12896 = vrot.lane.b32.xlu0 %v32184_v54, %s26538_s3  ;;  %24854 = vmatmul.mubr.msk.f32.vlgmr.msra.gmra.mxu0 %vm1270_vm2, %v28361_v45  ;;  %v32185_v45 = vld [vmem:[#allocation106_spill] sm:$0xff]  ;;  %v32194_v54 = vld [vmem:[#allocation109_spill] sm:$0xff] }
 0x522   :  { %v25952_v31 = vpop.eup %25951  ;;  %24862 = vmatpush3.xpose.msk.msra.mxu0 %vm1270_vm2, %v28376_v58  ;;  %24699 = vmatmul.mubr.msk.f32.vlgmr.msra.gmra.mxu1 %vm1270_vm2, %v4078_v30  ;;  %v8798_v30 = vpop.permute.xlu0 %8797 }
 0x523   :  { %v4080_v59 = vmul.f32 %v25952_v31, %v28077_v56  ;;  %24707 = vmatpush3.msra.mxu1 %v32180_v4  ;;  %24863 = vmatprep.mubr.msk.f32.mxu0 %vm26536_vm1, %v32107_v39 }
 0x524   :  { %24871 = vmatprep.subr.mxu0 %v32107_v39  ;;  %v28485_v51 = vpop.permute.xlu1 %7781  ;;  %24708 = vmatprep.mubr.msk.f32.mxu1 %vm26536_vm1, %v32107_v39 }
 0x525   :  { %24716 = vmatprep.subr.mxu1 %v32107_v39  ;;  %11723 = vrot.lane.b32.xlu1 %v32185_v45, %s26537_s2 }
 0x526   :  { %v25954_v58 = vpop.eup %25953  ;;  %24864 = vmatmul.mubr.msk.f32.vlgmr.msra.gmra.mxu0 %vm1270_vm2, %v28393_v8  ;;  %24709 = vmatmul.mubr.msk.f32.vlgmr.msra.gmra.mxu1 %vm1270_vm2, %v4080_v59  ;;  %v8796_v59 = vpop.permute.xlu0 %8795 }
 0x527   :  { %v4082_v56 = vmul.f32 %v25954_v58, %v28091_v62  ;;  %24872 = vmatpush3.xpose.msk.msra.mxu0 %vm1270_vm2, %v28413_v41  ;;  %24717 = vmatpush3.msra.mxu1 %v32182_v36  ;;  %v32186_v62 = vld [vmem:[#allocation40_spill] sm:$0xff] }
 0x528   :  { %24873 = vmatprep.mubr.msk.f32.mxu0 %vm26536_vm1, %v32107_v39  ;;  %24881 = vmatprep.subr.mxu0 %v32107_v39  ;;  %v28502_v44 = vpop.permute.xlu1 %7939 }
 0x529   :  { %24718 = vmatprep.mubr.msk.f32.mxu1 %vm26536_vm1, %v32107_v39  ;;  %24726 = vmatprep.subr.mxu1 %v32107_v39 }
 0x52a   :  { %v25956_v8 = vpop.eup %25955  ;;  %12040 = vrot.lane.b32.xlu1 %v32186_v62, %s26538_s3  ;;  %24874 = vmatmul.mubr.msk.f32.vlgmr.msra.gmra.mxu0 %vm1270_vm2, %v28431_v10 }
 0x52b   :  { %v4084_v41 = vmul.f32 %v25956_v8, %v28103_v57  ;;  %24882 = vmatpush3.xpose.msk.msra.mxu0 %vm1270_vm2, %v8642_v7  ;;  %24719 = vmatmul.mubr.msk.f32.vlgmr.msra.gmra.mxu1 %vm1270_vm2, %v4082_v56  ;;  %v32187_v57 = vld [vmem:[#allocation39_spill] sm:$0xff] }
 0x52c   :  { %24727 = vmatpush3.msra.mxu1 %v32183_v13  ;;  %24883 = vmatprep.mubr.msk.f32.mxu0 %vm26536_vm1, %v32107_v39  ;;  %v28517_v31 = vpop.permute.xlu1 %7937 }
 0x52d   :  { %24891 = vmatprep.subr.mxu0 %v32107_v39  ;;  %24728 = vmatprep.mubr.msk.f32.mxu1 %vm26536_vm1, %v32107_v39 }
 0x52e   :  { %v25958_v10 = vpop.eup %25957  ;;  %12038 = vrot.lane.b32.xlu1 %v32187_v57, %s26538_s3  ;;  %24736 = vmatprep.subr.mxu1 %v32107_v39  ;;  %v4156_v7 = vpop.f32.mrf.mxu0 }
 0x52f   :  { %24884 = vmatmul.mubr.msk.f32.vlgmr.msra.gmra.mxu0 %vm1270_vm2, %v8640_v38  ;;  %24729 = vmatmul.mubr.msk.f32.vlgmr.msra.gmra.mxu1 %vm1270_vm2, %v4084_v41  ;;  %6423 = vst.msk [vmem:[#allocation2] sm:$0xff] %vm1270_vm2, %v4156_v7  ;;  %v4086_v58 = vmul.f32 %v25958_v10, %v28118_v28  ;;  %v32188_v38 = vld [vmem:[#allocation38_spill] sm:$0xff]  ;;  %v9337_v28 = vpop.permute.xlu0 %9336  ;;  %v32189_v7 = vld [vmem:[#allocation125_spill] sm:$0xff] }
 0x530   :  { %24892 = vmatpush3.xpose.msk.msra.mxu0 %vm1270_vm2, %v8798_v30  ;;  %24737 = vmatpush3.msra.mxu1 %v32185_v45  ;;  %v28531_v56 = vpop.permute.xlu1 %8095  ;;  %v24585_v8 = vpop.f32.mrf.mxu0 }
 0x531   :  { %24893 = vmatprep.mubr.msk.f32.mxu0 %vm26536_vm1, %v32107_v39  ;;  %24901 = vmatprep.subr.mxu0 %v32107_v39  ;;  %v32190_v8 = vld [vmem:[#allocation37_spill] sm:$0xff] }
 0x532   :  { %12196 = vrot.lane.b32.xlu1 %v32188_v38, %s26538_s3  ;;  %24738 = vmatprep.mubr.msk.f32.mxu1 %vm26536_vm1, %v32107_v39  ;;  %v4229_v41 = vpop.f32.mrf.mxu1 }
 0x533   :  { %24746 = vmatprep.subr.mxu1 %v32107_v39  ;;  %24894 = vmatmul.mubr.msk.f32.vlgmr.msra.gmra.mxu0 %vm1270_vm2, %v8796_v59  ;;  %6424 = vst.msk [vmem:[#allocation2 + $0x8] sm:$0xff] %vm1270_vm2, %v4229_v41 }
 0x534   :  { %24902 = vmatpush3.msra.mxu0 %v9337_v28  ;;  %24739 = vmatmul.mubr.msk.f32.vlgmr.msra.gmra.mxu1 %vm1270_vm2, %v4086_v58  ;;  %v28544_v30 = vpop.permute.xlu1 %8093  ;;  %v24590_v10 = vpop.f32.mrf.mxu1  ;;  %v32191_v58 = vld [vmem:[#allocation111_spill] sm:$0xff] }
 0x535   :  { %24747 = vmatpush3.xpose.msk.msra.mxu1 %vm1270_vm2, %v32189_v7  ;;  %24748 = vmatprep.mubr.msk.f32.mxu1 %vm26536_vm1, %v32107_v39  ;;  %v32192_v10 = vld [vmem:[#allocation123_spill] sm:$0xff]  ;;  %v32193_v7 = vld [vmem:[#allocation48_spill] sm:$0xff] }
 0x536   :  { %12194 = vrot.lane.b32.xlu1 %v32190_v8, %s26538_s3  ;;  %24756 = vmatprep.subr.mxu1 %v32107_v39  ;;  %v4302_v59 = vpop.f32.mrf.mxu0 }
 0x537   :  { %6425 = vst.msk [vmem:[#allocation2 + $0x10] sm:$0xff] %vm1270_vm2, %v4302_v59  ;;  %24903 = vmatprep.mubr.msk.f32.mxu0 %vm26536_vm1, %v32107_v39  ;;  %24911 = vmatprep.subr.mxu0 %v32107_v39 }
 0x538   :  { %24749 = vmatmul.mubr.msk.f32.vlgmr.msra.gmra.mxu1 %vm1270_vm2, %v32191_v58  ;;  %v28559_v41 = vpop.permute.xlu1 %8251  ;;  %v24595_v28 = vpop.f32.mrf.mxu0 }
 0x539   :  { %24757 = vmatpush3.xpose.msk.msra.mxu1 %vm1270_vm2, %v32192_v10  ;;  %24758 = vmatprep.mubr.msk.f32.mxu1 %vm26536_vm1, %v32107_v39  ;;  %v32196_v10 = vld [vmem:[#allocation47_spill] sm:$0xff] }
 0x53a   :  { %12352 = vrot.lane.b32.xlu1 %v32193_v7, %s26538_s3  ;;  %24766 = vmatprep.subr.mxu1 %v32107_v39  ;;  %v4375_v59 = vpop.f32.mrf.mxu1 }
 0x53b   :  { %6426 = vst.msk [vmem:[#allocation2 + $0x18] sm:$0xff] %vm1270_vm2, %v4375_v59  ;;  %v32197_v59 = vld [vmem:[#allocation115_spill] sm:$0xff] }
 0x53c   :  { %24759 = vmatmul.mubr.msk.f32.vlgmr.msra.gmra.mxu1 %vm1270_vm2, %v32194_v54  ;;  %v24600_v58 = vpop.f32.mrf.mxu1  ;;  %v28575_v28 = vpop.permute.xlu1 %8249 }
 0x53d   :  { %24767 = vmatpush3.xpose.msk.msra.mxu1 %vm1270_vm2, %v32195_v55  ;;  %24768 = vmatprep.mubr.msk.f32.mxu1 %vm26536_vm1, %v32107_v39  ;;  %v32198_v58 = vld [vmem:[#allocation127_spill] sm:$0xff]  ;;  %v32199_v55 = vld [vmem:[#allocation46_spill] sm:$0xff] }
 0x53e   :  { %12350 = vrot.lane.b32.xlu1 %v32196_v10, %s26538_s3  ;;  %24776 = vmatprep.subr.mxu1 %v32107_v39  ;;  %v4448_v27 = vpop.f32.mrf.mxu0 }
 0x53f   :  { %6427 = vst.msk [vmem:[#allocation2 + $0x20] sm:$0xff] %vm1270_vm2, %v4448_v27  ;;  %v32200_v27 = vld [vmem:[#allocation113_spill] sm:$0xff] }
 0x540   :  { %24769 = vmatmul.mubr.msk.f32.vlgmr.msra.gmra.mxu1 %vm1270_vm2, %v32197_v59  ;;  %v24605_v54 = vpop.f32.mrf.mxu0  ;;  %v28591_v10 = vpop.permute.xlu1 %8407 }
 0x541   :  { %24777 = vmatpush3.xpose.msk.msra.mxu1 %vm1270_vm2, %v32198_v58  ;;  %24778 = vmatprep.mubr.msk.f32.mxu1 %vm26536_vm1, %v32107_v39  ;;  %v32201_v54 = vld [vmem:[#allocation133_spill] sm:$0xff] }
 0x542   :  { %12508 = vrot.lane.b32.xlu1 %v32199_v55, %s26538_s3  ;;  %24786 = vmatprep.subr.mxu1 %v32107_v39  ;;  %v4521_v48 = vpop.f32.mrf.mxu1  ;;  %v32202_v58 = vld [vmem:[#allocation45_spill] sm:$0xff] }
 0x543   :  { %6428 = vst.msk [vmem:[#allocation2 + $0x28] sm:$0xff] %vm1270_vm2, %v4521_v48  ;;  %v32203_v48 = vld [vmem:[#allocation119_spill] sm:$0xff] }
 0x544   :  { %24779 = vmatmul.mubr.msk.f32.vlgmr.msra.gmra.mxu1 %vm1270_vm2, %v32200_v27  ;;  %v24610_v59 = vpop.f32.mrf.mxu1  ;;  %v32204_v27 = vld [vmem:[#allocation131_spill] sm:$0xff] }
 0x545   :  { %24787 = vmatpush3.xpose.msk.msra.mxu1 %vm1270_vm2, %v32201_v54  ;;  %24788 = vmatprep.mubr.msk.f32.mxu1 %vm26536_vm1, %v32107_v39  ;;  %v8406_v59 = vpop.permute.xlu1 %8405  ;;  %v32205_v54 = vld [vmem:[#allocation56_spill] sm:$0xff] }
 0x546   :  { %12506 = vrot.lane.b32.xlu1 %v32202_v58, %s26538_s3  ;;  %24796 = vmatprep.subr.mxu1 %v32107_v39  ;;  %v4594_v55 = vpop.f32.mrf.mxu0 }
 0x547   :  { %6429 = vst.msk [vmem:[#allocation2 + $0x30] sm:$0xff] %vm1270_vm2, %v4594_v55  ;;  %v32206_v55 = vld [vmem:[#allocation117_spill] sm:$0xff] }
 0x548   :  { %24789 = vmatmul.mubr.msk.f32.vlgmr.msra.gmra.mxu1 %vm1270_vm2, %v32203_v48  ;;  %v24615_v7 = vpop.f32.mrf.mxu0 }
 0x549   :  { %24797 = vmatpush3.xpose.msk.msra.mxu1 %vm1270_vm2, %v32204_v27  ;;  %24798 = vmatprep.mubr.msk.f32.mxu1 %vm26536_vm1, %v32107_v39  ;;  %v32207_v7 = vld [vmem:[#allocation135_spill] sm:$0xff]  ;;  %v8564_v8 = vpop.permute.xlu1 %8563 }
 0x54a   :  { %12664 = vrot.lane.b32.xlu1 %v32205_v54, %s26538_s3  ;;  %24806 = vmatprep.subr.mxu1 %v32107_v39  ;;  %v4667_v58 = vpop.f32.mrf.mxu1  ;;  %v32208_v27 = vld [vmem:[#allocation55_spill] sm:$0xff] }
 0x54b   :  { %6430 = vst.msk [vmem:[#allocation2 + $0x38] sm:$0xff] %vm1270_vm2, %v4667_v58  ;;  %v32209_v58 = vld [vmem:[#allocation121_spill] sm:$0xff] }
 0x54c   :  { %24799 = vmatmul.mubr.msk.f32.vlgmr.msra.gmra.mxu1 %vm1270_vm2, %v32206_v55  ;;  %v24620_v48 = vpop.f32.mrf.mxu1 }
 0x54d   :  { %24807 = vmatpush3.xpose.msk.msra.mxu1 %vm1270_vm2, %v32207_v7  ;;  %24808 = vmatprep.mubr.msk.f32.mxu1 %vm26536_vm1, %v32107_v39  ;;  %v32210_v48 = vld [vmem:[#allocation54_spill] sm:$0xff] }
 0x54e   :  { %12662 = vrot.lane.b32.xlu1 %v32208_v27, %s26538_s3  ;;  %24816 = vmatprep.subr.mxu1 %v32107_v39  ;;  %v4740_v54 = vpop.f32.mrf.mxu0 }
 0x54f   :  { %6431 = vst.msk [vmem:[#allocation2 + $0x40] sm:$0xff] %vm1270_vm2, %v4740_v54 }
 0x550   :  { %24809 = vmatmul.mubr.msk.f32.vlgmr.msra.gmra.mxu1 %vm1270_vm2, %v32209_v58  ;;  %v24625_v55 = vpop.f32.mrf.mxu0  ;;  %v32211_v58 = vld [vmem:[#allocation53_spill] sm:$0xff] }
 0x551   :  { %24817 = vmatpush3.xpose.msk.msra.mxu1 %vm1270_vm2, %v28225_v43  ;;  %24818 = vmatprep.mubr.msk.f32.mxu1 %vm26536_vm1, %v32107_v39  ;;  %v8562_v43 = vpop.permute.xlu1 %8561 }
 0x552   :  { %12820 = vrot.lane.b32.xlu1 %v32210_v48, %s26538_s3  ;;  %24826 = vmatprep.subr.mxu1 %v32107_v39  ;;  %v4813_v7 = vpop.f32.mrf.mxu1 }
 0x553   :  { %6432 = vst.msk [vmem:[#allocation2 + $0x48] sm:$0xff] %vm1270_vm2, %v4813_v7 }
 0x554   :  { %24819 = vmatmul.mubr.msk.f32.vlgmr.msra.gmra.mxu1 %vm1270_vm2, %v28343_v40  ;;  %v24630_v54 = vpop.f32.mrf.mxu1 }
 0x555   :  { %24827 = vmatpush3.xpose.msk.msra.mxu1 %vm1270_vm2, %v28363_v61  ;;  %24828 = vmatprep.mubr.msk.f32.mxu1 %vm26536_vm1, %v32107_v39  ;;  %v32212_v61 = vld [vmem:[#allocation63_spill] sm:$0xff]  ;;  %v8720_v55 = vpop.permute.xlu1 %8719 }
 0x556   :  { %12818 = vrot.lane.b32.xlu1 %v32211_v58, %s26538_s3  ;;  %24836 = vmatprep.subr.mxu1 %v32107_v39 }
 0x558   :  { %24829 = vmatmul.mubr.msk.f32.vlgmr.msra.gmra.mxu1 %vm1270_vm2, %v28485_v51 }
 0x559   :  { %24837 = vmatpush3.xpose.msk.msra.mxu1 %vm1270_vm2, %v28502_v44  ;;  %24838 = vmatprep.mubr.msk.f32.mxu1 %vm26536_vm1, %v32107_v39  ;;  %v32213_v44 = vld [vmem:[#allocation62_spill] sm:$0xff] }
 0x55a   :  { %12976 = vrot.lane.b32.xlu1 %v32212_v61, %s26538_s3  ;;  %24846 = vmatprep.subr.mxu1 %v32107_v39 }
 0x55b   :  { %v4886_v40 = vpop.f32.mrf.mxu0 }
 0x55c   :  { %24839 = vmatmul.mubr.msk.f32.vlgmr.msra.gmra.mxu1 %vm1270_vm2, %v28517_v31  ;;  %6433 = vst.msk [vmem:[#allocation2 + $0x50] sm:$0xff] %vm1270_vm2, %v4886_v40  ;;  %v4959_v7 = vpop.f32.mrf.mxu1  ;;  %v8718_v31 = vpop.permute.xlu1 %8717 }
 0x55d   :  { %24847 = vmatpush3.xpose.msk.msra.mxu1 %vm1270_vm2, %v28531_v56  ;;  %24848 = vmatprep.mubr.msk.f32.mxu1 %vm26536_vm1, %v32107_v39  ;;  %6434 = vst.msk [vmem:[#allocation2 + $0x58] sm:$0xff] %vm1270_vm2, %v4959_v7  ;;  %v24635_v51 = vpop.f32.mrf.mxu0 }
 0x55e   :  { %12974 = vrot.lane.b32.xlu1 %v32213_v44, %s26538_s3  ;;  %24856 = vmatprep.subr.mxu1 %v32107_v39  ;;  %v24640_v54 = vpop.f32.mrf.mxu1 }
 0x560   :  { %24849 = vmatmul.mubr.msk.f32.vlgmr.msra.gmra.mxu1 %vm1270_vm2, %v28544_v30  ;;  %v8876_v30 = vpop.permute.xlu1 %8875 }
 0x561   :  { %24857 = vmatpush3.xpose.msk.msra.mxu1 %vm1270_vm2, %v28559_v41  ;;  %24858 = vmatprep.mubr.msk.f32.mxu1 %vm26536_vm1, %v32107_v39 }
 0x562   :  { %24866 = vmatprep.subr.mxu1 %v32107_v39 }
 0x564   :  { %24859 = vmatmul.mubr.msk.f32.vlgmr.msra.gmra.mxu1 %vm1270_vm2, %v28575_v28 }
 0x565   :  { %24867 = vmatpush3.xpose.msk.msra.mxu1 %vm1270_vm2, %v28591_v10  ;;  %24868 = vmatprep.mubr.msk.f32.mxu1 %vm26536_vm1, %v32107_v39 }
 0x566   :  { %24876 = vmatprep.subr.mxu1 %v32107_v39 }
 0x567   :  { %v5105_v56 = vpop.f32.mrf.mxu1 }
 0x568   :  { %24869 = vmatmul.mubr.msk.f32.vlgmr.msra.gmra.mxu1 %vm1270_vm2, %v8406_v59  ;;  %6436 = vst.msk [vmem:[#allocation2 + $0x68] sm:$0xff] %vm1270_vm2, %v5105_v56  ;;  %v8874_v59 = vpop.permute.xlu1 %8873 }
 0x569   :  { %24877 = vmatpush3.xpose.msk.msra.mxu1 %vm1270_vm2, %v8564_v8  ;;  %24878 = vmatprep.mubr.msk.f32.mxu1 %vm26536_vm1, %v32107_v39  ;;  %v24650_v41 = vpop.f32.mrf.mxu1  ;;  %v5032_v28 = vpop.f32.mrf.mxu0 }
 0x56a   :  { %24886 = vmatprep.subr.mxu1 %v32107_v39  ;;  %6435 = vst.msk [vmem:[#allocation2 + $0x60] sm:$0xff] %vm1270_vm2, %v5032_v28 }
 0x56b   :  { %v24645_v10 = vpop.f32.mrf.mxu0 }
 0x56c   :  { %24879 = vmatmul.mubr.msk.f32.vlgmr.msra.gmra.mxu1 %vm1270_vm2, %v8562_v43  ;;  %v9414_v40 = vpop.permute.xlu1 %9413 }
 0x56d   :  { %24887 = vmatpush3.xpose.msk.msra.mxu1 %vm1270_vm2, %v8720_v55  ;;  %24888 = vmatprep.mubr.msk.f32.mxu1 %vm26536_vm1, %v32107_v39 }
 0x56e   :  { %24896 = vmatprep.subr.mxu1 %v32107_v39 }
 0x570   :  { %24889 = vmatmul.mubr.msk.f32.vlgmr.msra.gmra.mxu1 %vm1270_vm2, %v8718_v31  ;;  %v28745_v62 = vpop.permute.xlu1 %9567 }
 0x571   :  { %24897 = vmatpush3.xpose.msk.msra.mxu1 %vm1270_vm2, %v8876_v30  ;;  %24898 = vmatprep.mubr.msk.f32.mxu1 %vm26536_vm1, %v32107_v39  ;;  %32221 = vst [vmem:[#allocation136_spill] sm:$0xff] %v28745_v62 }
 0x572   :  { %24906 = vmatprep.subr.mxu1 %v32107_v39 }
 0x573   :  { %v5178_v8 = vpop.f32.mrf.mxu0 }
 0x574   :  { %24899 = vmatmul.mubr.msk.f32.vlgmr.msra.gmra.mxu1 %vm1270_vm2, %v8874_v59  ;;  %6437 = vst.msk [vmem:[#allocation2 + $0x70] sm:$0xff] %vm1270_vm2, %v5178_v8  ;;  %v28752_v4 = vpop.permute.xlu1 %9721 }
 0x575   :  { %24907 = vmatpush3.msra.mxu1 %v9414_v40  ;;  %v24655_v43 = vpop.f32.mrf.mxu0  ;;  %24908 = vmatprep.mubr.msk.f32.mxu1 %vm26536_vm1, %v32107_v39  ;;  %32223 = vst [vmem:[#allocation108_spill] sm:$0xff] %v28752_v4 }
 0x576   :  { %24916 = vmatprep.subr.mxu1 %v32107_v39 }
 0x577   :  { %v5324_v55 = vpop.f32.mrf.mxu0 }
 0x578   :  { %6439 = vst.msk [vmem:[#allocation2 + $0x80] sm:$0xff] %vm1270_vm2, %v5324_v55  ;;  %v28705_v55 = vpop.permute.xlu0 %9490 }
 0x579   :  { %v24665_v7 = vpop.f32.mrf.mxu0 }
 0x57b   :  { %v5470_v51 = vpop.f32.mrf.mxu0 }
 0x57c   :  { %6441 = vst.msk [vmem:[#allocation2 + $0x90] sm:$0xff] %vm1270_vm2, %v5470_v51 }
 0x57d   :  { %v24675_v54 = vpop.f32.mrf.mxu0 }
 0x57f   :  { %v5616_v31 = vpop.f32.mrf.mxu0 }
 0x580   :  { %6443 = vst.msk [vmem:[#allocation2 + $0xa0] sm:$0xff] %vm1270_vm2, %v5616_v31  ;;  %v28708_v31 = vpop.permute.xlu0 %9644 }
 0x581   :  { %v24685_v56 = vpop.f32.mrf.mxu0  ;;  %32214 = vst [vmem:[#allocation21_spill] sm:$0xff] %v28708_v31 }
 0x583   :  { %v5762_v30 = vpop.f32.mrf.mxu0 }
 0x584   :  { %6445 = vst.msk [vmem:[#allocation2 + $0xb0] sm:$0xff] %vm1270_vm2, %v5762_v30 }
 0x585   :  { %v24695_v41 = vpop.f32.mrf.mxu0 }
 0x587   :  { %v5908_v28 = vpop.f32.mrf.mxu0 }
 0x588   :  { %6447 = vst.msk [vmem:[#allocation2 + $0xc0] sm:$0xff] %vm1270_vm2, %v5908_v28 }
 0x589   :  { %v24705_v10 = vpop.f32.mrf.mxu0 }
 0x58a   :  { %v28713_v10 = vpop.permute.xlu0 %9798 }
 0x58b   :  { %v6054_v59 = vpop.f32.mrf.mxu0  ;;  %32215 = vst [vmem:[#allocation64_spill] sm:$0xff] %v28713_v10 }
 0x58c   :  { %6449 = vst.msk [vmem:[#allocation2 + $0xd0] sm:$0xff] %vm1270_vm2, %v6054_v59 }
 0x58d   :  { %v24715_v8 = vpop.f32.mrf.mxu0 }
 0x59c   :  { %v5251_v40 = vpop.f32.mrf.mxu1 }
 0x59d   :  { %6438 = vst.msk [vmem:[#allocation2 + $0x78] sm:$0xff] %vm1270_vm2, %v5251_v40 }
 0x59e   :  { %v24660_v43 = vpop.f32.mrf.mxu1 }
 0x5a8   :  { %v6200_v7 = vpop.f32.mrf.mxu0 }
 0x5a9   :  { %6451 = vst.msk [vmem:[#allocation2 + $0xe0] sm:$0xff] %vm1270_vm2, %v6200_v7 }
 0x5aa   :  { %v24725_v51 = vpop.f32.mrf.mxu0 }
 0x5ac   :  { %v6346_v54 = vpop.f32.mrf.mxu0 }
 0x5ad   :  { %6453 = vst.msk [vmem:[#allocation2 + $0xf0] sm:$0xff] %vm1270_vm2, %v6346_v54  ;;  %v28723_v54 = vpop.permute.xlu0 %9952 }
 0x5ae   :  { %v24735_v56 = vpop.f32.mrf.mxu0  ;;  %32216 = vst [vmem:[#allocation20_spill] sm:$0xff] %v28723_v54 }
 0x5b0   :  { %v6529_v30 = vpop.f32.mrf.mxu0 }
 0x5b1   :  { %v28711_v41 = vmul.f32 0.35355338, %v6529_v30  ;;  %v28727_v44 = vpop.permute.xlu0 %10106 }
 0x5b2   :  { %v24745_v28 = vpop.f32.mrf.mxu0  ;;  %32217 = vst [vmem:[#allocation67_spill] sm:$0xff] %v28727_v44 }
 0x5b3   :  { %v8983_v59 = vsel %vm1270_vm2, %v28711_v41, -inf }
 0x5b4   :  { %8984 = vmax.xlane.f32.xlu0 %v8983_v59  ;;  %v6685_v8 = vpop.f32.mrf.mxu0 }
 0x5b5   :  { %v28717_v40 = vmul.f32 0.35355338, %v6685_v8 }
 0x5b6   :  { %v24755_v43 = vpop.f32.mrf.mxu0 }
 0x5b7   :  { %v8989_v7 = vsel %vm1270_vm2, %v28717_v40, -inf  ;;  %v28733_v43 = vpop.permute.xlu0 %10260 }
 0x5b8   :  { %8990 = vmax.xlane.f32.xlu0 %v8989_v7  ;;  %v28721_v51 = vpop.f32.mrf.mxu0  ;;  %32218 = vst [vmem:[#allocation24_spill] sm:$0xff] %v28733_v43 }
 0x5ba   :  { %v24765_v56 = vpop.f32.mrf.mxu0 }
 0x5bb   :  { %v28737_v27 = vpop.permute.xlu0 %10414 }
 0x5bc   :  { %v28725_v30 = vpop.f32.mrf.mxu0  ;;  %32219 = vst [vmem:[#allocation66_spill] sm:$0xff] %v28737_v27 }
 0x5be   :  { %v24775_v28 = vpop.f32.mrf.mxu0 }
 0x5bf   :  { %v28743_v28 = vpop.permute.xlu0 %10568 }
 0x5c0   :  { %v28729_v61 = vpop.f32.mrf.mxu0  ;;  %32220 = vst [vmem:[#allocation23_spill] sm:$0xff] %v28743_v28  ;;  %v28759_v28 = vpop.permute.xlu1 %9875 }
 0x5c1   :  { %32225 = vst [vmem:[#allocation110_spill] sm:$0xff] %v28759_v28 }
 0x5c2   :  { %v24785_v59 = vpop.f32.mrf.mxu0 }
 0x5c3   :  { %v28750_v36 = vpop.permute.xlu0 %10722 }
 0x5c4   :  { %v28731_v8 = vpop.f32.mrf.mxu0  ;;  %32222 = vst [vmem:[#allocation124_spill] sm:$0xff] %v28750_v36 }
 0x5c6   :  { %v24795_v58 = vpop.f32.mrf.mxu0 }
 0x5c7   :  { %v28757_v49 = vpop.permute.xlu0 %11030 }
 0x5c8   :  { %v28735_v48 = vpop.f32.mrf.mxu0  ;;  %32224 = vst [vmem:[#allocation122_spill] sm:$0xff] %v28757_v49 }
 0x5ca   :  { %v24805_v7 = vpop.f32.mrf.mxu0 }
 0x5cb   :  { %v28764_v36 = vpop.permute.xlu0 %11184 }
 0x5cc   :  { %v28739_v38 = vpop.f32.mrf.mxu0  ;;  %32226 = vst [vmem:[#allocation128_spill] sm:$0xff] %v28764_v36 }
 0x5ce   :  { %v24815_v56 = vpop.f32.mrf.mxu0 }
 0x5d0   :  { %v28741_v57 = vpop.f32.mrf.mxu0 }
 0x5d2   :  { %v24825_v59 = vpop.f32.mrf.mxu0 }
 0x5d4   :  { %v28747_v45 = vpop.f32.mrf.mxu0 }
 0x5d5   :  { %v5397_v13 = vpop.f32.mrf.mxu1 }
 0x5d6   :  { %6440 = vst.msk [vmem:[#allocation2 + $0x88] sm:$0xff] %vm1270_vm2, %v5397_v13  ;;  %v24835_v58 = vpop.f32.mrf.mxu0 }
 0x5d7   :  { %v24670_v7 = vpop.f32.mrf.mxu1 }
 0x5d9   :  { %v5543_v34 = vpop.f32.mrf.mxu1 }
 0x5da   :  { %6442 = vst.msk [vmem:[#allocation2 + $0x98] sm:$0xff] %vm1270_vm2, %v5543_v34 }
 0x5db   :  { %v24680_v56 = vpop.f32.mrf.mxu1 }
 0x5dc   :  { %v28755_v33 = vpop.f32.mrf.mxu0  ;;  %v28767_v56 = vpop.permute.xlu1 %10029 }
 0x5dd   :  { %v5689_v59 = vpop.f32.mrf.mxu1  ;;  %32227 = vst [vmem:[#allocation114_spill] sm:$0xff] %v28767_v56 }
 0x5de   :  { %6444 = vst.msk [vmem:[#allocation2 + $0xa8] sm:$0xff] %vm1270_vm2, %v5689_v59  ;;  %v24845_v13 = vpop.f32.mrf.mxu0 }
 0x5df   :  { %v24690_v58 = vpop.f32.mrf.mxu1  ;;  %v28772_v13 = vpop.permute.xlu0 %11338 }
 0x5e0   :  { %32228 = vst [vmem:[#allocation126_spill] sm:$0xff] %v28772_v13  ;;  %v28774_v58 = vpop.permute.xlu1 %10183 }
 0x5e1   :  { %v28762_v1 = vpop.f32.mrf.mxu0  ;;  %32229 = vst [vmem:[#allocation112_spill] sm:$0xff] %v28774_v58 }
 0x5e2   :  { %v5835_v7 = vpop.f32.mrf.mxu1 }
 0x5e3   :  { %6446 = vst.msk [vmem:[#allocation2 + $0xb8] sm:$0xff] %vm1270_vm2, %v5835_v7  ;;  %v24855_v34 = vpop.f32.mrf.mxu0  ;;  %v28781_v10 = vpop.permute.xlu0 %11492 }
 0x5e4   :  { %v24700_v27 = vpop.f32.mrf.mxu1  ;;  %32230 = vst [vmem:[#allocation132_spill] sm:$0xff] %v28781_v10  ;;  %v28783_v28 = vpop.permute.xlu1 %10337 }
 0x5e5   :  { %32231 = vst [vmem:[#allocation118_spill] sm:$0xff] %v28783_v28 }
 0x5e6   :  { %v28769_v43 = vpop.f32.mrf.mxu0  ;;  %v5981_v49 = vpop.f32.mrf.mxu1 }
 0x5e7   :  { %6448 = vst.msk [vmem:[#allocation2 + $0xc8] sm:$0xff] %vm1270_vm2, %v5981_v49 }
 0x5e8   :  { %v24865_v44 = vpop.f32.mrf.mxu0  ;;  %v24710_v59 = vpop.f32.mrf.mxu1 }
 0x5ea   :  { %v28776_v54 = vpop.f32.mrf.mxu0 }
 0x5eb   :  { %v6127_v36 = vpop.f32.mrf.mxu1 }
 0x5ec   :  { %6450 = vst.msk [vmem:[#allocation2 + $0xd8] sm:$0xff] %vm1270_vm2, %v6127_v36  ;;  %v24875_v7 = vpop.f32.mrf.mxu0 }
 0x5ed   :  { %v24720_v34 = vpop.f32.mrf.mxu1  ;;  %v28789_v7 = vpop.permute.xlu0 %11646 }
 0x5ee   :  { %32232 = vst [vmem:[#allocation130_spill] sm:$0xff] %v28789_v7  ;;  %v28791_v34 = vpop.permute.xlu1 %10491 }
 0x5ef   :  { %v28779_v56 = vpop.f32.mrf.mxu0  ;;  %v6273_v27 = vpop.f32.mrf.mxu1  ;;  %32233 = vst [vmem:[#allocation116_spill] sm:$0xff] %v28791_v34 }
 0x5f0   :  { %6452 = vst.msk [vmem:[#allocation2 + $0xe8] sm:$0xff] %vm1270_vm2, %v6273_v27 }
 0x5f1   :  { %v24885_v49 = vpop.f32.mrf.mxu0  ;;  %v24730_v44 = vpop.f32.mrf.mxu1 }
 0x5f2   :  { %v28797_v44 = vpop.permute.xlu0 %11962  ;;  %v28799_v28 = vpop.permute.xlu1 %10645 }
 0x5f3   :  { %v28786_v59 = vpop.f32.mrf.mxu0  ;;  %32234 = vst [vmem:[#allocation134_spill] sm:$0xff] %v28797_v44  ;;  %32235 = vst [vmem:[#allocation120_spill] sm:$0xff] %v28799_v28  ;;  %v28815_v44 = vmul.f32 0.35355338, %v28725_v30 }
 0x5f4   :  { %v6419_v13 = vpop.f32.mrf.mxu1 }
 0x5f5   :  { %6454 = vst.msk [vmem:[#allocation2 + $0xf8] sm:$0xff] %vm1270_vm2, %v6419_v13  ;;  %v24895_v58 = vpop.f32.mrf.mxu0  ;;  %v9001_v30 = vsel %vm1270_vm2, %v28815_v44, -inf }
 0x5f6   :  { %v24740_v36 = vpop.f32.mrf.mxu1  ;;  %v28812_v25 = vpop.permute.xlu1 %10799 }
 0x5f7   :  { %v28804_v36 = vmul.f32 0.35355338, %v28721_v51  ;;  %32237 = vst [vmem:[#allocation111_spill] sm:$0xff] %v28812_v25 }
 0x5f8   :  { %v6607_v4 = vpop.f32.mrf.mxu1 }
 0x5f9   :  { %v28793_v62 = vmul.f32 0.35355338, %v6607_v4  ;;  %v8995_v51 = vsel %vm1270_vm2, %v28804_v36, -inf }
 0x5fa   :  { %v24750_v10 = vpop.f32.mrf.mxu1 }
 0x5fb   :  { %v8986_v27 = vsel %vm1270_vm2, %v28793_v62, -inf }
 0x5fc   :  { %8987 = vmax.xlane.f32.xlu1 %v8986_v27  ;;  %v6763_v49 = vpop.f32.mrf.mxu1  ;;  %v28810_v27 = vpop.permute.xlu0 %11960 }
 0x5fd   :  { %v28801_v13 = vmul.f32 0.35355338, %v6763_v49  ;;  %32236 = vst [vmem:[#allocation125_spill] sm:$0xff] %v28810_v27 }
 0x5fe   :  { %v24760_v58 = vpop.f32.mrf.mxu1 }
 0x5ff   :  { %v8992_v4 = vsel %vm1270_vm2, %v28801_v13, -inf }
 0x600   :  { %v6919_v7 = vpop.f32.mrf.mxu1  ;;  %8993 = vmax.xlane.f32.xlu0 %v8992_v4  ;;  %v28830_v28 = vpop.permute.xlu0 %12118 }
 0x601   :  { %v28808_v10 = vmul.f32 0.35355338, %v6919_v7  ;;  %32238 = vst [vmem:[#allocation123_spill] sm:$0xff] %v28830_v28 }
 0x602   :  { %v24770_v34 = vpop.f32.mrf.mxu1 }
 0x603   :  { %v8998_v49 = vsel %vm1270_vm2, %v28808_v10, -inf  ;;  %v28824_v34 = vmul.f32 0.35355338, %v28729_v61 }
 0x604   :  { %8999 = vmax.xlane.f32.xlu1 %v8998_v49  ;;  %v7075_v58 = vpop.f32.mrf.mxu1  ;;  %8996 = vmax.xlane.f32.xlu0 %v8995_v51  ;;  %v28832_v49 = vpop.permute.xlu1 %10876 }
 0x605   :  { %v28821_v4 = vmul.f32 0.35355338, %v7075_v58  ;;  %32239 = vst [vmem:[#allocation109_spill] sm:$0xff] %v28832_v49  ;;  %v9007_v29 = vsel %vm1270_vm2, %v28824_v34, -inf  ;;  %v28845_v63 = vpop.permute.xlu0 %12116 }
 0x606   :  { %v24780_v7 = vpop.f32.mrf.mxu1  ;;  %32240 = vst [vmem:[#allocation129_spill] sm:$0xff] %v28845_v63 }
 0x607   :  { %v9004_v27 = vsel %vm1270_vm2, %v28821_v4, -inf  ;;  %v28837_v7 = vmul.f32 0.35355338, %v28731_v8 }
 0x608   :  { %9005 = vmax.xlane.f32.xlu1 %v9004_v27  ;;  %v7231_v25 = vpop.f32.mrf.mxu1  ;;  %9002 = vmax.xlane.f32.xlu0 %v9001_v30 }
 0x609   :  { %v28834_v51 = vmul.f32 0.35355338, %v7231_v25  ;;  %v28847_v25 = vpop.permute.xlu1 %10953  ;;  %v9013_v49 = vsel %vm1270_vm2, %v28837_v7, -inf  ;;  %v28865_v52 = vpop.permute.xlu0 %12274 }
 0x60a   :  { %v24790_v58 = vpop.f32.mrf.mxu1  ;;  %32241 = vst [vmem:[#allocation115_spill] sm:$0xff] %v28847_v25  ;;  %32242 = vst [vmem:[#allocation127_spill] sm:$0xff] %v28865_v52 }
 0x60b   :  { %v9010_v61 = vsel %vm1270_vm2, %v28834_v51, -inf  ;;  %v28850_v58 = vmul.f32 0.35355338, %v28735_v48 }
 0x60c   :  { %9011 = vmax.xlane.f32.xlu1 %v9010_v61  ;;  %v7387_v27 = vpop.f32.mrf.mxu1  ;;  %9008 = vmax.xlane.f32.xlu0 %v9007_v29 }
 0x60d   :  { %v28843_v30 = vmul.f32 0.35355338, %v7387_v27  ;;  %v9019_v48 = vsel %vm1270_vm2, %v28850_v58, -inf  ;;  %v28880_v22 = vpop.permute.xlu0 %12272 }
 0x60e   :  { %v24800_v28 = vpop.f32.mrf.mxu1  ;;  %32244 = vst [vmem:[#allocation133_spill] sm:$0xff] %v28880_v22 }
 0x60f   :  { %v9016_v8 = vsel %vm1270_vm2, %v28843_v30, -inf  ;;  %v28859_v28 = vmul.f32 0.35355338, %v28739_v38 }
 0x610   :  { %9017 = vmax.xlane.f32.xlu1 %v9016_v8  ;;  %v7543_v61 = vpop.f32.mrf.mxu1  ;;  %9014 = vmax.xlane.f32.xlu0 %v9013_v49  ;;  %v28867_v8 = vpop.permute.xlu1 %11107 }
 0x611   :  { %v28856_v29 = vmul.f32 0.35355338, %v7543_v61  ;;  %32243 = vst [vmem:[#allocation113_spill] sm:$0xff] %v28867_v8  ;;  %v9025_v14 = vsel %vm1270_vm2, %v28859_v28, -inf  ;;  %v28900_v50 = vpop.permute.xlu0 %12430 }
 0x612   :  { %v24810_v27 = vpop.f32.mrf.mxu1  ;;  %32246 = vst [vmem:[#allocation131_spill] sm:$0xff] %v28900_v50 }
 0x613   :  { %v9022_v63 = vsel %vm1270_vm2, %v28856_v29, -inf  ;;  %v28872_v27 = vmul.f32 0.35355338, %v28741_v57 }
 0x614   :  { %9023 = vmax.xlane.f32.xlu1 %v9022_v63  ;;  %v7699_v25 = vpop.f32.mrf.mxu1  ;;  %9020 = vmax.xlane.f32.xlu0 %v9019_v48 }
 0x615   :  { %v28869_v49 = vmul.f32 0.35355338, %v7699_v25  ;;  %v28882_v25 = vpop.permute.xlu1 %11261  ;;  %v9031_v8 = vsel %vm1270_vm2, %v28872_v27, -inf  ;;  %v28915_v37 = vpop.permute.xlu0 %12428 }
 0x616   :  { %v24820_v61 = vpop.f32.mrf.mxu1  ;;  %32245 = vst [vmem:[#allocation119_spill] sm:$0xff] %v28882_v25  ;;  %32248 = vst [vmem:[#allocation135_spill] sm:$0xff] %v28915_v37 }
 0x617   :  { %v9028_v38 = vsel %vm1270_vm2, %v28869_v49, -inf  ;;  %v28885_v61 = vmul.f32 0.35355338, %v28747_v45 }
 0x618   :  { %9029 = vmax.xlane.f32.xlu1 %v9028_v38  ;;  %v7855_v63 = vpop.f32.mrf.mxu1  ;;  %9026 = vmax.xlane.f32.xlu0 %v9025_v14 }
 0x619   :  { %v28878_v48 = vmul.f32 0.35355338, %v7855_v63  ;;  %v9037_v45 = vsel %vm1270_vm2, %v28885_v61, -inf  ;;  %v28935_v18 = vpop.permute.xlu0 %12586 }
 0x61a   :  { %v24830_v52 = vpop.f32.mrf.mxu1  ;;  %32250 = vst [vmem:[#allocation137_spill] sm:$0xff] %v28935_v18 }
 0x61b   :  { %v9034_v57 = vsel %vm1270_vm2, %v28878_v48, -inf  ;;  %v28894_v52 = vmul.f32 0.35355338, %v28755_v33 }
 0x61c   :  { %9035 = vmax.xlane.f32.xlu1 %v9034_v57  ;;  %v8011_v38 = vpop.f32.mrf.mxu1  ;;  %9032 = vmax.xlane.f32.xlu0 %v9031_v8  ;;  %v28902_v57 = vpop.permute.xlu1 %11415 }
 0x61d   :  { %v28891_v14 = vmul.f32 0.35355338, %v8011_v38  ;;  %32247 = vst [vmem:[#allocation117_spill] sm:$0xff] %v28902_v57  ;;  %v9043_v9 = vsel %vm1270_vm2, %v28894_v52, -inf  ;;  %v28950_v32 = vpop.permute.xlu0 %12584 }
 0x61e   :  { %v24840_v63 = vpop.f32.mrf.mxu1  ;;  %32252 = vst [vmem:[#allocation139_spill] sm:$0xff] %v28950_v32 }
 0x61f   :  { %v9040_v22 = vsel %vm1270_vm2, %v28891_v14, -inf  ;;  %v28907_v63 = vmul.f32 0.35355338, %v28762_v1 }
 0x620   :  { %9041 = vmax.xlane.f32.xlu1 %v9040_v22  ;;  %v8167_v25 = vpop.f32.mrf.mxu1  ;;  %9038 = vmax.xlane.f32.xlu0 %v9037_v45 }
 0x621   :  { %v28904_v8 = vmul.f32 0.35355338, %v8167_v25  ;;  %v28917_v25 = vpop.permute.xlu1 %11569  ;;  %v9049_v57 = vsel %vm1270_vm2, %v28907_v63, -inf }
 0x622   :  { %v24850_v38 = vpop.f32.mrf.mxu1  ;;  %32249 = vst [vmem:[#allocation121_spill] sm:$0xff] %v28917_v25 }
 0x623   :  { %v9046_v33 = vsel %vm1270_vm2, %v28904_v8, -inf  ;;  %v28920_v38 = vmul.f32 0.35355338, %v28769_v43 }
 0x624   :  { %9047 = vmax.xlane.f32.xlu1 %v9046_v33  ;;  %v8323_v22 = vpop.f32.mrf.mxu1  ;;  %9044 = vmax.xlane.f32.xlu0 %v9043_v9 }
 0x625   :  { %v28913_v45 = vmul.f32 0.35355338, %v8323_v22  ;;  %v9055_v43 = vsel %vm1270_vm2, %v28920_v38, -inf }
 0x626   :  { %v24860_v50 = vpop.f32.mrf.mxu1 }
 0x627   :  { %v9052_v1 = vsel %vm1270_vm2, %v28913_v45, -inf  ;;  %v28929_v50 = vmul.f32 0.35355338, %v28776_v54 }
 0x628   :  { %9053 = vmax.xlane.f32.xlu1 %v9052_v1  ;;  %v8479_v33 = vpop.f32.mrf.mxu1  ;;  %9050 = vmax.xlane.f32.xlu0 %v9049_v57  ;;  %v28937_v1 = vpop.permute.xlu1 %11723 }
 0x629   :  { %v28926_v9 = vmul.f32 0.35355338, %v8479_v33  ;;  %32251 = vst [vmem:[#allocation138_spill] sm:$0xff] %v28937_v1  ;;  %v9061_v23 = vsel %vm1270_vm2, %v28929_v50, -inf }
 0x62a   :  { %v24870_v22 = vpop.f32.mrf.mxu1 }
 0x62b   :  { %v9058_v37 = vsel %vm1270_vm2, %v28926_v9, -inf  ;;  %v28942_v22 = vmul.f32 0.35355338, %v28779_v56 }
 0x62c   :  { %9059 = vmax.xlane.f32.xlu1 %v9058_v37  ;;  %v8635_v25 = vpop.f32.mrf.mxu1  ;;  %9056 = vmax.xlane.f32.xlu0 %v9055_v43 }
 0x62d   :  { %v28939_v57 = vmul.f32 0.35355338, %v8635_v25  ;;  %v28952_v25 = vpop.permute.xlu1 %12040  ;;  %v9067_v1 = vsel %vm1270_vm2, %v28942_v22, -inf }
 0x62e   :  { %v24880_v33 = vpop.f32.mrf.mxu1  ;;  %32253 = vst [vmem:[#allocation140_spill] sm:$0xff] %v28952_v25 }
 0x62f   :  { %v9064_v54 = vsel %vm1270_vm2, %v28939_v57, -inf  ;;  %v28955_v33 = vmul.f32 0.35355338, %v28786_v59  ;;  %v28967_v59 = vpop.permute.xlu0 %12742 }
 0x630   :  { %9065 = vmax.xlane.f32.xlu1 %v9064_v54  ;;  %v8791_v37 = vpop.f32.mrf.mxu1  ;;  %9062 = vmax.xlane.f32.xlu0 %v9061_v23  ;;  %32254 = vst [vmem:[#allocation141_spill] sm:$0xff] %v28967_v59 }
 0x631   :  { %v28948_v43 = vmul.f32 0.35355338, %v8791_v37  ;;  %v9073_v32 = vsel %vm1270_vm2, %v28955_v33, -inf  ;;  %v28969_v25 = vpop.permute.xlu1 %12038 }
 0x632   :  { %v24890_v18 = vpop.f32.mrf.mxu1  ;;  %32255 = vst [vmem:[#allocation142_spill] sm:$0xff] %v28969_v25 }
 0x633   :  { %v9070_v56 = vsel %vm1270_vm2, %v28948_v43, -inf  ;;  %v28971_v2 = vpop.permute.xlu0 %12740 }
 0x634   :  { %9071 = vmax.xlane.f32.xlu1 %v9070_v56  ;;  %v8947_v54 = vpop.f32.mrf.mxu1  ;;  %9068 = vmax.xlane.f32.xlu0 %v9067_v1  ;;  %32256 = vst [vmem:[#allocation143_spill] sm:$0xff] %v28971_v2 }
 0x635   :  { %v28961_v23 = vmul.f32 0.35355338, %v8947_v54  ;;  %v28973_v56 = vpop.permute.xlu1 %12196 }
 0x636   :  { %v24900_v37 = vpop.f32.mrf.mxu1  ;;  %32257 = vst [vmem:[#allocation144_spill] sm:$0xff] %v28973_v56 }
 0x637   :  { %v9076_v18 = vsel %vm1270_vm2, %v28961_v23, -inf  ;;  %v28975_v1 = vpop.permute.xlu0 %12898  ;;  %v32260_v37 = vld [vmem:[#allocation61_spill] sm:$0xff] }
 0x638   :  { %9077 = vmax.xlane.f32.xlu1 %v9076_v18  ;;  %9074 = vmax.xlane.f32.xlu0 %v9073_v32  ;;  %32258 = vst [vmem:[#allocation145_spill] sm:$0xff] %v28975_v1  ;;  %v32263_v32 = vld [vmem:[#allocation57_spill] sm:$0xff] }
 0x639   :  { %v28977_v54 = vpop.permute.xlu1 %12194 }
 0x63a   :  { %32259 = vst [vmem:[#allocation146_spill] sm:$0xff] %v28977_v54 }
 0x63b   :  { %v28981_v17 = vpop.permute.xlu0 %12896 }
 0x63c   :  { %32261 = vst [vmem:[#allocation147_spill] sm:$0xff] %v28981_v17 }
 0x63d   :  { %v28983_v3 = vpop.permute.xlu1 %12352 }
 0x63e   :  { %32262 = vst [vmem:[#allocation148_spill] sm:$0xff] %v28983_v3 }
 0x63f   :  { %v8985_v18 = vpop.xlane.xlu0 %8984 }
 0x640   :  { %v9079_v2 = vsub.f32 %v28711_v41, %v8985_v18 }
 0x641   :  { %v28987_v59 = vpop.permute.xlu1 %12350 }
 0x642   :  { %32264 = vst [vmem:[#allocation149_spill] sm:$0xff] %v28987_v59  ;;  %v9111_v1 = vmul.f32 1.442695, %v9079_v2 }
 0x643   :  { %v8991_v56 = vpop.xlane.xlu0 %8990 }
 0x644   :  { %v9081_v54 = vsub.f32 %v28717_v40, %v8991_v56  ;;  %25959 = vpow2.f32 %v9111_v1 }
 0x645   :  { %v28990_v25 = vpop.permute.xlu1 %12508 }
 0x646   :  { %32265 = vst [vmem:[#allocation150_spill] sm:$0xff] %v28990_v25 }
 0x649   :  { %13132 = vrot.lane.b32.xlu1 %v32260_v37, %s26538_s3  ;;  %v9115_v37 = vmul.f32 1.442695, %v9081_v54  ;;  %v28993_v0 = vpop.permute.xlu1 %12506 }
 0x64a   :  { %32266 = vst [vmem:[#allocation151_spill] sm:$0xff] %v28993_v0 }
 0x64b   :  { %25961 = vpow2.f32 %v9115_v37 }
 0x64d   :  { %v28995_v17 = vpop.permute.xlu1 %12664 }
 0x64e   :  { %13054 = vrot.lane.b32.xlu0 %v32263_v32, %s26538_s3  ;;  %32267 = vst [vmem:[#allocation152_spill] sm:$0xff] %v28995_v17 }
 0x651   :  { %v28997_v3 = vpop.eup %25959  ;;  %v28999_v32 = vpop.permute.xlu1 %12662 }
 0x652   :  { %32268 = vst [vmem:[#allocation153_spill] sm:$0xff] %v28999_v32  ;;  %v9175_v41 = vsel %vm1270_vm2, %v28997_v3, 0.0 }
 0x655   :  { %v29005_v2 = vpop.permute.xlu1 %12820 }
 0x656   :  { %32269 = vst [vmem:[#allocation154_spill] sm:$0xff] %v29005_v2 }
 0x658   :  { %v29003_v18 = vpop.eup %25961 }
 0x659   :  { %v9181_v40 = vsel %vm1270_vm2, %v29003_v18, 0.0  ;;  %v29009_v56 = vpop.permute.xlu1 %12818 }
 0x65a   :  { %32270 = vst [vmem:[#allocation155_spill] sm:$0xff] %v29009_v56 }
 0x65d   :  { %v29011_v1 = vpop.permute.xlu1 %12976 }
 0x65e   :  { %32271 = vst [vmem:[#allocation156_spill] sm:$0xff] %v29011_v1 }
 0x661   :  { %v29013_v54 = vpop.permute.xlu1 %12974 }
 0x662   :  { %32272 = vst [vmem:[#allocation157_spill] sm:$0xff] %v29013_v54 }
 0x66d   :  { %9176 = vadd.xlane.f32.xlu0 %v9175_v41 }
 0x671   :  { %9182 = vadd.xlane.f32.xlu0 %v9181_v40 }
 0x685   :  { %v8988_v37 = vpop.xlane.xlu1 %8987 }
 0x686   :  { %v9080_v32 = vsub.f32 %v28793_v62, %v8988_v37 }
 0x688   :  { %v9113_v17 = vmul.f32 1.442695, %v9080_v32 }
 0x689   :  { %v8994_v0 = vpop.xlane.xlu0 %8993 }
 0x68a   :  { %25963 = vpow2.f32 %v9113_v17  ;;  %v9082_v41 = vsub.f32 %v28801_v13, %v8994_v0 }
 0x68c   :  { %v9117_v25 = vmul.f32 1.442695, %v9082_v41 }
 0x68d   :  { %v9000_v2 = vpop.xlane.xlu1 %8999  ;;  %v8997_v59 = vpop.xlane.xlu0 %8996 }
 0x68e   :  { %25965 = vpow2.f32 %v9117_v25  ;;  %v9084_v40 = vsub.f32 %v28808_v10, %v9000_v2  ;;  %v9083_v56 = vsub.f32 %v28804_v36, %v8997_v59 }
 0x690   :  { %v9121_v31 = vmul.f32 1.442695, %v9084_v40  ;;  %v9119_v1 = vmul.f32 1.442695, %v9083_v56 }
 0x691   :  { %v9006_v47 = vpop.xlane.xlu1 %9005  ;;  %v9003_v54 = vpop.xlane.xlu0 %9002 }
 0x692   :  { %25967 = vpow2.f32 %v9121_v31  ;;  %v9086_v62 = vsub.f32 %v28821_v4, %v9006_v47  ;;  %v9085_v32 = vsub.f32 %v28815_v44, %v9003_v54 }
 0x693   :  { %25969 = vpow2.f32 %v9119_v1 }
 0x694   :  { %v9125_v17 = vmul.f32 1.442695, %v9086_v62  ;;  %v9123_v0 = vmul.f32 1.442695, %v9085_v32 }
 0x695   :  { %v9012_v13 = vpop.xlane.xlu1 %9011  ;;  %v9009_v37 = vpop.xlane.xlu0 %9008 }
 0x696   :  { %25971 = vpow2.f32 %v9125_v17  ;;  %v9088_v25 = vsub.f32 %v28834_v51, %v9012_v13  ;;  %v9087_v10 = vsub.f32 %v28824_v34, %v9009_v37 }
 0x697   :  { %v29023_v36 = vpop.eup %25963  ;;  %25973 = vpow2.f32 %v9123_v0 }
 0x698   :  { %v9129_v59 = vmul.f32 1.442695, %v9088_v25  ;;  %v9127_v2 = vmul.f32 1.442695, %v9087_v10  ;;  %v9178_v47 = vsel %vm1270_vm2, %v29023_v36, 0.0 }
 0x699   :  { %v9018_v31 = vpop.xlane.xlu1 %9017  ;;  %9179 = vadd.xlane.f32.xlu1 %v9178_v47  ;;  %v9015_v44 = vpop.xlane.xlu0 %9014 }
 0x69a   :  { %25975 = vpow2.f32 %v9129_v59  ;;  %v9090_v4 = vsub.f32 %v28843_v30, %v9018_v31  ;;  %v9089_v56 = vsub.f32 %v28837_v7, %v9015_v44 }
 0x69b   :  { %v29029_v1 = vpop.eup %25965  ;;  %25977 = vpow2.f32 %v9127_v2 }
 0x69c   :  { %v9133_v34 = vmul.f32 1.442695, %v9090_v4  ;;  %v9131_v51 = vmul.f32 1.442695, %v9089_v56  ;;  %v9184_v54 = vsel %vm1270_vm2, %v29029_v1, 0.0 }
 0x69d   :  { %v9024_v41 = vpop.xlane.xlu1 %9023  ;;  %9185 = vadd.xlane.f32.xlu1 %v9184_v54  ;;  %v9021_v40 = vpop.xlane.xlu0 %9020 }
 0x69e   :  { %25979 = vpow2.f32 %v9133_v34  ;;  %v9092_v62 = vsub.f32 %v28856_v29, %v9024_v41  ;;  %v9091_v32 = vsub.f32 %v28850_v58, %v9021_v40 }
 0x69f   :  { %v29035_v17 = vpop.eup %25967  ;;  %25981 = vpow2.f32 %v9131_v51 }
 0x6a0   :  { %v29037_v7 = vpop.eup %25969  ;;  %v9137_v30 = vmul.f32 1.442695, %v9092_v62  ;;  %v9135_v0 = vmul.f32 1.442695, %v9091_v32  ;;  %v9190_v13 = vsel %vm1270_vm2, %v29035_v17, 0.0 }
 0x6a1   :  { %v9030_v37 = vpop.xlane.xlu1 %9029  ;;  %9191 = vadd.xlane.f32.xlu1 %v9190_v13  ;;  %v9187_v25 = vsel %vm1270_vm2, %v29037_v7, 0.0  ;;  %v9027_v10 = vpop.xlane.xlu0 %9026 }
 0x6a2   :  { %25983 = vpow2.f32 %v9137_v30  ;;  %v9094_v29 = vsub.f32 %v28869_v49, %v9030_v37  ;;  %9188 = vadd.xlane.f32.xlu0 %v9187_v25  ;;  %v9093_v58 = vsub.f32 %v28859_v28, %v9027_v10 }
 0x6a3   :  { %v29045_v59 = vpop.eup %25971  ;;  %25985 = vpow2.f32 %v9135_v0 }
 0x6a4   :  { %v29047_v2 = vpop.eup %25973  ;;  %v9141_v47 = vmul.f32 1.442695, %v9094_v29  ;;  %v9139_v31 = vmul.f32 1.442695, %v9093_v58  ;;  %v9196_v44 = vsel %vm1270_vm2, %v29045_v59, 0.0 }
 0x6a5   :  { %v9036_v4 = vpop.xlane.xlu1 %9035  ;;  %9197 = vadd.xlane.f32.xlu1 %v9196_v44  ;;  %v9193_v56 = vsel %vm1270_vm2, %v29047_v2, 0.0  ;;  %v9033_v34 = vpop.xlane.xlu0 %9032 }
 0x6a6   :  { %25987 = vpow2.f32 %v9141_v47  ;;  %v9096_v49 = vsub.f32 %v28878_v48, %v9036_v4  ;;  %9194 = vadd.xlane.f32.xlu0 %v9193_v56  ;;  %v9095_v28 = vsub.f32 %v28872_v27, %v9033_v34 }
 0x6a7   :  { %v29055_v51 = vpop.eup %25975  ;;  %25989 = vpow2.f32 %v9139_v31 }
 0x6a8   :  { %v29057_v54 = vpop.eup %25977  ;;  %v9145_v41 = vmul.f32 1.442695, %v9096_v49  ;;  %v9143_v40 = vmul.f32 1.442695, %v9095_v28  ;;  %v9202_v62 = vsel %vm1270_vm2, %v29055_v51, 0.0 }
 0x6a9   :  { %v9042_v32 = vpop.xlane.xlu1 %9041  ;;  %9203 = vadd.xlane.f32.xlu1 %v9202_v62  ;;  %v9199_v30 = vsel %vm1270_vm2, %v29057_v54, 0.0  ;;  %v9039_v0 = vpop.xlane.xlu0 %9038 }
 0x6aa   :  { %25991 = vpow2.f32 %v9145_v41  ;;  %v9098_v48 = vsub.f32 %v28891_v14, %v9042_v32  ;;  %9200 = vadd.xlane.f32.xlu0 %v9199_v30  ;;  %v9097_v27 = vsub.f32 %v28885_v61, %v9039_v0 }
 0x6ab   :  { %v29065_v13 = vpop.eup %25979  ;;  %25993 = vpow2.f32 %v9143_v40 }
 0x6ac   :  { %v29067_v37 = vpop.eup %25981  ;;  %v9149_v25 = vmul.f32 1.442695, %v9098_v48  ;;  %v9147_v10 = vmul.f32 1.442695, %v9097_v27  ;;  %v9208_v29 = vsel %vm1270_vm2, %v29065_v13, 0.0 }
 0x6ad   :  { %v9048_v58 = vpop.xlane.xlu1 %9047  ;;  %9209 = vadd.xlane.f32.xlu1 %v9208_v29  ;;  %v9205_v47 = vsel %vm1270_vm2, %v29067_v37, 0.0  ;;  %v9045_v31 = vpop.xlane.xlu0 %9044 }
 0x6ae   :  { %25995 = vpow2.f32 %v9149_v25  ;;  %v9100_v14 = vsub.f32 %v28904_v8, %v9048_v58  ;;  %9206 = vadd.xlane.f32.xlu0 %v9205_v47  ;;  %v9099_v61 = vsub.f32 %v28894_v52, %v9045_v31 }
 0x6af   :  { %v29075_v44 = vpop.eup %25983  ;;  %25997 = vpow2.f32 %v9147_v10 }
 0x6b0   :  { %v29077_v4 = vpop.eup %25985  ;;  %v9153_v56 = vmul.f32 1.442695, %v9100_v14  ;;  %v9151_v34 = vmul.f32 1.442695, %v9099_v61  ;;  %v9214_v49 = vsel %vm1270_vm2, %v29075_v44, 0.0 }
 0x6b1   :  { %v9054_v28 = vpop.xlane.xlu1 %9053  ;;  %9215 = vadd.xlane.f32.xlu1 %v9214_v49  ;;  %v9211_v41 = vsel %vm1270_vm2, %v29077_v4, 0.0  ;;  %v9051_v40 = vpop.xlane.xlu0 %9050 }
 0x6b2   :  { %25999 = vpow2.f32 %v9153_v56  ;;  %v9102_v8 = vsub.f32 %v28913_v45, %v9054_v28  ;;  %9212 = vadd.xlane.f32.xlu0 %v9211_v41  ;;  %v9101_v52 = vsub.f32 %v28907_v63, %v9051_v40 }
 0x6b3   :  { %v29085_v62 = vpop.eup %25987  ;;  %26001 = vpow2.f32 %v9151_v34 }
 0x6b4   :  { %v29087_v32 = vpop.eup %25989  ;;  %v9157_v30 = vmul.f32 1.442695, %v9102_v8  ;;  %v9155_v0 = vmul.f32 1.442695, %v9101_v52  ;;  %v9220_v48 = vsel %vm1270_vm2, %v29085_v62, 0.0 }
 0x6b5   :  { %v9060_v27 = vpop.xlane.xlu1 %9059  ;;  %v9217_v25 = vsel %vm1270_vm2, %v29087_v32, 0.0  ;;  %v9057_v10 = vpop.xlane.xlu0 %9056 }
 0x6b6   :  { %26003 = vpow2.f32 %v9157_v30  ;;  %v9104_v45 = vsub.f32 %v28926_v9, %v9060_v27  ;;  %9221 = vadd.xlane.f32.xlu0 %v9220_v48  ;;  %9218 = vadd.xlane.f32.xlu1 %v9217_v25  ;;  %v9103_v63 = vsub.f32 %v28920_v38, %v9057_v10 }
 0x6b7   :  { %v29095_v29 = vpop.eup %25991  ;;  %26005 = vpow2.f32 %v9155_v0 }
 0x6b8   :  { %v29097_v58 = vpop.eup %25993  ;;  %v9161_v47 = vmul.f32 1.442695, %v9104_v45  ;;  %v9159_v31 = vmul.f32 1.442695, %v9103_v63  ;;  %v9226_v14 = vsel %vm1270_vm2, %v29095_v29, 0.0 }
 0x6b9   :  { %v9066_v61 = vpop.xlane.xlu1 %9065  ;;  %v9223_v56 = vsel %vm1270_vm2, %v29097_v58, 0.0  ;;  %v9063_v34 = vpop.xlane.xlu0 %9062 }
 0x6ba   :  { %26007 = vpow2.f32 %v9161_v47  ;;  %v9106_v9 = vsub.f32 %v28939_v57, %v9066_v61  ;;  %9227 = vadd.xlane.f32.xlu0 %v9226_v14  ;;  %9224 = vadd.xlane.f32.xlu1 %v9223_v56  ;;  %v9105_v38 = vsub.f32 %v28929_v50, %v9063_v34 }
 0x6bb   :  { %v29105_v49 = vpop.eup %25995  ;;  %26009 = vpow2.f32 %v9159_v31 }
 0x6bc   :  { %v29107_v28 = vpop.eup %25997  ;;  %v9165_v41 = vmul.f32 1.442695, %v9106_v9  ;;  %v9163_v40 = vmul.f32 1.442695, %v9105_v38  ;;  %v9232_v8 = vsel %vm1270_vm2, %v29105_v49, 0.0 }
 0x6bd   :  { %v9072_v52 = vpop.xlane.xlu1 %9071  ;;  %v9229_v30 = vsel %vm1270_vm2, %v29107_v28, 0.0  ;;  %v9069_v0 = vpop.xlane.xlu0 %9068 }
 0x6be   :  { %26011 = vpow2.f32 %v9165_v41  ;;  %v9108_v57 = vsub.f32 %v28948_v43, %v9072_v52  ;;  %9233 = vadd.xlane.f32.xlu0 %v9232_v8  ;;  %9230 = vadd.xlane.f32.xlu1 %v9229_v30  ;;  %v9107_v50 = vsub.f32 %v28942_v22, %v9069_v0 }
 0x6bf   :  { %v29115_v48 = vpop.eup %25999  ;;  %26013 = vpow2.f32 %v9163_v40 }
 0x6c0   :  { %v29117_v27 = vpop.eup %26001  ;;  %v9169_v25 = vmul.f32 1.442695, %v9108_v57  ;;  %v9167_v10 = vmul.f32 1.442695, %v9107_v50  ;;  %v9238_v45 = vsel %vm1270_vm2, %v29115_v48, 0.0 }
 0x6c1   :  { %v9078_v63 = vpop.xlane.xlu1 %9077  ;;  %v9235_v47 = vsel %vm1270_vm2, %v29117_v27, 0.0  ;;  %v9075_v31 = vpop.xlane.xlu0 %9074 }
 0x6c2   :  { %26015 = vpow2.f32 %v9169_v25  ;;  %v9110_v43 = vsub.f32 %v28961_v23, %v9078_v63  ;;  %9239 = vadd.xlane.f32.xlu0 %v9238_v45  ;;  %9236 = vadd.xlane.f32.xlu1 %v9235_v47  ;;  %v9109_v22 = vsub.f32 %v28955_v33, %v9075_v31 }
 0x6c3   :  { %v29125_v14 = vpop.eup %26003  ;;  %26017 = vpow2.f32 %v9167_v10 }
 0x6c4   :  { %v29127_v61 = vpop.eup %26005  ;;  %v9173_v56 = vmul.f32 1.442695, %v9110_v43  ;;  %v9171_v34 = vmul.f32 1.442695, %v9109_v22  ;;  %v9244_v9 = vsel %vm1270_vm2, %v29125_v14, 0.0  ;;  %v32273_v43 = vld [vmem:[#allocation60_spill] sm:$0xff] }
 0x6c5   :  { %v9241_v38 = vsel %vm1270_vm2, %v29127_v61, 0.0  ;;  %v32274_v22 = vld [vmem:[#allocation65_spill] sm:$0xff] }
 0x6c6   :  { %26019 = vpow2.f32 %v9173_v56  ;;  %9245 = vadd.xlane.f32.xlu0 %v9244_v9  ;;  %9242 = vadd.xlane.f32.xlu1 %v9241_v38  ;;  %v29175_v56 = vpop.permute.xlu0 %13054 }
 0x6c7   :  { %v29133_v23 = vpop.eup %26007  ;;  %26021 = vpow2.f32 %v9171_v34 }
 0x6c8   :  { %v29135_v33 = vpop.eup %26009  ;;  %v9250_v41 = vsel %vm1270_vm2, %v29133_v23, 0.0 }
 0x6c9   :  { %v9247_v40 = vsel %vm1270_vm2, %v29135_v33, 0.0 }
 0x6ca   :  { %9251 = vadd.xlane.f32.xlu0 %v9250_v41  ;;  %9248 = vadd.xlane.f32.xlu1 %v9247_v40 }
 0x6cb   :  { %v29141_v8 = vpop.eup %26011 }
 0x6cc   :  { %v29143_v52 = vpop.eup %26013  ;;  %v9256_v30 = vsel %vm1270_vm2, %v29141_v8, 0.0 }
 0x6cd   :  { %v9253_v0 = vsel %vm1270_vm2, %v29143_v52, 0.0 }
 0x6ce   :  { %9257 = vadd.xlane.f32.xlu0 %v9256_v30  ;;  %9254 = vadd.xlane.f32.xlu1 %v9253_v0  ;;  %v32276_v0 = vld [vmem:[#allocation21_spill] sm:$0xff] }
 0x6cf   :  { %v29149_v57 = vpop.eup %26015 }
 0x6d0   :  { %v29151_v50 = vpop.eup %26017  ;;  %v9262_v25 = vsel %vm1270_vm2, %v29149_v57, 0.0 }
 0x6d1   :  { %v9259_v10 = vsel %vm1270_vm2, %v29151_v50, 0.0 }
 0x6d2   :  { %9263 = vadd.xlane.f32.xlu0 %v9262_v25  ;;  %9260 = vadd.xlane.f32.xlu1 %v9259_v10  ;;  %v32279_v25 = vld [vmem:[#allocation70_spill] sm:$0xff] }
 0x6d3   :  { %v29157_v45 = vpop.eup %26019  ;;  %v32280_v10 = vld [vmem:[#allocation26_spill] sm:$0xff] }
 0x6d4   :  { %v29159_v63 = vpop.eup %26021  ;;  %v9268_v47 = vsel %vm1270_vm2, %v29157_v45, 0.0 }
 0x6d5   :  { %v9265_v31 = vsel %vm1270_vm2, %v29159_v63, 0.0 }
 0x6d6   :  { %9269 = vadd.xlane.f32.xlu0 %v9268_v47  ;;  %9266 = vadd.xlane.f32.xlu1 %v9265_v31  ;;  %v32281_v47 = vld [vmem:[#allocation27_spill] sm:$0xff]  ;;  %v32282_v31 = vld [vmem:[#allocation68_spill] sm:$0xff] }
 0x6e7   :  { %13130 = vrot.lane.b32.xlu1 %v32273_v43, %s26538_s3 }
 0x6eb   :  { %13288 = vrot.lane.b32.xlu1 %v32274_v22, %s26538_s3 }
 0x6ec   :  { %13052 = vrot.lane.b32.xlu0 %v27340_v26, %s26538_s3 }
 0x6ef   :  { %13286 = vrot.lane.b32.xlu1 %v32122_v5, %s26538_s3 }
 0x6f0   :  { %13210 = vrot.lane.b32.xlu0 %v27383_v60, %s26538_s3 }
 0x6f3   :  { %13444 = vrot.lane.b32.xlu1 %v32125_v21, %s26538_s3 }
 0x6f4   :  { %13208 = vrot.lane.b32.xlu0 %v27205_v24, %s26538_s3 }
 0x6f6   :  { %v9177_v34 = vpop.xlane.xlu0 %9176 }
 0x6f7   :  { %13442 = vrot.lane.b32.xlu1 %v32127_v20, %s26538_s3  ;;  %26023 = vrcp.f32 %v9177_v34  ;;  %v32283_v34 = vld [vmem:[#allocation77_spill] sm:$0xff] }
 0x6f8   :  { %13366 = vrot.lane.b32.xlu0 %v27378_v19, %s26538_s3 }
 0x6fa   :  { %v9183_v9 = vpop.xlane.xlu0 %9182 }
 0x6fb   :  { %13600 = vrot.lane.b32.xlu1 %v32128_v11, %s26538_s3  ;;  %26025 = vrcp.f32 %v9183_v9  ;;  %v32284_v9 = vld [vmem:[#allocation25_spill] sm:$0xff] }
 0x6fc   :  { %13364 = vrot.lane.b32.xlu0 %v27203_v35, %s26538_s3 }
 0x6ff   :  { %13598 = vrot.lane.b32.xlu1 %v32130_v16, %s26538_s3 }
 0x700   :  { %13522 = vrot.lane.b32.xlu0 %v27421_v15, %s26538_s3 }
 0x703   :  { %13756 = vrot.lane.b32.xlu1 %v32132_v12, %s26538_s3 }
 0x704   :  { %v26024_v38 = vpop.eup %26023  ;;  %13520 = vrot.lane.b32.xlu0 %v27213_v6, %s26538_s3 }
 0x705   :  { %v9303_v41 = vmul.f32 %v26024_v38, %v28997_v3  ;;  %v32275_v3 = vld [vmem:[#allocation22_spill] sm:$0xff]  ;;  %v29233_v38 = vpop.permute.xlu1 %13132 }
 0x707   :  { %13754 = vrot.lane.b32.xlu1 %v32134_v46, %s26538_s3  ;;  %24904 = vmatmul.mubr.msk.f32.vlgmr.msra.gmra.mxu0 %vm1270_vm2, %v9303_v41  ;;  %v32285_v41 = vld [vmem:[#allocation32_spill] sm:$0xff] }
 0x708   :  { %v26026_v40 = vpop.eup %26025  ;;  %13678 = vrot.lane.b32.xlu0 %v27413_v53, %s26538_s3  ;;  %24912 = vmatpush3.msra.mxu0 %v28705_v55  ;;  %v32277_v55 = vld [vmem:[#allocation28_spill] sm:$0xff] }
 0x709   :  { %v9305_v30 = vmul.f32 %v26026_v40, %v29003_v18  ;;  %24913 = vmatprep.mubr.msk.f32.mxu0 %vm26536_vm1, %v32107_v39  ;;  %24921 = vmatprep.subr.mxu0 %v32107_v39  ;;  %v32278_v18 = vld [vmem:[#allocation69_spill] sm:$0xff] }
 0x70a   :  { %v32286_v40 = vld [vmem:[#allocation73_spill] sm:$0xff] }
 0x70b   :  { %13912 = vrot.lane.b32.xlu1 %v32136_v42, %s26538_s3  ;;  %24914 = vmatmul.mubr.msk.f32.vlgmr.msra.gmra.mxu0 %vm1270_vm2, %v9305_v30 }
 0x70c   :  { %13676 = vrot.lane.b32.xlu0 %v32275_v3, %s26538_s3  ;;  %24922 = vmatpush3.msra.mxu0 %v32276_v0  ;;  %v32287_v0 = vld [vmem:[#allocation76_spill] sm:$0xff] }
 0x70d   :  { %24923 = vmatprep.mubr.msk.f32.mxu0 %vm26536_vm1, %v32107_v39  ;;  %24931 = vmatprep.subr.mxu0 %v32107_v39 }
 0x70f   :  { %13910 = vrot.lane.b32.xlu1 %v32277_v55, %s26538_s3 }
 0x710   :  { %13834 = vrot.lane.b32.xlu0 %v32278_v18, %s26538_s3 }
 0x713   :  { %14068 = vrot.lane.b32.xlu1 %v32279_v25, %s26538_s3 }
 0x714   :  { %13832 = vrot.lane.b32.xlu0 %v32280_v10, %s26538_s3 }
 0x717   :  { %14066 = vrot.lane.b32.xlu1 %v32281_v47, %s26538_s3  ;;  %v32290_v47 = vld [vmem:[#allocation72_spill] sm:$0xff] }
 0x718   :  { %13990 = vrot.lane.b32.xlu0 %v32282_v31, %s26538_s3  ;;  %v32288_v31 = vld [vmem:[#allocation30_spill] sm:$0xff] }
 0x71b   :  { %14224 = vrot.lane.b32.xlu1 %v32283_v34, %s26538_s3 }
 0x71c   :  { %13988 = vrot.lane.b32.xlu0 %v32284_v9, %s26538_s3  ;;  %v32289_v9 = vld [vmem:[#allocation31_spill] sm:$0xff] }
 0x71f   :  { %14222 = vrot.lane.b32.xlu1 %v32285_v41, %s26538_s3 }
 0x720   :  { %14146 = vrot.lane.b32.xlu0 %v32286_v40, %s26538_s3  ;;  %v32291_v40 = vld [vmem:[#allocation79_spill] sm:$0xff] }
 0x722   :  { %v9180_v30 = vpop.xlane.xlu1 %9179 }
 0x723   :  { %26027 = vrcp.f32 %v9180_v30  ;;  %14380 = vrot.lane.b32.xlu1 %v32287_v0, %s26538_s3  ;;  %v32292_v0 = vld [vmem:[#allocation29_spill] sm:$0xff] }
 0x724   :  { %14144 = vrot.lane.b32.xlu0 %v32288_v31, %s26538_s3 }
 0x726   :  { %v9186_v34 = vpop.xlane.xlu1 %9185 }
 0x727   :  { %26029 = vrcp.f32 %v9186_v34  ;;  %14378 = vrot.lane.b32.xlu1 %v32289_v9, %s26538_s3  ;;  %v32293_v34 = vld [vmem:[#allocation78_spill] sm:$0xff] }
 0x728   :  { %14302 = vrot.lane.b32.xlu0 %v32290_v47, %s26538_s3  ;;  %v32294_v47 = vld [vmem:[#allocation75_spill] sm:$0xff] }
 0x72a   :  { %v9192_v41 = vpop.xlane.xlu1 %9191 }
 0x72b   :  { %26031 = vrcp.f32 %v9192_v41  ;;  %14916 = vrot.lane.b32.xlu1 %v32291_v40, %s26538_s3  ;;  %v9189_v30 = vpop.xlane.xlu0 %9188 }
 0x72c   :  { %26033 = vrcp.f32 %v9189_v30  ;;  %14300 = vrot.lane.b32.xlu0 %v32292_v0, %s26538_s3  ;;  %v32295_v30 = vld [vmem:[#allocation83_spill] sm:$0xff]  ;;  %v32296_v0 = vld [vmem:[#allocation136_spill] sm:$0xff] }
 0x72e   :  { %v9198_v10 = vpop.xlane.xlu1 %9197 }
 0x72f   :  { %26035 = vrcp.f32 %v9198_v10  ;;  %15068 = vrot.lane.b32.xlu1 %v32293_v34, %s26538_s3  ;;  %v9195_v31 = vpop.xlane.xlu0 %9194  ;;  %v32297_v34 = vld [vmem:[#allocation74_spill] sm:$0xff] }
 0x730   :  { %v26028_v9 = vpop.eup %26027  ;;  %26037 = vrcp.f32 %v9195_v31  ;;  %14840 = vrot.lane.b32.xlu0 %v32294_v47, %s26538_s3 }
 0x731   :  { %v9304_v41 = vmul.f32 %v26028_v9, %v29023_v36 }
 0x732   :  { %v9204_v25 = vpop.xlane.xlu1 %9203 }
 0x733   :  { %26039 = vrcp.f32 %v9204_v25  ;;  %15220 = vrot.lane.b32.xlu1 %v32295_v30, %s26538_s3  ;;  %v9201_v40 = vpop.xlane.xlu0 %9200  ;;  %24909 = vmatmul.mubr.msk.f32.vlgmr.msra.gmra.mxu1 %vm1270_vm2, %v9304_v41  ;;  %v32298_v25 = vld [vmem:[#allocation82_spill] sm:$0xff]  ;;  %v32300_v41 = vld [vmem:[#allocation81_spill] sm:$0xff] }
 0x734   :  { %v26030_v10 = vpop.eup %26029  ;;  %26041 = vrcp.f32 %v9201_v40  ;;  %24917 = vmatpush3.msra.mxu1 %v32296_v0  ;;  %14992 = vrot.lane.b32.xlu0 %v32297_v34, %s26538_s3  ;;  %v32299_v0 = vld [vmem:[#allocation108_spill] sm:$0xff] }
 0x735   :  { %v9306_v31 = vmul.f32 %v26030_v10, %v29029_v1  ;;  %24918 = vmatprep.mubr.msk.f32.mxu1 %vm26536_vm1, %v32107_v39  ;;  %24926 = vmatprep.subr.mxu1 %v32107_v39 }
 0x736   :  { %v9210_v36 = vpop.xlane.xlu1 %9209 }
 0x737   :  { %26043 = vrcp.f32 %v9210_v36  ;;  %15372 = vrot.lane.b32.xlu1 %v32298_v25, %s26538_s3  ;;  %v9207_v9 = vpop.xlane.xlu0 %9206  ;;  %24919 = vmatmul.mubr.msk.f32.vlgmr.msra.gmra.mxu1 %vm1270_vm2, %v9306_v31  ;;  %v32301_v31 = vld [vmem:[#allocation87_spill] sm:$0xff] }
 0x738   :  { %v26032_v40 = vpop.eup %26031  ;;  %26045 = vrcp.f32 %v9207_v9  ;;  %24927 = vmatpush3.msra.mxu1 %v32299_v0  ;;  %15144 = vrot.lane.b32.xlu0 %v32300_v41, %s26538_s3  ;;  %v32302_v41 = vld [vmem:[#allocation110_spill] sm:$0xff] }
 0x739   :  { %v26034_v1 = vpop.eup %26033  ;;  %v9308_v10 = vmul.f32 %v26032_v40, %v29035_v17  ;;  %24928 = vmatprep.mubr.msk.f32.mxu1 %vm26536_vm1, %v32107_v39  ;;  %24936 = vmatprep.subr.mxu1 %v32107_v39  ;;  %v32303_v17 = vld [vmem:[#allocation80_spill] sm:$0xff] }
 0x73a   :  { %v9307_v36 = vmul.f32 %v26034_v1, %v29037_v7  ;;  %v9216_v25 = vpop.xlane.xlu1 %9215 }
 0x73b   :  { %26047 = vrcp.f32 %v9216_v25  ;;  %15524 = vrot.lane.b32.xlu1 %v32301_v31, %s26538_s3  ;;  %v9213_v9 = vpop.xlane.xlu0 %9212  ;;  %24929 = vmatmul.mubr.msk.f32.vlgmr.msra.gmra.mxu1 %vm1270_vm2, %v9308_v10  ;;  %v32304_v25 = vld [vmem:[#allocation64_spill] sm:$0xff] }
 0x73c   :  { %v26036_v0 = vpop.eup %26035  ;;  %24937 = vmatpush3.msra.mxu1 %v32302_v41  ;;  %15296 = vrot.lane.b32.xlu0 %v32303_v17, %s26538_s3  ;;  %26049 = vrcp.f32 %v9213_v9  ;;  %v32305_v41 = vld [vmem:[#allocation86_spill] sm:$0xff] }
 0x73d   :  { %v26038_v40 = vpop.eup %26037  ;;  %v9310_v34 = vmul.f32 %v26036_v0, %v29045_v59  ;;  %24924 = vmatmul.mubr.msk.f32.vlgmr.msra.gmra.mxu0 %vm1270_vm2, %v9307_v36  ;;  %24938 = vmatprep.mubr.msk.f32.mxu1 %vm26536_vm1, %v32107_v39  ;;  %v32306_v9 = vld [vmem:[#allocation114_spill] sm:$0xff]  ;;  %v32307_v0 = vld [vmem:[#allocation85_spill] sm:$0xff] }
 0x73e   :  { %v9309_v7 = vmul.f32 %v26038_v40, %v29047_v2  ;;  %24932 = vmatpush3.msra.mxu0 %v32304_v25  ;;  %24946 = vmatprep.subr.mxu1 %v32107_v39  ;;  %v32308_v25 = vld [vmem:[#allocation20_spill] sm:$0xff] }
 0x73f   :  { %v9219_v1 = vpop.xlane.xlu1 %9218  ;;  %15676 = vrot.lane.b32.xlu1 %v32305_v41, %s26538_s3  ;;  %24933 = vmatprep.mubr.msk.f32.mxu0 %vm26536_vm1, %v32107_v39  ;;  %v9222_v59 = vpop.xlane.xlu0 %9221 }
 0x740   :  { %v26040_v10 = vpop.eup %26039  ;;  %26051 = vrcp.f32 %v9219_v1  ;;  %24941 = vmatprep.subr.mxu0 %v32107_v39  ;;  %24939 = vmatmul.mubr.msk.f32.vlgmr.msra.gmra.mxu1 %vm1270_vm2, %v9310_v34 }
 0x741   :  { %v26042_v36 = vpop.eup %26041  ;;  %v9312_v2 = vmul.f32 %v26040_v10, %v29055_v51  ;;  %26053 = vrcp.f32 %v9222_v59  ;;  %24947 = vmatpush3.msra.mxu1 %v32306_v9  ;;  %15448 = vrot.lane.b32.xlu0 %v32307_v0, %s26538_s3  ;;  %v32309_v59 = vld [vmem:[#allocation91_spill] sm:$0xff] }
 0x742   :  { %24934 = vmatmul.mubr.msk.f32.vlgmr.msra.gmra.mxu0 %vm1270_vm2, %v9309_v7  ;;  %24948 = vmatprep.mubr.msk.f32.mxu1 %vm26536_vm1, %v32107_v39  ;;  %v9311_v40 = vmul.f32 %v26042_v36, %v29057_v54  ;;  %v32310_v7 = vld [vmem:[#allocation112_spill] sm:$0xff]  ;;  %v32312_v0 = vld [vmem:[#allocation67_spill] sm:$0xff] }
 0x743   :  { %24942 = vmatpush3.msra.mxu0 %v32308_v25  ;;  %24956 = vmatprep.subr.mxu1 %v32107_v39  ;;  %v9225_v34 = vpop.xlane.xlu1 %9224  ;;  %v9228_v1 = vpop.xlane.xlu0 %9227  ;;  %v32311_v36 = vld [vmem:[#allocation84_spill] sm:$0xff] }
 0x744   :  { %v26044_v51 = vpop.eup %26043  ;;  %15828 = vrot.lane.b32.xlu1 %v32309_v59, %s26538_s3  ;;  %24943 = vmatprep.mubr.msk.f32.mxu0 %vm26536_vm1, %v32107_v39  ;;  %26055 = vrcp.f32 %v9225_v34 }
 0x745   :  { %v26046_v10 = vpop.eup %26045  ;;  %24951 = vmatprep.subr.mxu0 %v32107_v39  ;;  %24949 = vmatmul.mubr.msk.f32.vlgmr.msra.gmra.mxu1 %vm1270_vm2, %v9312_v2  ;;  %v9314_v54 = vmul.f32 %v26044_v51, %v29065_v13  ;;  %26057 = vrcp.f32 %v9228_v1  ;;  %v32313_v13 = vld [vmem:[#allocation90_spill] sm:$0xff] }
 0x746   :  { %24957 = vmatpush3.msra.mxu1 %v32310_v7  ;;  %15600 = vrot.lane.b32.xlu0 %v32311_v36, %s26538_s3  ;;  %v9313_v59 = vmul.f32 %v26046_v10, %v29067_v37  ;;  %v32314_v37 = vld [vmem:[#allocation118_spill] sm:$0xff] }
 0x747   :  { %24944 = vmatmul.mubr.msk.f32.vlgmr.msra.gmra.mxu0 %vm1270_vm2, %v9311_v40  ;;  %24958 = vmatprep.mubr.msk.f32.mxu1 %vm26536_vm1, %v32107_v39  ;;  %v9231_v9 = vpop.xlane.xlu1 %9230  ;;  %v9234_v25 = vpop.xlane.xlu0 %9233 }
 0x748   :  { %v26048_v34 = vpop.eup %26047  ;;  %24952 = vmatpush3.msra.mxu0 %v32312_v0  ;;  %24966 = vmatprep.subr.mxu1 %v32107_v39  ;;  %26059 = vrcp.f32 %v9231_v9  ;;  %v32315_v0 = vld [vmem:[#allocation89_spill] sm:$0xff]  ;;  %v32316_v9 = vld [vmem:[#allocation24_spill] sm:$0xff] }
 0x749   :  { %15980 = vrot.lane.b32.xlu1 %v32313_v13, %s26538_s3  ;;  %24953 = vmatprep.mubr.msk.f32.mxu0 %vm26536_vm1, %v32107_v39  ;;  %v26050_v2 = vpop.eup %26049  ;;  %v9316_v40 = vmul.f32 %v26048_v34, %v29075_v44  ;;  %26061 = vrcp.f32 %v9234_v25  ;;  %v32319_v34 = vld [vmem:[#allocation88_spill] sm:$0xff] }
 0x74a   :  { %24961 = vmatprep.subr.mxu0 %v32107_v39  ;;  %24959 = vmatmul.mubr.msk.f32.vlgmr.msra.gmra.mxu1 %vm1270_vm2, %v9314_v54  ;;  %v9315_v7 = vmul.f32 %v26050_v2, %v29077_v4  ;;  %v32317_v54 = vld [vmem:[#allocation95_spill] sm:$0xff]  ;;  %v32318_v4 = vld [vmem:[#allocation116_spill] sm:$0xff] }
 0x74b   :  { %24967 = vmatpush3.msra.mxu1 %v32314_v37  ;;  %15752 = vrot.lane.b32.xlu0 %v32315_v0, %s26538_s3  ;;  %v9237_v1 = vpop.xlane.xlu1 %9236  ;;  %v9240_v51 = vpop.xlane.xlu0 %9239 }
 0x74c   :  { %24954 = vmatmul.mubr.msk.f32.vlgmr.msra.gmra.mxu0 %vm1270_vm2, %v9313_v59  ;;  %24968 = vmatprep.mubr.msk.f32.mxu1 %vm26536_vm1, %v32107_v39  ;;  %26063 = vrcp.f32 %v9237_v1 }
 0x74d   :  { %v26052_v10 = vpop.eup %26051  ;;  %24962 = vmatpush3.msra.mxu0 %v32316_v9  ;;  %24976 = vmatprep.subr.mxu1 %v32107_v39  ;;  %26065 = vrcp.f32 %v9240_v51  ;;  %v32320_v9 = vld [vmem:[#allocation66_spill] sm:$0xff] }
 0x74e   :  { %v26054_v44 = vpop.eup %26053  ;;  %16132 = vrot.lane.b32.xlu1 %v32317_v54, %s26538_s3  ;;  %24963 = vmatprep.mubr.msk.f32.mxu0 %vm26536_vm1, %v32107_v39  ;;  %v9317_v2 = vmul.f32 %v26052_v10, %v29087_v32  ;;  %v32321_v51 = vld [vmem:[#allocation94_spill] sm:$0xff] }
 0x74f   :  { %24971 = vmatprep.subr.mxu0 %v32107_v39  ;;  %24969 = vmatmul.mubr.msk.f32.vlgmr.msra.gmra.mxu1 %vm1270_vm2, %v9316_v40  ;;  %v9243_v59 = vpop.xlane.xlu1 %9242  ;;  %v9246_v25 = vpop.xlane.xlu0 %9245  ;;  %v9318_v37 = vmul.f32 %v26054_v44, %v29085_v62  ;;  %v32322_v62 = vld [vmem:[#allocation93_spill] sm:$0xff] }
 0x750   :  { %24977 = vmatpush3.msra.mxu1 %v32318_v4  ;;  %15904 = vrot.lane.b32.xlu0 %v32319_v34, %s26538_s3  ;;  %26067 = vrcp.f32 %v9243_v59  ;;  %v32323_v4 = vld [vmem:[#allocation23_spill] sm:$0xff]  ;;  %v32325_v59 = vld [vmem:[#allocation97_spill] sm:$0xff] }
 0x751   :  { %24964 = vmatmul.mubr.msk.f32.vlgmr.msra.gmra.mxu0 %vm1270_vm2, %v9315_v7  ;;  %24978 = vmatprep.mubr.msk.f32.mxu1 %vm26536_vm1, %v32107_v39  ;;  %v26056_v1 = vpop.eup %26055  ;;  %26069 = vrcp.f32 %v9246_v25 }
 0x752   :  { %24972 = vmatpush3.msra.mxu0 %v32320_v9  ;;  %24986 = vmatprep.subr.mxu1 %v32107_v39  ;;  %v26058_v40 = vpop.eup %26057  ;;  %v9319_v7 = vmul.f32 %v26056_v1, %v29097_v58  ;;  %v32324_v9 = vld [vmem:[#allocation120_spill] sm:$0xff] }
 0x753   :  { %16284 = vrot.lane.b32.xlu1 %v32321_v51, %s26538_s3  ;;  %24973 = vmatprep.mubr.msk.f32.mxu0 %vm26536_vm1, %v32107_v39  ;;  %v9249_v32 = vpop.xlane.xlu1 %9248  ;;  %v9252_v10 = vpop.xlane.xlu0 %9251  ;;  %v9320_v44 = vmul.f32 %v26058_v40, %v29095_v29  ;;  %v32326_v29 = vld [vmem:[#allocation92_spill] sm:$0xff]  ;;  %v32328_v40 = vld [vmem:[#allocation111_spill] sm:$0xff] }
 0x754   :  { %24981 = vmatprep.subr.mxu0 %v32107_v39  ;;  %16056 = vrot.lane.b32.xlu0 %v32322_v62, %s26538_s3  ;;  %26071 = vrcp.f32 %v9249_v32  ;;  %v32327_v1 = vld [vmem:[#allocation124_spill] sm:$0xff] }
 0x755   :  { %24974 = vmatmul.mubr.msk.f32.vlgmr.msra.gmra.mxu0 %vm1270_vm2, %v9317_v2  ;;  %24979 = vmatmul.mubr.msk.f32.vlgmr.msra.gmra.mxu1 %vm1270_vm2, %v9318_v37  ;;  %v26060_v51 = vpop.eup %26059  ;;  %26073 = vrcp.f32 %v9252_v10 }
 0x756   :  { %24982 = vmatpush3.msra.mxu0 %v32323_v4  ;;  %24987 = vmatpush3.msra.mxu1 %v32324_v9  ;;  %v26062_v2 = vpop.eup %26061  ;;  %v9321_v58 = vmul.f32 %v26060_v51, %v29107_v28 }
 0x757   :  { %16360 = vrot.lane.b32.xlu1 %v32325_v59, %s26538_s3  ;;  %24983 = vmatprep.mubr.msk.f32.mxu0 %vm26536_vm1, %v32107_v39  ;;  %v9255_v25 = vpop.xlane.xlu1 %9254  ;;  %v9258_v62 = vpop.xlane.xlu0 %9257  ;;  %v9322_v37 = vmul.f32 %v26062_v2, %v29105_v49  ;;  %v32329_v59 = vld [vmem:[#allocation99_spill] sm:$0xff]  ;;  %v32330_v49 = vld [vmem:[#allocation96_spill] sm:$0xff]  ;;  %v32331_v2 = vld [vmem:[#allocation109_spill] sm:$0xff] }
 0x758   :  { %24988 = vmatprep.mubr.msk.f32.mxu1 %vm26536_vm1, %v32107_v39  ;;  %24991 = vmatprep.subr.mxu0 %v32107_v39  ;;  %26075 = vrcp.f32 %v9255_v25 }
 0x759   :  { %24996 = vmatprep.subr.mxu1 %v32107_v39  ;;  %16208 = vrot.lane.b32.xlu0 %v32326_v29, %s26538_s3  ;;  %v26064_v9 = vpop.eup %26063  ;;  %26077 = vrcp.f32 %v9258_v62 }
 0x75a   :  { %24984 = vmatmul.mubr.msk.f32.vlgmr.msra.gmra.mxu0 %vm1270_vm2, %v9319_v7  ;;  %24989 = vmatmul.mubr.msk.f32.vlgmr.msra.gmra.mxu1 %vm1270_vm2, %v9320_v44  ;;  %v26066_v10 = vpop.eup %26065  ;;  %v9323_v7 = vmul.f32 %v26064_v9, %v29117_v27 }
 0x75b   :  { %24992 = vmatpush3.msra.mxu0 %v32327_v1  ;;  %24997 = vmatpush3.msra.mxu1 %v32328_v40  ;;  %v9261_v4 = vpop.xlane.xlu1 %9260  ;;  %v9264_v32 = vpop.xlane.xlu0 %9263  ;;  %v9324_v44 = vmul.f32 %v26066_v10, %v29115_v48  ;;  %v32332_v1 = vld [vmem:[#allocation115_spill] sm:$0xff]  ;;  %v32333_v40 = vld [vmem:[#allocation98_spill] sm:$0xff]  ;;  %v32334_v48 = vld [vmem:[#allocation101_spill] sm:$0xff] }
 0x75c   :  { %16436 = vrot.lane.b32.xlu1 %v32329_v59, %s26538_s3  ;;  %24993 = vmatprep.mubr.msk.f32.mxu0 %vm26536_vm1, %v32107_v39  ;;  %26079 = vrcp.f32 %v9261_v4  ;;  %v32335_v10 = vld [vmem:[#allocation122_spill] sm:$0xff]  ;;  %v32336_v4 = vld [vmem:[#allocation113_spill] sm:$0xff] }
 0x75d   :  { %24998 = vmatprep.mubr.msk.f32.mxu1 %vm26536_vm1, %v32107_v39  ;;  %25001 = vmatprep.subr.mxu0 %v32107_v39  ;;  %v26068_v25 = vpop.eup %26067  ;;  %26081 = vrcp.f32 %v9264_v32 }
 0x75e   :  { %25006 = vmatprep.subr.mxu1 %v32107_v39  ;;  %16512 = vrot.lane.b32.xlu0 %v32330_v49, %s26538_s3  ;;  %v26070_v62 = vpop.eup %26069 }
 0x75f   :  { %24994 = vmatmul.mubr.msk.f32.vlgmr.msra.gmra.mxu0 %vm1270_vm2, %v9321_v58  ;;  %24999 = vmatmul.mubr.msk.f32.vlgmr.msra.gmra.mxu1 %vm1270_vm2, %v9322_v37  ;;  %v9267_v28 = vpop.xlane.xlu1 %9266  ;;  %v9270_v51 = vpop.xlane.xlu0 %9269  ;;  %v9325_v37 = vmul.f32 %v26068_v25, %v29127_v61  ;;  %v9326_v9 = vmul.f32 %v26070_v62, %v29125_v14  ;;  %v32338_v14 = vld [vmem:[#allocation100_spill] sm:$0xff]  ;;  %v32340_v62 = vld [vmem:[#allocation119_spill] sm:$0xff] }
 0x760   :  { %25002 = vmatpush3.msra.mxu0 %v32331_v2  ;;  %25007 = vmatpush3.msra.mxu1 %v32332_v1  ;;  %v32337_v1 = vld [vmem:[#allocation103_spill] sm:$0xff]  ;;  %26083 = vrcp.f32 %v9267_v28  ;;  %v32339_v25 = vld [vmem:[#allocation128_spill] sm:$0xff] }
 0x761   :  { %16588 = vrot.lane.b32.xlu1 %v32333_v40, %s26538_s3  ;;  %25003 = vmatprep.mubr.msk.f32.mxu0 %vm26536_vm1, %v32107_v39  ;;  %v26072_v2 = vpop.eup %26071  ;;  %26085 = vrcp.f32 %v9270_v51 }
 0x762   :  { %25008 = vmatprep.mubr.msk.f32.mxu1 %vm26536_vm1, %v32107_v39  ;;  %25011 = vmatprep.subr.mxu0 %v32107_v39  ;;  %v26074_v32 = vpop.eup %26073 }
 0x763   :  { %25016 = vmatprep.subr.mxu1 %v32107_v39  ;;  %16664 = vrot.lane.b32.xlu0 %v32334_v48, %s26538_s3  ;;  %v29409_v27 = vpop.permute.xlu0 %13052  ;;  %v29413_v58 = vpop.permute.xlu1 %13130  ;;  %v32393_v48 = vld [vmem:[#allocation156_spill] sm:$0xff] }
 0x764   :  { %25004 = vmatmul.mubr.msk.f32.vlgmr.msra.gmra.mxu0 %vm1270_vm2, %v9323_v7  ;;  %25009 = vmatmul.mubr.msk.f32.vlgmr.msra.gmra.mxu1 %vm1270_vm2, %v9324_v44  ;;  %v9327_v7 = vmul.f32 %v26072_v2, %v29135_v33  ;;  %v9328_v44 = vmul.f32 %v26074_v32, %v29133_v23  ;;  %v32342_v23 = vld [vmem:[#allocation105_spill] sm:$0xff] }
 0x765   :  { %25012 = vmatpush3.msra.mxu0 %v32335_v10  ;;  %25017 = vmatpush3.msra.mxu1 %v32336_v4  ;;  %v26076_v10 = vpop.eup %26075  ;;  %v32341_v4 = vld [vmem:[#allocation102_spill] sm:$0xff]  ;;  %v32344_v2 = vld [vmem:[#allocation117_spill] sm:$0xff] }
 0x766   :  { %16740 = vrot.lane.b32.xlu1 %v32337_v1, %s26538_s3  ;;  %25013 = vmatprep.mubr.msk.f32.mxu0 %vm26536_vm1, %v32107_v39  ;;  %v26078_v51 = vpop.eup %26077  ;;  %v9329_v33 = vmul.f32 %v26076_v10, %v29143_v52  ;;  %v32392_v1 = vld [vmem:[#allocation45_spill] sm:$0xff] }
 0x767   :  { %25018 = vmatprep.mubr.msk.f32.mxu1 %vm26536_vm1, %v32107_v39  ;;  %25021 = vmatprep.subr.mxu0 %v32107_v39  ;;  %v29431_v61 = vpop.permute.xlu0 %13210  ;;  %v29437_v28 = vpop.permute.xlu1 %13288 }
 0x768   :  { %25026 = vmatprep.subr.mxu1 %v32107_v39  ;;  %16816 = vrot.lane.b32.xlu0 %v32338_v14, %s26538_s3  ;;  %v32387_v14 = vld [vmem:[#allocation46_spill] sm:$0xff] }
 0x769   :  { %25014 = vmatmul.mubr.msk.f32.vlgmr.msra.gmra.mxu0 %vm1270_vm2, %v9325_v37  ;;  %25019 = vmatmul.mubr.msk.f32.vlgmr.msra.gmra.mxu1 %vm1270_vm2, %v9326_v9  ;;  %v9330_v37 = vmul.f32 %v26078_v51, %v29141_v8  ;;  %v32343_v9 = vld [vmem:[#allocation126_spill] sm:$0xff]  ;;  %v32346_v8 = vld [vmem:[#allocation104_spill] sm:$0xff] }
 0x76a   :  { %25022 = vmatpush3.msra.mxu0 %v32339_v25  ;;  %25027 = vmatpush3.msra.mxu1 %v32340_v62  ;;  %v26080_v25 = vpop.eup %26079  ;;  %v32345_v62 = vld [vmem:[#allocation107_spill] sm:$0xff]  ;;  %v32347_v51 = vld [vmem:[#allocation132_spill] sm:$0xff] }
 0x76b   :  { %16892 = vrot.lane.b32.xlu1 %v32341_v4, %s26538_s3  ;;  %25023 = vmatprep.mubr.msk.f32.mxu0 %vm26536_vm1, %v32107_v39  ;;  %v29455_v32 = vpop.permute.xlu0 %13208  ;;  %v9331_v52 = vmul.f32 %v26080_v25, %v29151_v50  ;;  %v32350_v50 = vld [vmem:[#allocation36_spill] sm:$0xff] }
 0x76c   :  { %25028 = vmatprep.mubr.msk.f32.mxu1 %vm26536_vm1, %v32107_v39  ;;  %25031 = vmatprep.subr.mxu0 %v32107_v39 }
 0x76d   :  { %25036 = vmatprep.subr.mxu1 %v32107_v39  ;;  %16968 = vrot.lane.b32.xlu0 %v32342_v23, %s26538_s3  ;;  %v32349_v23 = vld [vmem:[#allocation106_spill] sm:$0xff] }
 0x76e   :  { %25024 = vmatmul.mubr.msk.f32.vlgmr.msra.gmra.mxu0 %vm1270_vm2, %v9327_v7  ;;  %25029 = vmatmul.mubr.msk.f32.vlgmr.msra.gmra.mxu1 %vm1270_vm2, %v9328_v44  ;;  %v29461_v7 = vpop.permute.xlu1 %13286  ;;  %v26082_v44 = vpop.eup %26081 }
 0x76f   :  { %25032 = vmatpush3.msra.mxu0 %v32343_v9  ;;  %25037 = vmatpush3.msra.mxu1 %v32344_v2  ;;  %v9332_v10 = vmul.f32 %v26082_v44, %v29149_v57  ;;  %v32348_v9 = vld [vmem:[#allocation121_spill] sm:$0xff]  ;;  %v26084_v2 = vpop.eup %26083  ;;  %v32351_v44 = vld [vmem:[#allocation130_spill] sm:$0xff] }
 0x770   :  { %17044 = vrot.lane.b32.xlu1 %v32345_v62, %s26538_s3  ;;  %25033 = vmatprep.mubr.msk.f32.mxu0 %vm26536_vm1, %v32107_v39 }
 0x771   :  { %25038 = vmatprep.mubr.msk.f32.mxu1 %vm26536_vm1, %v32107_v39  ;;  %25041 = vmatprep.subr.mxu0 %v32107_v39 }
 0x772   :  { %25046 = vmatprep.subr.mxu1 %v32107_v39  ;;  %17120 = vrot.lane.b32.xlu0 %v32346_v8, %s26538_s3  ;;  %v29479_v8 = vpop.permute.xlu0 %13366  ;;  %v29484_v57 = vpop.permute.xlu1 %13444 }
 0x773   :  { %25034 = vmatmul.mubr.msk.f32.vlgmr.msra.gmra.mxu0 %vm1270_vm2, %v9329_v33  ;;  %25039 = vmatmul.mubr.msk.f32.vlgmr.msra.gmra.mxu1 %vm1270_vm2, %v9330_v37  ;;  %v26086_v33 = vpop.eup %26085  ;;  %v9333_v37 = vmul.f32 %v26084_v2, %v29159_v63  ;;  %v32356_v2 = vld [vmem:[#allocation140_spill] sm:$0xff] }
 0x774   :  { %25042 = vmatpush3.msra.mxu0 %v32347_v51  ;;  %25047 = vmatpush3.msra.mxu1 %v32348_v9  ;;  %v9334_v25 = vmul.f32 %v26086_v33, %v29157_v45  ;;  %v32352_v51 = vld [vmem:[#allocation138_spill] sm:$0xff]  ;;  %v32353_v9 = vld [vmem:[#allocation40_spill] sm:$0xff]  ;;  %v32354_v45 = vld [vmem:[#allocation35_spill] sm:$0xff] }
 0x775   :  { %17196 = vrot.lane.b32.xlu1 %v32349_v23, %s26538_s3  ;;  %25043 = vmatprep.mubr.msk.f32.mxu0 %vm26536_vm1, %v32107_v39  ;;  %v32357_v33 = vld [vmem:[#allocation39_spill] sm:$0xff]  ;;  %v32375_v23 = vld [vmem:[#allocation48_spill] sm:$0xff] }
 0x776   :  { %25048 = vmatprep.mubr.msk.f32.mxu1 %vm26536_vm1, %v32107_v39  ;;  %25051 = vmatprep.subr.mxu0 %v32107_v39  ;;  %v29507_v63 = vpop.permute.xlu1 %13442 }
 0x777   :  { %25056 = vmatprep.subr.mxu1 %v32107_v39  ;;  %17435 = vrot.lane.b32.xlu0 %v32350_v50, %s26539_s20  ;;  %v32358_v50 = vld [vmem:[#allocation34_spill] sm:$0xff] }
 0x778   :  { %25044 = vmatmul.mubr.msk.f32.vlgmr.msra.gmra.mxu0 %vm1270_vm2, %v9331_v52  ;;  %25049 = vmatmul.mubr.msk.f32.vlgmr.msra.gmra.mxu1 %vm1270_vm2, %v9332_v10  ;;  %v29502_v52 = vpop.permute.xlu0 %13364  ;;  %v32355_v10 = vld [vmem:[#allocation134_spill] sm:$0xff] }
 0x779   :  { %25052 = vmatpush3.msra.mxu0 %v32351_v44  ;;  %25057 = vmatpush3.msra.mxu1 %v32352_v51  ;;  %v32360_v44 = vld [vmem:[#allocation142_spill] sm:$0xff] }
 0x77a   :  { %17513 = vrot.lane.b32.xlu1 %v32353_v9, %s26539_s20  ;;  %25053 = vmatprep.mubr.msk.f32.mxu0 %vm26536_vm1, %v32107_v39  ;;  %v29531_v51 = vpop.permute.xlu1 %13600  ;;  %v32361_v9 = vld [vmem:[#allocation123_spill] sm:$0xff] }
 0x77b   :  { %25058 = vmatprep.mubr.msk.f32.mxu1 %vm26536_vm1, %v32107_v39  ;;  %25061 = vmatprep.subr.mxu0 %v32107_v39 }
 0x77c   :  { %25066 = vmatprep.subr.mxu1 %v32107_v39  ;;  %17433 = vrot.lane.b32.xlu0 %v32354_v45, %s26539_s20  ;;  %v32362_v45 = vld [vmem:[#allocation144_spill] sm:$0xff] }
 0x77d   :  { %25054 = vmatmul.mubr.msk.f32.vlgmr.msra.gmra.mxu0 %vm1270_vm2, %v9333_v37  ;;  %25059 = vmatmul.mubr.msk.f32.vlgmr.msra.gmra.mxu1 %vm1270_vm2, %v9334_v25  ;;  %v29525_v37 = vpop.permute.xlu0 %13522  ;;  %v32359_v25 = vld [vmem:[#allocation125_spill] sm:$0xff] }
 0x77e   :  { %25062 = vmatpush3.xpose.msk.msra.mxu0 %vm1270_vm2, %v32355_v10  ;;  %25067 = vmatpush3.xpose.msk.msra.mxu1 %vm1270_vm2, %v32356_v2  ;;  %v32363_v10 = vld [vmem:[#allocation38_spill] sm:$0xff]  ;;  %v32364_v2 = vld [vmem:[#allocation33_spill] sm:$0xff] }
 0x77f   :  { %17511 = vrot.lane.b32.xlu1 %v32357_v33, %s26539_s20  ;;  %25063 = vmatprep.mubr.msk.f32.mxu0 %vm26536_vm1, %v32107_v39  ;;  %v32365_v33 = vld [vmem:[#allocation129_spill] sm:$0xff] }
 0x780   :  { %25068 = vmatprep.mubr.msk.f32.mxu1 %vm26536_vm1, %v32107_v39  ;;  %25071 = vmatprep.subr.mxu0 %v32107_v39 }
 0x781   :  { %25076 = vmatprep.subr.mxu1 %v32107_v39  ;;  %17591 = vrot.lane.b32.xlu0 %v32358_v50, %s26539_s20  ;;  %v32366_v50 = vld [vmem:[#allocation146_spill] sm:$0xff] }
 0x782   :  { %25064 = vmatmul.mubr.msk.f32.vlgmr.msra.gmra.mxu0 %vm1270_vm2, %v32359_v25  ;;  %25069 = vmatmul.mubr.msk.f32.vlgmr.msra.gmra.mxu1 %vm1270_vm2, %v32360_v44  ;;  %v29551_v25 = vpop.permute.xlu0 %13520  ;;  %v32367_v44 = vld [vmem:[#allocation127_spill] sm:$0xff] }
 0x783   :  { %25072 = vmatpush3.xpose.msk.msra.mxu0 %vm1270_vm2, %v32361_v9  ;;  %25077 = vmatpush3.xpose.msk.msra.mxu1 %vm1270_vm2, %v32362_v45  ;;  %v32368_v9 = vld [vmem:[#allocation148_spill] sm:$0xff]  ;;  %v29557_v45 = vpop.permute.xlu1 %13598 }
 0x784   :  { %17669 = vrot.lane.b32.xlu1 %v32363_v10, %s26539_s20  ;;  %25073 = vmatprep.mubr.msk.f32.mxu0 %vm26536_vm1, %v32107_v39  ;;  %v32369_v10 = vld [vmem:[#allocation37_spill] sm:$0xff] }
 0x785   :  { %25078 = vmatprep.mubr.msk.f32.mxu1 %vm26536_vm1, %v32107_v39  ;;  %25081 = vmatprep.subr.mxu0 %v32107_v39 }
 0x786   :  { %25086 = vmatprep.subr.mxu1 %v32107_v39  ;;  %17589 = vrot.lane.b32.xlu0 %v32364_v2, %s26539_s20  ;;  %v32370_v2 = vld [vmem:[#allocation44_spill] sm:$0xff] }
 0x787   :  { %25074 = vmatmul.mubr.msk.f32.vlgmr.msra.gmra.mxu0 %vm1270_vm2, %v32365_v33  ;;  %25079 = vmatmul.mubr.msk.f32.vlgmr.msra.gmra.mxu1 %vm1270_vm2, %v32366_v50  ;;  %v32371_v33 = vld [vmem:[#allocation133_spill] sm:$0xff]  ;;  %v29581_v62 = vpop.permute.xlu1 %13756 }
 0x788   :  { %25082 = vmatpush3.xpose.msk.msra.mxu0 %vm1270_vm2, %v32367_v44  ;;  %25087 = vmatpush3.xpose.msk.msra.mxu1 %vm1270_vm2, %v32368_v9  ;;  %v32372_v50 = vld [vmem:[#allocation149_spill] sm:$0xff]  ;;  %v32373_v44 = vld [vmem:[#allocation131_spill] sm:$0xff]  ;;  %v32374_v9 = vld [vmem:[#allocation150_spill] sm:$0xff] }
 0x789   :  { %17667 = vrot.lane.b32.xlu1 %v32369_v10, %s26539_s20  ;;  %25083 = vmatprep.mubr.msk.f32.mxu0 %vm26536_vm1, %v32107_v39  ;;  %v29577_v10 = vpop.permute.xlu0 %13678 }
 0x78a   :  { %25088 = vmatprep.mubr.msk.f32.mxu1 %vm26536_vm1, %v32107_v39  ;;  %25091 = vmatprep.subr.mxu0 %v32107_v39 }
 0x78b   :  { %25096 = vmatprep.subr.mxu1 %v32107_v39  ;;  %17747 = vrot.lane.b32.xlu0 %v32370_v2, %s26539_s20  ;;  %v32376_v2 = vld [vmem:[#allocation43_spill] sm:$0xff] }
 0x78c   :  { %25084 = vmatmul.mubr.msk.f32.vlgmr.msra.gmra.mxu0 %vm1270_vm2, %v32371_v33  ;;  %25089 = vmatmul.mubr.msk.f32.vlgmr.msra.gmra.mxu1 %vm1270_vm2, %v32372_v50  ;;  %v32377_v33 = vld [vmem:[#allocation135_spill] sm:$0xff] }
 0x78d   :  { %25092 = vmatpush3.xpose.msk.msra.mxu0 %vm1270_vm2, %v32373_v44  ;;  %25097 = vmatpush3.xpose.msk.msra.mxu1 %vm1270_vm2, %v32374_v9  ;;  %v32378_v50 = vld [vmem:[#allocation151_spill] sm:$0xff]  ;;  %v32380_v44 = vld [vmem:[#allocation152_spill] sm:$0xff]  ;;  %v29603_v4 = vpop.permute.xlu0 %13676 }
 0x78e   :  { %17825 = vrot.lane.b32.xlu1 %v32375_v23, %s26539_s20  ;;  %25093 = vmatprep.mubr.msk.f32.mxu0 %vm26536_vm1, %v32107_v39  ;;  %v32379_v23 = vld [vmem:[#allocation137_spill] sm:$0xff]  ;;  %v32381_v9 = vld [vmem:[#allocation47_spill] sm:$0xff] }
 0x78f   :  { %25098 = vmatprep.mubr.msk.f32.mxu1 %vm26536_vm1, %v32107_v39  ;;  %25101 = vmatprep.subr.mxu0 %v32107_v39 }
 0x790   :  { %25106 = vmatprep.subr.mxu1 %v32107_v39  ;;  %17745 = vrot.lane.b32.xlu0 %v32376_v2, %s26539_s20  ;;  %v29605_v2 = vpop.permute.xlu1 %13754 }
 0x791   :  { %25094 = vmatmul.mubr.msk.f32.vlgmr.msra.gmra.mxu0 %vm1270_vm2, %v32377_v33  ;;  %25099 = vmatmul.mubr.msk.f32.vlgmr.msra.gmra.mxu1 %vm1270_vm2, %v32378_v50  ;;  %v32382_v33 = vld [vmem:[#allocation42_spill] sm:$0xff]  ;;  %v32383_v50 = vld [vmem:[#allocation139_spill] sm:$0xff] }
 0x792   :  { %25102 = vmatpush3.xpose.msk.msra.mxu0 %vm1270_vm2, %v32379_v23  ;;  %25107 = vmatpush3.xpose.msk.msra.mxu1 %vm1270_vm2, %v32380_v44  ;;  %v32384_v23 = vld [vmem:[#allocation153_spill] sm:$0xff] }
 0x793   :  { %17823 = vrot.lane.b32.xlu1 %v32381_v9, %s26539_s20  ;;  %25103 = vmatprep.mubr.msk.f32.mxu0 %vm26536_vm1, %v32107_v39  ;;  %v32385_v44 = vld [vmem:[#allocation141_spill] sm:$0xff]  ;;  %v32386_v9 = vld [vmem:[#allocation154_spill] sm:$0xff] }
 0x794   :  { %25108 = vmatprep.mubr.msk.f32.mxu1 %vm26536_vm1, %v32107_v39  ;;  %25111 = vmatprep.subr.mxu0 %v32107_v39 }
 0x795   :  { %25116 = vmatprep.subr.mxu1 %v32107_v39  ;;  %17903 = vrot.lane.b32.xlu0 %v32382_v33, %s26539_s20  ;;  %v29628_v33 = vpop.permute.xlu0 %13834 }
 0x796   :  { %25104 = vmatmul.mubr.msk.f32.vlgmr.msra.gmra.mxu0 %vm1270_vm2, %v32383_v50  ;;  %25109 = vmatmul.mubr.msk.f32.vlgmr.msra.gmra.mxu1 %vm1270_vm2, %v32384_v23  ;;  %v29630_v50 = vpop.permute.xlu1 %13912  ;;  %v32388_v23 = vld [vmem:[#allocation143_spill] sm:$0xff] }
 0x797   :  { %25112 = vmatpush3.xpose.msk.msra.mxu0 %vm1270_vm2, %v32385_v44  ;;  %25117 = vmatpush3.xpose.msk.msra.mxu1 %vm1270_vm2, %v32386_v9  ;;  %v32389_v44 = vld [vmem:[#allocation145_spill] sm:$0xff]  ;;  %v32391_v9 = vld [vmem:[#allocation155_spill] sm:$0xff] }
 0x798   :  { %17981 = vrot.lane.b32.xlu1 %v32387_v14, %s26539_s20  ;;  %25113 = vmatprep.mubr.msk.f32.mxu0 %vm26536_vm1, %v32107_v39  ;;  %v32390_v14 = vld [vmem:[#allocation41_spill] sm:$0xff] }
 0x799   :  { %25118 = vmatprep.mubr.msk.f32.mxu1 %vm26536_vm1, %v32107_v39  ;;  %25121 = vmatprep.subr.mxu0 %v32107_v39 }
 0x79a   :  { %25126 = vmatprep.subr.mxu1 %v32107_v39  ;;  %25114 = vmatmul.mubr.msk.f32.vlgmr.msra.gmra.mxu0 %vm1270_vm2, %v32388_v23  ;;  %v29651_v23 = vpop.permute.xlu0 %13832 }
 0x79b   :  { %25122 = vmatpush3.xpose.msk.msra.mxu0 %vm1270_vm2, %v32389_v44  ;;  %17901 = vrot.lane.b32.xlu0 %v32390_v14, %s26539_s20  ;;  %v32394_v44 = vld [vmem:[#allocation147_spill] sm:$0xff]  ;;  %v29655_v14 = vpop.permute.xlu1 %13910 }
 0x79c   :  { %25119 = vmatmul.mubr.msk.f32.vlgmr.msra.gmra.mxu1 %vm1270_vm2, %v32391_v9  ;;  %17979 = vrot.lane.b32.xlu1 %v32392_v1, %s26539_s20  ;;  %v32396_v1 = vld [vmem:[#allocation157_spill] sm:$0xff]  ;;  %v32397_v9 = vld [vmem:[#allocation56_spill] sm:$0xff] }
 0x79d   :  { %25127 = vmatpush3.xpose.msk.msra.mxu1 %vm1270_vm2, %v32393_v48  ;;  %25123 = vmatprep.mubr.msk.f32.mxu0 %vm26536_vm1, %v32107_v39  ;;  %v32395_v48 = vld [vmem:[#allocation52_spill] sm:$0xff] }
 0x79e   :  { %25128 = vmatprep.mubr.msk.f32.mxu1 %vm26536_vm1, %v32107_v39  ;;  %25131 = vmatprep.subr.mxu0 %v32107_v39 }
 0x79f   :  { %25136 = vmatprep.subr.mxu1 %v32107_v39  ;;  %25124 = vmatmul.mubr.msk.f32.vlgmr.msra.gmra.mxu0 %vm1270_vm2, %v32394_v44  ;;  %v13991_v44 = vpop.permute.xlu0 %13990 }
 0x7a0   :  { %25132 = vmatpush3.xpose.msk.msra.mxu0 %vm1270_vm2, %v29175_v56  ;;  %18059 = vrot.lane.b32.xlu0 %v32395_v48, %s26539_s20  ;;  %v32398_v56 = vld [vmem:[#allocation51_spill] sm:$0xff] }
 0x7a1   :  { %25129 = vmatmul.mubr.msk.f32.vlgmr.msra.gmra.mxu1 %vm1270_vm2, %v32396_v1  ;;  %18137 = vrot.lane.b32.xlu1 %v32397_v9, %s26539_s20  ;;  %v32399_v48 = vld [vmem:[#allocation55_spill] sm:$0xff] }
 0x7a2   :  { %25137 = vmatpush3.xpose.msk.msra.mxu1 %vm1270_vm2, %v29233_v38  ;;  %25133 = vmatprep.mubr.msk.f32.mxu0 %vm26536_vm1, %v32107_v39  ;;  %v14069_v38 = vpop.permute.xlu1 %14068 }
 0x7a3   :  { %25138 = vmatprep.mubr.msk.f32.mxu1 %vm26536_vm1, %v32107_v39  ;;  %25141 = vmatprep.subr.mxu0 %v32107_v39 }
 0x7a4   :  { %25146 = vmatprep.subr.mxu1 %v32107_v39  ;;  %18057 = vrot.lane.b32.xlu0 %v32398_v56, %s26539_s20 }
 0x7a5   :  { %25134 = vmatmul.mubr.msk.f32.vlgmr.msra.gmra.mxu0 %vm1270_vm2, %v29409_v27  ;;  %25139 = vmatmul.mubr.msk.f32.vlgmr.msra.gmra.mxu1 %vm1270_vm2, %v29413_v58  ;;  %v32400_v27 = vld [vmem:[#allocation50_spill] sm:$0xff]  ;;  %v13989_v58 = vpop.permute.xlu0 %13988 }
 0x7a6   :  { %25142 = vmatpush3.xpose.msk.msra.mxu0 %vm1270_vm2, %v29431_v61  ;;  %25147 = vmatpush3.xpose.msk.msra.mxu1 %vm1270_vm2, %v29437_v28  ;;  %v14067_v61 = vpop.permute.xlu1 %14066  ;;  %v32401_v28 = vld [vmem:[#allocation54_spill] sm:$0xff] }
 0x7a7   :  { %18135 = vrot.lane.b32.xlu1 %v32399_v48, %s26539_s20  ;;  %25143 = vmatprep.mubr.msk.f32.mxu0 %vm26536_vm1, %v32107_v39 }
 0x7a8   :  { %25148 = vmatprep.mubr.msk.f32.mxu1 %vm26536_vm1, %v32107_v39  ;;  %25151 = vmatprep.subr.mxu0 %v32107_v39 }
 0x7a9   :  { %25156 = vmatprep.subr.mxu1 %v32107_v39  ;;  %18215 = vrot.lane.b32.xlu0 %v32400_v27, %s26539_s20 }
 0x7aa   :  { %25144 = vmatmul.mubr.msk.f32.vlgmr.msra.gmra.mxu0 %vm1270_vm2, %v29455_v32  ;;  %25149 = vmatmul.mubr.msk.f32.vlgmr.msra.gmra.mxu1 %vm1270_vm2, %v29461_v7  ;;  %v32402_v32 = vld [vmem:[#allocation49_spill] sm:$0xff]  ;;  %v14147_v7 = vpop.permute.xlu0 %14146 }
 0x7ab   :  { %25152 = vmatpush3.xpose.msk.msra.mxu0 %vm1270_vm2, %v29479_v8  ;;  %25157 = vmatpush3.xpose.msk.msra.mxu1 %vm1270_vm2, %v29484_v57  ;;  %v32403_v8 = vld [vmem:[#allocation53_spill] sm:$0xff]  ;;  %v14225_v57 = vpop.permute.xlu1 %14224 }
 0x7ac   :  { %18293 = vrot.lane.b32.xlu1 %v32401_v28, %s26539_s20  ;;  %25153 = vmatprep.mubr.msk.f32.mxu0 %vm26536_vm1, %v32107_v39 }
 0x7ad   :  { %25158 = vmatprep.mubr.msk.f32.mxu1 %vm26536_vm1, %v32107_v39  ;;  %25161 = vmatprep.subr.mxu0 %v32107_v39 }
 0x7ae   :  { %25166 = vmatprep.subr.mxu1 %v32107_v39  ;;  %18213 = vrot.lane.b32.xlu0 %v32402_v32, %s26539_s20 }
 0x7af   :  { %25154 = vmatmul.mubr.msk.f32.vlgmr.msra.gmra.mxu0 %vm1270_vm2, %v29502_v52  ;;  %25159 = vmatmul.mubr.msk.f32.vlgmr.msra.gmra.mxu1 %vm1270_vm2, %v29507_v63  ;;  %v32404_v52 = vld [vmem:[#allocation59_spill] sm:$0xff] }
 0x7b0   :  { %25162 = vmatpush3.xpose.msk.msra.mxu0 %vm1270_vm2, %v29525_v37  ;;  %25167 = vmatpush3.xpose.msk.msra.mxu1 %vm1270_vm2, %v29531_v51  ;;  %v32405_v63 = vld [vmem:[#allocation63_spill] sm:$0xff]  ;;  %v14145_v37 = vpop.permute.xlu0 %14144  ;;  %v14223_v51 = vpop.permute.xlu1 %14222 }
 0x7b1   :  { %18291 = vrot.lane.b32.xlu1 %v32403_v8, %s26539_s20  ;;  %25163 = vmatprep.mubr.msk.f32.mxu0 %vm26536_vm1, %v32107_v39 }
 0x7b2   :  { %25168 = vmatprep.mubr.msk.f32.mxu1 %vm26536_vm1, %v32107_v39  ;;  %25171 = vmatprep.subr.mxu0 %v32107_v39 }
 0x7b3   :  { %25176 = vmatprep.subr.mxu1 %v32107_v39  ;;  %18371 = vrot.lane.b32.xlu0 %v32404_v52, %s26539_s20 }
 0x7b4   :  { %25164 = vmatmul.mubr.msk.f32.vlgmr.msra.gmra.mxu0 %vm1270_vm2, %v29551_v25  ;;  %25169 = vmatmul.mubr.msk.f32.vlgmr.msra.gmra.mxu1 %vm1270_vm2, %v29557_v45  ;;  %v32406_v25 = vld [vmem:[#allocation58_spill] sm:$0xff]  ;;  %v14381_v45 = vpop.permute.xlu1 %14380 }
 0x7b5   :  { %25172 = vmatpush3.xpose.msk.msra.mxu0 %vm1270_vm2, %v29577_v10  ;;  %25177 = vmatpush3.xpose.msk.msra.mxu1 %vm1270_vm2, %v29581_v62  ;;  %v32407_v62 = vld [vmem:[#allocation62_spill] sm:$0xff] }
 0x7b6   :  { %18449 = vrot.lane.b32.xlu1 %v32405_v63, %s26539_s20  ;;  %25173 = vmatprep.mubr.msk.f32.mxu0 %vm26536_vm1, %v32107_v39 }
 0x7b7   :  { %25178 = vmatprep.mubr.msk.f32.mxu1 %vm26536_vm1, %v32107_v39  ;;  %25181 = vmatprep.subr.mxu0 %v32107_v39 }
 0x7b8   :  { %25186 = vmatprep.subr.mxu1 %v32107_v39  ;;  %18369 = vrot.lane.b32.xlu0 %v32406_v25, %s26539_s20 }
 0x7b9   :  { %25174 = vmatmul.mubr.msk.f32.vlgmr.msra.gmra.mxu0 %vm1270_vm2, %v29603_v4  ;;  %25179 = vmatmul.mubr.msk.f32.vlgmr.msra.gmra.mxu1 %vm1270_vm2, %v29605_v2  ;;  %v14303_v4 = vpop.permute.xlu0 %14302  ;;  %v14379_v2 = vpop.permute.xlu1 %14378 }
 0x7ba   :  { %25182 = vmatpush3.xpose.msk.msra.mxu0 %vm1270_vm2, %v29628_v33  ;;  %25187 = vmatpush3.xpose.msk.msra.mxu1 %vm1270_vm2, %v29630_v50 }
 0x7bb   :  { %18447 = vrot.lane.b32.xlu1 %v32407_v62, %s26539_s20  ;;  %25183 = vmatprep.mubr.msk.f32.mxu0 %vm26536_vm1, %v32107_v39 }
 0x7bc   :  { %25188 = vmatprep.mubr.msk.f32.mxu1 %vm26536_vm1, %v32107_v39  ;;  %25191 = vmatprep.subr.mxu0 %v32107_v39 }
 0x7bd   :  { %25196 = vmatprep.subr.mxu1 %v32107_v39  ;;  %25184 = vmatmul.mubr.msk.f32.vlgmr.msra.gmra.mxu0 %vm1270_vm2, %v29651_v23  ;;  %v14301_v10 = vpop.permute.xlu0 %14300  ;;  %v14917_v23 = vpop.permute.xlu1 %14916 }
 0x7be   :  { %25189 = vmatmul.mubr.msk.f32.vlgmr.msra.gmra.mxu1 %vm1270_vm2, %v29655_v14  ;;  %25192 = vmatpush3.xpose.msk.msra.mxu0 %vm1270_vm2, %v13991_v44 }
 0x7bf   :  { %25197 = vmatpush3.xpose.msk.msra.mxu1 %vm1270_vm2, %v14069_v38  ;;  %25193 = vmatprep.mubr.msk.f32.mxu0 %vm26536_vm1, %v32107_v39 }
 0x7c0   :  { %25198 = vmatprep.mubr.msk.f32.mxu1 %vm26536_vm1, %v32107_v39  ;;  %25201 = vmatprep.subr.mxu0 %v32107_v39 }
 0x7c1   :  { %25206 = vmatprep.subr.mxu1 %v32107_v39  ;;  %25194 = vmatmul.mubr.msk.f32.vlgmr.msra.gmra.mxu0 %vm1270_vm2, %v13989_v58  ;;  %v14841_v50 = vpop.permute.xlu0 %14840 }
 0x7c2   :  { %25199 = vmatmul.mubr.msk.f32.vlgmr.msra.gmra.mxu1 %vm1270_vm2, %v14067_v61  ;;  %25202 = vmatpush3.xpose.msk.msra.mxu0 %vm1270_vm2, %v14147_v7 }
 0x7c3   :  { %25207 = vmatpush3.xpose.msk.msra.mxu1 %vm1270_vm2, %v14225_v57  ;;  %25203 = vmatprep.mubr.msk.f32.mxu0 %vm26536_vm1, %v32107_v39 }
 0x7c4   :  { %25208 = vmatprep.mubr.msk.f32.mxu1 %vm26536_vm1, %v32107_v39  ;;  %25211 = vmatprep.subr.mxu0 %v32107_v39 }
 0x7c5   :  { %25216 = vmatprep.subr.mxu1 %v32107_v39  ;;  %25204 = vmatmul.mubr.msk.f32.vlgmr.msra.gmra.mxu0 %vm1270_vm2, %v14145_v37 }
 0x7c6   :  { %25209 = vmatmul.mubr.msk.f32.vlgmr.msra.gmra.mxu1 %vm1270_vm2, %v14223_v51  ;;  %25212 = vmatpush3.xpose.msk.msra.mxu0 %vm1270_vm2, %v14303_v4 }
 0x7c7   :  { %25217 = vmatpush3.xpose.msk.msra.mxu1 %vm1270_vm2, %v14381_v45  ;;  %25213 = vmatprep.mubr.msk.f32.mxu0 %vm26536_vm1, %v32107_v39  ;;  %v29794_v33 = vpop.f32.mrf.mxu0 }
 0x7c8   :  { %25218 = vmatprep.mubr.msk.f32.mxu1 %vm26536_vm1, %v32107_v39  ;;  %25221 = vmatprep.subr.mxu0 %v32107_v39  ;;  %32408 = vst [vmem:[#allocation60_spill] sm:$0xff] %v29794_v33 }
 0x7c9   :  { %25226 = vmatprep.subr.mxu1 %v32107_v39  ;;  %25214 = vmatmul.mubr.msk.f32.vlgmr.msra.gmra.mxu0 %vm1270_vm2, %v14301_v10  ;;  %v24905_v14 = vpop.f32.mrf.mxu0 }
 0x7ca   :  { %25219 = vmatmul.mubr.msk.f32.vlgmr.msra.gmra.mxu1 %vm1270_vm2, %v14379_v2  ;;  %25222 = vmatpush3.msra.mxu0 %v14841_v50  ;;  %v29831_v14 = vpop.permute.xlu1 %15068 }
 0x7cb   :  { %25227 = vmatpush3.msra.mxu1 %v14917_v23  ;;  %25223 = vmatprep.mubr.msk.f32.mxu0 %vm26536_vm1, %v32107_v39  ;;  %v29801_v1 = vpop.f32.mrf.mxu0  ;;  %32422 = vst [vmem:[#allocation66_spill] sm:$0xff] %v29831_v14 }
 0x7cc   :  { %32409 = vst [vmem:[#allocation65_spill] sm:$0xff] %v29801_v1  ;;  %25228 = vmatprep.mubr.msk.f32.mxu1 %vm26536_vm1, %v32107_v39  ;;  %25231 = vmatprep.subr.mxu0 %v32107_v39 }
 0x7cd   :  { %25236 = vmatprep.subr.mxu1 %v32107_v39  ;;  %v24915_v9 = vpop.f32.mrf.mxu0 }
 0x7f3   :  { %v29807_v56 = vpop.f32.mrf.mxu1 }
 0x7f4   :  { %32410 = vst [vmem:[#allocation21_spill] sm:$0xff] %v29807_v56 }
 0x7f5   :  { %v24910_v44 = vpop.f32.mrf.mxu1 }
 0x7f7   :  { %v29809_v38 = vpop.f32.mrf.mxu1 }
 0x7f8   :  { %32411 = vst [vmem:[#allocation136_spill] sm:$0xff] %v29809_v38 }
 0x7f9   :  { %v24920_v48 = vpop.f32.mrf.mxu1 }
 0x7fb   :  { %v29811_v27 = vpop.f32.mrf.mxu1 }
 0x7fc   :  { %32412 = vst [vmem:[#allocation108_spill] sm:$0xff] %v29811_v27 }
 0x7fd   :  { %v29813_v58 = vpop.f32.mrf.mxu0  ;;  %v24930_v61 = vpop.f32.mrf.mxu1 }
 0x7fe   :  { %32413 = vst [vmem:[#allocation110_spill] sm:$0xff] %v29813_v58 }
 0x7ff   :  { %v24925_v28 = vpop.f32.mrf.mxu0 }
 0x800   :  { %v29815_v32 = vpop.f32.mrf.mxu1 }
 0x801   :  { %32414 = vst [vmem:[#allocation64_spill] sm:$0xff] %v29815_v32 }
 0x802   :  { %v29817_v7 = vpop.f32.mrf.mxu0  ;;  %v24940_v8 = vpop.f32.mrf.mxu1 }
 0x803   :  { %32415 = vst [vmem:[#allocation114_spill] sm:$0xff] %v29817_v7 }
 0x804   :  { %v24935_v57 = vpop.f32.mrf.mxu0 }
 0x805   :  { %v29819_v52 = vpop.f32.mrf.mxu1  ;;  %v29841_v57 = vpop.permute.xlu1 %15220 }
 0x806   :  { %32416 = vst [vmem:[#allocation20_spill] sm:$0xff] %v29819_v52  ;;  %32427 = vst [vmem:[#allocation109_spill] sm:$0xff] %v29841_v57 }
 0x807   :  { %v29821_v63 = vpop.f32.mrf.mxu0  ;;  %v24950_v37 = vpop.f32.mrf.mxu1 }
 0x808   :  { %32417 = vst [vmem:[#allocation112_spill] sm:$0xff] %v29821_v63 }
 0x809   :  { %v24945_v51 = vpop.f32.mrf.mxu0 }
 0x80a   :  { %v29823_v25 = vpop.f32.mrf.mxu1 }
 0x80b   :  { %32418 = vst [vmem:[#allocation67_spill] sm:$0xff] %v29823_v25 }
 0x80c   :  { %v29825_v62 = vpop.f32.mrf.mxu0  ;;  %v24960_v4 = vpop.f32.mrf.mxu1 }
 0x80d   :  { %32419 = vst [vmem:[#allocation118_spill] sm:$0xff] %v29825_v62 }
 0x80e   :  { %v24955_v45 = vpop.f32.mrf.mxu0 }
 0x80f   :  { %v29827_v10 = vpop.f32.mrf.mxu1 }
 0x810   :  { %32420 = vst [vmem:[#allocation24_spill] sm:$0xff] %v29827_v10 }
 0x811   :  { %v29829_v2 = vpop.f32.mrf.mxu0  ;;  %v24970_v50 = vpop.f32.mrf.mxu1 }
 0x812   :  { %32421 = vst [vmem:[#allocation116_spill] sm:$0xff] %v29829_v2  ;;  %v29847_v50 = vpop.permute.xlu0 %14992  ;;  %v29849_v2 = vpop.permute.xlu1 %15372 }
 0x813   :  { %v24965_v23 = vpop.f32.mrf.mxu0  ;;  %32430 = vst [vmem:[#allocation113_spill] sm:$0xff] %v29847_v50  ;;  %32431 = vst [vmem:[#allocation128_spill] sm:$0xff] %v29849_v2 }
 0x815   :  { %v29833_v9 = vpop.f32.mrf.mxu0  ;;  %v29835_v44 = vpop.f32.mrf.mxu1 }
 0x816   :  { %32423 = vst [vmem:[#allocation23_spill] sm:$0xff] %v29833_v9  ;;  %32424 = vst [vmem:[#allocation120_spill] sm:$0xff] %v29835_v44  ;;  %v29855_v44 = vpop.permute.xlu0 %15144 }
 0x817   :  { %v24975_v48 = vpop.f32.mrf.mxu0  ;;  %v24980_v61 = vpop.f32.mrf.mxu1  ;;  %32434 = vst [vmem:[#allocation117_spill] sm:$0xff] %v29855_v44 }
 0x81a   :  { %v29837_v28 = vpop.f32.mrf.mxu0  ;;  %v29839_v8 = vpop.f32.mrf.mxu1 }
 0x81b   :  { %32425 = vst [vmem:[#allocation124_spill] sm:$0xff] %v29837_v28  ;;  %32426 = vst [vmem:[#allocation111_spill] sm:$0xff] %v29839_v8 }
 0x81c   :  { %v24985_v37 = vpop.f32.mrf.mxu0  ;;  %v24990_v51 = vpop.f32.mrf.mxu1 }
 0x81d   :  { %v29857_v37 = vpop.permute.xlu1 %15524 }
 0x81e   :  { %32435 = vst [vmem:[#allocation132_spill] sm:$0xff] %v29857_v37 }
 0x81f   :  { %v29843_v4 = vpop.f32.mrf.mxu0  ;;  %v29845_v45 = vpop.f32.mrf.mxu1 }
 0x820   :  { %32428 = vst [vmem:[#allocation115_spill] sm:$0xff] %v29843_v4  ;;  %32429 = vst [vmem:[#allocation122_spill] sm:$0xff] %v29845_v45 }
 0x821   :  { %v24995_v23 = vpop.f32.mrf.mxu0  ;;  %v25000_v9 = vpop.f32.mrf.mxu1 }
 0x822   :  { %v29863_v23 = vpop.permute.xlu0 %15296 }
 0x823   :  { %32438 = vst [vmem:[#allocation130_spill] sm:$0xff] %v29863_v23 }
 0x824   :  { %v29851_v48 = vpop.f32.mrf.mxu0  ;;  %v29853_v61 = vpop.f32.mrf.mxu1 }
 0x825   :  { %32432 = vst [vmem:[#allocation119_spill] sm:$0xff] %v29851_v48  ;;  %32433 = vst [vmem:[#allocation126_spill] sm:$0xff] %v29853_v61  ;;  %v29869_v48 = vpop.permute.xlu1 %15676 }
 0x826   :  { %v25005_v28 = vpop.f32.mrf.mxu0  ;;  %v25010_v8 = vpop.f32.mrf.mxu1  ;;  %32441 = vst [vmem:[#allocation35_spill] sm:$0xff] %v29869_v48 }
 0x827   :  { %v29875_v25 = vpop.permute.xlu0 %15448 }
 0x828   :  { %32444 = vst [vmem:[#allocation39_spill] sm:$0xff] %v29875_v25 }
 0x829   :  { %v29859_v51 = vpop.f32.mrf.mxu0  ;;  %v29861_v4 = vpop.f32.mrf.mxu1 }
 0x82a   :  { %32436 = vst [vmem:[#allocation121_spill] sm:$0xff] %v29859_v51  ;;  %32437 = vst [vmem:[#allocation36_spill] sm:$0xff] %v29861_v4 }
 0x82b   :  { %v25015_v45 = vpop.f32.mrf.mxu0  ;;  %v25020_v10 = vpop.f32.mrf.mxu1 }
 0x82c   :  { %v29877_v45 = vpop.permute.xlu1 %15828  ;;  %v29883_v7 = vpop.permute.xlu0 %15600 }
 0x82d   :  { %32445 = vst [vmem:[#allocation34_spill] sm:$0xff] %v29877_v45  ;;  %32448 = vst [vmem:[#allocation123_spill] sm:$0xff] %v29883_v7 }
 0x82e   :  { %v29865_v9 = vpop.f32.mrf.mxu0  ;;  %v29867_v62 = vpop.f32.mrf.mxu1 }
 0x82f   :  { %32439 = vst [vmem:[#allocation138_spill] sm:$0xff] %v29865_v9  ;;  %32440 = vst [vmem:[#allocation40_spill] sm:$0xff] %v29867_v62 }
 0x830   :  { %v25025_v28 = vpop.f32.mrf.mxu0  ;;  %v25030_v8 = vpop.f32.mrf.mxu1 }
 0x831   :  { %v29885_v28 = vpop.permute.xlu1 %15980 }
 0x832   :  { %32449 = vst [vmem:[#allocation144_spill] sm:$0xff] %v29885_v28 }
 0x833   :  { %v29871_v61 = vpop.f32.mrf.mxu0  ;;  %v29873_v63 = vpop.f32.mrf.mxu1 }
 0x834   :  { %32442 = vst [vmem:[#allocation134_spill] sm:$0xff] %v29871_v61  ;;  %32443 = vst [vmem:[#allocation140_spill] sm:$0xff] %v29873_v63 }
 0x835   :  { %v25035_v51 = vpop.f32.mrf.mxu0  ;;  %v25040_v4 = vpop.f32.mrf.mxu1 }
 0x836   :  { %v29891_v51 = vpop.permute.xlu0 %15752  ;;  %v29893_v27 = vpop.permute.xlu1 %16132 }
 0x837   :  { %32452 = vst [vmem:[#allocation129_spill] sm:$0xff] %v29891_v51  ;;  %32453 = vst [vmem:[#allocation146_spill] sm:$0xff] %v29893_v27 }
 0x838   :  { %v29879_v10 = vpop.f32.mrf.mxu0  ;;  %v29881_v52 = vpop.f32.mrf.mxu1 }
 0x839   :  { %32446 = vst [vmem:[#allocation125_spill] sm:$0xff] %v29879_v10  ;;  %32447 = vst [vmem:[#allocation142_spill] sm:$0xff] %v29881_v52 }
 0x83a   :  { %v25045_v9 = vpop.f32.mrf.mxu0  ;;  %v25050_v62 = vpop.f32.mrf.mxu1 }
 0x83d   :  { %v29887_v8 = vpop.f32.mrf.mxu0  ;;  %v29889_v61 = vpop.f32.mrf.mxu1 }
 0x83e   :  { %32450 = vst [vmem:[#allocation38_spill] sm:$0xff] %v29887_v8  ;;  %32451 = vst [vmem:[#allocation33_spill] sm:$0xff] %v29889_v61  ;;  %v29903_v61 = vpop.permute.xlu0 %15904 }
 0x83f   :  { %v25055_v63 = vpop.f32.mrf.mxu0  ;;  %v25060_v58 = vpop.f32.mrf.mxu1  ;;  %32454 = vst [vmem:[#allocation127_spill] sm:$0xff] %v29903_v61 }
 0x842   :  { %v12034_v4 = vpop.f32.mrf.mxu0  ;;  %v12112_v32 = vpop.f32.mrf.mxu1 }
 0x843   :  { %v29895_v10 = vmul.f32 0.35355338, %v12034_v4  ;;  %v29897_v9 = vmul.f32 0.35355338, %v12112_v32  ;;  %v29907_v32 = vpop.permute.xlu1 %16284 }
 0x844   :  { %v25065_v62 = vpop.f32.mrf.mxu0  ;;  %v25070_v52 = vpop.f32.mrf.mxu1  ;;  %32455 = vst [vmem:[#allocation148_spill] sm:$0xff] %v29907_v32 }
 0x845   :  { %v14488_v1 = vsel %vm1270_vm2, %v29895_v10, -inf  ;;  %v14491_v8 = vsel %vm1270_vm2, %v29897_v9, -inf }
 0x846   :  { %14489 = vmax.xlane.f32.xlu0 %v14488_v1  ;;  %14492 = vmax.xlane.f32.xlu1 %v14491_v8 }
 0x847   :  { %v12190_v58 = vpop.f32.mrf.mxu0  ;;  %v12268_v63 = vpop.f32.mrf.mxu1 }
 0x848   :  { %v29905_v33 = vmul.f32 0.35355338, %v12190_v58  ;;  %v29909_v62 = vmul.f32 0.35355338, %v12268_v63 }
 0x849   :  { %v25075_v4 = vpop.f32.mrf.mxu0  ;;  %v25080_v38 = vpop.f32.mrf.mxu1 }
 0x84a   :  { %v14494_v52 = vsel %vm1270_vm2, %v29905_v33, -inf  ;;  %v14497_v58 = vsel %vm1270_vm2, %v29909_v62, -inf  ;;  %v29919_v38 = vpop.permute.xlu0 %16056  ;;  %v29923_v4 = vpop.permute.xlu1 %16360 }
 0x84b   :  { %14495 = vmax.xlane.f32.xlu0 %v14494_v52  ;;  %32456 = vst [vmem:[#allocation37_spill] sm:$0xff] %v29919_v38  ;;  %32457 = vst [vmem:[#allocation44_spill] sm:$0xff] %v29923_v4 }
 0x84c   :  { %v12346_v56 = vpop.f32.mrf.mxu0  ;;  %v12424_v40 = vpop.f32.mrf.mxu1 }
 0x84d   :  { %v29913_v1 = vmul.f32 0.35355338, %v12424_v40  ;;  %v29915_v8 = vmul.f32 0.35355338, %v12346_v56 }
 0x84e   :  { %v25085_v49 = vpop.f32.mrf.mxu0  ;;  %v25090_v59 = vpop.f32.mrf.mxu1 }
 0x84f   :  { %14498 = vmax.xlane.f32.xlu0 %v14497_v58  ;;  %v14503_v63 = vsel %vm1270_vm2, %v29913_v1, -inf  ;;  %v14500_v59 = vsel %vm1270_vm2, %v29915_v8, -inf  ;;  %v29933_v27 = vpop.permute.xlu0 %16208  ;;  %v29937_v38 = vpop.permute.xlu1 %16436 }
 0x850   :  { %14504 = vmax.xlane.f32.xlu1 %v14503_v63  ;;  %32458 = vst [vmem:[#allocation133_spill] sm:$0xff] %v29933_v27  ;;  %32459 = vst [vmem:[#allocation149_spill] sm:$0xff] %v29937_v38 }
 0x851   :  { %v12502_v52 = vpop.f32.mrf.mxu0  ;;  %v12580_v32 = vpop.f32.mrf.mxu1 }
 0x852   :  { %v29925_v40 = vmul.f32 0.35355338, %v12502_v52  ;;  %v29927_v56 = vmul.f32 0.35355338, %v12580_v32 }
 0x853   :  { %v25095_v49 = vpop.f32.mrf.mxu0  ;;  %v25100_v29 = vpop.f32.mrf.mxu1  ;;  %14501 = vmax.xlane.f32.xlu0 %v14500_v59 }
 0x854   :  { %v14509_v58 = vsel %vm1270_vm2, %v29927_v56, -inf  ;;  %v14506_v52 = vsel %vm1270_vm2, %v29925_v40, -inf  ;;  %v29947_v27 = vpop.permute.xlu0 %16512 }
 0x855   :  { %14510 = vmax.xlane.f32.xlu1 %v14509_v58  ;;  %32460 = vst [vmem:[#allocation131_spill] sm:$0xff] %v29947_v27 }
 0x856   :  { %v12658_v4 = vpop.f32.mrf.mxu0  ;;  %v12736_v63 = vpop.f32.mrf.mxu1 }
 0x857   :  { %v29939_v32 = vmul.f32 0.35355338, %v12658_v4  ;;  %v29941_v61 = vmul.f32 0.35355338, %v12736_v63  ;;  %14507 = vmax.xlane.f32.xlu0 %v14506_v52  ;;  %v29951_v63 = vpop.permute.xlu1 %16588 }
 0x858   :  { %v25105_v29 = vpop.f32.mrf.mxu0  ;;  %v25110_v59 = vpop.f32.mrf.mxu1  ;;  %32461 = vst [vmem:[#allocation150_spill] sm:$0xff] %v29951_v63 }
 0x859   :  { %v14515_v49 = vsel %vm1270_vm2, %v29941_v61, -inf  ;;  %v14512_v58 = vsel %vm1270_vm2, %v29939_v32, -inf  ;;  %v29961_v27 = vpop.permute.xlu0 %16664 }
 0x85a   :  { %v12814_v34 = vpop.f32.mrf.mxu0  ;;  %14516 = vmax.xlane.f32.xlu1 %v14515_v49  ;;  %32462 = vst [vmem:[#allocation48_spill] sm:$0xff] %v29961_v27 }
 0x85b   :  { %v29949_v28 = vmul.f32 0.35355338, %v12814_v34  ;;  %14513 = vmax.xlane.f32.xlu0 %v14512_v58 }
 0x85c   :  { %v12892_v4 = vpop.f32.mrf.mxu1  ;;  %v25115_v38 = vpop.f32.mrf.mxu0 }
 0x85d   :  { %v29953_v52 = vmul.f32 0.35355338, %v12892_v4  ;;  %v14518_v59 = vsel %vm1270_vm2, %v29949_v28, -inf  ;;  %v29975_v13 = vpop.permute.xlu0 %16816 }
 0x85e   :  { %v25120_v29 = vpop.f32.mrf.mxu1  ;;  %32464 = vst [vmem:[#allocation135_spill] sm:$0xff] %v29975_v13 }
 0x85f   :  { %v12970_v54 = vpop.f32.mrf.mxu0  ;;  %v14521_v49 = vsel %vm1270_vm2, %v29953_v52, -inf  ;;  %14519 = vmax.xlane.f32.xlu0 %v14518_v59  ;;  %v29967_v29 = vpop.permute.xlu1 %16740 }
 0x860   :  { %v29959_v0 = vmul.f32 0.35355338, %v12970_v54  ;;  %14522 = vmax.xlane.f32.xlu1 %v14521_v49  ;;  %32463 = vst [vmem:[#allocation43_spill] sm:$0xff] %v29967_v29 }
 0x861   :  { %v13048_v34 = vpop.f32.mrf.mxu1  ;;  %v25125_v58 = vpop.f32.mrf.mxu0 }
 0x862   :  { %v29963_v38 = vmul.f32 0.35355338, %v13048_v34  ;;  %v14524_v4 = vsel %vm1270_vm2, %v29959_v0, -inf  ;;  %v29991_v7 = vpop.permute.xlu0 %16968 }
 0x863   :  { %v25130_v63 = vpop.f32.mrf.mxu1  ;;  %14525 = vmax.xlane.f32.xlu0 %v14524_v4  ;;  %v29981_v4 = vpop.permute.xlu1 %16892  ;;  %32466 = vst [vmem:[#allocation137_spill] sm:$0xff] %v29991_v7 }
 0x864   :  { %v14527_v51 = vsel %vm1270_vm2, %v29963_v38, -inf  ;;  %32465 = vst [vmem:[#allocation151_spill] sm:$0xff] %v29981_v4 }
 0x865   :  { %14528 = vmax.xlane.f32.xlu1 %v14527_v51  ;;  %v13126_v54 = vpop.f32.mrf.mxu0  ;;  %v13204_v59 = vpop.f32.mrf.mxu1 }
 0x866   :  { %v29971_v49 = vmul.f32 0.35355338, %v13126_v54  ;;  %v29973_v58 = vmul.f32 0.35355338, %v13204_v59  ;;  %v30003_v7 = vpop.permute.xlu0 %17120 }
 0x867   :  { %v25135_v27 = vpop.f32.mrf.mxu0  ;;  %v25140_v34 = vpop.f32.mrf.mxu1  ;;  %32468 = vst [vmem:[#allocation47_spill] sm:$0xff] %v30003_v7 }
 0x868   :  { %v14533_v45 = vsel %vm1270_vm2, %v29973_v58, -inf  ;;  %v14530_v63 = vsel %vm1270_vm2, %v29971_v49, -inf  ;;  %v29993_v4 = vpop.permute.xlu1 %17044 }
 0x869   :  { %14534 = vmax.xlane.f32.xlu1 %v14533_v45  ;;  %14531 = vmax.xlane.f32.xlu0 %v14530_v63  ;;  %32467 = vst [vmem:[#allocation152_spill] sm:$0xff] %v29993_v4 }
 0x86a   :  { %v13282_v51 = vpop.f32.mrf.mxu0  ;;  %v13360_v29 = vpop.f32.mrf.mxu1 }
 0x86b   :  { %v29983_v54 = vmul.f32 0.35355338, %v13282_v51  ;;  %v29985_v59 = vmul.f32 0.35355338, %v13360_v29 }
 0x86c   :  { %v25145_v27 = vpop.f32.mrf.mxu0  ;;  %v25150_v34 = vpop.f32.mrf.mxu1 }
 0x86d   :  { %v14539_v13 = vsel %vm1270_vm2, %v29985_v59, -inf  ;;  %v14536_v36 = vsel %vm1270_vm2, %v29983_v54, -inf }
 0x86e   :  { %14540 = vmax.xlane.f32.xlu1 %v14539_v13  ;;  %14537 = vmax.xlane.f32.xlu0 %v14536_v36 }
 0x86f   :  { %v13438_v45 = vpop.f32.mrf.mxu0  ;;  %v13516_v63 = vpop.f32.mrf.mxu1 }
 0x870   :  { %v29995_v51 = vmul.f32 0.35355338, %v13438_v45  ;;  %v29997_v29 = vmul.f32 0.35355338, %v13516_v63 }
 0x871   :  { %v25155_v27 = vpop.f32.mrf.mxu0  ;;  %v25160_v34 = vpop.f32.mrf.mxu1 }
 0x872   :  { %v14545_v48 = vsel %vm1270_vm2, %v29997_v29, -inf  ;;  %v14542_v41 = vsel %vm1270_vm2, %v29995_v51, -inf  ;;  %v30009_v27 = vpop.permute.xlu1 %17196 }
 0x873   :  { %14546 = vmax.xlane.f32.xlu1 %v14545_v48  ;;  %14543 = vmax.xlane.f32.xlu0 %v14542_v41  ;;  %32469 = vst [vmem:[#allocation42_spill] sm:$0xff] %v30009_v27 }
 0x874   :  { %v13594_v13 = vpop.f32.mrf.mxu0  ;;  %v13672_v36 = vpop.f32.mrf.mxu1 }
 0x875   :  { %v30005_v25 = vmul.f32 0.35355338, %v13594_v13  ;;  %v30007_v45 = vmul.f32 0.35355338, %v13672_v36 }
 0x876   :  { %v25165_v63 = vpop.f32.mrf.mxu0  ;;  %v25170_v4 = vpop.f32.mrf.mxu1 }
 0x877   :  { %v14551_v34 = vsel %vm1270_vm2, %v30007_v45, -inf  ;;  %v14548_v17 = vsel %vm1270_vm2, %v30005_v25, -inf  ;;  %v30019_v63 = vpop.permute.xlu0 %17435  ;;  %v30025_v31 = vpop.permute.xlu1 %17513 }
 0x878   :  { %14552 = vmax.xlane.f32.xlu1 %v14551_v34  ;;  %14549 = vmax.xlane.f32.xlu0 %v14548_v17  ;;  %32470 = vst [vmem:[#allocation139_spill] sm:$0xff] %v30019_v63  ;;  %32471 = vst [vmem:[#allocation153_spill] sm:$0xff] %v30025_v31 }
 0x879   :  { %v13828_v41 = vpop.f32.mrf.mxu1  ;;  %v13750_v48 = vpop.f32.mrf.mxu0 }
 0x87a   :  { %v30015_v37 = vmul.f32 0.35355338, %v13828_v41  ;;  %v30017_v13 = vmul.f32 0.35355338, %v13750_v48 }
 0x87b   :  { %v25175_v36 = vpop.f32.mrf.mxu0  ;;  %v25180_v7 = vpop.f32.mrf.mxu1 }
 0x87c   :  { %v14557_v4 = vsel %vm1270_vm2, %v30015_v37, -inf  ;;  %v14554_v27 = vsel %vm1270_vm2, %v30017_v13, -inf  ;;  %v30035_v30 = vpop.permute.xlu0 %17433 }
 0x87d   :  { %14558 = vmax.xlane.f32.xlu1 %v14557_v4  ;;  %v13906_v17 = vpop.f32.mrf.mxu0  ;;  %14555 = vmax.xlane.f32.xlu0 %v14554_v27  ;;  %32472 = vst [vmem:[#allocation141_spill] sm:$0xff] %v30035_v30 }
 0x87e   :  { %v13984_v34 = vpop.f32.mrf.mxu1  ;;  %v30027_v41 = vmul.f32 0.35355338, %v13906_v17  ;;  %v30039_v17 = vpop.permute.xlu1 %17511 }
 0x87f   :  { %v30029_v48 = vmul.f32 0.35355338, %v13984_v34  ;;  %v25185_v36 = vpop.f32.mrf.mxu0  ;;  %32473 = vst [vmem:[#allocation154_spill] sm:$0xff] %v30039_v17 }
 0x880   :  { %v25190_v7 = vpop.f32.mrf.mxu1  ;;  %v14560_v63 = vsel %vm1270_vm2, %v30027_v41, -inf  ;;  %v30051_v17 = vpop.permute.xlu0 %17591 }
 0x881   :  { %v14563_v23 = vsel %vm1270_vm2, %v30029_v48, -inf  ;;  %v14062_v2 = vpop.f32.mrf.mxu0  ;;  %14561 = vmax.xlane.f32.xlu0 %v14560_v63  ;;  %32474 = vst [vmem:[#allocation46_spill] sm:$0xff] %v30051_v17 }
 0x882   :  { %14564 = vmax.xlane.f32.xlu1 %v14563_v23  ;;  %v14140_v4 = vpop.f32.mrf.mxu1  ;;  %v30037_v27 = vmul.f32 0.35355338, %v14062_v2 }
 0x883   :  { %v30041_v34 = vmul.f32 0.35355338, %v14140_v4  ;;  %v25195_v36 = vpop.f32.mrf.mxu0 }
 0x884   :  { %v25200_v7 = vpop.f32.mrf.mxu1  ;;  %v14566_v31 = vsel %vm1270_vm2, %v30037_v27, -inf }
 0x885   :  { %v14569_v57 = vsel %vm1270_vm2, %v30041_v34, -inf  ;;  %v14218_v47 = vpop.f32.mrf.mxu0  ;;  %14567 = vmax.xlane.f32.xlu0 %v14566_v31  ;;  %v30055_v7 = vpop.permute.xlu1 %17669 }
 0x886   :  { %14570 = vmax.xlane.f32.xlu1 %v14569_v57  ;;  %v14296_v63 = vpop.f32.mrf.mxu1  ;;  %v30047_v23 = vmul.f32 0.35355338, %v14218_v47  ;;  %32475 = vst [vmem:[#allocation143_spill] sm:$0xff] %v30055_v7  ;;  %v30067_v7 = vpop.permute.xlu0 %17589 }
 0x887   :  { %v30049_v2 = vmul.f32 0.35355338, %v14296_v63  ;;  %v25205_v30 = vpop.f32.mrf.mxu0  ;;  %32476 = vst [vmem:[#allocation145_spill] sm:$0xff] %v30067_v7 }
 0x888   :  { %v25210_v4 = vpop.f32.mrf.mxu1  ;;  %v14572_v36 = vsel %vm1270_vm2, %v30047_v23, -inf }
 0x889   :  { %v14575_v44 = vsel %vm1270_vm2, %v30049_v2, -inf  ;;  %v14374_v39 = vpop.f32.mrf.mxu0  ;;  %14573 = vmax.xlane.f32.xlu0 %v14572_v36  ;;  %v30069_v50 = vpop.permute.xlu1 %17667 }
 0x88a   :  { %14576 = vmax.xlane.f32.xlu1 %v14575_v44  ;;  %v14452_v31 = vpop.f32.mrf.mxu1  ;;  %v30059_v47 = vmul.f32 0.35355338, %v14374_v39  ;;  %32477 = vst [vmem:[#allocation41_spill] sm:$0xff] %v30069_v50  ;;  %v30071_v44 = vpop.permute.xlu0 %17747 }
 0x88b   :  { %v30061_v57 = vmul.f32 0.35355338, %v14452_v31  ;;  %v25215_v30 = vpop.f32.mrf.mxu0  ;;  %32478 = vst [vmem:[#allocation155_spill] sm:$0xff] %v30071_v44 }
 0x88c   :  { %v25220_v63 = vpop.f32.mrf.mxu1  ;;  %v14578_v4 = vsel %vm1270_vm2, %v30059_v47, -inf  ;;  %v32482_v30 = vld [vmem:[#allocation61_spill] sm:$0xff] }
 0x88d   :  { %v14581_v17 = vsel %vm1270_vm2, %v30061_v57, -inf  ;;  %14579 = vmax.xlane.f32.xlu0 %v14578_v4  ;;  %v30073_v39 = vpop.permute.xlu1 %17825 }
 0x88e   :  { %14582 = vmax.xlane.f32.xlu1 %v14581_v17  ;;  %32479 = vst [vmem:[#allocation45_spill] sm:$0xff] %v30073_v39  ;;  %v30075_v36 = vpop.permute.xlu0 %17745  ;;  %v32485_v17 = vld [vmem:[#allocation57_spill] sm:$0xff] }
 0x88f   :  { %32480 = vst [vmem:[#allocation156_spill] sm:$0xff] %v30075_v36 }
 0x891   :  { %v30077_v31 = vpop.permute.xlu1 %17823 }
 0x892   :  { %32481 = vst [vmem:[#allocation147_spill] sm:$0xff] %v30077_v31  ;;  %v30081_v63 = vpop.permute.xlu0 %17903 }
 0x893   :  { %32483 = vst [vmem:[#allocation52_spill] sm:$0xff] %v30081_v63 }
 0x895   :  { %v30083_v14 = vpop.permute.xlu1 %17981 }
 0x896   :  { %32484 = vst [vmem:[#allocation157_spill] sm:$0xff] %v30083_v14  ;;  %v30087_v4 = vpop.permute.xlu0 %17901 }
 0x897   :  { %32486 = vst [vmem:[#allocation56_spill] sm:$0xff] %v30087_v4 }
 0x899   :  { %v30089_v50 = vpop.permute.xlu1 %17979 }
 0x89a   :  { %32487 = vst [vmem:[#allocation51_spill] sm:$0xff] %v30089_v50  ;;  %v30091_v44 = vpop.permute.xlu0 %18059 }
 0x89b   :  { %32488 = vst [vmem:[#allocation55_spill] sm:$0xff] %v30091_v44 }
 0x89d   :  { %v30093_v39 = vpop.permute.xlu1 %18137 }
 0x89e   :  { %32489 = vst [vmem:[#allocation50_spill] sm:$0xff] %v30093_v39  ;;  %v30095_v36 = vpop.permute.xlu0 %18057 }
 0x89f   :  { %18605 = vrot.lane.b32.xlu1 %v32482_v30, %s26539_s20  ;;  %32490 = vst [vmem:[#allocation54_spill] sm:$0xff] %v30095_v36 }
 0x8a1   :  { %v30097_v31 = vpop.permute.xlu1 %18135 }
 0x8a2   :  { %32491 = vst [vmem:[#allocation49_spill] sm:$0xff] %v30097_v31  ;;  %v30099_v30 = vpop.permute.xlu0 %18215 }
 0x8a3   :  { %18527 = vrot.lane.b32.xlu0 %v32485_v17, %s26539_s20  ;;  %32492 = vst [vmem:[#allocation53_spill] sm:$0xff] %v30099_v30 }
 0x8a5   :  { %v30101_v63 = vpop.permute.xlu1 %18293 }
 0x8a6   :  { %32493 = vst [vmem:[#allocation59_spill] sm:$0xff] %v30101_v63  ;;  %v30103_v14 = vpop.permute.xlu0 %18213 }
 0x8a7   :  { %32494 = vst [vmem:[#allocation63_spill] sm:$0xff] %v30103_v14 }
 0x8a9   :  { %v30105_v7 = vpop.permute.xlu1 %18291 }
 0x8aa   :  { %32495 = vst [vmem:[#allocation58_spill] sm:$0xff] %v30105_v7  ;;  %v30107_v17 = vpop.permute.xlu0 %18371 }
 0x8ab   :  { %32496 = vst [vmem:[#allocation62_spill] sm:$0xff] %v30107_v17 }
 0x8ad   :  { %v30109_v4 = vpop.permute.xlu1 %18449 }
 0x8ae   :  { %32497 = vst [vmem:[#allocation61_spill] sm:$0xff] %v30109_v4  ;;  %v30111_v50 = vpop.permute.xlu0 %18369 }
 0x8af   :  { %32498 = vst [vmem:[#allocation57_spill] sm:$0xff] %v30111_v50 }
 0x8b1   :  { %v30113_v44 = vpop.permute.xlu1 %18447 }
 0x8b2   :  { %32499 = vst [vmem:[#allocation158_spill] sm:$0xff] %v30113_v44 }
 0x8cf   :  { %v14493_v39 = vpop.xlane.xlu1 %14492  ;;  %v14490_v36 = vpop.xlane.xlu0 %14489 }
 0x8d0   :  { %v14585_v31 = vsub.f32 %v29897_v9, %v14493_v39  ;;  %v14584_v30 = vsub.f32 %v29895_v10, %v14490_v36 }
 0x8d2   :  { %v14618_v18 = vmul.f32 1.442695, %v14585_v31  ;;  %v14616_v63 = vmul.f32 1.442695, %v14584_v30 }
 0x8d4   :  { %26087 = vpow2.f32 %v14618_v18  ;;  %v14496_v14 = vpop.xlane.xlu0 %14495 }
 0x8d5   :  { %26089 = vpow2.f32 %v14616_v63  ;;  %v14586_v7 = vsub.f32 %v29905_v33, %v14496_v14 }
 0x8d7   :  { %v14620_v17 = vmul.f32 1.442695, %v14586_v7 }
 0x8d8   :  { %v14499_v55 = vpop.xlane.xlu0 %14498 }
 0x8d9   :  { %26091 = vpow2.f32 %v14620_v17  ;;  %v14505_v4 = vpop.xlane.xlu1 %14504  ;;  %v14587_v50 = vsub.f32 %v29909_v62, %v14499_v55 }
 0x8da   :  { %v14589_v44 = vsub.f32 %v29913_v1, %v14505_v4 }
 0x8db   :  { %v14622_v3 = vmul.f32 1.442695, %v14587_v50 }
 0x8dc   :  { %v14626_v42 = vmul.f32 1.442695, %v14589_v44  ;;  %v14502_v9 = vpop.xlane.xlu0 %14501 }
 0x8dd   :  { %26093 = vpow2.f32 %v14622_v3  ;;  %v14588_v10 = vsub.f32 %v29915_v8, %v14502_v9 }
 0x8de   :  { %v14511_v39 = vpop.xlane.xlu1 %14510  ;;  %26095 = vpow2.f32 %v14626_v42 }
 0x8df   :  { %v14591_v18 = vsub.f32 %v29927_v56, %v14511_v39  ;;  %v14624_v36 = vmul.f32 1.442695, %v14588_v10 }
 0x8e0   :  { %v14508_v33 = vpop.xlane.xlu0 %14507 }
 0x8e1   :  { %v30122_v14 = vpop.eup %26087  ;;  %v14630_v7 = vmul.f32 1.442695, %v14591_v18  ;;  %26097 = vpow2.f32 %v14624_v36  ;;  %v14590_v55 = vsub.f32 %v29925_v40, %v14508_v33 }
 0x8e2   :  { %v30125_v62 = vpop.eup %26089  ;;  %v14683_v50 = vsel %vm1270_vm2, %v30122_v14, 0.0 }
 0x8e3   :  { %26099 = vpow2.f32 %v14630_v7  ;;  %v14517_v3 = vpop.xlane.xlu1 %14516  ;;  %v14628_v1 = vmul.f32 1.442695, %v14590_v55  ;;  %14684 = vadd.xlane.f32.xlu1 %v14683_v50  ;;  %v14680_v42 = vsel %vm1270_vm2, %v30125_v62, 0.0 }
 0x8e4   :  { %v14593_v8 = vsub.f32 %v29941_v61, %v14517_v3  ;;  %14681 = vadd.xlane.f32.xlu0 %v14680_v42  ;;  %v14514_v56 = vpop.xlane.xlu0 %14513 }
 0x8e5   :  { %26101 = vpow2.f32 %v14628_v1  ;;  %v14592_v44 = vsub.f32 %v29939_v32, %v14514_v56 }
 0x8e6   :  { %v30133_v40 = vpop.eup %26091  ;;  %v14634_v31 = vmul.f32 1.442695, %v14593_v8 }
 0x8e7   :  { %v14632_v63 = vmul.f32 1.442695, %v14592_v44  ;;  %v14686_v4 = vsel %vm1270_vm2, %v30133_v40, 0.0 }
 0x8e8   :  { %26103 = vpow2.f32 %v14634_v31  ;;  %14687 = vadd.xlane.f32.xlu0 %v14686_v4  ;;  %v14520_v30 = vpop.xlane.xlu0 %14519 }
 0x8e9   :  { %v14523_v17 = vpop.xlane.xlu1 %14522  ;;  %26105 = vpow2.f32 %v14632_v63  ;;  %v14594_v9 = vsub.f32 %v29949_v28, %v14520_v30 }
 0x8ea   :  { %v30138_v61 = vpop.eup %26093  ;;  %v14595_v10 = vsub.f32 %v29953_v52, %v14523_v17 }
 0x8eb   :  { %v14636_v39 = vmul.f32 1.442695, %v14594_v9  ;;  %v14689_v32 = vsel %vm1270_vm2, %v30138_v61, 0.0  ;;  %v30143_v18 = vpop.eup %26095 }
 0x8ec   :  { %v14638_v36 = vmul.f32 1.442695, %v14595_v10  ;;  %14690 = vadd.xlane.f32.xlu1 %v14689_v32  ;;  %v14526_v33 = vpop.xlane.xlu0 %14525  ;;  %v14695_v52 = vsel %vm1270_vm2, %v30143_v18, 0.0 }
 0x8ed   :  { %26107 = vpow2.f32 %v14636_v39  ;;  %v14596_v7 = vsub.f32 %v29959_v0, %v14526_v33 }
 0x8ee   :  { %v30146_v55 = vpop.eup %26097  ;;  %26109 = vpow2.f32 %v14638_v36  ;;  %v14529_v28 = vpop.xlane.xlu1 %14528 }
 0x8ef   :  { %v14597_v50 = vsub.f32 %v29963_v38, %v14529_v28  ;;  %v14640_v3 = vmul.f32 1.442695, %v14596_v7  ;;  %v14692_v1 = vsel %vm1270_vm2, %v30146_v55, 0.0 }
 0x8f0   :  { %v30153_v42 = vpop.eup %26099  ;;  %14696 = vadd.xlane.f32.xlu1 %v14695_v52  ;;  %14693 = vadd.xlane.f32.xlu0 %v14692_v1 }
 0x8f1   :  { %v14642_v8 = vmul.f32 1.442695, %v14597_v50  ;;  %26111 = vpow2.f32 %v14640_v3  ;;  %v14701_v38 = vsel %vm1270_vm2, %v30153_v42, 0.0 }
 0x8f2   :  { %v30155_v0 = vpop.eup %26101  ;;  %v14535_v56 = vpop.xlane.xlu1 %14534 }
 0x8f3   :  { %v14532_v44 = vpop.xlane.xlu0 %14531  ;;  %26113 = vpow2.f32 %v14642_v8  ;;  %v14599_v31 = vsub.f32 %v29973_v58, %v14535_v56  ;;  %v14698_v4 = vsel %vm1270_vm2, %v30155_v0, 0.0 }
 0x8f4   :  { %v14598_v63 = vsub.f32 %v29971_v49, %v14532_v44  ;;  %14702 = vadd.xlane.f32.xlu1 %v14701_v38  ;;  %14699 = vadd.xlane.f32.xlu0 %v14698_v4 }
 0x8f5   :  { %v30163_v30 = vpop.eup %26103  ;;  %v14646_v17 = vmul.f32 1.442695, %v14599_v31 }
 0x8f6   :  { %v14644_v9 = vmul.f32 1.442695, %v14598_v63  ;;  %v30165_v10 = vpop.eup %26105  ;;  %v14707_v36 = vsel %vm1270_vm2, %v30163_v30, 0.0 }
 0x8f7   :  { %26115 = vpow2.f32 %v14646_v17  ;;  %v14541_v39 = vpop.xlane.xlu1 %14540  ;;  %v14538_v32 = vpop.xlane.xlu0 %14537  ;;  %v14704_v49 = vsel %vm1270_vm2, %v30165_v10, 0.0 }
 0x8f8   :  { %v14601_v58 = vsub.f32 %v29985_v59, %v14541_v39  ;;  %26117 = vpow2.f32 %v14644_v9  ;;  %v14600_v33 = vsub.f32 %v29983_v54, %v14538_v32  ;;  %14708 = vadd.xlane.f32.xlu1 %v14707_v36  ;;  %14705 = vadd.xlane.f32.xlu0 %v14704_v49 }
 0x8fa   :  { %v30173_v7 = vpop.eup %26107  ;;  %v14650_v28 = vmul.f32 1.442695, %v14601_v58  ;;  %v14648_v50 = vmul.f32 1.442695, %v14600_v33 }
 0x8fb   :  { %v30175_v3 = vpop.eup %26109  ;;  %v14710_v52 = vsel %vm1270_vm2, %v30173_v7, 0.0 }
 0x8fc   :  { %26119 = vpow2.f32 %v14650_v28  ;;  %v14547_v1 = vpop.xlane.xlu1 %14546  ;;  %v14544_v8 = vpop.xlane.xlu0 %14543  ;;  %v14713_v59 = vsel %vm1270_vm2, %v30175_v3, 0.0  ;;  %14711 = vadd.xlane.f32.xlu0 %v14710_v52 }
 0x8fd   :  { %v14603_v54 = vsub.f32 %v29997_v29, %v14547_v1  ;;  %26121 = vpow2.f32 %v14648_v50  ;;  %v14602_v56 = vsub.f32 %v29995_v51, %v14544_v8  ;;  %14714 = vadd.xlane.f32.xlu1 %v14713_v59 }
 0x8fe   :  { %v30183_v44 = vpop.eup %26111 }
 0x8ff   :  { %v14654_v38 = vmul.f32 1.442695, %v14603_v54  ;;  %v14652_v31 = vmul.f32 1.442695, %v14602_v56  ;;  %v14716_v63 = vsel %vm1270_vm2, %v30183_v44, 0.0 }
 0x900   :  { %v30187_v4 = vpop.eup %26113  ;;  %14717 = vadd.xlane.f32.xlu0 %v14716_v63 }
 0x901   :  { %26123 = vpow2.f32 %v14654_v38  ;;  %v14553_v17 = vpop.xlane.xlu1 %14552  ;;  %v14550_v9 = vpop.xlane.xlu0 %14549  ;;  %v14719_v29 = vsel %vm1270_vm2, %v30187_v4, 0.0 }
 0x902   :  { %v14605_v39 = vsub.f32 %v30007_v45, %v14553_v17  ;;  %26125 = vpow2.f32 %v14652_v31  ;;  %v14604_v51 = vsub.f32 %v30005_v25, %v14550_v9  ;;  %14720 = vadd.xlane.f32.xlu1 %v14719_v29 }
 0x904   :  { %v30193_v32 = vpop.eup %26115  ;;  %v14658_v36 = vmul.f32 1.442695, %v14605_v39  ;;  %v14656_v49 = vmul.f32 1.442695, %v14604_v51 }
 0x905   :  { %v30195_v58 = vpop.eup %26117  ;;  %v14725_v33 = vsel %vm1270_vm2, %v30193_v32, 0.0 }
 0x906   :  { %26127 = vpow2.f32 %v14658_v36  ;;  %v14559_v28 = vpop.xlane.xlu1 %14558  ;;  %v14556_v50 = vpop.xlane.xlu0 %14555  ;;  %14726 = vadd.xlane.f32.xlu0 %v14725_v33  ;;  %v14722_v45 = vsel %vm1270_vm2, %v30195_v58, 0.0 }
 0x907   :  { %v14607_v52 = vsub.f32 %v30015_v37, %v14559_v28  ;;  %26129 = vpow2.f32 %v14656_v49  ;;  %v14606_v25 = vsub.f32 %v30017_v13, %v14556_v50  ;;  %14723 = vadd.xlane.f32.xlu1 %v14722_v45 }
 0x909   :  { %v30203_v1 = vpop.eup %26119  ;;  %v14662_v8 = vmul.f32 1.442695, %v14607_v52  ;;  %v14660_v59 = vmul.f32 1.442695, %v14606_v25 }
 0x90a   :  { %v30205_v54 = vpop.eup %26121  ;;  %v14562_v56 = vpop.xlane.xlu0 %14561  ;;  %v14731_v38 = vsel %vm1270_vm2, %v30203_v1, 0.0 }
 0x90b   :  { %26131 = vpow2.f32 %v14662_v8  ;;  %v14565_v31 = vpop.xlane.xlu1 %14564  ;;  %v14608_v63 = vsub.f32 %v30027_v41, %v14562_v56  ;;  %14732 = vadd.xlane.f32.xlu0 %v14731_v38  ;;  %v14728_v37 = vsel %vm1270_vm2, %v30205_v54, 0.0 }
 0x90c   :  { %v14609_v13 = vsub.f32 %v30029_v48, %v14565_v31  ;;  %26133 = vpow2.f32 %v14660_v59  ;;  %14729 = vadd.xlane.f32.xlu1 %v14728_v37 }
 0x90d   :  { %v14664_v17 = vmul.f32 1.442695, %v14608_v63 }
 0x90e   :  { %v30213_v9 = vpop.eup %26123  ;;  %v14666_v29 = vmul.f32 1.442695, %v14609_v13  ;;  %v14568_v39 = vpop.xlane.xlu0 %14567 }
 0x90f   :  { %v30215_v51 = vpop.eup %26125  ;;  %v14571_v36 = vpop.xlane.xlu1 %14570  ;;  %26135 = vpow2.f32 %v14664_v17  ;;  %v14610_v49 = vsub.f32 %v30037_v27, %v14568_v39  ;;  %v14737_v41 = vsel %vm1270_vm2, %v30213_v9, 0.0 }
 0x910   :  { %26137 = vpow2.f32 %v14666_v29  ;;  %v14611_v33 = vsub.f32 %v30041_v34, %v14571_v36  ;;  %14738 = vadd.xlane.f32.xlu0 %v14737_v41  ;;  %v14734_v48 = vsel %vm1270_vm2, %v30215_v51, 0.0 }
 0x911   :  { %v14668_v28 = vmul.f32 1.442695, %v14610_v49  ;;  %14735 = vadd.xlane.f32.xlu1 %v14734_v48 }
 0x912   :  { %v14670_v50 = vmul.f32 1.442695, %v14611_v33  ;;  %v14574_v45 = vpop.xlane.xlu0 %14573 }
 0x913   :  { %v30223_v52 = vpop.eup %26127  ;;  %v14577_v25 = vpop.xlane.xlu1 %14576  ;;  %26139 = vpow2.f32 %v14668_v28  ;;  %v14612_v27 = vsub.f32 %v30047_v23, %v14574_v45 }
 0x914   :  { %v30226_v8 = vpop.eup %26129  ;;  %26141 = vpow2.f32 %v14670_v50  ;;  %v14613_v59 = vsub.f32 %v30049_v2, %v14577_v25  ;;  %v14743_v34 = vsel %vm1270_vm2, %v30223_v52, 0.0 }
 0x915   :  { %v14672_v56 = vmul.f32 1.442695, %v14612_v27  ;;  %14744 = vadd.xlane.f32.xlu0 %v14743_v34  ;;  %v14740_v38 = vsel %vm1270_vm2, %v30226_v8, 0.0 }
 0x916   :  { %v14674_v31 = vmul.f32 1.442695, %v14613_v59  ;;  %14741 = vadd.xlane.f32.xlu1 %v14740_v38  ;;  %v14580_v63 = vpop.xlane.xlu0 %14579 }
 0x917   :  { %v14583_v37 = vpop.xlane.xlu1 %14582  ;;  %26143 = vpow2.f32 %v14672_v56  ;;  %v14614_v23 = vsub.f32 %v30059_v47, %v14580_v63 }
 0x918   :  { %v30234_v13 = vpop.eup %26131  ;;  %26145 = vpow2.f32 %v14674_v31  ;;  %v14615_v2 = vsub.f32 %v30061_v57, %v14583_v37 }
 0x919   :  { %v30237_v17 = vpop.eup %26133  ;;  %v14676_v29 = vmul.f32 1.442695, %v14614_v23  ;;  %v14749_v39 = vsel %vm1270_vm2, %v30234_v13, 0.0  ;;  %v32512_v23 = vld [vmem:[#allocation76_spill] sm:$0xff] }
 0x91a   :  { %v14678_v36 = vmul.f32 1.442695, %v14615_v2  ;;  %14750 = vadd.xlane.f32.xlu0 %v14749_v39  ;;  %v14746_v49 = vsel %vm1270_vm2, %v30237_v17, 0.0  ;;  %v32513_v2 = vld [vmem:[#allocation30_spill] sm:$0xff] }
 0x91b   :  { %26147 = vpow2.f32 %v14676_v29  ;;  %14747 = vadd.xlane.f32.xlu1 %v14746_v49 }
 0x91c   :  { %v30243_v41 = vpop.eup %26135  ;;  %26149 = vpow2.f32 %v14678_v36 }
 0x91d   :  { %v30245_v47 = vpop.eup %26137  ;;  %v14752_v57 = vsel %vm1270_vm2, %v30243_v41, 0.0 }
 0x91e   :  { %v14755_v33 = vsel %vm1270_vm2, %v30245_v47, 0.0 }
 0x91f   :  { %14756 = vadd.xlane.f32.xlu0 %v14755_v33  ;;  %14753 = vadd.xlane.f32.xlu1 %v14752_v57 }
 0x920   :  { %v30251_v48 = vpop.eup %26139 }
 0x921   :  { %v30253_v28 = vpop.eup %26141  ;;  %v14758_v50 = vsel %vm1270_vm2, %v30251_v48, 0.0 }
 0x922   :  { %v14761_v45 = vsel %vm1270_vm2, %v30253_v28, 0.0 }
 0x923   :  { %14762 = vadd.xlane.f32.xlu0 %v14761_v45  ;;  %14759 = vadd.xlane.f32.xlu1 %v14758_v50  ;;  %v32514_v50 = vld [vmem:[#allocation31_spill] sm:$0xff]  ;;  %v32515_v45 = vld [vmem:[#allocation72_spill] sm:$0xff] }
 0x924   :  { %v30259_v25 = vpop.eup %26143 }
 0x925   :  { %v30261_v27 = vpop.eup %26145  ;;  %v14764_v59 = vsel %vm1270_vm2, %v30259_v25, 0.0 }
 0x926   :  { %v14767_v34 = vsel %vm1270_vm2, %v30261_v27, 0.0 }
 0x927   :  { %14768 = vadd.xlane.f32.xlu0 %v14767_v34  ;;  %14765 = vadd.xlane.f32.xlu1 %v14764_v59 }
 0x928   :  { %v30267_v56 = vpop.eup %26147 }
 0x929   :  { %v30269_v38 = vpop.eup %26149  ;;  %v14770_v31 = vsel %vm1270_vm2, %v30267_v56, 0.0 }
 0x92a   :  { %v14773_v63 = vsel %vm1270_vm2, %v30269_v38, 0.0 }
 0x92b   :  { %14774 = vadd.xlane.f32.xlu0 %v14773_v63  ;;  %14771 = vadd.xlane.f32.xlu1 %v14770_v31  ;;  %v32516_v31 = vld [vmem:[#allocation66_spill] sm:$0xff] }
 0x93c   :  { %18603 = vrot.lane.b32.xlu1 %v32273_v43, %s26539_s20  ;;  %v32510_v43 = vld [vmem:[#allocation32_spill] sm:$0xff] }
 0x940   :  { %18761 = vrot.lane.b32.xlu1 %v32274_v22, %s26539_s20  ;;  %v32511_v22 = vld [vmem:[#allocation73_spill] sm:$0xff] }
 0x941   :  { %18525 = vrot.lane.b32.xlu0 %v27340_v26, %s26539_s20  ;;  %v32502_v26 = vld [vmem:[#allocation28_spill] sm:$0xff] }
 0x944   :  { %18759 = vrot.lane.b32.xlu1 %v32122_v5, %s26539_s20  ;;  %v32506_v5 = vld [vmem:[#allocation27_spill] sm:$0xff] }
 0x945   :  { %18683 = vrot.lane.b32.xlu0 %v27383_v60, %s26539_s20  ;;  %v30317_v60 = vpop.permute.xlu1 %18605 }
 0x948   :  { %18917 = vrot.lane.b32.xlu1 %v32125_v21, %s26539_s20 }
 0x949   :  { %18681 = vrot.lane.b32.xlu0 %v27205_v24, %s26539_s20  ;;  %v32501_v24 = vld [vmem:[#allocation22_spill] sm:$0xff] }
 0x94c   :  { %18915 = vrot.lane.b32.xlu1 %v32127_v20, %s26539_s20  ;;  %v32507_v20 = vld [vmem:[#allocation68_spill] sm:$0xff] }
 0x94d   :  { %18839 = vrot.lane.b32.xlu0 %v27378_v19, %s26539_s20  ;;  %v32503_v19 = vld [vmem:[#allocation69_spill] sm:$0xff] }
 0x950   :  { %19073 = vrot.lane.b32.xlu1 %v32128_v11, %s26539_s20 }
 0x951   :  { %18837 = vrot.lane.b32.xlu0 %v27203_v35, %s26539_s20  ;;  %v32500_v35 = vld [vmem:[#allocation71_spill] sm:$0xff] }
 0x954   :  { %19071 = vrot.lane.b32.xlu1 %v32130_v16, %s26539_s20  ;;  %v32508_v16 = vld [vmem:[#allocation77_spill] sm:$0xff] }
 0x955   :  { %18995 = vrot.lane.b32.xlu0 %v27421_v15, %s26539_s20  ;;  %v30321_v15 = vpop.permute.xlu0 %18527 }
 0x958   :  { %19229 = vrot.lane.b32.xlu1 %v32132_v12, %s26539_s20  ;;  %v32509_v12 = vld [vmem:[#allocation25_spill] sm:$0xff] }
 0x959   :  { %18993 = vrot.lane.b32.xlu0 %v27213_v6, %s26539_s20  ;;  %v32504_v6 = vld [vmem:[#allocation70_spill] sm:$0xff] }
 0x95c   :  { %19227 = vrot.lane.b32.xlu1 %v32134_v46, %s26539_s20 }
 0x95d   :  { %19151 = vrot.lane.b32.xlu0 %v27413_v53, %s26539_s20  ;;  %v32505_v53 = vld [vmem:[#allocation26_spill] sm:$0xff] }
 0x960   :  { %19385 = vrot.lane.b32.xlu1 %v32500_v35, %s26539_s20 }
 0x961   :  { %19149 = vrot.lane.b32.xlu0 %v32501_v24, %s26539_s20  ;;  %v32519_v24 = vld [vmem:[#allocation79_spill] sm:$0xff] }
 0x964   :  { %19383 = vrot.lane.b32.xlu1 %v32502_v26, %s26539_s20  ;;  %v32520_v26 = vld [vmem:[#allocation29_spill] sm:$0xff] }
 0x965   :  { %19307 = vrot.lane.b32.xlu0 %v32503_v19, %s26539_s20 }
 0x968   :  { %19541 = vrot.lane.b32.xlu1 %v32504_v6, %s26539_s20 }
 0x969   :  { %19305 = vrot.lane.b32.xlu0 %v32505_v53, %s26539_s20 }
 0x96c   :  { %19539 = vrot.lane.b32.xlu1 %v32506_v5, %s26539_s20  ;;  %v14685_v21 = vpop.xlane.xlu1 %14684 }
 0x96d   :  { %19463 = vrot.lane.b32.xlu0 %v32507_v20, %s26539_s20  ;;  %26151 = vrcp.f32 %v14685_v21  ;;  %v14682_v11 = vpop.xlane.xlu0 %14681  ;;  %v32522_v21 = vld [vmem:[#allocation78_spill] sm:$0xff]  ;;  %v32523_v20 = vld [vmem:[#allocation75_spill] sm:$0xff] }
 0x96e   :  { %26153 = vrcp.f32 %v14682_v11 }
 0x970   :  { %19697 = vrot.lane.b32.xlu1 %v32508_v16, %s26539_s20 }
 0x971   :  { %19461 = vrot.lane.b32.xlu0 %v32509_v12, %s26539_s20  ;;  %v14688_v46 = vpop.xlane.xlu0 %14687 }
 0x972   :  { %26155 = vrcp.f32 %v14688_v46  ;;  %v32524_v46 = vld [vmem:[#allocation109_spill] sm:$0xff] }
 0x974   :  { %19695 = vrot.lane.b32.xlu1 %v32510_v43, %s26539_s20 }
 0x975   :  { %19619 = vrot.lane.b32.xlu0 %v32511_v22, %s26539_s20  ;;  %v14691_v37 = vpop.xlane.xlu1 %14690  ;;  %v32525_v22 = vld [vmem:[#allocation83_spill] sm:$0xff] }
 0x976   :  { %26157 = vrcp.f32 %v14691_v37 }
 0x978   :  { %19853 = vrot.lane.b32.xlu1 %v32512_v23, %s26539_s20  ;;  %v32526_v23 = vld [vmem:[#allocation74_spill] sm:$0xff] }
 0x979   :  { %19617 = vrot.lane.b32.xlu0 %v32513_v2, %s26539_s20  ;;  %v14697_v29 = vpop.xlane.xlu1 %14696  ;;  %v14694_v39 = vpop.xlane.xlu0 %14693 }
 0x97a   :  { %v26152_v36 = vpop.eup %26151  ;;  %26159 = vrcp.f32 %v14697_v29 }
 0x97b   :  { %v26154_v49 = vpop.eup %26153  ;;  %v14809_v57 = vmul.f32 %v26152_v36, %v30122_v14  ;;  %26161 = vrcp.f32 %v14694_v39  ;;  %v32517_v14 = vld [vmem:[#allocation113_spill] sm:$0xff]  ;;  %v32527_v36 = vld [vmem:[#allocation128_spill] sm:$0xff] }
 0x97c   :  { %v14808_v33 = vmul.f32 %v26154_v49, %v30125_v62  ;;  %19851 = vrot.lane.b32.xlu1 %v32514_v50, %s26539_s20  ;;  %v32518_v62 = vmov 0.0   ;;  %v32530_v50 = vld [vmem:[#allocation81_spill] sm:$0xff] }
 0x97d   :  { %19775 = vrot.lane.b32.xlu0 %v32515_v45, %s26539_s20  ;;  %v14703_v59 = vpop.xlane.xlu1 %14702  ;;  %v14700_v34 = vpop.xlane.xlu0 %14699  ;;  %25229 = vmatmul.mubr.msk.f32.vlgmr.msra.gmra.mxu1 %vm1270_vm2, %v14809_v57  ;;  %v32528_v57 = vld [vmem:[#allocation82_spill] sm:$0xff] }
 0x97e   :  { %26163 = vrcp.f32 %v14703_v59  ;;  %25237 = vmatpush3.msra.mxu1 %v32516_v31  ;;  %25224 = vmatmul.mubr.msk.f32.vlgmr.msra.gmra.mxu0 %vm1270_vm2, %v14808_v33  ;;  %v32532_v31 = vld [vmem:[#allocation132_spill] sm:$0xff] }
 0x97f   :  { %v26156_v63 = vpop.eup %26155  ;;  %26165 = vrcp.f32 %v14700_v34  ;;  %25232 = vmatpush3.msra.mxu0 %v32517_v14  ;;  %25233 = vmatprep.mubr.msk.f32.mxu0 %vm26536_vm1, %v32518_v62  ;;  %v32533_v14 = vld [vmem:[#allocation80_spill] sm:$0xff] }
 0x980   :  { %v14810_v35 = vmul.f32 %v26156_v63, %v30133_v40  ;;  %20389 = vrot.lane.b32.xlu1 %v32519_v24, %s26539_s20  ;;  %25241 = vmatprep.subr.mxu0 %v32518_v62  ;;  %v32521_v40 = vld [vmem:[#allocation117_spill] sm:$0xff]  ;;  %v32534_v24 = vld [vmem:[#allocation39_spill] sm:$0xff] }
 0x981   :  { %19773 = vrot.lane.b32.xlu0 %v32520_v26, %s26539_s20  ;;  %v14709_v19 = vpop.xlane.xlu1 %14708  ;;  %v14706_v6 = vpop.xlane.xlu0 %14705  ;;  %25238 = vmatprep.mubr.msk.f32.mxu1 %vm26536_vm1, %v32518_v62 }
 0x982   :  { %26167 = vrcp.f32 %v14709_v19  ;;  %25234 = vmatmul.mubr.msk.f32.vlgmr.msra.gmra.mxu0 %vm1270_vm2, %v14810_v35  ;;  %25246 = vmatprep.subr.mxu1 %v32518_v62  ;;  %v32535_v19 = vld [vmem:[#allocation86_spill] sm:$0xff] }
 0x983   :  { %v26158_v53 = vpop.eup %26157  ;;  %26169 = vrcp.f32 %v14706_v6  ;;  %25242 = vmatpush3.msra.mxu0 %v32521_v40  ;;  %25243 = vmatprep.mubr.msk.f32.mxu0 %vm26536_vm1, %v32518_v62 }
 0x984   :  { %v14811_v5 = vmul.f32 %v26158_v53, %v30138_v61  ;;  %20541 = vrot.lane.b32.xlu1 %v32522_v21, %s26539_s20  ;;  %25251 = vmatprep.subr.mxu0 %v32518_v62 }
 0x985   :  { %20313 = vrot.lane.b32.xlu0 %v32523_v20, %s26539_s20  ;;  %v14712_v11 = vpop.xlane.xlu0 %14711  ;;  %v32538_v20 = vld [vmem:[#allocation123_spill] sm:$0xff] }
 0x986   :  { %v14715_v16 = vpop.xlane.xlu1 %14714  ;;  %26171 = vrcp.f32 %v14712_v11  ;;  %25239 = vmatmul.mubr.msk.f32.vlgmr.msra.gmra.mxu1 %vm1270_vm2, %v14811_v5  ;;  %v32537_v5 = vld [vmem:[#allocation35_spill] sm:$0xff] }
 0x987   :  { %v26160_v12 = vpop.eup %26159  ;;  %26173 = vrcp.f32 %v14715_v16  ;;  %25247 = vmatpush3.msra.mxu1 %v32524_v46  ;;  %25248 = vmatprep.mubr.msk.f32.mxu1 %vm26536_vm1, %v32518_v62  ;;  %v32539_v11 = vld [vmem:[#allocation91_spill] sm:$0xff] }
 0x988   :  { %v26162_v61 = vpop.eup %26161  ;;  %v14813_v43 = vmul.f32 %v26160_v12, %v30143_v18  ;;  %20693 = vrot.lane.b32.xlu1 %v32525_v22, %s26539_s20  ;;  %25256 = vmatprep.subr.mxu1 %v32518_v62  ;;  %v32542_v22 = vld [vmem:[#allocation90_spill] sm:$0xff] }
 0x989   :  { %v14812_v37 = vmul.f32 %v26162_v61, %v30146_v55  ;;  %20465 = vrot.lane.b32.xlu0 %v32526_v23, %s26539_s20  ;;  %v14718_v2 = vpop.xlane.xlu0 %14717  ;;  %v32529_v55 = vld [vmem:[#allocation130_spill] sm:$0xff] }
 0x98a   :  { %25249 = vmatmul.mubr.msk.f32.vlgmr.msra.gmra.mxu1 %vm1270_vm2, %v14813_v43  ;;  %v32541_v43 = vld [vmem:[#allocation34_spill] sm:$0xff] }
 0x98b   :  { %v26164_v29 = vpop.eup %26163  ;;  %v14721_v39 = vpop.xlane.xlu1 %14720  ;;  %25257 = vmatpush3.msra.mxu1 %v32527_v36  ;;  %25244 = vmatmul.mubr.msk.f32.vlgmr.msra.gmra.mxu0 %vm1270_vm2, %v14812_v37  ;;  %v32543_v37 = vld [vmem:[#allocation129_spill] sm:$0xff] }
 0x98c   :  { %v26166_v18 = vpop.eup %26165  ;;  %v14815_v49 = vmul.f32 %v26164_v29, %v30153_v42  ;;  %20845 = vrot.lane.b32.xlu1 %v32528_v57, %s26539_s20  ;;  %26175 = vrcp.f32 %v14721_v39  ;;  %25252 = vmatpush3.msra.mxu0 %v32529_v55  ;;  %v32547_v57 = vld [vmem:[#allocation88_spill] sm:$0xff] }
 0x98d   :  { %v14814_v33 = vmul.f32 %v26166_v18, %v30155_v0  ;;  %20617 = vrot.lane.b32.xlu0 %v32530_v50, %s26539_s20  ;;  %26177 = vrcp.f32 %v14718_v2  ;;  %25258 = vmatprep.mubr.msk.f32.mxu1 %vm26536_vm1, %v32518_v62  ;;  %v32531_v0 = vld [vmem:[#allocation87_spill] sm:$0xff]  ;;  %v32544_v2 = vld [vmem:[#allocation89_spill] sm:$0xff]  ;;  %v32546_v18 = vld [vmem:[#allocation144_spill] sm:$0xff] }
 0x98e   :  { %25266 = vmatprep.subr.mxu1 %v32518_v62  ;;  %25253 = vmatprep.mubr.msk.f32.mxu0 %vm26536_vm1, %v32518_v62 }
 0x98f   :  { %v26168_v42 = vpop.eup %26167  ;;  %25261 = vmatprep.subr.mxu0 %v32518_v62  ;;  %v14727_v45 = vpop.xlane.xlu0 %14726  ;;  %25259 = vmatmul.mubr.msk.f32.vlgmr.msra.gmra.mxu1 %vm1270_vm2, %v14815_v49 }
 0x990   :  { %v26170_v59 = vpop.eup %26169  ;;  %20997 = vrot.lane.b32.xlu1 %v32531_v0, %s26539_s20  ;;  %v14724_v34 = vpop.xlane.xlu1 %14723  ;;  %25267 = vmatpush3.msra.mxu1 %v32532_v31  ;;  %v14817_v63 = vmul.f32 %v26168_v42, %v30163_v30 }
 0x991   :  { %20769 = vrot.lane.b32.xlu0 %v32533_v14, %s26539_s20  ;;  %26179 = vrcp.f32 %v14724_v34  ;;  %25254 = vmatmul.mubr.msk.f32.vlgmr.msra.gmra.mxu0 %vm1270_vm2, %v14814_v33  ;;  %v14816_v35 = vmul.f32 %v26170_v59, %v30165_v10  ;;  %v32536_v10 = vld [vmem:[#allocation85_spill] sm:$0xff]  ;;  %v32548_v33 = vld [vmem:[#allocation127_spill] sm:$0xff]  ;;  %v32549_v59 = vld [vmem:[#allocation94_spill] sm:$0xff] }
 0x992   :  { %26181 = vrcp.f32 %v14727_v45  ;;  %25262 = vmatpush3.msra.mxu0 %v32534_v24  ;;  %25268 = vmatprep.mubr.msk.f32.mxu1 %vm26536_vm1, %v32518_v62  ;;  %v32551_v34 = vld [vmem:[#allocation37_spill] sm:$0xff] }
 0x993   :  { %v26172_v26 = vpop.eup %26171  ;;  %25276 = vmatprep.subr.mxu1 %v32518_v62  ;;  %25263 = vmatprep.mubr.msk.f32.mxu0 %vm26536_vm1, %v32518_v62  ;;  %v32553_v24 = vld [vmem:[#allocation97_spill] sm:$0xff] }
 0x994   :  { %v26174_v30 = vpop.eup %26173  ;;  %21149 = vrot.lane.b32.xlu1 %v32535_v19, %s26539_s20  ;;  %25271 = vmatprep.subr.mxu0 %v32518_v62  ;;  %v14733_v6 = vpop.xlane.xlu0 %14732  ;;  %v14818_v21 = vmul.f32 %v26172_v26, %v30173_v7  ;;  %v32555_v19 = vld [vmem:[#allocation133_spill] sm:$0xff] }
 0x995   :  { %20921 = vrot.lane.b32.xlu0 %v32536_v10, %s26539_s20  ;;  %v14730_v53 = vpop.xlane.xlu1 %14729  ;;  %25269 = vmatmul.mubr.msk.f32.vlgmr.msra.gmra.mxu1 %vm1270_vm2, %v14817_v63  ;;  %v14819_v40 = vmul.f32 %v26174_v30, %v30175_v3  ;;  %v32540_v3 = vld [vmem:[#allocation84_spill] sm:$0xff]  ;;  %v32552_v63 = vld [vmem:[#allocation146_spill] sm:$0xff] }
 0x996   :  { %26183 = vrcp.f32 %v14730_v53  ;;  %25277 = vmatpush3.msra.mxu1 %v32537_v5  ;;  %25264 = vmatmul.mubr.msk.f32.vlgmr.msra.gmra.mxu0 %vm1270_vm2, %v14816_v35  ;;  %v32556_v10 = vld [vmem:[#allocation148_spill] sm:$0xff] }
 0x997   :  { %26185 = vrcp.f32 %v14733_v6  ;;  %25272 = vmatpush3.msra.mxu0 %v32538_v20  ;;  %25278 = vmatprep.mubr.msk.f32.mxu1 %vm26536_vm1, %v32518_v62 }
 0x998   :  { %21301 = vrot.lane.b32.xlu1 %v32539_v11, %s26539_s20  ;;  %25286 = vmatprep.subr.mxu1 %v32518_v62  ;;  %v32559_v11 = vld [vmem:[#allocation44_spill] sm:$0xff] }
 0x999   :  { %v26176_v16 = vpop.eup %26175  ;;  %21073 = vrot.lane.b32.xlu0 %v32540_v3, %s26539_s20  ;;  %25273 = vmatprep.mubr.msk.f32.mxu0 %vm26536_vm1, %v32518_v62  ;;  %v14739_v12 = vpop.xlane.xlu0 %14738 }
 0x99a   :  { %v26178_v7 = vpop.eup %26177  ;;  %v14736_v46 = vpop.xlane.xlu1 %14735  ;;  %25281 = vmatprep.subr.mxu0 %v32518_v62  ;;  %25279 = vmatmul.mubr.msk.f32.vlgmr.msra.gmra.mxu1 %vm1270_vm2, %v14819_v40  ;;  %v14821_v61 = vmul.f32 %v26176_v16, %v30187_v4  ;;  %v32557_v40 = vld [vmem:[#allocation99_spill] sm:$0xff] }
 0x99b   :  { %26187 = vrcp.f32 %v14736_v46  ;;  %25287 = vmatpush3.msra.mxu1 %v32541_v43  ;;  %25274 = vmatmul.mubr.msk.f32.vlgmr.msra.gmra.mxu0 %vm1270_vm2, %v14818_v21  ;;  %v14820_v23 = vmul.f32 %v26178_v7, %v30183_v44  ;;  %v32545_v44 = vld [vmem:[#allocation95_spill] sm:$0xff]  ;;  %v32560_v7 = vld [vmem:[#allocation149_spill] sm:$0xff]  ;;  %v32561_v46 = vld [vmem:[#allocation98_spill] sm:$0xff] }
 0x99c   :  { %21453 = vrot.lane.b32.xlu1 %v32542_v22, %s26539_s20  ;;  %26189 = vrcp.f32 %v14739_v12  ;;  %25282 = vmatpush3.msra.mxu0 %v32543_v37 }
 0x99d   :  { %21225 = vrot.lane.b32.xlu0 %v32544_v2, %s26539_s20  ;;  %25288 = vmatprep.mubr.msk.f32.mxu1 %vm26536_vm1, %v32518_v62 }
 0x99e   :  { %v26180_v4 = vpop.eup %26179  ;;  %25296 = vmatprep.subr.mxu1 %v32518_v62  ;;  %25283 = vmatprep.mubr.msk.f32.mxu0 %vm26536_vm1, %v32518_v62  ;;  %v14745_v29 = vpop.xlane.xlu0 %14744 }
 0x99f   :  { %v26182_v39 = vpop.eup %26181  ;;  %v14742_v36 = vpop.xlane.xlu1 %14741  ;;  %25291 = vmatprep.subr.mxu0 %v32518_v62  ;;  %25289 = vmatmul.mubr.msk.f32.vlgmr.msra.gmra.mxu1 %vm1270_vm2, %v14821_v61  ;;  %v14822_v49 = vmul.f32 %v26180_v4, %v30195_v58 }
 0x9a0   :  { %26191 = vrcp.f32 %v14742_v36  ;;  %21605 = vrot.lane.b32.xlu1 %v32545_v44, %s26539_s20  ;;  %25297 = vmatpush3.msra.mxu1 %v32546_v18  ;;  %v14823_v55 = vmul.f32 %v26182_v39, %v30193_v32  ;;  %v32550_v32 = vld [vmem:[#allocation93_spill] sm:$0xff]  ;;  %v32565_v39 = vld [vmem:[#allocation103_spill] sm:$0xff]  ;;  %v32566_v44 = vld [vmem:[#allocation100_spill] sm:$0xff] }
 0x9a1   :  { %26193 = vrcp.f32 %v14745_v29  ;;  %21377 = vrot.lane.b32.xlu0 %v32547_v57, %s26539_s20  ;;  %25284 = vmatmul.mubr.msk.f32.vlgmr.msra.gmra.mxu0 %vm1270_vm2, %v14820_v23  ;;  %v32563_v23 = vld [vmem:[#allocation131_spill] sm:$0xff]  ;;  %v32564_v29 = vld [vmem:[#allocation150_spill] sm:$0xff] }
 0x9a2   :  { %25292 = vmatpush3.msra.mxu0 %v32548_v33  ;;  %25298 = vmatprep.mubr.msk.f32.mxu1 %vm26536_vm1, %v32518_v62 }
 0x9a3   :  { %v26184_v50 = vpop.eup %26183  ;;  %25306 = vmatprep.subr.mxu1 %v32518_v62  ;;  %25293 = vmatprep.mubr.msk.f32.mxu0 %vm26536_vm1, %v32518_v62  ;;  %v14751_v58 = vpop.xlane.xlu0 %14750 }
 0x9a4   :  { %v26186_v42 = vpop.eup %26185  ;;  %v14748_v45 = vpop.xlane.xlu1 %14747  ;;  %21757 = vrot.lane.b32.xlu1 %v32549_v59, %s26539_s20  ;;  %25301 = vmatprep.subr.mxu0 %v32518_v62  ;;  %v14824_v0 = vmul.f32 %v26184_v50, %v30205_v54  ;;  %v32568_v50 = vld [vmem:[#allocation43_spill] sm:$0xff] }
 0x9a5   :  { %26195 = vrcp.f32 %v14748_v45  ;;  %21529 = vrot.lane.b32.xlu0 %v32550_v32, %s26539_s20  ;;  %25294 = vmatmul.mubr.msk.f32.vlgmr.msra.gmra.mxu0 %vm1270_vm2, %v14822_v49  ;;  %v14825_v31 = vmul.f32 %v26186_v42, %v30203_v1  ;;  %v32554_v1 = vld [vmem:[#allocation92_spill] sm:$0xff] }
 0x9a6   :  { %26197 = vrcp.f32 %v14751_v58  ;;  %25299 = vmatmul.mubr.msk.f32.vlgmr.msra.gmra.mxu1 %vm1270_vm2, %v14823_v55  ;;  %25302 = vmatpush3.msra.mxu0 %v32551_v34  ;;  %v32567_v55 = vld [vmem:[#allocation48_spill] sm:$0xff]  ;;  %v32569_v58 = vld [vmem:[#allocation102_spill] sm:$0xff]  ;;  %v32571_v34 = vld [vmem:[#allocation151_spill] sm:$0xff] }
 0x9a7   :  { %25307 = vmatpush3.msra.mxu1 %v32552_v63  ;;  %25303 = vmatprep.mubr.msk.f32.mxu0 %vm26536_vm1, %v32518_v62 }
 0x9a8   :  { %v26188_v14 = vpop.eup %26187  ;;  %v14754_v35 = vpop.xlane.xlu1 %14753  ;;  %21833 = vrot.lane.b32.xlu1 %v32553_v24, %s26539_s20  ;;  %25308 = vmatprep.mubr.msk.f32.mxu1 %vm26536_vm1, %v32518_v62  ;;  %v32572_v24 = vld [vmem:[#allocation137_spill] sm:$0xff] }
 0x9a9   :  { %v14757_v54 = vpop.xlane.xlu0 %14756  ;;  %v26190_v26 = vpop.eup %26189  ;;  %26199 = vrcp.f32 %v14754_v35  ;;  %25311 = vmatprep.subr.mxu0 %v32518_v62  ;;  %25316 = vmatprep.subr.mxu1 %v32518_v62  ;;  %v14826_v30 = vmul.f32 %v26188_v14, %v30215_v51 }
 0x9aa   :  { %26201 = vrcp.f32 %v14757_v54  ;;  %21681 = vrot.lane.b32.xlu0 %v32554_v1, %s26539_s20  ;;  %25304 = vmatmul.mubr.msk.f32.vlgmr.msra.gmra.mxu0 %vm1270_vm2, %v14824_v0  ;;  %v14827_v6 = vmul.f32 %v26190_v26, %v30213_v9  ;;  %v32558_v9 = vld [vmem:[#allocation96_spill] sm:$0xff]  ;;  %v32570_v0 = vld [vmem:[#allocation135_spill] sm:$0xff] }
 0x9ab   :  { %25309 = vmatmul.mubr.msk.f32.vlgmr.msra.gmra.mxu1 %vm1270_vm2, %v14825_v31  ;;  %25312 = vmatpush3.msra.mxu0 %v32555_v19  ;;  %v32573_v54 = vld [vmem:[#allocation152_spill] sm:$0xff]  ;;  %v32575_v19 = vld [vmem:[#allocation42_spill] sm:$0xff] }
 0x9ac   :  { %25317 = vmatpush3.msra.mxu1 %v32556_v10  ;;  %v14760_v53 = vpop.xlane.xlu1 %14759  ;;  %21909 = vrot.lane.b32.xlu1 %v32557_v40, %s26539_s20 }
 0x9ad   :  { %v14763_v5 = vpop.xlane.xlu0 %14762  ;;  %v26192_v21 = vpop.eup %26191  ;;  %26203 = vrcp.f32 %v14760_v53  ;;  %25313 = vmatprep.mubr.msk.f32.mxu0 %vm26536_vm1, %v32518_v62  ;;  %25318 = vmatprep.mubr.msk.f32.mxu1 %vm26536_vm1, %v32518_v62 }
 0x9ae   :  { %v26194_v51 = vpop.eup %26193  ;;  %25321 = vmatprep.subr.mxu0 %v32518_v62  ;;  %25326 = vmatprep.subr.mxu1 %v32518_v62  ;;  %26205 = vrcp.f32 %v14763_v5  ;;  %v14828_v20 = vmul.f32 %v26192_v21, %v30226_v8  ;;  %v32578_v5 = vld [vmem:[#allocation141_spill] sm:$0xff]  ;;  %v32579_v21 = vld [vmem:[#allocation154_spill] sm:$0xff] }
 0x9af   :  { %21985 = vrot.lane.b32.xlu0 %v32558_v9, %s26539_s20  ;;  %25314 = vmatmul.mubr.msk.f32.vlgmr.msra.gmra.mxu0 %vm1270_vm2, %v14826_v30  ;;  %v14829_v12 = vmul.f32 %v26194_v51, %v30223_v52  ;;  %v32562_v52 = vld [vmem:[#allocation101_spill] sm:$0xff]  ;;  %v32574_v30 = vld [vmem:[#allocation47_spill] sm:$0xff]  ;;  %v32580_v51 = vld [vmem:[#allocation46_spill] sm:$0xff] }
 0x9b0   :  { %25319 = vmatmul.mubr.msk.f32.vlgmr.msra.gmra.mxu1 %vm1270_vm2, %v14827_v6  ;;  %25322 = vmatpush3.msra.mxu0 %v32559_v11  ;;  %v14766_v16 = vpop.xlane.xlu1 %14765  ;;  %v32581_v9 = vld [vmem:[#allocation143_spill] sm:$0xff] }
 0x9b1   :  { %v14769_v3 = vpop.xlane.xlu0 %14768  ;;  %25327 = vmatpush3.msra.mxu1 %v32560_v7  ;;  %26207 = vrcp.f32 %v14766_v16  ;;  %22061 = vrot.lane.b32.xlu1 %v32561_v46, %s26539_s20  ;;  %v32582_v16 = vld [vmem:[#allocation145_spill] sm:$0xff] }
 0x9b2   :  { %v26196_v61 = vpop.eup %26195  ;;  %25323 = vmatprep.mubr.msk.f32.mxu0 %vm26536_vm1, %v32518_v62  ;;  %25328 = vmatprep.mubr.msk.f32.mxu1 %vm26536_vm1, %v32518_v62  ;;  %26209 = vrcp.f32 %v14769_v3  ;;  %v32583_v3 = vld [vmem:[#allocation41_spill] sm:$0xff] }
 0x9b3   :  { %v26198_v8 = vpop.eup %26197  ;;  %25331 = vmatprep.subr.mxu0 %v32518_v62  ;;  %25336 = vmatprep.subr.mxu1 %v32518_v62  ;;  %v14830_v37 = vmul.f32 %v26196_v61, %v30237_v17  ;;  %v32585_v7 = vld [vmem:[#allocation45_spill] sm:$0xff] }
 0x9b4   :  { %22137 = vrot.lane.b32.xlu0 %v32562_v52, %s26539_s20  ;;  %25324 = vmatmul.mubr.msk.f32.vlgmr.msra.gmra.mxu0 %vm1270_vm2, %v14828_v20  ;;  %v14772_v43 = vpop.xlane.xlu1 %14771  ;;  %v14831_v4 = vmul.f32 %v26198_v8, %v30234_v13  ;;  %v32586_v8 = vld [vmem:[#allocation156_spill] sm:$0xff]  ;;  %v32587_v52 = vld [vmem:[#allocation147_spill] sm:$0xff] }
 0x9b5   :  { %v14775_v22 = vpop.xlane.xlu0 %14774  ;;  %25329 = vmatmul.mubr.msk.f32.vlgmr.msra.gmra.mxu1 %vm1270_vm2, %v14829_v12  ;;  %25332 = vmatpush3.msra.mxu0 %v32563_v23  ;;  %26211 = vrcp.f32 %v14772_v43  ;;  %v32584_v12 = vld [vmem:[#allocation155_spill] sm:$0xff]  ;;  %v32588_v43 = vld [vmem:[#allocation52_spill] sm:$0xff] }
 0x9b6   :  { %v26200_v2 = vpop.eup %26199  ;;  %25337 = vmatpush3.msra.mxu1 %v32564_v29  ;;  %22213 = vrot.lane.b32.xlu1 %v32565_v39, %s26539_s20  ;;  %26213 = vrcp.f32 %v14775_v22  ;;  %v32589_v22 = vld [vmem:[#allocation157_spill] sm:$0xff]  ;;  %v32592_v29 = vld [vmem:[#allocation55_spill] sm:$0xff]  ;;  %v32593_v39 = vld [vmem:[#allocation50_spill] sm:$0xff] }
 0x9b7   :  { %v26202_v36 = vpop.eup %26201  ;;  %25333 = vmatprep.mubr.msk.f32.mxu0 %vm26536_vm1, %v32518_v62  ;;  %25338 = vmatprep.mubr.msk.f32.mxu1 %vm26536_vm1, %v32518_v62  ;;  %v14832_v49 = vmul.f32 %v26200_v2, %v30243_v41  ;;  %v32590_v2 = vld [vmem:[#allocation56_spill] sm:$0xff] }
 0x9b8   :  { %25341 = vmatprep.subr.mxu0 %v32518_v62  ;;  %25346 = vmatprep.subr.mxu1 %v32518_v62  ;;  %v30533_v17 = vpop.permute.xlu1 %18603  ;;  %v14833_v57 = vmul.f32 %v26202_v36, %v30245_v47 }
 0x9b9   :  { %v30535_v13 = vpop.permute.xlu0 %18525  ;;  %22289 = vrot.lane.b32.xlu0 %v32566_v44, %s26539_s20  ;;  %25334 = vmatmul.mubr.msk.f32.vlgmr.msra.gmra.mxu0 %vm1270_vm2, %v14830_v37 }
 0x9ba   :  { %v26204_v18 = vpop.eup %26203  ;;  %25339 = vmatmul.mubr.msk.f32.vlgmr.msra.gmra.mxu1 %vm1270_vm2, %v14831_v4  ;;  %25342 = vmatpush3.msra.mxu0 %v32567_v55  ;;  %v32591_v4 = vld [vmem:[#allocation51_spill] sm:$0xff] }
 0x9bb   :  { %v26206_v33 = vpop.eup %26205  ;;  %25347 = vmatpush3.msra.mxu1 %v32568_v50  ;;  %22365 = vrot.lane.b32.xlu1 %v32569_v58, %s26539_s20  ;;  %v14834_v45 = vmul.f32 %v26204_v18, %v30251_v48  ;;  %v32594_v18 = vld [vmem:[#allocation54_spill] sm:$0xff]  ;;  %v32597_v55 = vld [vmem:[#allocation59_spill] sm:$0xff] }
 0x9bc   :  { %25343 = vmatprep.mubr.msk.f32.mxu0 %vm26536_vm1, %v32518_v62  ;;  %25348 = vmatprep.mubr.msk.f32.mxu1 %vm26536_vm1, %v32518_v62  ;;  %v30551_v42 = vpop.permute.xlu1 %18761  ;;  %v14835_v59 = vmul.f32 %v26206_v33, %v30253_v28  ;;  %v32598_v58 = vld [vmem:[#allocation63_spill] sm:$0xff] }
 0x9bd   :  { %v30553_v41 = vpop.permute.xlu0 %18683  ;;  %25351 = vmatprep.subr.mxu0 %v32518_v62  ;;  %25356 = vmatprep.subr.mxu1 %v32518_v62 }
 0x9be   :  { %v26208_v47 = vpop.eup %26207  ;;  %25344 = vmatmul.mubr.msk.f32.vlgmr.msra.gmra.mxu0 %vm1270_vm2, %v14832_v49  ;;  %25349 = vmatmul.mubr.msk.f32.vlgmr.msra.gmra.mxu1 %vm1270_vm2, %v14833_v57  ;;  %v32595_v49 = vld [vmem:[#allocation49_spill] sm:$0xff] }
 0x9bf   :  { %v26210_v32 = vpop.eup %26209  ;;  %25352 = vmatpush3.msra.mxu0 %v32570_v0  ;;  %25357 = vmatpush3.msra.mxu1 %v32571_v34  ;;  %v14836_v63 = vmul.f32 %v26208_v47, %v30259_v25  ;;  %v32596_v57 = vld [vmem:[#allocation53_spill] sm:$0xff]  ;;  %v32599_v47 = vld [vmem:[#allocation58_spill] sm:$0xff] }
 0x9c0   :  { %25353 = vmatprep.mubr.msk.f32.mxu0 %vm26536_vm1, %v32518_v62  ;;  %25358 = vmatprep.mubr.msk.f32.mxu1 %vm26536_vm1, %v32518_v62  ;;  %v30567_v31 = vpop.permute.xlu1 %18759  ;;  %v14837_v14 = vmul.f32 %v26210_v32, %v30261_v27  ;;  %v32602_v32 = vld [vmem:[#allocation57_spill] sm:$0xff]  ;;  %v32603_v0 = vld [vmem:[#allocation158_spill] sm:$0xff] }
 0x9c1   :  { %v30569_v48 = vpop.permute.xlu0 %18681  ;;  %25361 = vmatprep.subr.mxu0 %v32518_v62  ;;  %25366 = vmatprep.subr.mxu1 %v32518_v62 }
 0x9c2   :  { %v26212_v28 = vpop.eup %26211  ;;  %25354 = vmatmul.mubr.msk.f32.vlgmr.msra.gmra.mxu0 %vm1270_vm2, %v14834_v45  ;;  %25359 = vmatmul.mubr.msk.f32.vlgmr.msra.gmra.mxu1 %vm1270_vm2, %v14835_v59  ;;  %v32600_v45 = vld [vmem:[#allocation62_spill] sm:$0xff]  ;;  %v32601_v59 = vld [vmem:[#allocation61_spill] sm:$0xff] }
 0x9c3   :  { %v26214_v35 = vpop.eup %26213  ;;  %25362 = vmatpush3.msra.mxu0 %v32572_v24  ;;  %25367 = vmatpush3.msra.mxu1 %v32573_v54  ;;  %v14838_v27 = vmul.f32 %v26212_v28, %v30267_v56  ;;  %v32576_v56 = vld [vmem:[#allocation139_spill] sm:$0xff] }
 0x9c4   :  { %25363 = vmatprep.mubr.msk.f32.mxu0 %vm26536_vm1, %v32518_v62  ;;  %25368 = vmatprep.mubr.msk.f32.mxu1 %vm26536_vm1, %v32518_v62  ;;  %v30583_v26 = vpop.permute.xlu1 %18917  ;;  %v14839_v1 = vmul.f32 %v26214_v35, %v30269_v38  ;;  %v32577_v38 = vld [vmem:[#allocation153_spill] sm:$0xff] }
 0x9c5   :  { %v30585_v25 = vpop.permute.xlu0 %18839  ;;  %25371 = vmatprep.subr.mxu0 %v32518_v62  ;;  %25376 = vmatprep.subr.mxu1 %v32518_v62 }
 0x9c6   :  { %25364 = vmatmul.mubr.msk.f32.vlgmr.msra.gmra.mxu0 %vm1270_vm2, %v14836_v63  ;;  %25369 = vmatmul.mubr.msk.f32.vlgmr.msra.gmra.mxu1 %vm1270_vm2, %v14837_v14 }
 0x9c7   :  { %25372 = vmatpush3.msra.mxu0 %v32574_v30  ;;  %25377 = vmatpush3.msra.mxu1 %v32575_v19 }
 0x9c8   :  { %25373 = vmatprep.mubr.msk.f32.mxu0 %vm26536_vm1, %v32518_v62  ;;  %25378 = vmatprep.mubr.msk.f32.mxu1 %vm26536_vm1, %v32518_v62  ;;  %v30599_v6 = vpop.permute.xlu1 %18915 }
 0x9c9   :  { %v30601_v10 = vpop.permute.xlu0 %18837  ;;  %25381 = vmatprep.subr.mxu0 %v32518_v62  ;;  %25386 = vmatprep.subr.mxu1 %v32518_v62 }
 0x9ca   :  { %25374 = vmatmul.mubr.msk.f32.vlgmr.msra.gmra.mxu0 %vm1270_vm2, %v14838_v27  ;;  %25379 = vmatmul.mubr.msk.f32.vlgmr.msra.gmra.mxu1 %vm1270_vm2, %v14839_v1 }
 0x9cb   :  { %25382 = vmatpush3.xpose.msk.msra.mxu0 %vm1270_vm2, %v32576_v56  ;;  %25387 = vmatpush3.xpose.msk.msra.mxu1 %vm1270_vm2, %v32577_v38 }
 0x9cc   :  { %25383 = vmatprep.mubr.msk.f32.mxu0 %vm26536_vm1, %v32518_v62  ;;  %25388 = vmatprep.mubr.msk.f32.mxu1 %vm26536_vm1, %v32518_v62  ;;  %v30615_v53 = vpop.permute.xlu1 %19073 }
 0x9cd   :  { %v30617_v40 = vpop.permute.xlu0 %18995  ;;  %25391 = vmatprep.subr.mxu0 %v32518_v62  ;;  %25396 = vmatprep.subr.mxu1 %v32518_v62 }
 0x9ce   :  { %25384 = vmatmul.mubr.msk.f32.vlgmr.msra.gmra.mxu0 %vm1270_vm2, %v32578_v5  ;;  %25389 = vmatmul.mubr.msk.f32.vlgmr.msra.gmra.mxu1 %vm1270_vm2, %v32579_v21 }
 0x9cf   :  { %25392 = vmatpush3.xpose.msk.msra.mxu0 %vm1270_vm2, %v32580_v51  ;;  %25397 = vmatpush3.xpose.msk.msra.mxu1 %vm1270_vm2, %v32581_v9 }
 0x9d0   :  { %25393 = vmatprep.mubr.msk.f32.mxu0 %vm26536_vm1, %v32518_v62  ;;  %25398 = vmatprep.mubr.msk.f32.mxu1 %vm26536_vm1, %v32518_v62  ;;  %v30633_v20 = vpop.permute.xlu1 %19071 }
 0x9d1   :  { %v30635_v11 = vpop.permute.xlu0 %18993  ;;  %25401 = vmatprep.subr.mxu0 %v32518_v62  ;;  %25406 = vmatprep.subr.mxu1 %v32518_v62 }
 0x9d2   :  { %25394 = vmatmul.mubr.msk.f32.vlgmr.msra.gmra.mxu0 %vm1270_vm2, %v32582_v16  ;;  %25399 = vmatmul.mubr.msk.f32.vlgmr.msra.gmra.mxu1 %vm1270_vm2, %v32583_v3 }
 0x9d3   :  { %25402 = vmatpush3.xpose.msk.msra.mxu0 %vm1270_vm2, %v32584_v12  ;;  %25407 = vmatpush3.xpose.msk.msra.mxu1 %vm1270_vm2, %v32585_v7 }
 0x9d4   :  { %25403 = vmatprep.mubr.msk.f32.mxu0 %vm26536_vm1, %v32518_v62  ;;  %25408 = vmatprep.mubr.msk.f32.mxu1 %vm26536_vm1, %v32518_v62  ;;  %v30651_v46 = vpop.permute.xlu1 %19229 }
 0x9d5   :  { %v30653_v61 = vpop.permute.xlu0 %19151  ;;  %25411 = vmatprep.subr.mxu0 %v32518_v62  ;;  %25416 = vmatprep.subr.mxu1 %v32518_v62 }
 0x9d6   :  { %25404 = vmatmul.mubr.msk.f32.vlgmr.msra.gmra.mxu0 %vm1270_vm2, %v32586_v8  ;;  %25409 = vmatmul.mubr.msk.f32.vlgmr.msra.gmra.mxu1 %vm1270_vm2, %v32587_v52 }
 0x9d7   :  { %25412 = vmatpush3.xpose.msk.msra.mxu0 %vm1270_vm2, %v32588_v43  ;;  %25417 = vmatpush3.xpose.msk.msra.mxu1 %vm1270_vm2, %v32589_v22 }
 0x9d8   :  { %25413 = vmatprep.mubr.msk.f32.mxu0 %vm26536_vm1, %v32518_v62  ;;  %25418 = vmatprep.mubr.msk.f32.mxu1 %vm26536_vm1, %v32518_v62  ;;  %v30669_v37 = vpop.permute.xlu1 %19227 }
 0x9d9   :  { %v30671_v23 = vpop.permute.xlu0 %19149  ;;  %25421 = vmatprep.subr.mxu0 %v32518_v62  ;;  %25426 = vmatprep.subr.mxu1 %v32518_v62 }
 0x9da   :  { %25414 = vmatmul.mubr.msk.f32.vlgmr.msra.gmra.mxu0 %vm1270_vm2, %v32590_v2  ;;  %25419 = vmatmul.mubr.msk.f32.vlgmr.msra.gmra.mxu1 %vm1270_vm2, %v32591_v4 }
 0x9db   :  { %25422 = vmatpush3.xpose.msk.msra.mxu0 %vm1270_vm2, %v32592_v29  ;;  %25427 = vmatpush3.xpose.msk.msra.mxu1 %vm1270_vm2, %v32593_v39 }
 0x9dc   :  { %25423 = vmatprep.mubr.msk.f32.mxu0 %vm26536_vm1, %v32518_v62  ;;  %25428 = vmatprep.mubr.msk.f32.mxu1 %vm26536_vm1, %v32518_v62  ;;  %v30687_v36 = vpop.permute.xlu1 %19385 }
 0x9dd   :  { %v30689_v44 = vpop.permute.xlu0 %19307  ;;  %25431 = vmatprep.subr.mxu0 %v32518_v62  ;;  %25436 = vmatprep.subr.mxu1 %v32518_v62 }
 0x9de   :  { %25424 = vmatmul.mubr.msk.f32.vlgmr.msra.gmra.mxu0 %vm1270_vm2, %v32594_v18  ;;  %25429 = vmatmul.mubr.msk.f32.vlgmr.msra.gmra.mxu1 %vm1270_vm2, %v32595_v49 }
 0x9df   :  { %25432 = vmatpush3.xpose.msk.msra.mxu0 %vm1270_vm2, %v32596_v57  ;;  %25437 = vmatpush3.xpose.msk.msra.mxu1 %vm1270_vm2, %v32597_v55 }
 0x9e0   :  { %25433 = vmatprep.mubr.msk.f32.mxu0 %vm26536_vm1, %v32518_v62  ;;  %25438 = vmatprep.mubr.msk.f32.mxu1 %vm26536_vm1, %v32518_v62  ;;  %v30705_v33 = vpop.permute.xlu1 %19383 }
 0x9e1   :  { %v30707_v50 = vpop.permute.xlu0 %19305  ;;  %25441 = vmatprep.subr.mxu0 %v32518_v62  ;;  %25446 = vmatprep.subr.mxu1 %v32518_v62 }
 0x9e2   :  { %25434 = vmatmul.mubr.msk.f32.vlgmr.msra.gmra.mxu0 %vm1270_vm2, %v32598_v58  ;;  %25439 = vmatmul.mubr.msk.f32.vlgmr.msra.gmra.mxu1 %vm1270_vm2, %v32599_v47 }
 0x9e3   :  { %25442 = vmatpush3.xpose.msk.msra.mxu0 %vm1270_vm2, %v32600_v45  ;;  %25447 = vmatpush3.xpose.msk.msra.mxu1 %vm1270_vm2, %v32601_v59 }
 0x9e4   :  { %25443 = vmatprep.mubr.msk.f32.mxu0 %vm26536_vm1, %v32518_v62  ;;  %25448 = vmatprep.mubr.msk.f32.mxu1 %vm26536_vm1, %v32518_v62  ;;  %v19542_v34 = vpop.permute.xlu1 %19541 }
 0x9e5   :  { %25451 = vmatprep.subr.mxu0 %v32518_v62  ;;  %25456 = vmatprep.subr.mxu1 %v32518_v62  ;;  %v19464_v28 = vpop.permute.xlu0 %19463 }
 0x9e6   :  { %25444 = vmatmul.mubr.msk.f32.vlgmr.msra.gmra.mxu0 %vm1270_vm2, %v32602_v32  ;;  %25449 = vmatmul.mubr.msk.f32.vlgmr.msra.gmra.mxu1 %vm1270_vm2, %v32603_v0 }
 0x9e7   :  { %25452 = vmatpush3.xpose.msk.msra.mxu0 %vm1270_vm2, %v30321_v15  ;;  %25457 = vmatpush3.xpose.msk.msra.mxu1 %vm1270_vm2, %v30317_v60 }
 0x9e8   :  { %25453 = vmatprep.mubr.msk.f32.mxu0 %vm26536_vm1, %v32518_v62  ;;  %25458 = vmatprep.mubr.msk.f32.mxu1 %vm26536_vm1, %v32518_v62  ;;  %v19540_v60 = vpop.permute.xlu1 %19539 }
 0x9e9   :  { %25461 = vmatprep.subr.mxu0 %v32518_v62  ;;  %25466 = vmatprep.subr.mxu1 %v32518_v62  ;;  %v19462_v15 = vpop.permute.xlu0 %19461 }
 0x9ea   :  { %25454 = vmatmul.mubr.msk.f32.vlgmr.msra.gmra.mxu0 %vm1270_vm2, %v30535_v13  ;;  %25459 = vmatmul.mubr.msk.f32.vlgmr.msra.gmra.mxu1 %vm1270_vm2, %v30533_v17 }
 0x9eb   :  { %25462 = vmatpush3.xpose.msk.msra.mxu0 %vm1270_vm2, %v30553_v41  ;;  %25467 = vmatpush3.xpose.msk.msra.mxu1 %vm1270_vm2, %v30551_v42 }
 0x9ec   :  { %25463 = vmatprep.mubr.msk.f32.mxu0 %vm26536_vm1, %v32518_v62  ;;  %25468 = vmatprep.mubr.msk.f32.mxu1 %vm26536_vm1, %v32518_v62  ;;  %v19698_v17 = vpop.permute.xlu1 %19697 }
 0x9ed   :  { %25471 = vmatprep.subr.mxu0 %v32518_v62  ;;  %25476 = vmatprep.subr.mxu1 %v32518_v62  ;;  %v19620_v13 = vpop.permute.xlu0 %19619 }
 0x9ee   :  { %25464 = vmatmul.mubr.msk.f32.vlgmr.msra.gmra.mxu0 %vm1270_vm2, %v30569_v48  ;;  %25469 = vmatmul.mubr.msk.f32.vlgmr.msra.gmra.mxu1 %vm1270_vm2, %v30567_v31 }
 0x9ef   :  { %25472 = vmatpush3.xpose.msk.msra.mxu0 %vm1270_vm2, %v30585_v25  ;;  %25477 = vmatpush3.xpose.msk.msra.mxu1 %vm1270_vm2, %v30583_v26 }
 0x9f0   :  { %25473 = vmatprep.mubr.msk.f32.mxu0 %vm26536_vm1, %v32518_v62  ;;  %25478 = vmatprep.mubr.msk.f32.mxu1 %vm26536_vm1, %v32518_v62  ;;  %v19696_v42 = vpop.permute.xlu1 %19695 }
 0x9f1   :  { %25481 = vmatprep.subr.mxu0 %v32518_v62  ;;  %25486 = vmatprep.subr.mxu1 %v32518_v62  ;;  %v19618_v41 = vpop.permute.xlu0 %19617 }
 0x9f2   :  { %25474 = vmatmul.mubr.msk.f32.vlgmr.msra.gmra.mxu0 %vm1270_vm2, %v30601_v10  ;;  %25479 = vmatmul.mubr.msk.f32.vlgmr.msra.gmra.mxu1 %vm1270_vm2, %v30599_v6 }
 0x9f3   :  { %25482 = vmatpush3.xpose.msk.msra.mxu0 %vm1270_vm2, %v30617_v40  ;;  %25487 = vmatpush3.xpose.msk.msra.mxu1 %vm1270_vm2, %v30615_v53 }
 0x9f4   :  { %25483 = vmatprep.mubr.msk.f32.mxu0 %vm26536_vm1, %v32518_v62  ;;  %25488 = vmatprep.mubr.msk.f32.mxu1 %vm26536_vm1, %v32518_v62  ;;  %v19854_v31 = vpop.permute.xlu1 %19853 }
 0x9f5   :  { %25491 = vmatprep.subr.mxu0 %v32518_v62  ;;  %25496 = vmatprep.subr.mxu1 %v32518_v62  ;;  %v19776_v48 = vpop.permute.xlu0 %19775 }
 0x9f6   :  { %25484 = vmatmul.mubr.msk.f32.vlgmr.msra.gmra.mxu0 %vm1270_vm2, %v30635_v11  ;;  %25489 = vmatmul.mubr.msk.f32.vlgmr.msra.gmra.mxu1 %vm1270_vm2, %v30633_v20 }
 0x9f7   :  { %25492 = vmatpush3.xpose.msk.msra.mxu0 %vm1270_vm2, %v30653_v61  ;;  %25497 = vmatpush3.xpose.msk.msra.mxu1 %vm1270_vm2, %v30651_v46 }
 0x9f8   :  { %25493 = vmatprep.mubr.msk.f32.mxu0 %vm26536_vm1, %v32518_v62  ;;  %25498 = vmatprep.mubr.msk.f32.mxu1 %vm26536_vm1, %v32518_v62  ;;  %v19852_v63 = vpop.permute.xlu1 %19851 }
 0x9f9   :  { %25501 = vmatprep.subr.mxu0 %v32518_v62  ;;  %25506 = vmatprep.subr.mxu1 %v32518_v62  ;;  %v19774_v14 = vpop.permute.xlu0 %19773 }
 0x9fa   :  { %25494 = vmatmul.mubr.msk.f32.vlgmr.msra.gmra.mxu0 %vm1270_vm2, %v30671_v23  ;;  %25499 = vmatmul.mubr.msk.f32.vlgmr.msra.gmra.mxu1 %vm1270_vm2, %v30669_v37 }
 0x9fb   :  { %25502 = vmatpush3.xpose.msk.msra.mxu0 %vm1270_vm2, %v30689_v44  ;;  %25507 = vmatpush3.xpose.msk.msra.mxu1 %vm1270_vm2, %v30687_v36 }
 0x9fc   :  { %25503 = vmatprep.mubr.msk.f32.mxu0 %vm26536_vm1, %v32518_v62  ;;  %25508 = vmatprep.mubr.msk.f32.mxu1 %vm26536_vm1, %v32518_v62  ;;  %v20390_v35 = vpop.permute.xlu1 %20389 }
 0x9fd   :  { %25511 = vmatprep.subr.mxu0 %v32518_v62  ;;  %25516 = vmatprep.subr.mxu1 %v32518_v62  ;;  %v20314_v24 = vpop.permute.xlu0 %20313 }
 0x9fe   :  { %25504 = vmatmul.mubr.msk.f32.vlgmr.msra.gmra.mxu0 %vm1270_vm2, %v30707_v50  ;;  %25509 = vmatmul.mubr.msk.f32.vlgmr.msra.gmra.mxu1 %vm1270_vm2, %v30705_v33 }
 0x9ff   :  { %25512 = vmatpush3.xpose.msk.msra.mxu0 %vm1270_vm2, %v19464_v28  ;;  %25517 = vmatpush3.xpose.msk.msra.mxu1 %vm1270_vm2, %v19542_v34 }
 0xa00   :  { %25513 = vmatprep.mubr.msk.f32.mxu0 %vm26536_vm1, %v32518_v62  ;;  %25518 = vmatprep.mubr.msk.f32.mxu1 %vm26536_vm1, %v32518_v62 }
 0xa01   :  { %25521 = vmatprep.subr.mxu0 %v32518_v62  ;;  %25526 = vmatprep.subr.mxu1 %v32518_v62 }
 0xa02   :  { %25514 = vmatmul.mubr.msk.f32.vlgmr.msra.gmra.mxu0 %vm1270_vm2, %v19462_v15  ;;  %25519 = vmatmul.mubr.msk.f32.vlgmr.msra.gmra.mxu1 %vm1270_vm2, %v19540_v60 }
 0xa03   :  { %25522 = vmatpush3.xpose.msk.msra.mxu0 %vm1270_vm2, %v19620_v13  ;;  %25527 = vmatpush3.xpose.msk.msra.mxu1 %vm1270_vm2, %v19698_v17 }
 0xa04   :  { %25523 = vmatprep.mubr.msk.f32.mxu0 %vm26536_vm1, %v32518_v62  ;;  %25528 = vmatprep.mubr.msk.f32.mxu1 %vm26536_vm1, %v32518_v62 }
 0xa05   :  { %25531 = vmatprep.subr.mxu0 %v32518_v62  ;;  %25536 = vmatprep.subr.mxu1 %v32518_v62 }
 0xa06   :  { %25524 = vmatmul.mubr.msk.f32.vlgmr.msra.gmra.mxu0 %vm1270_vm2, %v19618_v41  ;;  %25529 = vmatmul.mubr.msk.f32.vlgmr.msra.gmra.mxu1 %vm1270_vm2, %v19696_v42 }
 0xa07   :  { %25532 = vmatpush3.xpose.msk.msra.mxu0 %vm1270_vm2, %v19776_v48  ;;  %25537 = vmatpush3.xpose.msk.msra.mxu1 %vm1270_vm2, %v19854_v31 }
 0xa08   :  { %25533 = vmatprep.mubr.msk.f32.mxu0 %vm26536_vm1, %v32518_v62  ;;  %25538 = vmatprep.mubr.msk.f32.mxu1 %vm26536_vm1, %v32518_v62 }
 0xa09   :  { %25541 = vmatprep.subr.mxu0 %v32518_v62  ;;  %25546 = vmatprep.subr.mxu1 %v32518_v62 }
 0xa0a   :  { %25534 = vmatmul.mubr.msk.f32.vlgmr.msra.gmra.mxu0 %vm1270_vm2, %v19774_v14  ;;  %25539 = vmatmul.mubr.msk.f32.vlgmr.msra.gmra.mxu1 %vm1270_vm2, %v19852_v63 }
 0xa0b   :  { %25542 = vmatpush3.msra.mxu0 %v20314_v24  ;;  %25547 = vmatpush3.msra.mxu1 %v20390_v35 }
 0xa0c   :  { %25543 = vmatprep.mubr.msk.f32.mxu0 %vm26536_vm1, %v32518_v62  ;;  %25548 = vmatprep.mubr.msk.f32.mxu1 %vm26536_vm1, %v32518_v62 }
 0xa0d   :  { %25551 = vmatprep.subr.mxu0 %v32518_v62  ;;  %25556 = vmatprep.subr.mxu1 %v32518_v62 }
 0xa3d   :  { %v30849_v54 = vpop.f32.mrf.mxu1 }
 0xa3e   :  { %v30851_v26 = vpop.f32.mrf.mxu0 }
 0xa3f   :  { %v25230_v25 = vpop.f32.mrf.mxu1 }
 0xa40   :  { %v25225_v27 = vpop.f32.mrf.mxu0 }
 0xa42   :  { %v30853_v1 = vpop.f32.mrf.mxu0 }
 0xa44   :  { %v25235_v30 = vpop.f32.mrf.mxu0 }
 0xa46   :  { %v30855_v19 = vpop.f32.mrf.mxu1 }
 0xa48   :  { %v25240_v6 = vpop.f32.mrf.mxu1 }
 0xa4a   :  { %v30857_v10 = vpop.f32.mrf.mxu1 }
 0xa4b   :  { %v30859_v56 = vpop.f32.mrf.mxu0 }
 0xa4c   :  { %v25250_v38 = vpop.f32.mrf.mxu1 }
 0xa4d   :  { %v25245_v53 = vpop.f32.mrf.mxu0 }
 0xa4f   :  { %v30861_v40 = vpop.f32.mrf.mxu1 }
 0xa51   :  { %v30863_v5 = vpop.f32.mrf.mxu0  ;;  %v25260_v21 = vpop.f32.mrf.mxu1 }
 0xa53   :  { %v25255_v51 = vpop.f32.mrf.mxu0 }
 0xa55   :  { %v30865_v9 = vpop.f32.mrf.mxu1 }
 0xa56   :  { %v30867_v20 = vpop.f32.mrf.mxu0 }
 0xa57   :  { %v25270_v11 = vpop.f32.mrf.mxu1 }
 0xa58   :  { %v25265_v16 = vpop.f32.mrf.mxu0 }
 0xa5a   :  { %v30869_v3 = vpop.f32.mrf.mxu1 }
 0xa5b   :  { %v30871_v12 = vpop.f32.mrf.mxu0 }
 0xa5c   :  { %v25280_v7 = vpop.f32.mrf.mxu1 }
 0xa5d   :  { %v25275_v46 = vpop.f32.mrf.mxu0 }
 0xa5f   :  { %v30873_v61 = vpop.f32.mrf.mxu1 }
 0xa61   :  { %v30875_v8 = vpop.f32.mrf.mxu0  ;;  %v25290_v52 = vpop.f32.mrf.mxu1 }
 0xa63   :  { %v25285_v43 = vpop.f32.mrf.mxu0 }
 0xa65   :  { %v30877_v22 = vpop.f32.mrf.mxu0 }
 0xa66   :  { %v30879_v37 = vpop.f32.mrf.mxu1 }
 0xa67   :  { %v25295_v23 = vpop.f32.mrf.mxu0 }
 0xa68   :  { %v25300_v2 = vpop.f32.mrf.mxu1 }
 0xa6a   :  { %v30881_v4 = vpop.f32.mrf.mxu0 }
 0xa6b   :  { %32604 = vst [vmem:[#allocation71_spill] sm:$0xff] %v30881_v4  ;;  %v30883_v29 = vpop.f32.mrf.mxu1 }
 0xa6c   :  { %32605 = vst [vmem:[#allocation22_spill] sm:$0xff] %v30883_v29  ;;  %v25305_v39 = vpop.f32.mrf.mxu0 }
 0xa6d   :  { %v25310_v36 = vpop.f32.mrf.mxu1 }
 0xa6f   :  { %v30885_v44 = vpop.f32.mrf.mxu0 }
 0xa70   :  { %32606 = vst [vmem:[#allocation28_spill] sm:$0xff] %v30885_v44  ;;  %v30887_v18 = vpop.f32.mrf.mxu1 }
 0xa71   :  { %32607 = vst [vmem:[#allocation69_spill] sm:$0xff] %v30887_v18  ;;  %v25315_v49 = vpop.f32.mrf.mxu0 }
 0xa72   :  { %v25320_v57 = vpop.f32.mrf.mxu1 }
 0xa74   :  { %v30889_v55 = vpop.f32.mrf.mxu0 }
 0xa75   :  { %32608 = vst [vmem:[#allocation70_spill] sm:$0xff] %v30889_v55  ;;  %v30891_v33 = vpop.f32.mrf.mxu1 }
 0xa76   :  { %32609 = vst [vmem:[#allocation26_spill] sm:$0xff] %v30891_v33  ;;  %v25325_v50 = vpop.f32.mrf.mxu0 }
 0xa77   :  { %v25330_v58 = vpop.f32.mrf.mxu1 }
 0xa79   :  { %v30893_v47 = vpop.f32.mrf.mxu0 }
 0xa7a   :  { %32610 = vst [vmem:[#allocation27_spill] sm:$0xff] %v30893_v47  ;;  %v30895_v45 = vpop.f32.mrf.mxu1 }
 0xa7b   :  { %32611 = vst [vmem:[#allocation68_spill] sm:$0xff] %v30895_v45  ;;  %v25335_v59 = vpop.f32.mrf.mxu0 }
 0xa7c   :  { %v25340_v32 = vpop.f32.mrf.mxu1 }
 0xa7e   :  { %v30897_v0 = vpop.f32.mrf.mxu0  ;;  %v30899_v34 = vpop.f32.mrf.mxu1 }
 0xa7f   :  { %32612 = vst [vmem:[#allocation77_spill] sm:$0xff] %v30897_v0  ;;  %32613 = vst [vmem:[#allocation25_spill] sm:$0xff] %v30899_v34 }
 0xa80   :  { %v25345_v28 = vpop.f32.mrf.mxu0  ;;  %v25350_v60 = vpop.f32.mrf.mxu1 }
 0xa82   :  { %v30901_v15 = vpop.f32.mrf.mxu0  ;;  %v30903_v17 = vpop.f32.mrf.mxu1 }
 0xa83   :  { %32614 = vst [vmem:[#allocation32_spill] sm:$0xff] %v30901_v15  ;;  %32615 = vst [vmem:[#allocation73_spill] sm:$0xff] %v30903_v17 }
 0xa84   :  { %v25355_v13 = vpop.f32.mrf.mxu0  ;;  %v25360_v42 = vpop.f32.mrf.mxu1 }
 0xa86   :  { %v30905_v41 = vpop.f32.mrf.mxu0  ;;  %v30907_v31 = vpop.f32.mrf.mxu1 }
 0xa87   :  { %32616 = vst [vmem:[#allocation76_spill] sm:$0xff] %v30905_v41  ;;  %32617 = vst [vmem:[#allocation30_spill] sm:$0xff] %v30907_v31 }
 0xa88   :  { %v25365_v48 = vpop.f32.mrf.mxu0  ;;  %v25370_v63 = vpop.f32.mrf.mxu1 }
 0xa8a   :  { %v30909_v14 = vpop.f32.mrf.mxu0  ;;  %v30911_v35 = vpop.f32.mrf.mxu1 }
 0xa8b   :  { %32618 = vst [vmem:[#allocation31_spill] sm:$0xff] %v30909_v14  ;;  %32619 = vst [vmem:[#allocation72_spill] sm:$0xff] %v30911_v35 }
 0xa8c   :  { %v25375_v24 = vpop.f32.mrf.mxu0  ;;  %v25380_v25 = vpop.f32.mrf.mxu1 }
 0xa8e   :  { %v17507_v27 = vpop.f32.mrf.mxu0  ;;  %v17585_v30 = vpop.f32.mrf.mxu1 }
 0xa8f   :  { %v30913_v6 = vmul.f32 0.35355338, %v17507_v27  ;;  %v30915_v38 = vmul.f32 0.35355338, %v17585_v30 }
 0xa90   :  { %v25385_v53 = vpop.f32.mrf.mxu0  ;;  %v25390_v21 = vpop.f32.mrf.mxu1 }
 0xa91   :  { %v19961_v51 = vsel %vm1270_vm2, %v30913_v6, -inf  ;;  %v19964_v11 = vsel %vm1270_vm2, %v30915_v38, -inf }
 0xa92   :  { %19962 = vmax.xlane.f32.xlu0 %v19961_v51  ;;  %v17663_v16 = vpop.f32.mrf.mxu0  ;;  %19965 = vmax.xlane.f32.xlu1 %v19964_v11  ;;  %v17741_v7 = vpop.f32.mrf.mxu1 }
 0xa93   :  { %v30921_v46 = vmul.f32 0.35355338, %v17663_v16  ;;  %v30923_v23 = vmul.f32 0.35355338, %v17741_v7 }
 0xa94   :  { %v25395_v52 = vpop.f32.mrf.mxu0  ;;  %v25400_v43 = vpop.f32.mrf.mxu1 }
 0xa95   :  { %v19967_v2 = vsel %vm1270_vm2, %v30921_v46, -inf  ;;  %v19970_v59 = vsel %vm1270_vm2, %v30923_v23, -inf }
 0xa96   :  { %19968 = vmax.xlane.f32.xlu0 %v19967_v2  ;;  %v17819_v39 = vpop.f32.mrf.mxu0  ;;  %v17897_v36 = vpop.f32.mrf.mxu1 }
 0xa97   :  { %v30927_v49 = vmul.f32 0.35355338, %v17897_v36  ;;  %v30929_v58 = vmul.f32 0.35355338, %v17819_v39 }
 0xa98   :  { %v25405_v57 = vpop.f32.mrf.mxu0  ;;  %v25410_v50 = vpop.f32.mrf.mxu1 }
 0xa99   :  { %v19976_v32 = vsel %vm1270_vm2, %v30927_v49, -inf  ;;  %v19973_v24 = vsel %vm1270_vm2, %v30929_v58, -inf }
 0xa9a   :  { %v17975_v28 = vpop.f32.mrf.mxu0  ;;  %19971 = vmax.xlane.f32.xlu0 %v19970_v59  ;;  %19977 = vmax.xlane.f32.xlu1 %v19976_v32  ;;  %v18053_v60 = vpop.f32.mrf.mxu1 }
 0xa9b   :  { %v30935_v13 = vmul.f32 0.35355338, %v18053_v60  ;;  %v30937_v63 = vmul.f32 0.35355338, %v17975_v28 }
 0xa9c   :  { %v25415_v42 = vpop.f32.mrf.mxu0  ;;  %v25420_v48 = vpop.f32.mrf.mxu1 }
 0xa9d   :  { %v19982_v25 = vsel %vm1270_vm2, %v30935_v13, -inf  ;;  %v19979_v16 = vsel %vm1270_vm2, %v30937_v63, -inf }
 0xa9e   :  { %v18131_v27 = vpop.f32.mrf.mxu0  ;;  %19974 = vmax.xlane.f32.xlu0 %v19973_v24  ;;  %19983 = vmax.xlane.f32.xlu1 %v19982_v25  ;;  %v18209_v30 = vpop.f32.mrf.mxu1 }
 0xa9f   :  { %v30943_v53 = vmul.f32 0.35355338, %v18209_v30  ;;  %v30945_v11 = vmul.f32 0.35355338, %v18131_v27 }
 0xaa0   :  { %v25425_v21 = vpop.f32.mrf.mxu0  ;;  %v25430_v51 = vpop.f32.mrf.mxu1 }
 0xaa1   :  { %v19988_v7 = vsel %vm1270_vm2, %v30943_v53, -inf  ;;  %v19985_v50 = vsel %vm1270_vm2, %v30945_v11, -inf }
 0xaa2   :  { %v18287_v52 = vpop.f32.mrf.mxu0  ;;  %19980 = vmax.xlane.f32.xlu0 %v19979_v16  ;;  %19989 = vmax.xlane.f32.xlu1 %v19988_v7  ;;  %v18365_v43 = vpop.f32.mrf.mxu1 }
 0xaa3   :  { %v30951_v2 = vmul.f32 0.35355338, %v18365_v43  ;;  %v30953_v57 = vmul.f32 0.35355338, %v18287_v52 }
 0xaa4   :  { %v25435_v39 = vpop.f32.mrf.mxu0  ;;  %v25440_v36 = vpop.f32.mrf.mxu1 }
 0xaa5   :  { %v19994_v59 = vsel %vm1270_vm2, %v30951_v2, -inf  ;;  %v19991_v25 = vsel %vm1270_vm2, %v30953_v57, -inf }
 0xaa6   :  { %v18443_v32 = vpop.f32.mrf.mxu0  ;;  %19986 = vmax.xlane.f32.xlu0 %v19985_v50  ;;  %19995 = vmax.xlane.f32.xlu1 %v19994_v59  ;;  %v18521_v28 = vpop.f32.mrf.mxu1 }
 0xaa7   :  { %v30959_v60 = vmul.f32 0.35355338, %v18521_v28  ;;  %v30961_v24 = vmul.f32 0.35355338, %v18443_v32 }
 0xaa8   :  { %v25445_v42 = vpop.f32.mrf.mxu0  ;;  %v25450_v48 = vpop.f32.mrf.mxu1 }
 0xaa9   :  { %v20000_v27 = vsel %vm1270_vm2, %v30959_v60, -inf  ;;  %v19997_v43 = vsel %vm1270_vm2, %v30961_v24, -inf }
 0xaaa   :  { %19992 = vmax.xlane.f32.xlu0 %v19991_v25  ;;  %20001 = vmax.xlane.f32.xlu1 %v20000_v27  ;;  %v18599_v30 = vpop.f32.mrf.mxu0  ;;  %v18677_v21 = vpop.f32.mrf.mxu1 }
 0xaab   :  { %v30967_v51 = vmul.f32 0.35355338, %v18677_v21  ;;  %v30969_v52 = vmul.f32 0.35355338, %v18599_v30 }
 0xaac   :  { %v25455_v16 = vpop.f32.mrf.mxu0  ;;  %v25460_v7 = vpop.f32.mrf.mxu1 }
 0xaad   :  { %v20006_v39 = vsel %vm1270_vm2, %v30967_v51, -inf  ;;  %v20003_v25 = vsel %vm1270_vm2, %v30969_v52, -inf }
 0xaae   :  { %19998 = vmax.xlane.f32.xlu0 %v19997_v43  ;;  %20007 = vmax.xlane.f32.xlu1 %v20006_v39  ;;  %v18755_v36 = vpop.f32.mrf.mxu0  ;;  %v18833_v50 = vpop.f32.mrf.mxu1 }
 0xaaf   :  { %v30975_v59 = vmul.f32 0.35355338, %v18833_v50  ;;  %v30977_v42 = vmul.f32 0.35355338, %v18755_v36 }
 0xab0   :  { %v25465_v32 = vpop.f32.mrf.mxu0  ;;  %v25470_v28 = vpop.f32.mrf.mxu1 }
 0xab1   :  { %v20012_v48 = vsel %vm1270_vm2, %v30975_v59, -inf  ;;  %v20009_v36 = vsel %vm1270_vm2, %v30977_v42, -inf }
 0xab2   :  { %20013 = vmax.xlane.f32.xlu1 %v20012_v48  ;;  %v18989_v27 = vpop.f32.mrf.mxu1  ;;  %20004 = vmax.xlane.f32.xlu0 %v20003_v25  ;;  %v18911_v30 = vpop.f32.mrf.mxu0 }
 0xab3   :  { %v30983_v21 = vmul.f32 0.35355338, %v18989_v27  ;;  %v30985_v43 = vmul.f32 0.35355338, %v18911_v30 }
 0xab4   :  { %v25475_v16 = vpop.f32.mrf.mxu0  ;;  %v25480_v7 = vpop.f32.mrf.mxu1 }
 0xab5   :  { %v20018_v39 = vsel %vm1270_vm2, %v30983_v21, -inf  ;;  %v20015_v16 = vsel %vm1270_vm2, %v30985_v43, -inf }
 0xab6   :  { %20019 = vmax.xlane.f32.xlu1 %v20018_v39  ;;  %v19145_v50 = vpop.f32.mrf.mxu1  ;;  %20010 = vmax.xlane.f32.xlu0 %v20009_v36  ;;  %v19067_v32 = vpop.f32.mrf.mxu0 }
 0xab7   :  { %v30991_v28 = vmul.f32 0.35355338, %v19145_v50  ;;  %v30993_v27 = vmul.f32 0.35355338, %v19067_v32 }
 0xab8   :  { %v25485_v48 = vpop.f32.mrf.mxu0  ;;  %v25490_v25 = vpop.f32.mrf.mxu1 }
 0xab9   :  { %v20024_v30 = vsel %vm1270_vm2, %v30991_v28, -inf  ;;  %v20021_v48 = vsel %vm1270_vm2, %v30993_v27, -inf }
 0xaba   :  { %20025 = vmax.xlane.f32.xlu1 %v20024_v30  ;;  %v19301_v7 = vpop.f32.mrf.mxu1  ;;  %20016 = vmax.xlane.f32.xlu0 %v20015_v16  ;;  %v19223_v14 = vpop.f32.mrf.mxu0 }
 0xabb   :  { %v30999_v39 = vmul.f32 0.35355338, %v19301_v7  ;;  %v31001_v50 = vmul.f32 0.35355338, %v19223_v14 }
 0xabc   :  { %v25495_v36 = vpop.f32.mrf.mxu0  ;;  %v25500_v41 = vpop.f32.mrf.mxu1 }
 0xabd   :  { %v20030_v32 = vsel %vm1270_vm2, %v30999_v39, -inf  ;;  %v20027_v14 = vsel %vm1270_vm2, %v31001_v50, -inf }
 0xabe   :  { %20031 = vmax.xlane.f32.xlu1 %v20030_v32  ;;  %v19457_v25 = vpop.f32.mrf.mxu1  ;;  %20022 = vmax.xlane.f32.xlu0 %v20021_v48  ;;  %v19379_v35 = vpop.f32.mrf.mxu0 }
 0xabf   :  { %v31007_v30 = vmul.f32 0.35355338, %v19457_v25  ;;  %v31009_v7 = vmul.f32 0.35355338, %v19379_v35 }
 0xac0   :  { %v25505_v16 = vpop.f32.mrf.mxu0  ;;  %v25510_v31 = vpop.f32.mrf.mxu1 }
 0xac1   :  { %v20036_v41 = vsel %vm1270_vm2, %v31007_v30, -inf  ;;  %v20033_v35 = vsel %vm1270_vm2, %v31009_v7, -inf }
 0xac2   :  { %20037 = vmax.xlane.f32.xlu1 %v20036_v41  ;;  %v19613_v36 = vpop.f32.mrf.mxu1  ;;  %20028 = vmax.xlane.f32.xlu0 %v20027_v14  ;;  %v19535_v15 = vpop.f32.mrf.mxu0 }
 0xac3   :  { %v31015_v32 = vmul.f32 0.35355338, %v19613_v36  ;;  %v31017_v25 = vmul.f32 0.35355338, %v19535_v15  ;;  %v31025_v36 = vpop.permute.xlu1 %20541 }
 0xac4   :  { %v25515_v48 = vpop.f32.mrf.mxu0  ;;  %v25520_v0 = vpop.f32.mrf.mxu1 }
 0xac5   :  { %v20042_v31 = vsel %vm1270_vm2, %v31015_v32, -inf  ;;  %v20039_v15 = vsel %vm1270_vm2, %v31017_v25, -inf }
 0xac6   :  { %20043 = vmax.xlane.f32.xlu1 %v20042_v31  ;;  %v19769_v16 = vpop.f32.mrf.mxu1  ;;  %20034 = vmax.xlane.f32.xlu0 %v20033_v35  ;;  %v19691_v17 = vpop.f32.mrf.mxu0 }
 0xac7   :  { %v31023_v41 = vmul.f32 0.35355338, %v19769_v16  ;;  %v31027_v48 = vmul.f32 0.35355338, %v19691_v17  ;;  %v31041_v45 = vpop.permute.xlu1 %20693 }
 0xac8   :  { %v25525_v14 = vpop.f32.mrf.mxu0  ;;  %v25530_v34 = vpop.f32.mrf.mxu1  ;;  %32620 = vst [vmem:[#allocation66_spill] sm:$0xff] %v31041_v45 }
 0xac9   :  { %v20048_v0 = vsel %vm1270_vm2, %v31023_v41, -inf  ;;  %v20045_v17 = vsel %vm1270_vm2, %v31027_v48, -inf }
 0xaca   :  { %20049 = vmax.xlane.f32.xlu1 %v20048_v0  ;;  %v19925_v47 = vpop.f32.mrf.mxu1  ;;  %20040 = vmax.xlane.f32.xlu0 %v20039_v15  ;;  %v19847_v31 = vpop.f32.mrf.mxu0 }
 0xacb   :  { %v31033_v35 = vmul.f32 0.35355338, %v19925_v47  ;;  %v31035_v14 = vmul.f32 0.35355338, %v19847_v31  ;;  %v31045_v47 = vpop.permute.xlu0 %20465  ;;  %v31047_v15 = vpop.permute.xlu1 %20845 }
 0xacc   :  { %v25535_v16 = vpop.f32.mrf.mxu0  ;;  %v25540_v55 = vpop.f32.mrf.mxu1  ;;  %32621 = vst [vmem:[#allocation113_spill] sm:$0xff] %v31045_v47  ;;  %32622 = vst [vmem:[#allocation79_spill] sm:$0xff] %v31047_v15 }
 0xacd   :  { %v20054_v34 = vsel %vm1270_vm2, %v31033_v35, -inf  ;;  %v20051_v0 = vsel %vm1270_vm2, %v31035_v14, -inf  ;;  %v32625_v16 = vld [vmem:[#allocation107_spill] sm:$0xff] }
 0xace   :  { %20055 = vmax.xlane.f32.xlu1 %v20054_v34  ;;  %20046 = vmax.xlane.f32.xlu0 %v20045_v17 }
 0xacf   :  { %v31049_v55 = vpop.permute.xlu0 %20617  ;;  %v31051_v31 = vpop.permute.xlu1 %20997 }
 0xad0   :  { %32623 = vst [vmem:[#allocation29_spill] sm:$0xff] %v31049_v55  ;;  %32624 = vst [vmem:[#allocation117_spill] sm:$0xff] %v31051_v31 }
 0xad2   :  { %20052 = vmax.xlane.f32.xlu0 %v20051_v0  ;;  %v32630_v0 = vld [vmem:[#allocation105_spill] sm:$0xff] }
 0xad3   :  { %v31055_v33 = vpop.permute.xlu0 %20769  ;;  %v31057_v34 = vpop.permute.xlu1 %21149 }
 0xad4   :  { %32626 = vst [vmem:[#allocation78_spill] sm:$0xff] %v31055_v33  ;;  %32627 = vst [vmem:[#allocation75_spill] sm:$0xff] %v31057_v34 }
 0xad7   :  { %v31059_v17 = vpop.permute.xlu0 %20921  ;;  %v31061_v44 = vpop.permute.xlu1 %21301 }
 0xad8   :  { %32628 = vst [vmem:[#allocation109_spill] sm:$0xff] %v31059_v17  ;;  %32629 = vst [vmem:[#allocation83_spill] sm:$0xff] %v31061_v44 }
 0xadb   :  { %v31065_v45 = vpop.permute.xlu0 %21073  ;;  %v31067_v15 = vpop.permute.xlu1 %21453 }
 0xadc   :  { %32631 = vst [vmem:[#allocation74_spill] sm:$0xff] %v31065_v45  ;;  %32632 = vst [vmem:[#allocation128_spill] sm:$0xff] %v31067_v15 }
 0xadf   :  { %22517 = vrot.lane.b32.xlu1 %v32625_v16, %s26539_s20  ;;  %v31069_v4 = vpop.permute.xlu0 %21225  ;;  %v31071_v31 = vpop.permute.xlu1 %21605 }
 0xae0   :  { %32633 = vst [vmem:[#allocation82_spill] sm:$0xff] %v31069_v4  ;;  %32634 = vst [vmem:[#allocation130_spill] sm:$0xff] %v31071_v31 }
 0xae3   :  { %v31073_v16 = vpop.permute.xlu0 %21377  ;;  %v31075_v33 = vpop.permute.xlu1 %21757 }
 0xae4   :  { %32635 = vst [vmem:[#allocation81_spill] sm:$0xff] %v31073_v16  ;;  %32636 = vst [vmem:[#allocation87_spill] sm:$0xff] %v31075_v33 }
 0xae7   :  { %v31077_v34 = vpop.permute.xlu0 %21529  ;;  %v31079_v17 = vpop.permute.xlu1 %21833 }
 0xae8   :  { %22441 = vrot.lane.b32.xlu0 %v32630_v0, %s26539_s20  ;;  %32637 = vst [vmem:[#allocation132_spill] sm:$0xff] %v31077_v34  ;;  %32638 = vst [vmem:[#allocation80_spill] sm:$0xff] %v31079_v17 }
 0xaeb   :  { %v31081_v44 = vpop.permute.xlu0 %21681  ;;  %v31083_v18 = vpop.permute.xlu1 %21909 }
 0xaec   :  { %32639 = vst [vmem:[#allocation39_spill] sm:$0xff] %v31081_v44  ;;  %32640 = vst [vmem:[#allocation86_spill] sm:$0xff] %v31083_v18 }
 0xaef   :  { %v31085_v0 = vpop.permute.xlu0 %21985  ;;  %v31087_v45 = vpop.permute.xlu1 %22061 }
 0xaf0   :  { %32641 = vst [vmem:[#allocation85_spill] sm:$0xff] %v31085_v0  ;;  %32642 = vst [vmem:[#allocation35_spill] sm:$0xff] %v31087_v45 }
 0xaf3   :  { %v31089_v15 = vpop.permute.xlu0 %22137  ;;  %v31091_v4 = vpop.permute.xlu1 %22213 }
 0xaf4   :  { %32643 = vst [vmem:[#allocation123_spill] sm:$0xff] %v31089_v15  ;;  %32644 = vst [vmem:[#allocation91_spill] sm:$0xff] %v31091_v4 }
 0xaf7   :  { %v31093_v31 = vpop.permute.xlu0 %22289  ;;  %v31095_v16 = vpop.permute.xlu1 %22365 }
 0xaf8   :  { %32645 = vst [vmem:[#allocation84_spill] sm:$0xff] %v31093_v31  ;;  %32646 = vst [vmem:[#allocation34_spill] sm:$0xff] %v31095_v16 }
 0xb1b   :  { %v19966_v33 = vpop.xlane.xlu1 %19965  ;;  %v19963_v34 = vpop.xlane.xlu0 %19962 }
 0xb1c   :  { %v20058_v17 = vsub.f32 %v30915_v38, %v19966_v33  ;;  %v20057_v44 = vsub.f32 %v30913_v6, %v19963_v34 }
 0xb1e   :  { %v20091_v55 = vmul.f32 1.442695, %v20058_v17  ;;  %v20089_v18 = vmul.f32 1.442695, %v20057_v44 }
 0xb1f   :  { %v19969_v29 = vpop.xlane.xlu0 %19968 }
 0xb20   :  { %26215 = vpow2.f32 %v20091_v55  ;;  %v20059_v45 = vsub.f32 %v30921_v46, %v19969_v29 }
 0xb21   :  { %26217 = vpow2.f32 %v20089_v18 }
 0xb22   :  { %v20093_v15 = vmul.f32 1.442695, %v20059_v45 }
 0xb23   :  { %v19978_v0 = vpop.xlane.xlu1 %19977  ;;  %v19972_v4 = vpop.xlane.xlu0 %19971 }
 0xb24   :  { %26219 = vpow2.f32 %v20093_v15  ;;  %v20062_v31 = vsub.f32 %v30927_v49, %v19978_v0  ;;  %v20060_v16 = vsub.f32 %v30923_v23, %v19972_v4 }
 0xb26   :  { %v20095_v47 = vmul.f32 1.442695, %v20060_v16  ;;  %v20099_v62 = vmul.f32 1.442695, %v20062_v31 }
 0xb27   :  { %v19984_v33 = vpop.xlane.xlu1 %19983  ;;  %v19975_v38 = vpop.xlane.xlu0 %19974 }
 0xb28   :  { %v20064_v6 = vsub.f32 %v30935_v13, %v19984_v33  ;;  %v20061_v44 = vsub.f32 %v30929_v58, %v19975_v38  ;;  %26221 = vpow2.f32 %v20095_v47 }
 0xb29   :  { %26223 = vpow2.f32 %v20099_v62 }
 0xb2a   :  { %v20097_v55 = vmul.f32 1.442695, %v20061_v44  ;;  %v20103_v29 = vmul.f32 1.442695, %v20064_v6 }
 0xb2b   :  { %v19990_v18 = vpop.xlane.xlu1 %19989  ;;  %v19981_v45 = vpop.xlane.xlu0 %19980 }
 0xb2c   :  { %v20066_v46 = vsub.f32 %v30943_v53, %v19990_v18  ;;  %v20063_v49 = vsub.f32 %v30937_v63, %v19981_v45  ;;  %26225 = vpow2.f32 %v20097_v55 }
 0xb2d   :  { %v31106_v15 = vpop.eup %26215  ;;  %26227 = vpow2.f32 %v20103_v29 }
 0xb2e   :  { %v31108_v4 = vpop.eup %26217  ;;  %v20101_v23 = vmul.f32 1.442695, %v20063_v49  ;;  %v20156_v13 = vsel %vm1270_vm2, %v31106_v15, 0.0  ;;  %v20107_v58 = vmul.f32 1.442695, %v20066_v46 }
 0xb2f   :  { %v19996_v47 = vpop.xlane.xlu1 %19995  ;;  %20157 = vadd.xlane.f32.xlu1 %v20156_v13  ;;  %v20153_v62 = vsel %vm1270_vm2, %v31108_v4, 0.0  ;;  %v19987_v31 = vpop.xlane.xlu0 %19986 }
 0xb30   :  { %v20068_v53 = vsub.f32 %v30951_v2, %v19996_v47  ;;  %20154 = vadd.xlane.f32.xlu0 %v20153_v62  ;;  %v20065_v63 = vsub.f32 %v30945_v11, %v19987_v31  ;;  %26229 = vpow2.f32 %v20101_v23 }
 0xb31   :  { %v31116_v34 = vpop.eup %26219  ;;  %26231 = vpow2.f32 %v20107_v58 }
 0xb32   :  { %v20105_v17 = vmul.f32 1.442695, %v20065_v63  ;;  %v20159_v16 = vsel %vm1270_vm2, %v31116_v34, 0.0  ;;  %v20111_v0 = vmul.f32 1.442695, %v20068_v53 }
 0xb33   :  { %v20002_v33 = vpop.xlane.xlu1 %20001  ;;  %v19993_v38 = vpop.xlane.xlu0 %19992 }
 0xb34   :  { %v20070_v6 = vsub.f32 %v30959_v60, %v20002_v33  ;;  %20160 = vadd.xlane.f32.xlu0 %v20159_v16  ;;  %v20067_v44 = vsub.f32 %v30953_v57, %v19993_v38  ;;  %26233 = vpow2.f32 %v20105_v17 }
 0xb35   :  { %v31122_v2 = vpop.eup %26221  ;;  %26235 = vpow2.f32 %v20111_v0 }
 0xb36   :  { %v20109_v11 = vmul.f32 1.442695, %v20067_v44  ;;  %v20115_v55 = vmul.f32 1.442695, %v20070_v6  ;;  %v20162_v18 = vsel %vm1270_vm2, %v31122_v2, 0.0  ;;  %v31126_v46 = vpop.eup %26223 }
 0xb37   :  { %v20008_v29 = vpop.xlane.xlu1 %20007  ;;  %v19999_v45 = vpop.xlane.xlu0 %19998  ;;  %20163 = vadd.xlane.f32.xlu1 %v20162_v18  ;;  %v20168_v47 = vsel %vm1270_vm2, %v31126_v46, 0.0 }
 0xb38   :  { %v20072_v49 = vsub.f32 %v30967_v51, %v20008_v29  ;;  %v20069_v60 = vsub.f32 %v30961_v24, %v19999_v45  ;;  %26237 = vpow2.f32 %v20109_v11 }
 0xb39   :  { %v31130_v57 = vpop.eup %26225  ;;  %26239 = vpow2.f32 %v20115_v55 }
 0xb3a   :  { %v20113_v23 = vmul.f32 1.442695, %v20069_v60  ;;  %v20119_v13 = vmul.f32 1.442695, %v20072_v49  ;;  %v20165_v62 = vsel %vm1270_vm2, %v31130_v57, 0.0  ;;  %v31136_v53 = vpop.eup %26227 }
 0xb3b   :  { %v20014_v58 = vpop.xlane.xlu1 %20013  ;;  %v20005_v31 = vpop.xlane.xlu0 %20004  ;;  %20169 = vadd.xlane.f32.xlu1 %v20168_v47  ;;  %20166 = vadd.xlane.f32.xlu0 %v20165_v62  ;;  %v20174_v33 = vsel %vm1270_vm2, %v31136_v53, 0.0 }
 0xb3c   :  { %v20074_v51 = vsub.f32 %v30975_v59, %v20014_v58  ;;  %v20071_v24 = vsub.f32 %v30969_v52, %v20005_v31  ;;  %26241 = vpow2.f32 %v20113_v23 }
 0xb3d   :  { %v31140_v63 = vpop.eup %26229  ;;  %26243 = vpow2.f32 %v20119_v13 }
 0xb3e   :  { %v20117_v17 = vmul.f32 1.442695, %v20071_v24  ;;  %v20123_v16 = vmul.f32 1.442695, %v20074_v51  ;;  %v20171_v38 = vsel %vm1270_vm2, %v31140_v63, 0.0  ;;  %v31146_v44 = vpop.eup %26231 }
 0xb3f   :  { %v20020_v0 = vpop.xlane.xlu1 %20019  ;;  %v20011_v6 = vpop.xlane.xlu0 %20010  ;;  %20175 = vadd.xlane.f32.xlu1 %v20174_v33  ;;  %20172 = vadd.xlane.f32.xlu0 %v20171_v38  ;;  %v20180_v45 = vsel %vm1270_vm2, %v31146_v44, 0.0 }
 0xb40   :  { %v20076_v59 = vsub.f32 %v30983_v21, %v20020_v0  ;;  %v20073_v52 = vsub.f32 %v30977_v42, %v20011_v6  ;;  %26245 = vpow2.f32 %v20117_v17 }
 0xb41   :  { %v31150_v11 = vpop.eup %26233  ;;  %26247 = vpow2.f32 %v20123_v16 }
 0xb42   :  { %v20121_v55 = vmul.f32 1.442695, %v20073_v52  ;;  %v20127_v29 = vmul.f32 1.442695, %v20076_v59  ;;  %v20177_v49 = vsel %vm1270_vm2, %v31150_v11, 0.0  ;;  %v31156_v23 = vpop.eup %26235 }
 0xb43   :  { %v20026_v18 = vpop.xlane.xlu1 %20025  ;;  %v20017_v60 = vpop.xlane.xlu0 %20016  ;;  %20181 = vadd.xlane.f32.xlu1 %v20180_v45  ;;  %20178 = vadd.xlane.f32.xlu0 %v20177_v49  ;;  %v20186_v31 = vsel %vm1270_vm2, %v31156_v23, 0.0 }
 0xb44   :  { %v20078_v21 = vsub.f32 %v30991_v28, %v20026_v18  ;;  %v20075_v42 = vsub.f32 %v30985_v43, %v20017_v60  ;;  %26249 = vpow2.f32 %v20121_v55 }
 0xb45   :  { %v31160_v13 = vpop.eup %26237  ;;  %26251 = vpow2.f32 %v20127_v29 }
 0xb46   :  { %v20125_v58 = vmul.f32 1.442695, %v20075_v42  ;;  %v20131_v47 = vmul.f32 1.442695, %v20078_v21  ;;  %v20183_v51 = vsel %vm1270_vm2, %v31160_v13, 0.0  ;;  %v31166_v17 = vpop.eup %26239 }
 0xb47   :  { %v20032_v62 = vpop.xlane.xlu1 %20031  ;;  %v20023_v24 = vpop.xlane.xlu0 %20022  ;;  %20187 = vadd.xlane.f32.xlu1 %v20186_v31  ;;  %20184 = vadd.xlane.f32.xlu0 %v20183_v51  ;;  %v20192_v6 = vsel %vm1270_vm2, %v31166_v17, 0.0 }
 0xb48   :  { %v20080_v28 = vsub.f32 %v30999_v39, %v20032_v62  ;;  %v20077_v43 = vsub.f32 %v30993_v27, %v20023_v24  ;;  %26253 = vpow2.f32 %v20125_v58 }
 0xb49   :  { %v31170_v16 = vpop.eup %26241  ;;  %26255 = vpow2.f32 %v20131_v47 }
 0xb4a   :  { %v20129_v0 = vmul.f32 1.442695, %v20077_v43  ;;  %v20135_v33 = vmul.f32 1.442695, %v20080_v28  ;;  %v20189_v59 = vsel %vm1270_vm2, %v31170_v16, 0.0  ;;  %v31176_v55 = vpop.eup %26243 }
 0xb4b   :  { %v20038_v38 = vpop.xlane.xlu1 %20037  ;;  %v20029_v52 = vpop.xlane.xlu0 %20028  ;;  %20193 = vadd.xlane.f32.xlu1 %v20192_v6  ;;  %20190 = vadd.xlane.f32.xlu0 %v20189_v59  ;;  %v20198_v60 = vsel %vm1270_vm2, %v31176_v55, 0.0 }
 0xb4c   :  { %v20082_v39 = vsub.f32 %v31007_v30, %v20038_v38  ;;  %v20079_v27 = vsub.f32 %v31001_v50, %v20029_v52  ;;  %26257 = vpow2.f32 %v20129_v0 }
 0xb4d   :  { %v31180_v29 = vpop.eup %26245  ;;  %26259 = vpow2.f32 %v20135_v33 }
 0xb4e   :  { %v20133_v18 = vmul.f32 1.442695, %v20079_v27  ;;  %v20139_v45 = vmul.f32 1.442695, %v20082_v39  ;;  %v20195_v21 = vsel %vm1270_vm2, %v31180_v29, 0.0  ;;  %v31186_v58 = vpop.eup %26247 }
 0xb4f   :  { %v20044_v49 = vpop.xlane.xlu1 %20043  ;;  %v20035_v42 = vpop.xlane.xlu0 %20034  ;;  %20199 = vadd.xlane.f32.xlu0 %v20198_v60  ;;  %20196 = vadd.xlane.f32.xlu1 %v20195_v21  ;;  %v20204_v24 = vsel %vm1270_vm2, %v31186_v58, 0.0 }
 0xb50   :  { %v20084_v30 = vsub.f32 %v31015_v32, %v20044_v49  ;;  %v20081_v50 = vsub.f32 %v31009_v7, %v20035_v42  ;;  %26261 = vpow2.f32 %v20133_v18 }
 0xb51   :  { %v31190_v47 = vpop.eup %26249  ;;  %26263 = vpow2.f32 %v20139_v45 }
 0xb52   :  { %v20137_v62 = vmul.f32 1.442695, %v20081_v50  ;;  %v20143_v31 = vmul.f32 1.442695, %v20084_v30  ;;  %v20201_v28 = vsel %vm1270_vm2, %v31190_v47, 0.0  ;;  %v31196_v0 = vpop.eup %26251 }
 0xb53   :  { %v20050_v51 = vpop.xlane.xlu1 %20049  ;;  %v20041_v43 = vpop.xlane.xlu0 %20040  ;;  %20205 = vadd.xlane.f32.xlu0 %v20204_v24  ;;  %20202 = vadd.xlane.f32.xlu1 %v20201_v28  ;;  %v20210_v52 = vsel %vm1270_vm2, %v31196_v0, 0.0 }
 0xb54   :  { %v20086_v32 = vsub.f32 %v31023_v41, %v20050_v51  ;;  %v20083_v7 = vsub.f32 %v31017_v25, %v20041_v43  ;;  %26265 = vpow2.f32 %v20137_v62 }
 0xb55   :  { %v31200_v33 = vpop.eup %26253  ;;  %26267 = vpow2.f32 %v20143_v31 }
 0xb56   :  { %v20141_v38 = vmul.f32 1.442695, %v20083_v7  ;;  %v20147_v6 = vmul.f32 1.442695, %v20086_v32  ;;  %v20207_v39 = vsel %vm1270_vm2, %v31200_v33, 0.0  ;;  %v31206_v18 = vpop.eup %26255 }
 0xb57   :  { %v20056_v59 = vpop.xlane.xlu1 %20055  ;;  %v20047_v27 = vpop.xlane.xlu0 %20046  ;;  %20211 = vadd.xlane.f32.xlu0 %v20210_v52  ;;  %20208 = vadd.xlane.f32.xlu1 %v20207_v39  ;;  %v20216_v21 = vsel %vm1270_vm2, %v31206_v18, 0.0 }
 0xb58   :  { %v20088_v41 = vsub.f32 %v31033_v35, %v20056_v59  ;;  %v20085_v25 = vsub.f32 %v31027_v48, %v20047_v27  ;;  %26269 = vpow2.f32 %v20141_v38 }
 0xb59   :  { %v31210_v45 = vpop.eup %26257  ;;  %26271 = vpow2.f32 %v20147_v6 }
 0xb5a   :  { %v20145_v49 = vmul.f32 1.442695, %v20085_v25  ;;  %v20151_v60 = vmul.f32 1.442695, %v20088_v41  ;;  %v20213_v42 = vsel %vm1270_vm2, %v31210_v45, 0.0  ;;  %v31216_v50 = vpop.eup %26259 }
 0xb5b   :  { %v20053_v30 = vpop.xlane.xlu0 %20052  ;;  %20217 = vadd.xlane.f32.xlu0 %v20216_v21  ;;  %20214 = vadd.xlane.f32.xlu1 %v20213_v42  ;;  %v20222_v31 = vsel %vm1270_vm2, %v31216_v50, 0.0  ;;  %v32647_v21 = vld [vmem:[#allocation106_spill] sm:$0xff]  ;;  %v32648_v42 = vld [vmem:[#allocation21_spill] sm:$0xff] }
 0xb5c   :  { %v20087_v35 = vsub.f32 %v31035_v14, %v20053_v30  ;;  %26273 = vpow2.f32 %v20145_v49  ;;  %v32649_v30 = vld [vmem:[#allocation104_spill] sm:$0xff] }
 0xb5d   :  { %v31219_v48 = vpop.eup %26261  ;;  %26275 = vpow2.f32 %v20151_v60 }
 0xb5e   :  { %v20149_v62 = vmul.f32 1.442695, %v20087_v35  ;;  %v20219_v51 = vsel %vm1270_vm2, %v31219_v48, 0.0  ;;  %v31225_v24 = vpop.eup %26263  ;;  %v32650_v35 = vld [vmem:[#allocation136_spill] sm:$0xff] }
 0xb5f   :  { %20223 = vadd.xlane.f32.xlu0 %v20222_v31  ;;  %20220 = vadd.xlane.f32.xlu1 %v20219_v51  ;;  %v20228_v14 = vsel %vm1270_vm2, %v31225_v24, 0.0  ;;  %v32652_v31 = vld [vmem:[#allocation65_spill] sm:$0xff]  ;;  %v32653_v51 = vld [vmem:[#allocation108_spill] sm:$0xff] }
 0xb60   :  { %26277 = vpow2.f32 %v20149_v62  ;;  %v32651_v62 = vld [vmem:[#allocation60_spill] sm:$0xff] }
 0xb61   :  { %v31227_v28 = vpop.eup %26265 }
 0xb62   :  { %v20225_v43 = vsel %vm1270_vm2, %v31227_v28, 0.0  ;;  %v31233_v32 = vpop.eup %26267 }
 0xb63   :  { %20229 = vadd.xlane.f32.xlu0 %v20228_v14  ;;  %20226 = vadd.xlane.f32.xlu1 %v20225_v43  ;;  %v20234_v38 = vsel %vm1270_vm2, %v31233_v32, 0.0  ;;  %v32654_v14 = vld [vmem:[#allocation64_spill] sm:$0xff] }
 0xb64   :  { %v32661_v43 = vld [vmem:[#allocation24_spill] sm:$0xff] }
 0xb65   :  { %v31235_v7 = vpop.eup %26269 }
 0xb66   :  { %v20231_v6 = vsel %vm1270_vm2, %v31235_v7, 0.0  ;;  %v31241_v59 = vpop.eup %26271 }
 0xb67   :  { %20235 = vadd.xlane.f32.xlu0 %v20234_v38  ;;  %20232 = vadd.xlane.f32.xlu1 %v20231_v6  ;;  %v20240_v39 = vsel %vm1270_vm2, %v31241_v59, 0.0  ;;  %v32662_v38 = vld [vmem:[#allocation120_spill] sm:$0xff] }
 0xb69   :  { %v31243_v52 = vpop.eup %26273 }
 0xb6a   :  { %v20237_v27 = vsel %vm1270_vm2, %v31243_v52, 0.0  ;;  %v31249_v41 = vpop.eup %26275 }
 0xb6b   :  { %20241 = vadd.xlane.f32.xlu0 %v20240_v39  ;;  %20238 = vadd.xlane.f32.xlu1 %v20237_v27  ;;  %v20246_v60 = vsel %vm1270_vm2, %v31249_v41, 0.0  ;;  %v32664_v39 = vld [vmem:[#allocation23_spill] sm:$0xff] }
 0xb6d   :  { %v31251_v25 = vpop.eup %26277 }
 0xb6e   :  { %v20243_v49 = vsel %vm1270_vm2, %v31251_v25, 0.0 }
 0xb6f   :  { %20247 = vadd.xlane.f32.xlu0 %v20246_v60  ;;  %20244 = vadd.xlane.f32.xlu1 %v20243_v49  ;;  %v32665_v49 = vld [vmem:[#allocation111_spill] sm:$0xff] }
 0xb80   :  { %22669 = vrot.lane.b32.xlu1 %v32647_v21, %s26539_s20 }
 0xb84   :  { %11833 = vrot.lane.b32.xlu1 %v32648_v42, %s26531_s24 }
 0xb85   :  { %22593 = vrot.lane.b32.xlu0 %v32649_v30, %s26539_s20 }
 0xb88   :  { %11837 = vrot.lane.b32.xlu1 %v32650_v35, %s26531_s24  ;;  %v32666_v35 = vld [vmem:[#allocation122_spill] sm:$0xff] }
 0xb89   :  { %11831 = vrot.lane.b32.xlu0 %v32651_v62, %s26531_s24  ;;  %v32667_v62 = vld [vmem:[#allocation124_spill] sm:$0xff] }
 0xb8c   :  { %17306 = vrot.lane.b32.xlu1 %v30849_v54, %s26540_s21  ;;  %v32655_v54 = vld [vmem:[#allocation110_spill] sm:$0xff] }
 0xb8d   :  { %11835 = vrot.lane.b32.xlu0 %v32652_v31, %s26531_s24  ;;  %v32669_v31 = vld [vmem:[#allocation113_spill] sm:$0xff] }
 0xb90   :  { %17310 = vrot.lane.b32.xlu1 %v30855_v19, %s26540_s21  ;;  %v32656_v19 = vld [vmem:[#allocation114_spill] sm:$0xff] }
 0xb91   :  { %17304 = vrot.lane.b32.xlu0 %v30851_v26, %s26540_s21  ;;  %v32657_v26 = vld [vmem:[#allocation20_spill] sm:$0xff] }
 0xb94   :  { %11841 = vrot.lane.b32.xlu1 %v32653_v51, %s26531_s24 }
 0xb95   :  { %17308 = vrot.lane.b32.xlu0 %v30853_v1, %s26540_s21  ;;  %v32658_v1 = vld [vmem:[#allocation67_spill] sm:$0xff] }
 0xb98   :  { %11845 = vrot.lane.b32.xlu1 %v32654_v14, %s26531_s24 }
 0xb99   :  { %11839 = vrot.lane.b32.xlu0 %v32655_v54, %s26531_s24  ;;  %v32671_v54 = vld [vmem:[#allocation115_spill] sm:$0xff] }
 0xb9c   :  { %17314 = vrot.lane.b32.xlu1 %v30857_v10, %s26540_s21  ;;  %v32659_v10 = vld [vmem:[#allocation112_spill] sm:$0xff] }
 0xb9d   :  { %11843 = vrot.lane.b32.xlu0 %v32656_v19, %s26531_s24 }
 0xba0   :  { %17318 = vrot.lane.b32.xlu1 %v30861_v40, %s26540_s21  ;;  %v32660_v40 = vld [vmem:[#allocation118_spill] sm:$0xff] }
 0xba1   :  { %17312 = vrot.lane.b32.xlu0 %v30859_v56, %s26540_s21  ;;  %v31307_v56 = vpop.permute.xlu1 %22517 }
 0xba4   :  { %11849 = vrot.lane.b32.xlu1 %v32657_v26, %s26531_s24  ;;  %v32672_v26 = vld [vmem:[#allocation29_spill] sm:$0xff] }
 0xba5   :  { %17316 = vrot.lane.b32.xlu0 %v30863_v5, %s26540_s21  ;;  %v31309_v5 = vpop.permute.xlu0 %22441 }
 0xba8   :  { %11853 = vrot.lane.b32.xlu1 %v32658_v1, %s26531_s24 }
 0xba9   :  { %11847 = vrot.lane.b32.xlu0 %v32659_v10, %s26531_s24  ;;  %v32673_v10 = vld [vmem:[#allocation69_spill] sm:$0xff] }
 0xbac   :  { %17322 = vrot.lane.b32.xlu1 %v30865_v9, %s26540_s21 }
 0xbad   :  { %11851 = vrot.lane.b32.xlu0 %v32660_v40, %s26531_s24 }
 0xbb0   :  { %17326 = vrot.lane.b32.xlu1 %v30869_v3, %s26540_s21  ;;  %v32663_v3 = vld [vmem:[#allocation116_spill] sm:$0xff] }
 0xbb1   :  { %17320 = vrot.lane.b32.xlu0 %v30867_v20, %s26540_s21 }
 0xbb4   :  { %11857 = vrot.lane.b32.xlu1 %v32661_v43, %s26531_s24  ;;  %v32674_v43 = vld [vmem:[#allocation71_spill] sm:$0xff] }
 0xbb5   :  { %17324 = vrot.lane.b32.xlu0 %v30871_v12, %s26540_s21 }
 0xbb8   :  { %v20158_v9 = vpop.xlane.xlu1 %20157  ;;  %11861 = vrot.lane.b32.xlu1 %v32662_v38, %s26531_s24 }
 0xbb9   :  { %26279 = vrcp.f32 %v20158_v9  ;;  %v20155_v6 = vpop.xlane.xlu0 %20154  ;;  %11855 = vrot.lane.b32.xlu0 %v32663_v3, %s26531_s24 }
 0xbba   :  { %26281 = vrcp.f32 %v20155_v6 }
 0xbbc   :  { %17330 = vrot.lane.b32.xlu1 %v30873_v61, %s26540_s21 }
 0xbbd   :  { %v20161_v20 = vpop.xlane.xlu0 %20160  ;;  %11859 = vrot.lane.b32.xlu0 %v32664_v39, %s26531_s24  ;;  %v32676_v39 = vld [vmem:[#allocation126_spill] sm:$0xff] }
 0xbbe   :  { %26283 = vrcp.f32 %v20161_v20 }
 0xbc0   :  { %v20164_v27 = vpop.xlane.xlu1 %20163  ;;  %17334 = vrot.lane.b32.xlu1 %v30879_v37, %s26540_s21 }
 0xbc1   :  { %26285 = vrcp.f32 %v20164_v27  ;;  %17328 = vrot.lane.b32.xlu0 %v30875_v8, %s26540_s21 }
 0xbc4   :  { %v20170_v12 = vpop.xlane.xlu1 %20169  ;;  %11865 = vrot.lane.b32.xlu1 %v32665_v49, %s26531_s24  ;;  %v20167_v60 = vpop.xlane.xlu0 %20166 }
 0xbc5   :  { %26287 = vrcp.f32 %v20170_v12  ;;  %17332 = vrot.lane.b32.xlu0 %v30877_v22, %s26540_s21  ;;  %v32677_v12 = vld [vmem:[#allocation28_spill] sm:$0xff] }
 0xbc6   :  { %v26280_v21 = vpop.eup %26279  ;;  %26289 = vrcp.f32 %v20167_v60  ;;  %v32678_v60 = vld [vmem:[#allocation79_spill] sm:$0xff] }
 0xbc7   :  { %v26282_v61 = vpop.eup %26281  ;;  %v20282_v42 = vmul.f32 %v26280_v21, %v31106_v15  ;;  %v32668_v15 = vmov 0.0   ;;  %v32679_v21 = vld [vmem:[#allocation78_spill] sm:$0xff] }
 0xbc8   :  { %v20281_v37 = vmul.f32 %v26282_v61, %v31108_v4  ;;  %v20176_v30 = vpop.xlane.xlu1 %20175  ;;  %11869 = vrot.lane.b32.xlu1 %v32666_v35, %s26531_s24  ;;  %v20173_v8 = vpop.xlane.xlu0 %20172  ;;  %v32681_v35 = vld [vmem:[#allocation119_spill] sm:$0xff] }
 0xbc9   :  { %25549 = vmatmul.mubr.msk.f32.vlgmr.msra.gmra.mxu1 %vm1270_vm2, %v20282_v42  ;;  %26291 = vrcp.f32 %v20176_v30  ;;  %11863 = vrot.lane.b32.xlu0 %v32667_v62, %s26531_s24  ;;  %v32682_v62 = vld [vmem:[#allocation117_spill] sm:$0xff] }
 0xbca   :  { %25557 = vmatpush3.msra.mxu1 %v31025_v36  ;;  %26293 = vrcp.f32 %v20173_v8  ;;  %25544 = vmatmul.mubr.msk.f32.vlgmr.msra.gmra.mxu0 %vm1270_vm2, %v20281_v37  ;;  %v32670_v36 = vld [vmem:[#allocation22_spill] sm:$0xff]  ;;  %v32680_v37 = vld [vmem:[#allocation36_spill] sm:$0xff] }
 0xbcb   :  { %v26284_v22 = vpop.eup %26283  ;;  %25558 = vmatprep.mubr.msk.f32.mxu1 %vm26536_vm1, %v32668_v15  ;;  %25552 = vmatpush3.msra.mxu0 %v32669_v31 }
 0xbcc   :  { %v20283_v4 = vmul.f32 %v26284_v22, %v31116_v34  ;;  %25553 = vmatprep.mubr.msk.f32.mxu0 %vm26536_vm1, %v32668_v15  ;;  %v20182_v51 = vpop.xlane.xlu1 %20181  ;;  %17338 = vrot.lane.b32.xlu1 %v32670_v36, %s26540_s21  ;;  %v20179_v14 = vpop.xlane.xlu0 %20178  ;;  %v32684_v36 = vld [vmem:[#allocation26_spill] sm:$0xff] }
 0xbcd   :  { %25561 = vmatprep.subr.mxu0 %v32668_v15  ;;  %26295 = vrcp.f32 %v20182_v51  ;;  %11867 = vrot.lane.b32.xlu0 %v32671_v54, %s26531_s24 }
 0xbce   :  { %25566 = vmatprep.subr.mxu1 %v32668_v15  ;;  %v26286_v19 = vpop.eup %26285  ;;  %26297 = vrcp.f32 %v20179_v14  ;;  %25554 = vmatmul.mubr.msk.f32.vlgmr.msra.gmra.mxu0 %vm1270_vm2, %v20283_v4  ;;  %v32683_v4 = vld [vmem:[#allocation109_spill] sm:$0xff] }
 0xbcf   :  { %v20284_v34 = vmul.f32 %v26286_v19, %v31122_v2  ;;  %25562 = vmatpush3.msra.mxu0 %v32672_v26  ;;  %25563 = vmatprep.mubr.msk.f32.mxu0 %vm26536_vm1, %v32668_v15  ;;  %v32675_v2 = vld [vmem:[#allocation66_spill] sm:$0xff]  ;;  %v32686_v19 = vld [vmem:[#allocation75_spill] sm:$0xff] }
 0xbd0   :  { %v20188_v1 = vpop.xlane.xlu1 %20187  ;;  %17342 = vrot.lane.b32.xlu1 %v32673_v10, %s26540_s21  ;;  %v20185_v40 = vpop.xlane.xlu0 %20184  ;;  %25571 = vmatprep.subr.mxu0 %v32668_v15  ;;  %v32687_v10 = vld [vmem:[#allocation74_spill] sm:$0xff] }
 0xbd1   :  { %26299 = vrcp.f32 %v20188_v1  ;;  %25559 = vmatmul.mubr.msk.f32.vlgmr.msra.gmra.mxu1 %vm1270_vm2, %v20284_v34  ;;  %17336 = vrot.lane.b32.xlu0 %v32674_v43, %s26540_s21  ;;  %v32688_v43 = vld [vmem:[#allocation68_spill] sm:$0xff] }
 0xbd2   :  { %v26288_v9 = vpop.eup %26287  ;;  %26301 = vrcp.f32 %v20185_v40  ;;  %25567 = vmatpush3.msra.mxu1 %v32675_v2  ;;  %25568 = vmatprep.mubr.msk.f32.mxu1 %vm26536_vm1, %v32668_v15 }
 0xbd3   :  { %v26290_v38 = vpop.eup %26289  ;;  %v20286_v6 = vmul.f32 %v26288_v9, %v31126_v46  ;;  %25576 = vmatprep.subr.mxu1 %v32668_v15 }
 0xbd4   :  { %v20285_v3 = vmul.f32 %v26290_v38, %v31130_v57  ;;  %v20194_v20 = vpop.xlane.xlu1 %20193  ;;  %11873 = vrot.lane.b32.xlu1 %v32676_v39, %s26531_s24  ;;  %v20191_v27 = vpop.xlane.xlu0 %20190 }
 0xbd5   :  { %26303 = vrcp.f32 %v20194_v20  ;;  %25569 = vmatmul.mubr.msk.f32.vlgmr.msra.gmra.mxu1 %vm1270_vm2, %v20286_v6  ;;  %17340 = vrot.lane.b32.xlu0 %v32677_v12, %s26540_s21  ;;  %v32690_v6 = vld [vmem:[#allocation83_spill] sm:$0xff]  ;;  %v32691_v20 = vld [vmem:[#allocation82_spill] sm:$0xff] }
 0xbd6   :  { %v26292_v49 = vpop.eup %26291  ;;  %26305 = vrcp.f32 %v20191_v27  ;;  %25577 = vmatpush3.msra.mxu1 %v32678_v60  ;;  %25564 = vmatmul.mubr.msk.f32.vlgmr.msra.gmra.mxu0 %vm1270_vm2, %v20285_v3  ;;  %v32692_v27 = vld [vmem:[#allocation40_spill] sm:$0xff] }
 0xbd7   :  { %v26294_v46 = vpop.eup %26293  ;;  %v20288_v57 = vmul.f32 %v26292_v49, %v31136_v53  ;;  %25572 = vmatpush3.msra.mxu0 %v32679_v21  ;;  %25578 = vmatprep.mubr.msk.f32.mxu1 %vm26536_vm1, %v32668_v15  ;;  %v32695_v21 = vld [vmem:[#allocation81_spill] sm:$0xff] }
 0xbd8   :  { %v20287_v61 = vmul.f32 %v26294_v46, %v31140_v63  ;;  %25586 = vmatprep.subr.mxu1 %v32668_v15  ;;  %v20197_v42 = vpop.xlane.xlu1 %20196  ;;  %11877 = vrot.lane.b32.xlu1 %v32680_v37, %s26531_s24  ;;  %v20200_v30 = vpop.xlane.xlu0 %20199  ;;  %v32694_v46 = vld [vmem:[#allocation128_spill] sm:$0xff] }
 0xbd9   :  { %25573 = vmatprep.mubr.msk.f32.mxu0 %vm26536_vm1, %v32668_v15  ;;  %25581 = vmatprep.subr.mxu0 %v32668_v15  ;;  %26307 = vrcp.f32 %v20197_v42  ;;  %v32696_v42 = vld [vmem:[#allocation140_spill] sm:$0xff] }
 0xbda   :  { %v26296_v53 = vpop.eup %26295  ;;  %25579 = vmatmul.mubr.msk.f32.vlgmr.msra.gmra.mxu1 %vm1270_vm2, %v20288_v57  ;;  %11871 = vrot.lane.b32.xlu0 %v32681_v35, %s26531_s24  ;;  %26309 = vrcp.f32 %v20200_v30  ;;  %v32698_v35 = vld [vmem:[#allocation132_spill] sm:$0xff] }
 0xbdb   :  { %v26298_v63 = vpop.eup %26297  ;;  %v20290_v8 = vmul.f32 %v26296_v53, %v31146_v44  ;;  %25587 = vmatpush3.msra.mxu1 %v32682_v62  ;;  %25574 = vmatmul.mubr.msk.f32.vlgmr.msra.gmra.mxu0 %vm1270_vm2, %v20287_v61  ;;  %v32700_v62 = vld [vmem:[#allocation25_spill] sm:$0xff] }
 0xbdc   :  { %v20289_v22 = vmul.f32 %v26298_v63, %v31150_v11  ;;  %25582 = vmatpush3.msra.mxu0 %v32683_v4  ;;  %25588 = vmatprep.mubr.msk.f32.mxu1 %vm26536_vm1, %v32668_v15  ;;  %v20203_v31 = vpop.xlane.xlu1 %20202  ;;  %v20206_v51 = vpop.xlane.xlu0 %20205  ;;  %v32685_v11 = vld [vmem:[#allocation121_spill] sm:$0xff] }
 0xbdd   :  { %25596 = vmatprep.subr.mxu1 %v32668_v15  ;;  %17346 = vrot.lane.b32.xlu1 %v32684_v36, %s26540_s21  ;;  %26311 = vrcp.f32 %v20203_v31  ;;  %v32702_v36 = vld [vmem:[#allocation39_spill] sm:$0xff] }
 0xbde   :  { %v26300_v44 = vpop.eup %26299  ;;  %25583 = vmatprep.mubr.msk.f32.mxu0 %vm26536_vm1, %v32668_v15  ;;  %25591 = vmatprep.subr.mxu0 %v32668_v15  ;;  %26313 = vrcp.f32 %v20206_v51 }
 0xbdf   :  { %v26302_v14 = vpop.eup %26301  ;;  %25589 = vmatmul.mubr.msk.f32.vlgmr.msra.gmra.mxu1 %vm1270_vm2, %v20290_v8  ;;  %11875 = vrot.lane.b32.xlu0 %v32685_v11, %s26531_s24  ;;  %v20292_v54 = vmul.f32 %v26300_v44, %v31156_v23  ;;  %v32699_v8 = vld [vmem:[#allocation130_spill] sm:$0xff] }
 0xbe0   :  { %25597 = vmatpush3.msra.mxu1 %v32686_v19  ;;  %25584 = vmatmul.mubr.msk.f32.vlgmr.msra.gmra.mxu0 %vm1270_vm2, %v20289_v22  ;;  %v20209_v34 = vpop.xlane.xlu1 %20208  ;;  %v20212_v26 = vpop.xlane.xlu0 %20211  ;;  %v20291_v1 = vmul.f32 %v26302_v14, %v31160_v13  ;;  %v32689_v13 = vld [vmem:[#allocation70_spill] sm:$0xff]  ;;  %v32704_v19 = vld [vmem:[#allocation73_spill] sm:$0xff] }
 0xbe1   :  { %25592 = vmatpush3.msra.mxu0 %v32687_v10  ;;  %25598 = vmatprep.mubr.msk.f32.mxu1 %vm26536_vm1, %v32668_v15  ;;  %26315 = vrcp.f32 %v20209_v34 }
 0xbe2   :  { %v26304_v40 = vpop.eup %26303  ;;  %25606 = vmatprep.subr.mxu1 %v32668_v15  ;;  %17350 = vrot.lane.b32.xlu1 %v32688_v43, %s26540_s21  ;;  %26317 = vrcp.f32 %v20212_v26 }
 0xbe3   :  { %v26306_v23 = vpop.eup %26305  ;;  %25593 = vmatprep.mubr.msk.f32.mxu0 %vm26536_vm1, %v32668_v15  ;;  %25601 = vmatprep.subr.mxu0 %v32668_v15  ;;  %v20294_v38 = vmul.f32 %v26304_v40, %v31166_v17  ;;  %v32706_v40 = vld [vmem:[#allocation80_spill] sm:$0xff] }
 0xbe4   :  { %25599 = vmatmul.mubr.msk.f32.vlgmr.msra.gmra.mxu1 %vm1270_vm2, %v20292_v54  ;;  %17344 = vrot.lane.b32.xlu0 %v32689_v13, %s26540_s21  ;;  %v20215_v9 = vpop.xlane.xlu1 %20214  ;;  %v20218_v2 = vpop.xlane.xlu0 %20217  ;;  %v20293_v3 = vmul.f32 %v26306_v23, %v31170_v16  ;;  %v32693_v16 = vld [vmem:[#allocation27_spill] sm:$0xff]  ;;  %v32707_v23 = vld [vmem:[#allocation86_spill] sm:$0xff] }
 0xbe5   :  { %25607 = vmatpush3.msra.mxu1 %v32690_v6  ;;  %25594 = vmatmul.mubr.msk.f32.vlgmr.msra.gmra.mxu0 %vm1270_vm2, %v20291_v1  ;;  %26319 = vrcp.f32 %v20215_v9  ;;  %v32703_v54 = vld [vmem:[#allocation87_spill] sm:$0xff]  ;;  %v32708_v13 = vld [vmem:[#allocation142_spill] sm:$0xff] }
 0xbe6   :  { %25602 = vmatpush3.msra.mxu0 %v32691_v20  ;;  %25608 = vmatprep.mubr.msk.f32.mxu1 %vm26536_vm1, %v32668_v15  ;;  %v26308_v39 = vpop.eup %26307  ;;  %26321 = vrcp.f32 %v20218_v2 }
 0xbe7   :  { %25616 = vmatprep.subr.mxu1 %v32668_v15  ;;  %11881 = vrot.lane.b32.xlu1 %v32692_v27, %s26531_s24  ;;  %v26310_v12 = vpop.eup %26309  ;;  %v20295_v60 = vmul.f32 %v26308_v39, %v31180_v29  ;;  %v32711_v39 = vld [vmem:[#allocation35_spill] sm:$0xff]  ;;  %v32712_v27 = vld [vmem:[#allocation33_spill] sm:$0xff] }
 0xbe8   :  { %25603 = vmatprep.mubr.msk.f32.mxu0 %vm26536_vm1, %v32668_v15  ;;  %25611 = vmatprep.subr.mxu0 %v32668_v15  ;;  %v20221_v17 = vpop.xlane.xlu1 %20220  ;;  %v20224_v49 = vpop.xlane.xlu0 %20223  ;;  %v20296_v57 = vmul.f32 %v26310_v12, %v31176_v55  ;;  %v32697_v55 = vld [vmem:[#allocation138_spill] sm:$0xff] }
 0xbe9   :  { %25609 = vmatmul.mubr.msk.f32.vlgmr.msra.gmra.mxu1 %vm1270_vm2, %v20294_v38  ;;  %17348 = vrot.lane.b32.xlu0 %v32693_v16, %s26540_s21  ;;  %26323 = vrcp.f32 %v20221_v17  ;;  %v32709_v38 = vld [vmem:[#allocation32_spill] sm:$0xff] }
 0xbea   :  { %25617 = vmatpush3.msra.mxu1 %v32694_v46  ;;  %25604 = vmatmul.mubr.msk.f32.vlgmr.msra.gmra.mxu0 %vm1270_vm2, %v20293_v3  ;;  %v26312_v61 = vpop.eup %26311  ;;  %26325 = vrcp.f32 %v20224_v49  ;;  %v32710_v3 = vld [vmem:[#allocation85_spill] sm:$0xff] }
 0xbeb   :  { %25612 = vmatpush3.msra.mxu0 %v32695_v21  ;;  %25618 = vmatprep.mubr.msk.f32.mxu1 %vm26536_vm1, %v32668_v15  ;;  %v26314_v30 = vpop.eup %26313  ;;  %v20297_v53 = vmul.f32 %v26312_v61, %v31190_v47  ;;  %v32716_v21 = vld [vmem:[#allocation30_spill] sm:$0xff] }
 0xbec   :  { %25626 = vmatprep.subr.mxu1 %v32668_v15  ;;  %11885 = vrot.lane.b32.xlu1 %v32696_v42, %s26531_s24  ;;  %v20227_v37 = vpop.xlane.xlu1 %20226  ;;  %v20230_v29 = vpop.xlane.xlu0 %20229  ;;  %v20298_v63 = vmul.f32 %v26314_v30, %v31186_v58  ;;  %v32701_v58 = vld [vmem:[#allocation134_spill] sm:$0xff]  ;;  %v32718_v30 = vld [vmem:[#allocation84_spill] sm:$0xff] }
 0xbed   :  { %25613 = vmatprep.mubr.msk.f32.mxu0 %vm26536_vm1, %v32668_v15  ;;  %25621 = vmatprep.subr.mxu0 %v32668_v15  ;;  %26327 = vrcp.f32 %v20227_v37 }
 0xbee   :  { %11879 = vrot.lane.b32.xlu0 %v32697_v55, %s26531_s24  ;;  %25614 = vmatmul.mubr.msk.f32.vlgmr.msra.gmra.mxu0 %vm1270_vm2, %v20295_v60  ;;  %v26316_v31 = vpop.eup %26315  ;;  %26329 = vrcp.f32 %v20230_v29  ;;  %v32714_v60 = vld [vmem:[#allocation123_spill] sm:$0xff] }
 0xbef   :  { %25619 = vmatmul.mubr.msk.f32.vlgmr.msra.gmra.mxu1 %vm1270_vm2, %v20296_v57  ;;  %25622 = vmatpush3.msra.mxu0 %v32698_v35  ;;  %v26318_v47 = vpop.eup %26317  ;;  %v20299_v51 = vmul.f32 %v26316_v31, %v31200_v33  ;;  %v32715_v57 = vld [vmem:[#allocation91_spill] sm:$0xff] }
 0xbf0   :  { %25627 = vmatpush3.msra.mxu1 %v32699_v8  ;;  %17354 = vrot.lane.b32.xlu1 %v32700_v62, %s26540_s21  ;;  %v20233_v22 = vpop.xlane.xlu1 %20232  ;;  %v20236_v4 = vpop.xlane.xlu0 %20235  ;;  %v20300_v11 = vmul.f32 %v26318_v47, %v31196_v0  ;;  %v32705_v0 = vld [vmem:[#allocation77_spill] sm:$0xff]  ;;  %v32719_v8 = vld [vmem:[#allocation34_spill] sm:$0xff]  ;;  %v32720_v62 = vld [vmem:[#allocation72_spill] sm:$0xff] }
 0xbf1   :  { %25623 = vmatprep.mubr.msk.f32.mxu0 %vm26536_vm1, %v32668_v15  ;;  %25628 = vmatprep.mubr.msk.f32.mxu1 %vm26536_vm1, %v32668_v15  ;;  %26331 = vrcp.f32 %v20233_v22 }
 0xbf2   :  { %25631 = vmatprep.subr.mxu0 %v32668_v15  ;;  %25636 = vmatprep.subr.mxu1 %v32668_v15  ;;  %v26320_v34 = vpop.eup %26319  ;;  %26333 = vrcp.f32 %v20236_v4 }
 0xbf3   :  { %11883 = vrot.lane.b32.xlu0 %v32701_v58, %s26531_s24  ;;  %25624 = vmatmul.mubr.msk.f32.vlgmr.msra.gmra.mxu0 %vm1270_vm2, %v20297_v53  ;;  %v26322_v33 = vpop.eup %26321  ;;  %v20301_v10 = vmul.f32 %v26320_v34, %v31210_v45 }
 0xbf4   :  { %25629 = vmatmul.mubr.msk.f32.vlgmr.msra.gmra.mxu1 %vm1270_vm2, %v20298_v63  ;;  %25632 = vmatpush3.msra.mxu0 %v32702_v36  ;;  %v20239_v44 = vpop.xlane.xlu1 %20238  ;;  %v20242_v14 = vpop.xlane.xlu0 %20241  ;;  %v20302_v43 = vmul.f32 %v26322_v33, %v31206_v18 }
 0xbf5   :  { %25637 = vmatpush3.msra.mxu1 %v32703_v54  ;;  %17358 = vrot.lane.b32.xlu1 %v32704_v19, %s26540_s21  ;;  %26335 = vrcp.f32 %v20239_v44 }
 0xbf6   :  { %25633 = vmatprep.mubr.msk.f32.mxu0 %vm26536_vm1, %v32668_v15  ;;  %25638 = vmatprep.mubr.msk.f32.mxu1 %vm26536_vm1, %v32668_v15  ;;  %v26324_v9 = vpop.eup %26323  ;;  %26337 = vrcp.f32 %v20242_v14 }
 0xbf7   :  { %25641 = vmatprep.subr.mxu0 %v32668_v15  ;;  %25646 = vmatprep.subr.mxu1 %v32668_v15  ;;  %v26326_v45 = vpop.eup %26325  ;;  %v20303_v6 = vmul.f32 %v26324_v9, %v31219_v48 }
 0xbf8   :  { %17352 = vrot.lane.b32.xlu0 %v32705_v0, %s26540_s21  ;;  %25634 = vmatmul.mubr.msk.f32.vlgmr.msra.gmra.mxu0 %vm1270_vm2, %v20299_v51  ;;  %v20245_v26 = vpop.xlane.xlu1 %20244  ;;  %v20248_v1 = vpop.xlane.xlu0 %20247  ;;  %v20304_v20 = vmul.f32 %v26326_v45, %v31216_v50  ;;  %v32713_v50 = vld [vmem:[#allocation125_spill] sm:$0xff] }
 0xbf9   :  { %25639 = vmatmul.mubr.msk.f32.vlgmr.msra.gmra.mxu1 %vm1270_vm2, %v20300_v11  ;;  %25642 = vmatpush3.msra.mxu0 %v32706_v40  ;;  %26339 = vrcp.f32 %v20245_v26 }
 0xbfa   :  { %25647 = vmatpush3.msra.mxu1 %v32707_v23  ;;  %11889 = vrot.lane.b32.xlu1 %v32708_v13, %s26531_s24  ;;  %v26328_v12 = vpop.eup %26327  ;;  %26341 = vrcp.f32 %v20248_v1 }
 0xbfb   :  { %25643 = vmatprep.mubr.msk.f32.mxu0 %vm26536_vm1, %v32668_v15  ;;  %25648 = vmatprep.mubr.msk.f32.mxu1 %vm26536_vm1, %v32668_v15  ;;  %v26330_v49 = vpop.eup %26329  ;;  %v20305_v16 = vmul.f32 %v26328_v12, %v31227_v28 }
 0xbfc   :  { %25651 = vmatprep.subr.mxu0 %v32668_v15  ;;  %25656 = vmatprep.subr.mxu1 %v32668_v15  ;;  %v31499_v2 = vpop.permute.xlu1 %22669  ;;  %v31501_v18 = vpop.permute.xlu0 %22593  ;;  %v20306_v46 = vmul.f32 %v26330_v49, %v31225_v24  ;;  %v32717_v24 = vld [vmem:[#allocation38_spill] sm:$0xff] }
 0xbfd   :  { %17356 = vrot.lane.b32.xlu0 %v32709_v38, %s26540_s21  ;;  %25644 = vmatmul.mubr.msk.f32.vlgmr.msra.gmra.mxu0 %vm1270_vm2, %v20301_v10 }
 0xbfe   :  { %25649 = vmatmul.mubr.msk.f32.vlgmr.msra.gmra.mxu1 %vm1270_vm2, %v20302_v43  ;;  %25652 = vmatpush3.msra.mxu0 %v32710_v3  ;;  %v26332_v37 = vpop.eup %26331 }
 0xbff   :  { %25657 = vmatpush3.msra.mxu1 %v32711_v39  ;;  %11893 = vrot.lane.b32.xlu1 %v32712_v27, %s26531_s24  ;;  %v26334_v28 = vpop.eup %26333  ;;  %v20307_v29 = vmul.f32 %v26332_v37, %v31235_v7 }
 0xc00   :  { %25653 = vmatprep.mubr.msk.f32.mxu0 %vm26536_vm1, %v32668_v15  ;;  %25658 = vmatprep.mubr.msk.f32.mxu1 %vm26536_vm1, %v32668_v15  ;;  %v11834_v48 = vpop.permute.xlu1 %11833  ;;  %v11832_v17 = vpop.permute.xlu0 %11831  ;;  %v20308_v63 = vmul.f32 %v26334_v28, %v31233_v32  ;;  %v32721_v32 = vld [vmem:[#allocation76_spill] sm:$0xff] }
 0xc01   :  { %25661 = vmatprep.subr.mxu0 %v32668_v15  ;;  %25666 = vmatprep.subr.mxu1 %v32668_v15  ;;  %11929 = vst.msk [vmem:[#allocation2 + $0x8] sm:$0xff] %vm11927_vm3, %v11834_v48  ;;  %11928 = vst.msk [vmem:[#allocation2] sm:$0xff] %vm11927_vm3, %v11832_v17 }
 0xc02   :  { %11887 = vrot.lane.b32.xlu0 %v32713_v50, %s26531_s24  ;;  %25654 = vmatmul.mubr.msk.f32.vlgmr.msra.gmra.mxu0 %vm1270_vm2, %v20303_v6  ;;  %v26336_v35 = vpop.eup %26335 }
 0xc03   :  { %25659 = vmatmul.mubr.msk.f32.vlgmr.msra.gmra.mxu1 %vm1270_vm2, %v20304_v20  ;;  %25662 = vmatpush3.msra.mxu0 %v32714_v60  ;;  %v26338_v22 = vpop.eup %26337  ;;  %v20309_v47 = vmul.f32 %v26336_v35, %v31243_v52 }
 0xc04   :  { %25667 = vmatpush3.msra.mxu1 %v32715_v57  ;;  %17362 = vrot.lane.b32.xlu1 %v32716_v21, %s26540_s21  ;;  %v11838_v61 = vpop.permute.xlu1 %11837  ;;  %v11836_v42 = vpop.permute.xlu0 %11835  ;;  %v20310_v58 = vmul.f32 %v26338_v22, %v31241_v59  ;;  %v32722_v59 = vld [vmem:[#allocation31_spill] sm:$0xff] }
 0xc05   :  { %25663 = vmatprep.mubr.msk.f32.mxu0 %vm26536_vm1, %v32668_v15  ;;  %25668 = vmatprep.mubr.msk.f32.mxu1 %vm26536_vm1, %v32668_v15  ;;  %11931 = vst.msk [vmem:[#allocation2 + $0x18] sm:$0xff] %vm11927_vm3, %v11838_v61  ;;  %11930 = vst.msk [vmem:[#allocation2 + $0x10] sm:$0xff] %vm11927_vm3, %v11836_v42 }
 0xc06   :  { %25671 = vmatprep.subr.mxu0 %v32668_v15  ;;  %25676 = vmatprep.subr.mxu1 %v32668_v15  ;;  %v26340_v31 = vpop.eup %26339 }
 0xc07   :  { %11891 = vrot.lane.b32.xlu0 %v32717_v24, %s26531_s24  ;;  %25664 = vmatmul.mubr.msk.f32.vlgmr.msra.gmra.mxu0 %vm1270_vm2, %v20305_v16  ;;  %v26342_v51 = vpop.eup %26341  ;;  %v20311_v36 = vmul.f32 %v26340_v31, %v31251_v25 }
 0xc08   :  { %25669 = vmatmul.mubr.msk.f32.vlgmr.msra.gmra.mxu1 %vm1270_vm2, %v20306_v46  ;;  %25672 = vmatpush3.msra.mxu0 %v32718_v30  ;;  %v17307_v55 = vpop.permute.xlu1 %17306  ;;  %v17305_v53 = vpop.permute.xlu0 %17304  ;;  %v20312_v44 = vmul.f32 %v26342_v51, %v31249_v41  ;;  %v25766_v51 = vld [vmem:[#allocation12] sm:$0xff]  }
 0xc09   :  { %25677 = vmatpush3.msra.mxu1 %v32719_v8  ;;  %17366 = vrot.lane.b32.xlu1 %v32720_v62, %s26540_s21  ;;  %17402 = vst.msk [vmem:[#allocation2 + $0x8] sm:$0xff] %vm17400_vm4, %v17307_v55  ;;  %17401 = vst.msk [vmem:[#allocation2] sm:$0xff] %vm17400_vm4, %v17305_v53 }
 0xc0a   :  { %25673 = vmatprep.mubr.msk.f32.mxu0 %vm26536_vm1, %v32668_v15  ;;  %25678 = vmatprep.mubr.msk.f32.mxu1 %vm26536_vm1, %v32668_v15 }
 0xc0b   :  { %25681 = vmatprep.subr.mxu0 %v32668_v15  ;;  %25686 = vmatprep.subr.mxu1 %v32668_v15 }
 0xc0c   :  { %17360 = vrot.lane.b32.xlu0 %v32721_v32, %s26540_s21  ;;  %25674 = vmatmul.mubr.msk.f32.vlgmr.msra.gmra.mxu0 %vm1270_vm2, %v20307_v29  ;;  %v17311_v7 = vpop.permute.xlu1 %17310  ;;  %v17309_v4 = vpop.permute.xlu0 %17308 }
 0xc0d   :  { %25679 = vmatmul.mubr.msk.f32.vlgmr.msra.gmra.mxu1 %vm1270_vm2, %v20308_v63  ;;  %25682 = vmatpush3.msra.mxu0 %v31309_v5  ;;  %17404 = vst.msk [vmem:[#allocation2 + $0x18] sm:$0xff] %vm17400_vm4, %v17311_v7  ;;  %17403 = vst.msk [vmem:[#allocation2 + $0x10] sm:$0xff] %vm17400_vm4, %v17309_v4  ;;  %v25765_v4 = vld [vmem:[#allocation12 + $0x8] sm:$0xff]  }
 0xc0e   :  { %25687 = vmatpush3.msra.mxu1 %v31307_v56  ;;  %25683 = vmatprep.mubr.msk.f32.mxu0 %vm26536_vm1, %v32668_v15 }
 0xc0f   :  { %25688 = vmatprep.mubr.msk.f32.mxu1 %vm26536_vm1, %v32668_v15  ;;  %25691 = vmatprep.subr.mxu0 %v32668_v15 }
 0xc10   :  { %25696 = vmatprep.subr.mxu1 %v32668_v15  ;;  %17364 = vrot.lane.b32.xlu0 %v32722_v59, %s26540_s21  ;;  %v11842_v52 = vpop.permute.xlu1 %11841  ;;  %v11840_v5 = vpop.permute.xlu0 %11839 }
 0xc11   :  { %25684 = vmatmul.mubr.msk.f32.vlgmr.msra.gmra.mxu0 %vm1270_vm2, %v20309_v47  ;;  %25689 = vmatmul.mubr.msk.f32.vlgmr.msra.gmra.mxu1 %vm1270_vm2, %v20310_v58  ;;  %11933 = vst.msk [vmem:[#allocation2 + $0x28] sm:$0xff] %vm11927_vm3, %v11842_v52  ;;  %11932 = vst.msk [vmem:[#allocation2 + $0x20] sm:$0xff] %vm11927_vm3, %v11840_v5 }
 0xc12   :  { %25692 = vmatpush3.msra.mxu0 %v31501_v18  ;;  %25697 = vmatpush3.msra.mxu1 %v31499_v2 }
 0xc13   :  { %25693 = vmatprep.mubr.msk.f32.mxu0 %vm26536_vm1, %v32668_v15  ;;  %25698 = vmatprep.mubr.msk.f32.mxu1 %vm26536_vm1, %v32668_v15 }
 0xc14   :  { %v11846_v25 = vpop.permute.xlu1 %11845  ;;  %v11844_v41 = vpop.permute.xlu0 %11843  ;;  %25701 = vmatprep.subr.bf16.mxu0 %v25765_v4 }
 0xc15   :  { %25694 = vmatmul.mubr.msk.f32.vlgmr.msra.gmra.mxu0 %vm1270_vm2, %v20311_v36  ;;  %25699 = vmatmul.mubr.msk.f32.vlgmr.msra.gmra.mxu1 %vm1270_vm2, %v20312_v44  ;;  %11935 = vst.msk [vmem:[#allocation2 + $0x38] sm:$0xff] %vm11927_vm3, %v11846_v25  ;;  %11934 = vst.msk [vmem:[#allocation2 + $0x30] sm:$0xff] %vm11927_vm3, %v11844_v41 }
 0xc16   :  { %25702 = vmatpush3.bf16.msra.mxu0 %v25765_v4 }
 0xc17   :  { %25703 = vmatprep.subr.bf16.mxu0 %v25766_v51 }
 0xc18   :  { %v17315_v56 = vpop.permute.xlu1 %17314  ;;  %v17313_v14 = vpop.permute.xlu0 %17312 }
 0xc19   :  { %17406 = vst.msk [vmem:[#allocation2 + $0x28] sm:$0xff] %vm17400_vm4, %v17315_v56  ;;  %17405 = vst.msk [vmem:[#allocation2 + $0x20] sm:$0xff] %vm17400_vm4, %v17313_v14 }
 0xc1a   :  { %25704 = vmatpush3.bf16.msra.mxu0 %v25766_v51 }
 0xc1c   :  { %v17319_v11 = vpop.permute.xlu1 %17318  ;;  %v17317_v54 = vpop.permute.xlu0 %17316 }
 0xc1d   :  { %17408 = vst.msk [vmem:[#allocation2 + $0x38] sm:$0xff] %vm17400_vm4, %v17319_v11  ;;  %17407 = vst.msk [vmem:[#allocation2 + $0x30] sm:$0xff] %vm17400_vm4, %v17317_v54 }
 0xc20   :  { %v11850_v15 = vpop.permute.xlu1 %11849  ;;  %v11848_v19 = vpop.permute.xlu0 %11847 }
 0xc21   :  { %11937 = vst.msk [vmem:[#allocation2 + $0x48] sm:$0xff] %vm11927_vm3, %v11850_v15  ;;  %11936 = vst.msk [vmem:[#allocation2 + $0x40] sm:$0xff] %vm11927_vm3, %v11848_v19 }
 0xc24   :  { %v11854_v34 = vpop.permute.xlu1 %11853  ;;  %v11852_v33 = vpop.permute.xlu0 %11851 }
 0xc25   :  { %11939 = vst.msk [vmem:[#allocation2 + $0x58] sm:$0xff] %vm11927_vm3, %v11854_v34  ;;  %11938 = vst.msk [vmem:[#allocation2 + $0x50] sm:$0xff] %vm11927_vm3, %v11852_v33 }
 0xc28   :  { %v17323_v0 = vpop.permute.xlu1 %17322  ;;  %v17321_v26 = vpop.permute.xlu0 %17320 }
 0xc29   :  { %17410 = vst.msk [vmem:[#allocation2 + $0x48] sm:$0xff] %vm17400_vm4, %v17323_v0  ;;  %17409 = vst.msk [vmem:[#allocation2 + $0x40] sm:$0xff] %vm17400_vm4, %v17321_v26 }
 0xc2c   :  { %v17327_v1 = vpop.permute.xlu1 %17326  ;;  %v17325_v10 = vpop.permute.xlu0 %17324 }
 0xc2d   :  { %17412 = vst.msk [vmem:[#allocation2 + $0x58] sm:$0xff] %vm17400_vm4, %v17327_v1  ;;  %17411 = vst.msk [vmem:[#allocation2 + $0x50] sm:$0xff] %vm17400_vm4, %v17325_v10 }
 0xc30   :  { %v11858_v40 = vpop.permute.xlu1 %11857  ;;  %v11856_v43 = vpop.permute.xlu0 %11855 }
 0xc31   :  { %11941 = vst.msk [vmem:[#allocation2 + $0x68] sm:$0xff] %vm11927_vm3, %v11858_v40  ;;  %11940 = vst.msk [vmem:[#allocation2 + $0x60] sm:$0xff] %vm11927_vm3, %v11856_v43 }
 0xc34   :  { %v11862_v23 = vpop.permute.xlu1 %11861  ;;  %v11860_v13 = vpop.permute.xlu0 %11859 }
 0xc35   :  { %11943 = vst.msk [vmem:[#allocation2 + $0x78] sm:$0xff] %vm11927_vm3, %v11862_v23  ;;  %11942 = vst.msk [vmem:[#allocation2 + $0x70] sm:$0xff] %vm11927_vm3, %v11860_v13 }
 0xc38   :  { %v17331_v9 = vpop.permute.xlu1 %17330  ;;  %v17329_v45 = vpop.permute.xlu0 %17328 }
 0xc39   :  { %17414 = vst.msk [vmem:[#allocation2 + $0x68] sm:$0xff] %vm17400_vm4, %v17331_v9  ;;  %17413 = vst.msk [vmem:[#allocation2 + $0x60] sm:$0xff] %vm17400_vm4, %v17329_v45 }
 0xc3c   :  { %v17335_v2 = vpop.permute.xlu1 %17334  ;;  %v17333_v18 = vpop.permute.xlu0 %17332 }
 0xc3d   :  { %17416 = vst.msk [vmem:[#allocation2 + $0x78] sm:$0xff] %vm17400_vm4, %v17335_v2  ;;  %17415 = vst.msk [vmem:[#allocation2 + $0x70] sm:$0xff] %vm17400_vm4, %v17333_v18 }
 0xc40   :  { %v11866_v38 = vpop.permute.xlu1 %11865  ;;  %v11864_v6 = vpop.permute.xlu0 %11863 }
 0xc41   :  { %11945 = vst.msk [vmem:[#allocation2 + $0x88] sm:$0xff] %vm11927_vm3, %v11866_v38  ;;  %11944 = vst.msk [vmem:[#allocation2 + $0x80] sm:$0xff] %vm11927_vm3, %v11864_v6 }
 0xc44   :  { %v11870_v3 = vpop.permute.xlu1 %11869  ;;  %v11868_v20 = vpop.permute.xlu0 %11867 }
 0xc45   :  { %11947 = vst.msk [vmem:[#allocation2 + $0x98] sm:$0xff] %vm11927_vm3, %v11870_v3  ;;  %11946 = vst.msk [vmem:[#allocation2 + $0x90] sm:$0xff] %vm11927_vm3, %v11868_v20 }
 0xc48   :  { %v17339_v39 = vpop.permute.xlu1 %17338  ;;  %v17337_v27 = vpop.permute.xlu0 %17336 }
 0xc49   :  { %17418 = vst.msk [vmem:[#allocation2 + $0x88] sm:$0xff] %vm17400_vm4, %v17339_v39  ;;  %17417 = vst.msk [vmem:[#allocation2 + $0x80] sm:$0xff] %vm17400_vm4, %v17337_v27 }
 0xc4c   :  { %v17343_v12 = vpop.permute.xlu1 %17342  ;;  %v17341_v48 = vpop.permute.xlu0 %17340 }
 0xc4d   :  { %17420 = vst.msk [vmem:[#allocation2 + $0x98] sm:$0xff] %vm17400_vm4, %v17343_v12  ;;  %17419 = vst.msk [vmem:[#allocation2 + $0x90] sm:$0xff] %vm17400_vm4, %v17341_v48 }
 0xc50   :  { %v11874_v17 = vpop.permute.xlu1 %11873  ;;  %v11872_v49 = vpop.permute.xlu0 %11871 }
 0xc51   :  { %11949 = vst.msk [vmem:[#allocation2 + $0xa8] sm:$0xff] %vm11927_vm3, %v11874_v17  ;;  %11948 = vst.msk [vmem:[#allocation2 + $0xa0] sm:$0xff] %vm11927_vm3, %v11872_v49 }
 0xc54   :  { %v11878_v50 = vpop.permute.xlu1 %11877  ;;  %v11876_v16 = vpop.permute.xlu0 %11875 }
 0xc55   :  { %11951 = vst.msk [vmem:[#allocation2 + $0xb8] sm:$0xff] %vm11927_vm3, %v11878_v50  ;;  %11950 = vst.msk [vmem:[#allocation2 + $0xb0] sm:$0xff] %vm11927_vm3, %v11876_v16 }
 0xc58   :  { %v17347_v60 = vpop.permute.xlu1 %17346  ;;  %v17345_v46 = vpop.permute.xlu0 %17344 }
 0xc59   :  { %17422 = vst.msk [vmem:[#allocation2 + $0xa8] sm:$0xff] %vm17400_vm4, %v17347_v60  ;;  %17421 = vst.msk [vmem:[#allocation2 + $0xa0] sm:$0xff] %vm17400_vm4, %v17345_v46 }
 0xc5c   :  { %v17351_v57 = vpop.permute.xlu1 %17350  ;;  %v17349_v21 = vpop.permute.xlu0 %17348 }
 0xc5d   :  { %17424 = vst.msk [vmem:[#allocation2 + $0xb8] sm:$0xff] %vm17400_vm4, %v17351_v57  ;;  %17423 = vst.msk [vmem:[#allocation2 + $0xb0] sm:$0xff] %vm17400_vm4, %v17349_v21 }
 0xc60   :  { %v11882_v61 = vpop.permute.xlu1 %11881  ;;  %v11880_v42 = vpop.permute.xlu0 %11879 }
 0xc61   :  { %11953 = vst.msk [vmem:[#allocation2 + $0xc8] sm:$0xff] %vm11927_vm3, %v11882_v61  ;;  %11952 = vst.msk [vmem:[#allocation2 + $0xc0] sm:$0xff] %vm11927_vm3, %v11880_v42 }
 0xc64   :  { %v11886_v37 = vpop.permute.xlu1 %11885 }
 0xc65   :  { %11955 = vst.msk [vmem:[#allocation2 + $0xd8] sm:$0xff] %vm11927_vm3, %v11886_v37  ;;  %v11884_v28 = vpop.permute.xlu0 %11883 }
 0xc66   :  { %11954 = vst.msk [vmem:[#allocation2 + $0xd0] sm:$0xff] %vm11927_vm3, %v11884_v28 }
 0xc68   :  { %v17355_v24 = vpop.permute.xlu1 %17354 }
 0xc69   :  { %17426 = vst.msk [vmem:[#allocation2 + $0xc8] sm:$0xff] %vm17400_vm4, %v17355_v24 }
 0xc6a   :  { %v17353_v29 = vpop.permute.xlu0 %17352 }
 0xc6b   :  { %17425 = vst.msk [vmem:[#allocation2 + $0xc0] sm:$0xff] %vm17400_vm4, %v17353_v29 }
 0xc6c   :  { %v17359_v30 = vpop.permute.xlu1 %17358 }
 0xc6d   :  { %17428 = vst.msk [vmem:[#allocation2 + $0xd8] sm:$0xff] %vm17400_vm4, %v17359_v30 }
 0xc6f   :  { %v17357_v55 = vpop.permute.xlu0 %17356 }
 0xc70   :  { %17427 = vst.msk [vmem:[#allocation2 + $0xd0] sm:$0xff] %vm17400_vm4, %v17357_v55  ;;  %v11890_v53 = vpop.permute.xlu1 %11889 }
 0xc71   :  { %11957 = vst.msk [vmem:[#allocation2 + $0xe8] sm:$0xff] %vm11927_vm3, %v11890_v53 }
 0xc74   :  { %v11888_v35 = vpop.permute.xlu0 %11887  ;;  %v11894_v63 = vpop.permute.xlu1 %11893 }
 0xc75   :  { %11956 = vst.msk [vmem:[#allocation2 + $0xe0] sm:$0xff] %vm11927_vm3, %v11888_v35  ;;  %11959 = vst.msk [vmem:[#allocation2 + $0xf8] sm:$0xff] %vm11927_vm3, %v11894_v63 }
 0xc78   :  { %v17363_v8 = vpop.permute.xlu1 %17362 }
 0xc79   :  { %v11892_v62 = vpop.permute.xlu0 %11891  ;;  %17430 = vst.msk [vmem:[#allocation2 + $0xe8] sm:$0xff] %vm17400_vm4, %v17363_v8 }
 0xc7a   :  { %11958 = vst.msk [vmem:[#allocation2 + $0xf0] sm:$0xff] %vm11927_vm3, %v11892_v62 }
 0xc7c   :  { %v17367_v22 = vpop.permute.xlu1 %17366 }
 0xc7d   :  { %17432 = vst.msk [vmem:[#allocation2 + $0xf8] sm:$0xff] %vm17400_vm4, %v17367_v22 }
 0xc7e   :  { %v17361_v32 = vpop.permute.xlu0 %17360 }
 0xc7f   :  { %17429 = vst.msk [vmem:[#allocation2 + $0xe0] sm:$0xff] %vm17400_vm4, %v17361_v32 }
 0xc82   :  { %v17365_v7 = vpop.permute.xlu0 %17364 }
 0xc83   :  { %17431 = vst.msk [vmem:[#allocation2 + $0xf0] sm:$0xff] %vm17400_vm4, %v17365_v7 }
 0xc89   :  { %v20461_v31 = vpop.f32.mrf.mxu1 }
 0xc8a   :  { %22779 = vrot.lane.b32.xlu1 %v20461_v31, %s26541_s22  ;;  %v20385_v47 = vpop.f32.mrf.mxu0 }
 0xc8b   :  { %v25550_v58 = vpop.f32.mrf.mxu1  ;;  %22777 = vrot.lane.b32.xlu0 %v20385_v47, %s26541_s22 }
 0xc8c   :  { %v25545_v59 = vpop.f32.mrf.mxu0 }
 0xc8e   :  { %v20537_v52 = vpop.f32.mrf.mxu0 }
 0xc8f   :  { %22781 = vrot.lane.b32.xlu0 %v20537_v52, %s26541_s22 }
 0xc90   :  { %v25555_v5 = vpop.f32.mrf.mxu0 }
 0xc91   :  { %v20613_v36 = vpop.f32.mrf.mxu1 }
 0xc92   :  { %22783 = vrot.lane.b32.xlu1 %v20613_v36, %s26541_s22 }
 0xc93   :  { %v25560_v44 = vpop.f32.mrf.mxu1 }
 0xc95   :  { %v20765_v25 = vpop.f32.mrf.mxu1 }
 0xc96   :  { %v20689_v41 = vpop.f32.mrf.mxu0  ;;  %22787 = vrot.lane.b32.xlu1 %v20765_v25, %s26541_s22 }
 0xc97   :  { %22785 = vrot.lane.b32.xlu0 %v20689_v41, %s26541_s22  ;;  %v25570_v56 = vpop.f32.mrf.mxu1 }
 0xc98   :  { %v25565_v14 = vpop.f32.mrf.mxu0 }
 0xc9a   :  { %v20917_v11 = vpop.f32.mrf.mxu1 }
 0xc9b   :  { %v20841_v54 = vpop.f32.mrf.mxu0  ;;  %22791 = vrot.lane.b32.xlu1 %v20917_v11, %s26541_s22 }
 0xc9c   :  { %22789 = vrot.lane.b32.xlu0 %v20841_v54, %s26541_s22  ;;  %v25580_v15 = vpop.f32.mrf.mxu1 }
 0xc9d   :  { %v25575_v19 = vpop.f32.mrf.mxu0 }
 0xc9f   :  { %v21069_v34 = vpop.f32.mrf.mxu1 }
 0xca0   :  { %v20993_v33 = vpop.f32.mrf.mxu0  ;;  %22795 = vrot.lane.b32.xlu1 %v21069_v34, %s26541_s22 }
 0xca1   :  { %22793 = vrot.lane.b32.xlu0 %v20993_v33, %s26541_s22  ;;  %v25590_v0 = vpop.f32.mrf.mxu1 }
 0xca2   :  { %v25585_v26 = vpop.f32.mrf.mxu0 }
 0xca4   :  { %v21221_v1 = vpop.f32.mrf.mxu1 }
 0xca5   :  { %v21145_v10 = vpop.f32.mrf.mxu0  ;;  %22799 = vrot.lane.b32.xlu1 %v21221_v1, %s26541_s22 }
 0xca6   :  { %22797 = vrot.lane.b32.xlu0 %v21145_v10, %s26541_s22  ;;  %v25600_v40 = vpop.f32.mrf.mxu1 }
 0xca7   :  { %v25595_v43 = vpop.f32.mrf.mxu0 }
 0xca9   :  { %v21373_v23 = vpop.f32.mrf.mxu1 }
 0xcaa   :  { %v21297_v13 = vpop.f32.mrf.mxu0  ;;  %22803 = vrot.lane.b32.xlu1 %v21373_v23, %s26541_s22 }
 0xcab   :  { %22801 = vrot.lane.b32.xlu0 %v21297_v13, %s26541_s22  ;;  %v25610_v9 = vpop.f32.mrf.mxu1 }
 0xcac   :  { %v25605_v45 = vpop.f32.mrf.mxu0 }
 0xcae   :  { %v21449_v2 = vpop.f32.mrf.mxu0 }
 0xcaf   :  { %v21525_v18 = vpop.f32.mrf.mxu1  ;;  %22805 = vrot.lane.b32.xlu0 %v21449_v2, %s26541_s22 }
 0xcb0   :  { %22807 = vrot.lane.b32.xlu1 %v21525_v18, %s26541_s22  ;;  %v25615_v38 = vpop.f32.mrf.mxu0 }
 0xcb1   :  { %v25620_v6 = vpop.f32.mrf.mxu1 }
 0xcb3   :  { %v21601_v3 = vpop.f32.mrf.mxu0 }
 0xcb4   :  { %v21677_v20 = vpop.f32.mrf.mxu1  ;;  %22809 = vrot.lane.b32.xlu0 %v21601_v3, %s26541_s22 }
 0xcb5   :  { %22811 = vrot.lane.b32.xlu1 %v21677_v20, %s26541_s22  ;;  %v25625_v39 = vpop.f32.mrf.mxu0 }
 0xcb6   :  { %v25630_v27 = vpop.f32.mrf.mxu1 }
 0xcb8   :  { %v21753_v12 = vpop.f32.mrf.mxu0 }
 0xcb9   :  { %v21829_v48 = vpop.f32.mrf.mxu1  ;;  %22813 = vrot.lane.b32.xlu0 %v21753_v12, %s26541_s22 }
 0xcba   :  { %22815 = vrot.lane.b32.xlu1 %v21829_v48, %s26541_s22  ;;  %v25635_v17 = vpop.f32.mrf.mxu0 }
 0xcbb   :  { %v25640_v49 = vpop.f32.mrf.mxu1 }
 0xcbd   :  { %v21905_v50 = vpop.f32.mrf.mxu0 }
 0xcbe   :  { %v21981_v16 = vpop.f32.mrf.mxu1  ;;  %22817 = vrot.lane.b32.xlu0 %v21905_v50, %s26541_s22 }
 0xcbf   :  { %22819 = vrot.lane.b32.xlu1 %v21981_v16, %s26541_s22  ;;  %v25645_v60 = vpop.f32.mrf.mxu0 }
 0xcc0   :  { %v25650_v46 = vpop.f32.mrf.mxu1 }
 0xcc2   :  { %v22057_v57 = vpop.f32.mrf.mxu0 }
 0xcc3   :  { %v22133_v21 = vpop.f32.mrf.mxu1  ;;  %22821 = vrot.lane.b32.xlu0 %v22057_v57, %s26541_s22 }
 0xcc4   :  { %22823 = vrot.lane.b32.xlu1 %v22133_v21, %s26541_s22  ;;  %v25655_v61 = vpop.f32.mrf.mxu0 }
 0xcc5   :  { %v25660_v42 = vpop.f32.mrf.mxu1 }
 0xcc7   :  { %v22209_v37 = vpop.f32.mrf.mxu0 }
 0xcc8   :  { %v22285_v28 = vpop.f32.mrf.mxu1  ;;  %22825 = vrot.lane.b32.xlu0 %v22209_v37, %s26541_s22 }
 0xcc9   :  { %22827 = vrot.lane.b32.xlu1 %v22285_v28, %s26541_s22  ;;  %v25665_v24 = vpop.f32.mrf.mxu0 }
 0xcca   :  { %v25670_v29 = vpop.f32.mrf.mxu1 }
 0xccc   :  { %v22361_v30 = vpop.f32.mrf.mxu0 }
 0xccd   :  { %v22437_v55 = vpop.f32.mrf.mxu1  ;;  %22829 = vrot.lane.b32.xlu0 %v22361_v30, %s26541_s22 }
 0xcce   :  { %22831 = vrot.lane.b32.xlu1 %v22437_v55, %s26541_s22  ;;  %v25675_v53 = vpop.f32.mrf.mxu0 }
 0xccf   :  { %v25680_v35 = vpop.f32.mrf.mxu1 }
 0xcd1   :  { %v22513_v63 = vpop.f32.mrf.mxu0  ;;  %v22589_v8 = vpop.f32.mrf.mxu1 }
 0xcd2   :  { %22835 = vrot.lane.b32.xlu1 %v22589_v8, %s26541_s22  ;;  %22833 = vrot.lane.b32.xlu0 %v22513_v63, %s26541_s22 }
 0xcd3   :  { %v25685_v62 = vpop.f32.mrf.mxu0  ;;  %v25690_v22 = vpop.f32.mrf.mxu1 }
 0xcd5   :  { %v22665_v32 = vpop.f32.mrf.mxu0  ;;  %v22741_v7 = vpop.f32.mrf.mxu1 }
 0xcd6   :  { %22839 = vrot.lane.b32.xlu1 %v22741_v7, %s26541_s22  ;;  %22837 = vrot.lane.b32.xlu0 %v22665_v32, %s26541_s22 }
 0xcd7   :  { %v25695_v4 = vpop.f32.mrf.mxu0  ;;  %v25700_v31 = vpop.f32.mrf.mxu1 }
 0xcfc   :  { %v22780_v47 = vpop.permute.xlu1 %22779 }
 0xcfd   :  { %22875 = vst.msk [vmem:[#allocation2 + $0x8] sm:$0xff] %vm22873_vm5, %v22780_v47  ;;  %v22778_v58 = vpop.permute.xlu0 %22777 }
 0xcfe   :  { %22874 = vst.msk [vmem:[#allocation2] sm:$0xff] %vm22873_vm5, %v22778_v58 }
 0xd01   :  { %v22782_v51 = vpop.permute.xlu0 %22781 }
 0xd02   :  { %22876 = vst.msk [vmem:[#allocation2 + $0x10] sm:$0xff] %vm22873_vm5, %v22782_v51 }
 0xd04   :  { %v22907_v59 = vld [vmem:[#allocation2 + $0x8] sm:$0xff]  ;;  %v22784_v52 = vpop.permute.xlu1 %22783 }
 0xd05   :  { %22877 = vst.msk [vmem:[#allocation2 + $0x18] sm:$0xff] %vm22873_vm5, %v22784_v52  ;;  %v22906_v5 = vld [vmem:[#allocation2] sm:$0xff] }
 0xd06   :  { %v22938_v36 = vpack.c.bf16 %v22907_v59, %v22906_v5 }
 0xd08   :  { %25705 = vmatprep.mubr.msk.bf16.mxu0 %vm146_vm0, %v22938_v36  ;;  %v22788_v44 = vpop.permute.xlu1 %22787 }
 0xd09   :  { %22879 = vst.msk [vmem:[#allocation2 + $0x28] sm:$0xff] %vm22873_vm5, %v22788_v44  ;;  %v22786_v25 = vpop.permute.xlu0 %22785  ;;  %v22908_v41 = vld [vmem:[#allocation2 + $0x10] sm:$0xff] }
 0xd0a   :  { %22878 = vst.msk [vmem:[#allocation2 + $0x20] sm:$0xff] %vm22873_vm5, %v22786_v25 }
 0xd0c   :  { %v22909_v56 = vld [vmem:[#allocation2 + $0x18] sm:$0xff] }
 0xd0d   :  { %v22792_v14 = vpop.permute.xlu1 %22791  ;;  %v22939_v11 = vpack.c.bf16 %v22909_v56, %v22908_v41 }
 0xd0e   :  { %22881 = vst.msk [vmem:[#allocation2 + $0x38] sm:$0xff] %vm22873_vm5, %v22792_v14  ;;  %v22790_v54 = vpop.permute.xlu0 %22789 }
 0xd0f   :  { %22880 = vst.msk [vmem:[#allocation2 + $0x30] sm:$0xff] %vm22873_vm5, %v22790_v54  ;;  %25706 = vmatmul.mubr.msk.bf16.vlgmr.msra.gmra.mxu0 %vm146_vm0, %v22939_v11 }
 0xd10   :  { %v22911_v15 = vld [vmem:[#allocation2 + $0x28] sm:$0xff] }
 0xd11   :  { %v22910_v19 = vld [vmem:[#allocation2 + $0x20] sm:$0xff] }
 0xd12   :  { %v22796_v34 = vpop.permute.xlu1 %22795  ;;  %v22940_v33 = vpack.c.bf16 %v22911_v15, %v22910_v19 }
 0xd13   :  { %22883 = vst.msk [vmem:[#allocation2 + $0x48] sm:$0xff] %vm22873_vm5, %v22796_v34  ;;  %v22794_v0 = vpop.permute.xlu0 %22793  ;;  %v31726_v34 = vld [vmem:[%s31806_s8] ss:$0 sm:$0xff]  ;;  %s26542_s8 = smov [#allocation14]  }
 0xd14   :  { %22882 = vst.msk [vmem:[#allocation2 + $0x40] sm:$0xff] %vm22873_vm5, %v22794_v0  ;;  %25709 = vmatprep.mubr.msk.bf16.mxu0 %vm146_vm0, %v22940_v33  ;;  %s23255_s26 = sshll.u32 %s26542_s8, 4  ;;  %s23256_s26 = int_to_ptr.vmem [resolvable:$true] %s23255_s26 }
 0xd15   :  { %v22913_v26 = vld [vmem:[#allocation2 + $0x38] sm:$0xff]  ;;  %s26495_s27 = scalar_lea.vmem %s23256_s26, 4096  ;;  %p26500_p3 = scmp.lt.s32.totalorder %s23256_s26, %s23256_s26 }
 0xd16   :  { %v22912_v1 = vld [vmem:[#allocation2 + $0x30] sm:$0xff]  ;;  %p26496_p2 = scmp.ne.s32.totalorder %s23256_s26, %s26495_s27  ;;  %p26501_p4 = scmp.lt.s32.totalorder %s26495_s27, %s26495_s27 }
 0xd17   :  { %v22800_v10 = vpop.permute.xlu1 %22799  ;;  %v22941_v40 = vpack.c.bf16 %v22913_v26, %v22912_v1  ;;  %v26343_v1 = vld [vmem:[#allocation3 + $0x10] sm:$0xff] }
 0xd18   :  { %22885 = vst.msk [vmem:[#allocation2 + $0x58] sm:$0xff] %vm22873_vm5, %v22800_v10  ;;  %v22798_v43 = vpop.permute.xlu0 %22797  ;;  %p26502_p5 = por %p26501_p4, %p26500_p3 }
 0xd19   :  { %22884 = vst.msk [vmem:[#allocation2 + $0x50] sm:$0xff] %vm22873_vm5, %v22798_v43  ;;  %25710 = vmatmul.mubr.msk.bf16.gmra.mxu0 %vm146_vm0, %v22941_v40 }
 0xd1a   :  { %v22915_v23 = vld [vmem:[#allocation2 + $0x48] sm:$0xff]  ;;  %p26503_p6 = pnand %p26502_p5, %p26496_p2 }
 0xd1b   :  { %v22914_v13 = vld [vmem:[#allocation2 + $0x40] sm:$0xff] }
 0xd1c   :  { %v22804_v9 = vpop.permute.xlu1 %22803  ;;  %v22942_v45 = vpack.c.bf16 %v22915_v23, %v22914_v13  ;;  %v26344_v23 = vld [vmem:[#allocation3] sm:$0xff] }
 0xd1d   :  { %22887 = vst.msk [vmem:[#allocation2 + $0x68] sm:$0xff] %vm22873_vm5, %v22804_v9  ;;  %v22802_v2 = vpop.permute.xlu0 %22801 }
 0xd1e   :  { %22886 = vst.msk [vmem:[#allocation2 + $0x60] sm:$0xff] %vm22873_vm5, %v22802_v2  ;;  %25713 = vmatprep.mubr.msk.bf16.mxu0 %vm146_vm0, %v22942_v45  ;;  %v26345_v2 = vld [vmem:[#allocation3 + $0x18] sm:$0xff] }
 0xd1f   :  { %v22917_v18 = vld [vmem:[#allocation2 + $0x58] sm:$0xff] }
 0xd20   :  { %v22916_v38 = vld [vmem:[#allocation2 + $0x50] sm:$0xff] }
 0xd21   :  { %v22806_v6 = vpop.permute.xlu0 %22805  ;;  %v22943_v3 = vpack.c.bf16 %v22917_v18, %v22916_v38 }
 0xd22   :  { %v22808_v20 = vpop.permute.xlu1 %22807  ;;  %22888 = vst.msk [vmem:[#allocation2 + $0x70] sm:$0xff] %vm22873_vm5, %v22806_v6  ;;  %v26346_v6 = vld [vmem:[#allocation3 + $0x8] sm:$0xff] }
 0xd23   :  { %22889 = vst.msk [vmem:[#allocation2 + $0x78] sm:$0xff] %vm22873_vm5, %v22808_v20  ;;  %25714 = vmatmul.mubr.msk.bf16.gmra.mxu0 %vm146_vm0, %v22943_v3 }
 0xd24   :  { %v22919_v39 = vld [vmem:[#allocation2 + $0x68] sm:$0xff] }
 0xd25   :  { %v22918_v27 = vld [vmem:[#allocation2 + $0x60] sm:$0xff] }
 0xd26   :  { %v22810_v12 = vpop.permute.xlu0 %22809  ;;  %v22944_v48 = vpack.c.bf16 %v22919_v39, %v22918_v27 }
 0xd27   :  { %v22812_v17 = vpop.permute.xlu1 %22811  ;;  %22890 = vst.msk [vmem:[#allocation2 + $0x80] sm:$0xff] %vm22873_vm5, %v22810_v12  ;;  %v26347_v12 = vld [vmem:[#allocation3 + $0x30] sm:$0xff] }
 0xd28   :  { %22891 = vst.msk [vmem:[#allocation2 + $0x88] sm:$0xff] %vm22873_vm5, %v22812_v17  ;;  %25717 = vmatprep.mubr.msk.bf16.mxu0 %vm146_vm0, %v22944_v48 }
 0xd29   :  { %v22920_v49 = vld [vmem:[#allocation2 + $0x70] sm:$0xff] }
 0xd2a   :  { %v22921_v50 = vld [vmem:[#allocation2 + $0x78] sm:$0xff] }
 0xd2b   :  { %v22814_v16 = vpop.permute.xlu0 %22813  ;;  %v22945_v60 = vpack.c.bf16 %v22921_v50, %v22920_v49  ;;  %v26348_v50 = vld [vmem:[#allocation3 + $0x20] sm:$0xff] }
 0xd2c   :  { %v22816_v46 = vpop.permute.xlu1 %22815  ;;  %22892 = vst.msk [vmem:[#allocation2 + $0x90] sm:$0xff] %vm22873_vm5, %v22814_v16 }
 0xd2d   :  { %22893 = vst.msk [vmem:[#allocation2 + $0x98] sm:$0xff] %vm22873_vm5, %v22816_v46  ;;  %25718 = vmatmul.mubr.msk.bf16.gmra.mxu0 %vm146_vm0, %v22945_v60 }
 0xd2e   :  { %v22922_v57 = vld [vmem:[#allocation2 + $0x80] sm:$0xff] }
 0xd2f   :  { %v22923_v21 = vld [vmem:[#allocation2 + $0x88] sm:$0xff] }
 0xd30   :  { %v22818_v61 = vpop.permute.xlu0 %22817  ;;  %v22946_v42 = vpack.c.bf16 %v22923_v21, %v22922_v57  ;;  %v26349_v57 = vld [vmem:[#allocation3 + $0x38] sm:$0xff] }
 0xd31   :  { %v22820_v37 = vpop.permute.xlu1 %22819  ;;  %22894 = vst.msk [vmem:[#allocation2 + $0xa0] sm:$0xff] %vm22873_vm5, %v22818_v61 }
 0xd32   :  { %22895 = vst.msk [vmem:[#allocation2 + $0xa8] sm:$0xff] %vm22873_vm5, %v22820_v37  ;;  %25721 = vmatprep.mubr.msk.bf16.mxu0 %vm146_vm0, %v22946_v42  ;;  %v26350_v42 = vld [vmem:[#allocation3 + $0x28] sm:$0xff] }
 0xd33   :  { %v22924_v28 = vld [vmem:[#allocation2 + $0x90] sm:$0xff] }
 0xd34   :  { %v22925_v24 = vld [vmem:[#allocation2 + $0x98] sm:$0xff] }
 0xd35   :  { %v22822_v29 = vpop.permute.xlu0 %22821  ;;  %v22947_v30 = vpack.c.bf16 %v22925_v24, %v22924_v28 }
 0xd36   :  { %v22824_v55 = vpop.permute.xlu1 %22823  ;;  %22896 = vst.msk [vmem:[#allocation2 + $0xb0] sm:$0xff] %vm22873_vm5, %v22822_v29 }
 0xd37   :  { %22897 = vst.msk [vmem:[#allocation2 + $0xb8] sm:$0xff] %vm22873_vm5, %v22824_v55  ;;  %25722 = vmatmul.mubr.msk.bf16.gmra.mxu0 %vm146_vm0, %v22947_v30  ;;  %v26351_v30 = vld [vmem:[#allocation3 + $0x50] sm:$0xff] }
 0xd38   :  { %v22926_v53 = vld [vmem:[#allocation2 + $0xa0] sm:$0xff] }
 0xd39   :  { %v22927_v35 = vld [vmem:[#allocation2 + $0xa8] sm:$0xff] }
 0xd3a   :  { %v22826_v63 = vpop.permute.xlu0 %22825  ;;  %v22948_v8 = vpack.c.bf16 %v22927_v35, %v22926_v53 }
 0xd3b   :  { %v22828_v62 = vpop.permute.xlu1 %22827  ;;  %22898 = vst.msk [vmem:[#allocation2 + $0xc0] sm:$0xff] %vm22873_vm5, %v22826_v63  ;;  %v26352_v63 = vld [vmem:[#allocation3 + $0x40] sm:$0xff] }
 0xd3c   :  { %22899 = vst.msk [vmem:[#allocation2 + $0xc8] sm:$0xff] %vm22873_vm5, %v22828_v62  ;;  %25725 = vmatprep.mubr.msk.bf16.mxu0 %vm146_vm0, %v22948_v8 }
 0xd3d   :  { %v22928_v22 = vld [vmem:[#allocation2 + $0xb0] sm:$0xff] }
 0xd3e   :  { %v22929_v32 = vld [vmem:[#allocation2 + $0xb8] sm:$0xff] }
 0xd3f   :  { %v22830_v7 = vpop.permute.xlu0 %22829  ;;  %v22949_v4 = vpack.c.bf16 %v22929_v32, %v22928_v22  ;;  %v26353_v32 = vld [vmem:[#allocation3 + $0x58] sm:$0xff] }
 0xd40   :  { %v22832_v31 = vpop.permute.xlu1 %22831  ;;  %22900 = vst.msk [vmem:[#allocation2 + $0xd0] sm:$0xff] %vm22873_vm5, %v22830_v7 }
 0xd41   :  { %22901 = vst.msk [vmem:[#allocation2 + $0xd8] sm:$0xff] %vm22873_vm5, %v22832_v31  ;;  %25726 = vmatmul.mubr.msk.bf16.gmra.mxu0 %vm146_vm0, %v22949_v4  ;;  %v26354_v31 = vld [vmem:[#allocation3 + $0x48] sm:$0xff] }
 0xd42   :  { %v22930_v47 = vld [vmem:[#allocation2 + $0xc0] sm:$0xff] }
 0xd43   :  { %v22931_v58 = vld [vmem:[#allocation2 + $0xc8] sm:$0xff] }
 0xd44   :  { %v22836_v51 = vpop.permute.xlu1 %22835  ;;  %v22834_v59 = vpop.permute.xlu0 %22833  ;;  %v22950_v52 = vpack.c.bf16 %v22931_v58, %v22930_v47 }
 0xd45   :  { %22903 = vst.msk [vmem:[#allocation2 + $0xe8] sm:$0xff] %vm22873_vm5, %v22836_v51  ;;  %22902 = vst.msk [vmem:[#allocation2 + $0xe0] sm:$0xff] %vm22873_vm5, %v22834_v59 }
 0xd46   :  { %25729 = vmatprep.mubr.msk.bf16.mxu0 %vm146_vm0, %v22950_v52  ;;  %v26355_v52 = vld [vmem:[#allocation3 + $0x70] sm:$0xff] }
 0xd47   :  { %v22932_v5 = vld [vmem:[#allocation2 + $0xd0] sm:$0xff] }
 0xd48   :  { %v22840_v36 = vpop.permute.xlu1 %22839  ;;  %v22838_v44 = vpop.permute.xlu0 %22837  ;;  %v22933_v25 = vld [vmem:[#allocation2 + $0xd8] sm:$0xff] }
 0xd49   :  { %22905 = vst.msk [vmem:[#allocation2 + $0xf8] sm:$0xff] %vm22873_vm5, %v22840_v36  ;;  %22904 = vst.msk [vmem:[#allocation2 + $0xf0] sm:$0xff] %vm22873_vm5, %v22838_v44  ;;  %v22951_v41 = vpack.c.bf16 %v22933_v25, %v22932_v5  ;;  %v26356_v25 = vld [vmem:[#allocation3 + $0x60] sm:$0xff] }
 0xd4b   :  { %25730 = vmatmul.mubr.msk.bf16.gmra.mxu0 %vm146_vm0, %v22951_v41 }
 0xd4c   :  { %v22934_v56 = vld [vmem:[#allocation2 + $0xe0] sm:$0xff]  ;;  %v22935_v14 = vld [vmem:[#allocation2 + $0xe8] sm:$0xff] }
 0xd4d   :  { %v22952_v11 = vpack.c.bf16 %v22935_v14, %v22934_v56 }
 0xd4f   :  { %25733 = vmatprep.mubr.msk.bf16.mxu0 %vm146_vm0, %v22952_v11  ;;  %v26357_v11 = vld [vmem:[#allocation3 + $0x78] sm:$0xff] }
 0xd50   :  { %v22936_v54 = vld [vmem:[#allocation2 + $0xf0] sm:$0xff]  ;;  %v22937_v15 = vld [vmem:[#allocation2 + $0xf8] sm:$0xff] }
 0xd51   :  { %v22953_v19 = vpack.c.bf16 %v22937_v15, %v22936_v54 }
 0xd53   :  { %25734 = vmatmul.mubr.msk.bf16.gmra.mxu0 %vm146_vm0, %v22953_v19  ;;  %v26358_v19 = vld [vmem:[#allocation3 + $0x68] sm:$0xff] }
 0xdcf   :  { %v25707_v33 = vpop.f32.mrf.mxu0 }
 0xdd0   :  { %v23068_v0 = vadd.f32 %v25707_v33, %v31726_v34 }
 0xdd1   :  { %v23059_v26 = vpop.f32.mrf.mxu0 }
 0xdd2   :  { %v23188_v10 = vadd.f32 %v26343_v1, %v23068_v0  ;;  %v23060_v40 = vadd.f32 %v31726_v34, %v23059_v26 }
 0xdd3   :  { %v25708_v43 = vpop.f32.mrf.mxu0 }
 0xdd4   :  { %23220 = vst.msk [vmem:[#allocation14 + $0x10] sm:$0xff] %vm146_vm0, %v23188_v10  ;;  %v23186_v13 = vadd.f32 %v26344_v23, %v23060_v40  ;;  %v23071_v9 = vadd.f32 %v25708_v43, %v31726_v34  ;;  %v26359_v10 = vld [vmem:[#allocation3 + $0x90] sm:$0xff] }
 0xdd5   :  { %v23062_v45 = vpop.f32.mrf.mxu0 }
 0xdd6   :  { %23218 = vst.msk [vmem:[#allocation14] sm:$0xff] %vm146_vm0, %v23186_v13  ;;  %v23189_v18 = vadd.f32 %v26345_v2, %v23071_v9  ;;  %v23063_v38 = vadd.f32 %v31726_v34, %v23062_v45  ;;  %v26360_v13 = vld [vmem:[#allocation3 + $0x80] sm:$0xff] }
 0xdd8   :  { %23221 = vst.msk [vmem:[#allocation14 + $0x18] sm:$0xff] %vm146_vm0, %v23189_v18  ;;  %v23187_v3 = vadd.f32 %v26346_v6, %v23063_v38  ;;  %v26361_v18 = vld [vmem:[#allocation3 + $0x98] sm:$0xff] }
 0xdd9   :  { %v25711_v20 = vpop.f32.mrf.mxu0 }
 0xdda   :  { %23219 = vst.msk [vmem:[#allocation14 + $0x8] sm:$0xff] %vm146_vm0, %v23187_v3  ;;  %v23084_v39 = vadd.f32 %v25711_v20, %v31726_v34  ;;  %v26362_v3 = vld [vmem:[#allocation3 + $0x88] sm:$0xff] }
 0xddb   :  { %v23075_v27 = vpop.f32.mrf.mxu0 }
 0xddc   :  { %v23192_v48 = vadd.f32 %v26347_v12, %v23084_v39  ;;  %v23076_v17 = vadd.f32 %v31726_v34, %v23075_v27 }
 0xddd   :  { %v25712_v49 = vpop.f32.mrf.mxu0 }
 0xdde   :  { %23224 = vst.msk [vmem:[#allocation14 + $0x30] sm:$0xff] %vm146_vm0, %v23192_v48  ;;  %v23190_v16 = vadd.f32 %v26348_v50, %v23076_v17  ;;  %v23087_v60 = vadd.f32 %v25712_v49, %v31726_v34  ;;  %v26363_v48 = vld [vmem:[#allocation3 + $0xb0] sm:$0xff] }
 0xddf   :  { %v23078_v46 = vpop.f32.mrf.mxu0 }
 0xde0   :  { %23222 = vst.msk [vmem:[#allocation14 + $0x20] sm:$0xff] %vm146_vm0, %v23190_v16  ;;  %v23193_v21 = vadd.f32 %v26349_v57, %v23087_v60  ;;  %v23079_v61 = vadd.f32 %v31726_v34, %v23078_v46  ;;  %v26364_v16 = vld [vmem:[#allocation3 + $0xa0] sm:$0xff] }
 0xde2   :  { %23225 = vst.msk [vmem:[#allocation14 + $0x38] sm:$0xff] %vm146_vm0, %v23193_v21  ;;  %v23191_v37 = vadd.f32 %v26350_v42, %v23079_v61  ;;  %v26365_v21 = vld [vmem:[#allocation3 + $0xb8] sm:$0xff] }
 0xde3   :  { %v25715_v28 = vpop.f32.mrf.mxu0 }
 0xde4   :  { %23223 = vst.msk [vmem:[#allocation14 + $0x28] sm:$0xff] %vm146_vm0, %v23191_v37  ;;  %v23100_v24 = vadd.f32 %v25715_v28, %v31726_v34  ;;  %v26366_v37 = vld [vmem:[#allocation3 + $0xa8] sm:$0xff] }
 0xde5   :  { %v23091_v29 = vpop.f32.mrf.mxu0 }
 0xde6   :  { %v23196_v55 = vadd.f32 %v26351_v30, %v23100_v24  ;;  %v23092_v53 = vadd.f32 %v31726_v34, %v23091_v29 }
 0xde7   :  { %v25716_v35 = vpop.f32.mrf.mxu0 }
 0xde8   :  { %23228 = vst.msk [vmem:[#allocation14 + $0x50] sm:$0xff] %vm146_vm0, %v23196_v55  ;;  %v23194_v8 = vadd.f32 %v26352_v63, %v23092_v53  ;;  %v23103_v62 = vadd.f32 %v25716_v35, %v31726_v34  ;;  %v26367_v55 = vld [vmem:[#allocation3 + $0xd0] sm:$0xff] }
 0xde9   :  { %v23094_v22 = vpop.f32.mrf.mxu0 }
 0xdea   :  { %23226 = vst.msk [vmem:[#allocation14 + $0x40] sm:$0xff] %vm146_vm0, %v23194_v8  ;;  %v23197_v7 = vadd.f32 %v26353_v32, %v23103_v62  ;;  %v23095_v4 = vadd.f32 %v31726_v34, %v23094_v22  ;;  %v26368_v8 = vld [vmem:[#allocation3 + $0xc0] sm:$0xff] }
 0xdec   :  { %23229 = vst.msk [vmem:[#allocation14 + $0x58] sm:$0xff] %vm146_vm0, %v23197_v7  ;;  %v23195_v47 = vadd.f32 %v26354_v31, %v23095_v4  ;;  %v26369_v7 = vld [vmem:[#allocation3 + $0xd8] sm:$0xff] }
 0xded   :  { %v25719_v58 = vpop.f32.mrf.mxu0 }
 0xdee   :  { %23227 = vst.msk [vmem:[#allocation14 + $0x48] sm:$0xff] %vm146_vm0, %v23195_v47  ;;  %v23116_v51 = vadd.f32 %v25719_v58, %v31726_v34  ;;  %v26370_v58 = vld [vmem:[#allocation3 + $0xc8] sm:$0xff] }
 0xdef   :  { %v23107_v59 = vpop.f32.mrf.mxu0 }
 0xdf0   :  { %v23200_v5 = vadd.f32 %v26355_v52, %v23116_v51  ;;  %v23108_v36 = vadd.f32 %v31726_v34, %v23107_v59 }
 0xdf1   :  { %v25720_v44 = vpop.f32.mrf.mxu0 }
 0xdf2   :  { %23232 = vst.msk [vmem:[#allocation14 + $0x70] sm:$0xff] %vm146_vm0, %v23200_v5  ;;  %v23198_v41 = vadd.f32 %v26356_v25, %v23108_v36  ;;  %v23119_v56 = vadd.f32 %v25720_v44, %v31726_v34  ;;  %v26371_v5 = vld [vmem:[#allocation3 + $0xf0] sm:$0xff] }
 0xdf3   :  { %v23110_v14 = vpop.f32.mrf.mxu0 }
 0xdf4   :  { %23230 = vst.msk [vmem:[#allocation14 + $0x60] sm:$0xff] %vm146_vm0, %v23198_v41  ;;  %v23201_v54 = vadd.f32 %v26357_v11, %v23119_v56  ;;  %v23111_v15 = vadd.f32 %v31726_v34, %v23110_v14  ;;  %v26372_v41 = vld [vmem:[#allocation3 + $0xe0] sm:$0xff] }
 0xdf6   :  { %23233 = vst.msk [vmem:[#allocation14 + $0x78] sm:$0xff] %vm146_vm0, %v23201_v54  ;;  %v23199_v33 = vadd.f32 %v26358_v19, %v23111_v15  ;;  %v26373_v54 = vld [vmem:[#allocation3 + $0xf8] sm:$0xff] }
 0xdf7   :  { %v25723_v0 = vpop.f32.mrf.mxu0 }
 0xdf8   :  { %23231 = vst.msk [vmem:[#allocation14 + $0x68] sm:$0xff] %vm146_vm0, %v23199_v33  ;;  %v23132_v26 = vadd.f32 %v25723_v0, %v31726_v34  ;;  %v26374_v33 = vld [vmem:[#allocation3 + $0xe8] sm:$0xff] }
 0xdf9   :  { %v23123_v1 = vpop.f32.mrf.mxu0 }
 0xdfa   :  { %v23204_v40 = vadd.f32 %v26359_v10, %v23132_v26  ;;  %v23124_v43 = vadd.f32 %v31726_v34, %v23123_v1 }
 0xdfb   :  { %v25724_v23 = vpop.f32.mrf.mxu0 }
 0xdfc   :  { %23236 = vst.msk [vmem:[#allocation14 + $0x90] sm:$0xff] %vm146_vm0, %v23204_v40  ;;  %v23202_v9 = vadd.f32 %v26360_v13, %v23124_v43  ;;  %v23135_v45 = vadd.f32 %v25724_v23, %v31726_v34 }
 0xdfd   :  { %v23126_v2 = vpop.f32.mrf.mxu0 }
 0xdfe   :  { %23234 = vst.msk [vmem:[#allocation14 + $0x80] sm:$0xff] %vm146_vm0, %v23202_v9  ;;  %v23205_v38 = vadd.f32 %v26361_v18, %v23135_v45  ;;  %v23127_v6 = vadd.f32 %v31726_v34, %v23126_v2 }
 0xe00   :  { %23237 = vst.msk [vmem:[#allocation14 + $0x98] sm:$0xff] %vm146_vm0, %v23205_v38  ;;  %v23203_v20 = vadd.f32 %v26362_v3, %v23127_v6 }
 0xe01   :  { %v25727_v39 = vpop.f32.mrf.mxu0 }
 0xe02   :  { %23235 = vst.msk [vmem:[#allocation14 + $0x88] sm:$0xff] %vm146_vm0, %v23203_v20  ;;  %v23148_v27 = vadd.f32 %v25727_v39, %v31726_v34 }
 0xe03   :  { %v23139_v12 = vpop.f32.mrf.mxu0 }
 0xe04   :  { %v23208_v17 = vadd.f32 %v26363_v48, %v23148_v27  ;;  %v23140_v49 = vadd.f32 %v31726_v34, %v23139_v12 }
 0xe05   :  { %v25728_v50 = vpop.f32.mrf.mxu0 }
 0xe06   :  { %23240 = vst.msk [vmem:[#allocation14 + $0xb0] sm:$0xff] %vm146_vm0, %v23208_v17  ;;  %v23206_v60 = vadd.f32 %v26364_v16, %v23140_v49  ;;  %v23151_v46 = vadd.f32 %v25728_v50, %v31726_v34 }
 0xe07   :  { %v23142_v57 = vpop.f32.mrf.mxu0 }
 0xe08   :  { %23238 = vst.msk [vmem:[#allocation14 + $0xa0] sm:$0xff] %vm146_vm0, %v23206_v60  ;;  %v23209_v61 = vadd.f32 %v26365_v21, %v23151_v46  ;;  %v23143_v42 = vadd.f32 %v31726_v34, %v23142_v57 }
 0xe0a   :  { %23241 = vst.msk [vmem:[#allocation14 + $0xb8] sm:$0xff] %vm146_vm0, %v23209_v61  ;;  %v23207_v28 = vadd.f32 %v26366_v37, %v23143_v42 }
 0xe0b   :  { %v25731_v24 = vpop.f32.mrf.mxu0 }
 0xe0c   :  { %23239 = vst.msk [vmem:[#allocation14 + $0xa8] sm:$0xff] %vm146_vm0, %v23207_v28  ;;  %v23164_v29 = vadd.f32 %v25731_v24, %v31726_v34 }
 0xe0d   :  { %v23155_v30 = vpop.f32.mrf.mxu0 }
 0xe0e   :  { %v23212_v53 = vadd.f32 %v26367_v55, %v23164_v29  ;;  %v23156_v35 = vadd.f32 %v31726_v34, %v23155_v30 }
 0xe0f   :  { %v25732_v63 = vpop.f32.mrf.mxu0 }
 0xe10   :  { %23244 = vst.msk [vmem:[#allocation14 + $0xd0] sm:$0xff] %vm146_vm0, %v23212_v53  ;;  %v23210_v62 = vadd.f32 %v26368_v8, %v23156_v35  ;;  %v23167_v22 = vadd.f32 %v25732_v63, %v31726_v34 }
 0xe11   :  { %v23158_v32 = vpop.f32.mrf.mxu0 }
 0xe12   :  { %23242 = vst.msk [vmem:[#allocation14 + $0xc0] sm:$0xff] %vm146_vm0, %v23210_v62  ;;  %v23213_v4 = vadd.f32 %v26369_v7, %v23167_v22  ;;  %v23159_v31 = vadd.f32 %v31726_v34, %v23158_v32 }
 0xe13   :  { %v25735_v47 = vpop.f32.mrf.mxu0 }
 0xe14   :  { %23245 = vst.msk [vmem:[#allocation14 + $0xd8] sm:$0xff] %vm146_vm0, %v23213_v4  ;;  %v23211_v51 = vadd.f32 %v26370_v58, %v23159_v31  ;;  %v23180_v59 = vadd.f32 %v25735_v47, %v31726_v34 }
 0xe15   :  { %v23171_v52 = vpop.f32.mrf.mxu0 }
 0xe16   :  { %23243 = vst.msk [vmem:[#allocation14 + $0xc8] sm:$0xff] %vm146_vm0, %v23211_v51  ;;  %v23216_v36 = vadd.f32 %v26371_v5, %v23180_v59  ;;  %v23172_v44 = vadd.f32 %v31726_v34, %v23171_v52 }
 0xe17   :  { %v25736_v25 = vpop.f32.mrf.mxu0 }
 0xe18   :  { %23248 = vst.msk [vmem:[#allocation14 + $0xf0] sm:$0xff] %vm146_vm0, %v23216_v36  ;;  %v23214_v56 = vadd.f32 %v26372_v41, %v23172_v44  ;;  %v23183_v14 = vadd.f32 %v25736_v25, %v31726_v34 }
 0xe19   :  { %v23174_v11 = vpop.f32.mrf.mxu0 }
 0xe1a   :  { %23246 = vst.msk [vmem:[#allocation14 + $0xe0] sm:$0xff] %vm146_vm0, %v23214_v56  ;;  %v23217_v15 = vadd.f32 %v26373_v54, %v23183_v14  ;;  %v23175_v19 = vadd.f32 %v31726_v34, %v23174_v11 }
 0xe1c   :  { %23249 = vst.msk [vmem:[#allocation14 + $0xf8] sm:$0xff] %vm146_vm0, %v23217_v15  ;;  %v23215_v0 = vadd.f32 %v26374_v33, %v23175_v19 }
 0xe1e   :  { %23247 = vst.msk [vmem:[#allocation14 + $0xe8] sm:$0xff] %vm146_vm0, %v23215_v0 }
 0xe1f   :  { %26506 = shalt.err (!%p26503_p6)
}
 0xe20   :  { %23261 = dma.vmem_to_hbm [thread:$0]  %s23256_s26, 4096, %s31807_s9, [#allocation5], %s26530_s23, %s26530_s23, %s26531_s24  }
 0xe21   :  { %26523 = dma.done.wait [#allocation5], 4096  }
 0xe22   :  { %26524 = vsyncadd [#allocation5], 4294963200 }
 0xe23   :  { %23265 = vsyncpa [#allocation4], 1 }
 0xe24   :  { %23266 = vsyncpa [#allocation7], 1 }
 0xe25   :  { %23267 = vsyncpa [#allocation10], 1 }
 0xe26   :  { %23268 = vsyncpa [#allocation13], 1 }
 0xe27   :  { %23269 = vsyncpa [#allocation5], 1 }

</bundles_post_ra>
